<compile_context>
chip_gen: v6e
topology: v6e:2x2x1
jax: 0.10.0
libtpu: 0.0.40
codegen_flags: <defaults>
</compile_context>

<pallas_src>
import functools

import jax
import jax.numpy as jnp
from jax.experimental import pallas as pl
from jax.experimental.pallas import tpu as pltpu

EPS = 1e-5
NUM_RES = 9


# ----------------------------------------------------------------------------
# Fused Conv1d (+InstanceNorm) (+ReLU / tanh) — grid over batch
# ----------------------------------------------------------------------------

def _conv_norm_act_kernel(ph_ref, w_ref, b_ref, o_ref, *, K, P, L_out, Cin,
                          norm, act):
    Cout = o_ref.shape[-1]
    ph = ph_ref[0]                                    # (P, Lph, Cin) value
    acc = jnp.zeros((L_out, Cout), jnp.float32) + b_ref[...]
    for k in range(K):                                # tap k reads x_pad[s*l + k]
        r, q = k % P, k // P                          # = phase (k%s), offset k//s
        xk = ph[r, q:q + L_out, :]                    # (L_out, Cin)
        wk = w_ref[k]                                 # (Cin, Cout)
        if Cin == 1:
            acc = acc + xk * wk                       # VPU rank-1 update
        else:
            acc = acc + jnp.dot(xk.astype(jnp.bfloat16),
                                wk.astype(jnp.bfloat16),
                                preferred_element_type=jnp.float32)
    if norm == "instance":                            # per-sample, per-channel
        mean = jnp.mean(acc, axis=0, keepdims=True)
        cen = acc - mean
        var = jnp.mean(cen * cen, axis=0, keepdims=True)
        acc = cen * jax.lax.rsqrt(var + EPS)
    if act == "relu":
        acc = jnp.maximum(acc, 0.0)
    elif act == "tanh":
        acc = jnp.tanh(acc)
    o_ref[0] = acc


def _to_phases(x, pad, stride):
    """(N, L, C) -> (N, stride, Lph, C); phase r, offset q holds x_pad[stride*q + r]."""
    N, L, C = x.shape
    xp = jnp.pad(x, ((0, 0), (pad, pad), (0, 0)))
    Lp = xp.shape[1]
    if stride == 1:
        return xp.reshape(N, 1, Lp, C)
    Lph = -(-Lp // stride)
    xp = jnp.pad(xp, ((0, 0), (0, Lph * stride - Lp), (0, 0)))
    return xp.reshape(N, Lph, stride, C).transpose(0, 2, 1, 3)


def conv_norm_act(x, w, b, *, stride=1, pad=0, norm="instance", act="relu"):
    """Fused Conv1d + optional InstanceNorm + activation.

    x: (N, L, Cin); w: (Cout, Cin, K) (PyTorch layout); b: (Cout,).
    """
    N, L, Cin = x.shape
    Cout, _, K = w.shape
    L_out = (L + 2 * pad - K) // stride + 1
    # Keep the output lane dim MXU/store friendly when Cout is tiny (final
    # conv has Cout=1); the extra channels are zero and sliced off below.
    Cout_k = Cout if Cout >= 8 else 128
    if Cout_k != Cout:
        w = jnp.pad(w, ((0, Cout_k - Cout), (0, 0), (0, 0)))
        b = jnp.pad(b, ((0, Cout_k - Cout),))
    ph = _to_phases(x, pad, stride)
    P, Lph = ph.shape[1], ph.shape[2]
    wk = jnp.transpose(w, (2, 1, 0))                  # (K, Cin, Cout_k)
    out = pl.pallas_call(
        functools.partial(_conv_norm_act_kernel, K=K, P=P, L_out=L_out,
                          Cin=Cin, norm=norm, act=act),
        out_shape=jax.ShapeDtypeStruct((N, L_out, Cout_k), jnp.float32),
        grid=(N,),
        in_specs=[
            pl.BlockSpec((1, P, Lph, Cin), lambda n: (n, 0, 0, 0)),
            pl.BlockSpec((K, Cin, Cout_k), lambda n: (0, 0, 0)),
            pl.BlockSpec((1, Cout_k), lambda n: (0, 0)),
        ],
        out_specs=pl.BlockSpec((1, L_out, Cout_k), lambda n: (n, 0, 0)),
        compiler_params=pltpu.CompilerParams(dimension_semantics=("parallel",)),
    )(ph, wk, b.reshape(1, Cout_k))
    return out if Cout_k == Cout else out[:, :, :Cout]


# ----------------------------------------------------------------------------
# Fused Conv1d + training-mode BatchNorm1d (+residual) + ReLU — residual blocks
# ----------------------------------------------------------------------------

def _conv_bn_relu_kernel(x_ref, w_ref, b_ref, g_ref, be_ref, *rest,
                         K, L_out, add_res):
    if add_res:
        res_ref, o_ref, acc_ref = rest
    else:
        o_ref, acc_ref = rest
    N = x_ref.shape[0]
    C = o_ref.shape[-1]
    # conv (stride 1, "same" padding already applied) per batch element
    for n in range(N):
        xn = x_ref[n]                                 # (L_out + K - 1, C)
        a = jnp.zeros((L_out, C), jnp.float32) + b_ref[...]
        for k in range(K):
            a = a + jnp.dot(xn[k:k + L_out, :].astype(jnp.bfloat16),
                            w_ref[k].astype(jnp.bfloat16),
                            preferred_element_type=jnp.float32)
        acc_ref[n] = a
    # batch statistics over (N, L_out) per channel (train-mode BatchNorm1d)
    cnt = float(N * L_out)
    s = jnp.zeros((1, C), jnp.float32)
    for n in range(N):
        s = s + jnp.sum(acc_ref[n], axis=0, keepdims=True)
    mean = s / cnt
    ss = jnp.zeros((1, C), jnp.float32)
    for n in range(N):
        d = acc_ref[n] - mean
        ss = ss + jnp.sum(d * d, axis=0, keepdims=True)
    var = ss / cnt
    scale = jax.lax.rsqrt(var + EPS) * g_ref[...]
    shift = be_ref[...] - mean * scale
    for n in range(N):
        yn = acc_ref[n] * scale + shift
        if add_res:
            yn = yn + res_ref[n]
        o_ref[n] = jnp.maximum(yn, 0.0)


def conv_bn_relu(x, w, b, gamma, beta, residual=None):
    """Fused Conv1d(k=3, pad=1) + BatchNorm1d(batch stats) (+residual) + ReLU."""
    N, L, C = x.shape
    Cout, _, K = w.shape
    pad = (K - 1) // 2
    xp = jnp.pad(x, ((0, 0), (pad, pad), (0, 0)))
    wk = jnp.transpose(w, (2, 1, 0))                  # (K, C, Cout)
    add_res = residual is not None
    inputs = [xp, wk, b.reshape(1, Cout), gamma.reshape(1, Cout),
              beta.reshape(1, Cout)]
    in_specs = [
        pl.BlockSpec((N, L + 2 * pad, C), lambda i: (0, 0, 0)),
        pl.BlockSpec((K, C, Cout), lambda i: (0, 0, 0)),
        pl.BlockSpec((1, Cout), lambda i: (0, 0)),
        pl.BlockSpec((1, Cout), lambda i: (0, 0)),
        pl.BlockSpec((1, Cout), lambda i: (0, 0)),
    ]
    if add_res:
        inputs.append(residual)
        in_specs.append(pl.BlockSpec((N, L, Cout), lambda i: (0, 0, 0)))
    # TODO(synk): batch statistics need the whole (N, L, C) activation resident
    # in one invocation; for long sequences (or v7x's 64 MiB VMEM) switch to a
    # two-pass sum/sumsq scheme instead of this single-block kernel.
    return pl.pallas_call(
        functools.partial(_conv_bn_relu_kernel, K=K, L_out=L, add_res=add_res),
        out_shape=jax.ShapeDtypeStruct((N, L, Cout), jnp.float32),
        grid=(1,),
        in_specs=in_specs,
        out_specs=pl.BlockSpec((N, L, Cout), lambda i: (0, 0, 0)),
        scratch_shapes=[pltpu.VMEM((N, L, Cout), jnp.float32)],
    )(*inputs)


# ----------------------------------------------------------------------------
# Fused polyphase ConvTranspose1d + InstanceNorm + ReLU — grid over batch
# ----------------------------------------------------------------------------

def _convT_in_relu_kernel(x_ref, w_ref, b_ref, o_ref, *, L):
    x = x_ref[0]                                      # (L + 1, Cin); row L is zero
    x0 = x[0:L, :]                                    # x[j]
    x1 = x[1:L + 1, :]                                # x[j + 1]

    def mm(a, wk):
        return jnp.dot(a.astype(jnp.bfloat16), wk.astype(jnp.bfloat16),
                       preferred_element_type=jnp.float32)

    bias = b_ref[...]
    ye = mm(x0, w_ref[1]) + bias                      # even outputs y[2j]
    yo = mm(x0, w_ref[2]) + mm(x1, w_ref[0]) + bias   # odd outputs  y[2j+1]
    # InstanceNorm over the full output length (2L) per channel
    cnt = float(2 * L)
    mean = (jnp.sum(ye, axis=0, keepdims=True) +
            jnp.sum(yo, axis=0, keepdims=True)) / cnt
    de, do = ye - mean, yo - mean
    var = (jnp.sum(de * de, axis=0, keepdims=True) +
           jnp.sum(do * do, axis=0, keepdims=True)) / cnt
    inv = jax.lax.rsqrt(var + EPS)
    o_ref[0, 0] = jnp.maximum(de * inv, 0.0)
    o_ref[0, 1] = jnp.maximum(do * inv, 0.0)


def conv_transpose_in_relu(x, w_t, b):
    """Fused ConvTranspose1d(k=3, s=2, p=1, output_padding=1) + InstanceNorm + ReLU.

    Polyphase: y[2j] = x[j] @ W[:,:,1]; y[2j+1] = x[j] @ W[:,:,2] + x[j+1] @ W[:,:,0].
    x: (N, L, Cin); w_t: (Cin, Cout, 3) (PyTorch layout); output (N, 2L, Cout).
    """
    N, L, Cin = x.shape
    _, Cout, K = w_t.shape
    x_ext = jnp.pad(x, ((0, 0), (0, 1), (0, 0)))      # append one zero row
    wk = jnp.transpose(w_t, (2, 0, 1))                # (K, Cin, Cout)
    out_ph = pl.pallas_call(
        functools.partial(_convT_in_relu_kernel, L=L),
        out_shape=jax.ShapeDtypeStruct((N, 2, L, Cout), jnp.float32),
        grid=(N,),
        in_specs=[
            pl.BlockSpec((1, L + 1, Cin), lambda n: (n, 0, 0)),
            pl.BlockSpec((K, Cin, Cout), lambda n: (0, 0, 0)),
            pl.BlockSpec((1, Cout), lambda n: (0, 0)),
        ],
        out_specs=pl.BlockSpec((1, 2, L, Cout), lambda n: (n, 0, 0, 0)),
        compiler_params=pltpu.CompilerParams(dimension_semantics=("parallel",)),
    )(x_ext, wk, b.reshape(1, Cout))
    # interleave even/odd phases -> (N, 2L, Cout) (tiny XLA transpose/reshape)
    return out_ph.transpose(0, 2, 1, 3).reshape(N, 2 * L, Cout)


# ----------------------------------------------------------------------------
# Generator: parameters + forward
# ----------------------------------------------------------------------------

def init_params(key, input_channels=1, output_channels=1, num_res=NUM_RES):
    keys = iter(jax.random.split(key, 64))

    def w_init(k, shape, fan_in):
        bound = 1.0 / (fan_in ** 0.5)
        return jax.random.uniform(k, shape, jnp.float32, -bound, bound)

    p = {}
    # initial conv: Conv1d(in_channels, 64, k=7, pad=3)
    p["c0_w"] = w_init(next(keys), (64, input_channels, 7), input_channels * 7)
    p["c0_b"] = w_init(next(keys), (64,), input_channels * 7)
    inf = 64
    # downsampling convs
    for i in range(2):
        outf = inf * 2
        p[f"d{i}_w"] = w_init(next(keys), (outf, inf, 3), inf * 3)
        p[f"d{i}_b"] = w_init(next(keys), (outf,), inf * 3)
        inf = outf
    # residual blocks
    for i in range(num_res):
        p[f"r{i}_c1_w"] = w_init(next(keys), (inf, inf, 3), inf * 3)
        p[f"r{i}_c1_b"] = w_init(next(keys), (inf,), inf * 3)
        p[f"r{i}_bn1_g"] = jnp.ones((inf,), jnp.float32)
        p[f"r{i}_bn1_b"] = jnp.zeros((inf,), jnp.float32)
        p[f"r{i}_c2_w"] = w_init(next(keys), (inf, inf, 3), inf * 3)
        p[f"r{i}_c2_b"] = w_init(next(keys), (inf,), inf * 3)
        p[f"r{i}_bn2_g"] = jnp.ones((inf,), jnp.float32)
        p[f"r{i}_bn2_b"] = jnp.zeros((inf,), jnp.float32)
    # upsampling (ConvTranspose1d weights are (Cin, Cout, K))
    for i in range(2):
        outf = inf // 2
        p[f"u{i}_w"] = w_init(next(keys), (inf, outf, 3), inf * 3)
        p[f"u{i}_b"] = w_init(next(keys), (outf,), inf * 3)
        inf = outf
    # final conv: Conv1d(64, out_channels, k=7, pad=3)
    p["cf_w"] = w_init(next(keys), (output_channels, 64, 7), 64 * 7)
    p["cf_b"] = w_init(next(keys), (output_channels,), 64 * 7)
    return p


def generator_forward(params, x_ncl, num_res=NUM_RES):
    # external layout is (N, C, L) like PyTorch; internal compute is (N, L, C)
    x = jnp.transpose(x_ncl, (0, 2, 1)).astype(jnp.float32)

    # initial conv + InstanceNorm + ReLU (fused)
    x = conv_norm_act(x, params["c0_w"], params["c0_b"], stride=1, pad=3,
                      norm="instance", act="relu")

    # 2x downsampling (conv s=2 + IN + ReLU, fused)
    for i in range(2):
        x = conv_norm_act(x, params[f"d{i}_w"], params[f"d{i}_b"], stride=2,
                          pad=1, norm="instance", act="relu")

    # residual blocks: relu(bn1(conv1(x))) -> bn2(conv2(.)) + x -> relu
    for i in range(num_res):
        res = x
        y = conv_bn_relu(x, params[f"r{i}_c1_w"], params[f"r{i}_c1_b"],
                         params[f"r{i}_bn1_g"], params[f"r{i}_bn1_b"])
        x = conv_bn_relu(y, params[f"r{i}_c2_w"], params[f"r{i}_c2_b"],
                         params[f"r{i}_bn2_g"], params[f"r{i}_bn2_b"],
                         residual=res)

    # 2x upsampling (polyphase ConvTranspose + IN + ReLU, fused)
    for i in range(2):
        x = conv_transpose_in_relu(x, params[f"u{i}_w"], params[f"u{i}_b"])

    # final conv + tanh (fused epilogue)
    x = conv_norm_act(x, params["cf_w"], params["cf_b"], stride=1, pad=3,
                      norm="none", act="tanh")
    return jnp.transpose(x, (0, 2, 1))


if __name__ == "__main__":
    key = jax.random.PRNGKey(0)
    pkey, xkey = jax.random.split(key)
    params = init_params(pkey, input_channels=1, output_channels=1,
                         num_res=NUM_RES)

    # small deterministic input: (batch=2, channels=1, length=16), PyTorch NCL
    x = jax.random.normal(xkey, (2, 1, 16), jnp.float32)

    fwd = jax.jit(functools.partial(generator_forward, num_res=NUM_RES))
    out = fwd(params, x)
    jax.block_until_ready(out)

    assert out.shape == (2, 1, 16), out.shape
    assert bool(jnp.all(jnp.isfinite(out)))
    assert bool(jnp.all(jnp.abs(out) <= 1.0))  # tanh output range
    print("KERNEL_OK")
</pallas_src>

<mosaic_0001>
module attributes {stable_mosaic.version = 11 : i64} {
  func.func @_conv_norm_act_kernel(%arg0: i32, %arg1: memref<1x1x22x1xf32, #tpu.memory_space<vmem>>, %arg2: memref<7x1x64xf32, #tpu.memory_space<vmem>>, %arg3: memref<1x64xf32, #tpu.memory_space<vmem>>, %arg4: memref<1x16x64xf32, #tpu.memory_space<vmem>>) attributes {dimension_semantics = [#tpu.dimension_semantics<parallel>], iteration_bounds = array<i64: 2>, scalar_prefetch = 0 : i64, scratch_operands = 0 : i64, tpu.core_type = #tpu.core_type<tc>, window_params = [{transform_indices = @transform_0, window_bounds = array<i64: 1, 1, 22, 1>}, {pipeline_mode = #tpu.pipeline_mode<synchronous>, transform_indices = @transform_1, window_bounds = array<i64: 7, 1, 64>}, {pipeline_mode = #tpu.pipeline_mode<synchronous>, transform_indices = @transform_2, window_bounds = array<i64: 1, 64>}, {transform_indices = @transform_3, window_bounds = array<i64: 1, 16, 64>}]} {
    %c0 = arith.constant 0 : index
    %c0_0 = arith.constant 0 : index
    %c0_1 = arith.constant 0 : index
    %c0_2 = arith.constant 0 : index
    %0 = vector.load %arg1[%c0, %c0_0, %c0_1, %c0_2] : memref<1x1x22x1xf32, #tpu.memory_space<vmem>>, vector<1x1x22x1xf32>
    %1 = vector.shape_cast %0 : vector<1x1x22x1xf32> to vector<1x22x1xf32>
    %cst = arith.constant 0.000000e+00 : f32
    %2 = vector.broadcast %cst : f32 to vector<16x64xf32>
    %c0_3 = arith.constant 0 : index
    %c0_4 = arith.constant 0 : index
    %3 = vector.load %arg3[%c0_3, %c0_4] : memref<1x64xf32, #tpu.memory_space<vmem>>, vector<1x64xf32>
    %4 = vector.broadcast %3 : vector<1x64xf32> to vector<16x64xf32>
    %5 = arith.addf %2, %4 : vector<16x64xf32>
    %6 = vector.extract_strided_slice %1 {offsets = [0, 0, 0], sizes = [1, 16, 1], strides = [1, 1, 1]} : vector<1x22x1xf32> to vector<1x16x1xf32>
    %7 = vector.shape_cast %6 : vector<1x16x1xf32> to vector<16x1xf32>
    %c0_5 = arith.constant 0 : index
    %c0_6 = arith.constant 0 : index
    %c0_7 = arith.constant 0 : index
    %8 = vector.load %arg2[%c0_5, %c0_6, %c0_7] : memref<7x1x64xf32, #tpu.memory_space<vmem>>, vector<1x1x64xf32>
    %9 = vector.shape_cast %8 : vector<1x1x64xf32> to vector<1x64xf32>
    %10 = vector.broadcast %7 : vector<16x1xf32> to vector<16x64xf32>
    %11 = vector.broadcast %9 : vector<1x64xf32> to vector<16x64xf32>
    %12 = arith.mulf %10, %11 : vector<16x64xf32>
    %13 = arith.addf %5, %12 : vector<16x64xf32>
    %14 = vector.extract_strided_slice %1 {offsets = [0, 1, 0], sizes = [1, 16, 1], strides = [1, 1, 1]} : vector<1x22x1xf32> to vector<1x16x1xf32>
    %15 = vector.shape_cast %14 : vector<1x16x1xf32> to vector<16x1xf32>
    %c1 = arith.constant 1 : index
    %c0_8 = arith.constant 0 : index
    %c0_9 = arith.constant 0 : index
    %16 = vector.load %arg2[%c1, %c0_8, %c0_9] : memref<7x1x64xf32, #tpu.memory_space<vmem>>, vector<1x1x64xf32>
    %17 = vector.shape_cast %16 : vector<1x1x64xf32> to vector<1x64xf32>
    %18 = vector.broadcast %15 : vector<16x1xf32> to vector<16x64xf32>
    %19 = vector.broadcast %17 : vector<1x64xf32> to vector<16x64xf32>
    %20 = arith.mulf %18, %19 : vector<16x64xf32>
    %21 = arith.addf %13, %20 : vector<16x64xf32>
    %22 = vector.extract_strided_slice %1 {offsets = [0, 2, 0], sizes = [1, 16, 1], strides = [1, 1, 1]} : vector<1x22x1xf32> to vector<1x16x1xf32>
    %23 = vector.shape_cast %22 : vector<1x16x1xf32> to vector<16x1xf32>
    %c2 = arith.constant 2 : index
    %c0_10 = arith.constant 0 : index
    %c0_11 = arith.constant 0 : index
    %24 = vector.load %arg2[%c2, %c0_10, %c0_11] : memref<7x1x64xf32, #tpu.memory_space<vmem>>, vector<1x1x64xf32>
    %25 = vector.shape_cast %24 : vector<1x1x64xf32> to vector<1x64xf32>
    %26 = vector.broadcast %23 : vector<16x1xf32> to vector<16x64xf32>
    %27 = vector.broadcast %25 : vector<1x64xf32> to vector<16x64xf32>
    %28 = arith.mulf %26, %27 : vector<16x64xf32>
    %29 = arith.addf %21, %28 : vector<16x64xf32>
    %30 = vector.extract_strided_slice %1 {offsets = [0, 3, 0], sizes = [1, 16, 1], strides = [1, 1, 1]} : vector<1x22x1xf32> to vector<1x16x1xf32>
    %31 = vector.shape_cast %30 : vector<1x16x1xf32> to vector<16x1xf32>
    %c3 = arith.constant 3 : index
    %c0_12 = arith.constant 0 : index
    %c0_13 = arith.constant 0 : index
    %32 = vector.load %arg2[%c3, %c0_12, %c0_13] : memref<7x1x64xf32, #tpu.memory_space<vmem>>, vector<1x1x64xf32>
    %33 = vector.shape_cast %32 : vector<1x1x64xf32> to vector<1x64xf32>
    %34 = vector.broadcast %31 : vector<16x1xf32> to vector<16x64xf32>
    %35 = vector.broadcast %33 : vector<1x64xf32> to vector<16x64xf32>
    %36 = arith.mulf %34, %35 : vector<16x64xf32>
    %37 = arith.addf %29, %36 : vector<16x64xf32>
    %38 = vector.extract_strided_slice %1 {offsets = [0, 4, 0], sizes = [1, 16, 1], strides = [1, 1, 1]} : vector<1x22x1xf32> to vector<1x16x1xf32>
    %39 = vector.shape_cast %38 : vector<1x16x1xf32> to vector<16x1xf32>
    %c4 = arith.constant 4 : index
    %c0_14 = arith.constant 0 : index
    %c0_15 = arith.constant 0 : index
    %40 = vector.load %arg2[%c4, %c0_14, %c0_15] : memref<7x1x64xf32, #tpu.memory_space<vmem>>, vector<1x1x64xf32>
    %41 = vector.shape_cast %40 : vector<1x1x64xf32> to vector<1x64xf32>
    %42 = vector.broadcast %39 : vector<16x1xf32> to vector<16x64xf32>
    %43 = vector.broadcast %41 : vector<1x64xf32> to vector<16x64xf32>
    %44 = arith.mulf %42, %43 : vector<16x64xf32>
    %45 = arith.addf %37, %44 : vector<16x64xf32>
    %46 = vector.extract_strided_slice %1 {offsets = [0, 5, 0], sizes = [1, 16, 1], strides = [1, 1, 1]} : vector<1x22x1xf32> to vector<1x16x1xf32>
    %47 = vector.shape_cast %46 : vector<1x16x1xf32> to vector<16x1xf32>
    %c5 = arith.constant 5 : index
    %c0_16 = arith.constant 0 : index
    %c0_17 = arith.constant 0 : index
    %48 = vector.load %arg2[%c5, %c0_16, %c0_17] : memref<7x1x64xf32, #tpu.memory_space<vmem>>, vector<1x1x64xf32>
    %49 = vector.shape_cast %48 : vector<1x1x64xf32> to vector<1x64xf32>
    %50 = vector.broadcast %47 : vector<16x1xf32> to vector<16x64xf32>
    %51 = vector.broadcast %49 : vector<1x64xf32> to vector<16x64xf32>
    %52 = arith.mulf %50, %51 : vector<16x64xf32>
    %53 = arith.addf %45, %52 : vector<16x64xf32>
    %54 = vector.extract_strided_slice %1 {offsets = [0, 6, 0], sizes = [1, 16, 1], strides = [1, 1, 1]} : vector<1x22x1xf32> to vector<1x16x1xf32>
    %55 = vector.shape_cast %54 : vector<1x16x1xf32> to vector<16x1xf32>
    %c6 = arith.constant 6 : index
    %c0_18 = arith.constant 0 : index
    %c0_19 = arith.constant 0 : index
    %56 = vector.load %arg2[%c6, %c0_18, %c0_19] : memref<7x1x64xf32, #tpu.memory_space<vmem>>, vector<1x1x64xf32>
    %57 = vector.shape_cast %56 : vector<1x1x64xf32> to vector<1x64xf32>
    %58 = vector.broadcast %55 : vector<16x1xf32> to vector<16x64xf32>
    %59 = vector.broadcast %57 : vector<1x64xf32> to vector<16x64xf32>
    %60 = arith.mulf %58, %59 : vector<16x64xf32>
    %61 = arith.addf %53, %60 : vector<16x64xf32>
    %cst_20 = arith.constant dense<0.000000e+00> : vector<64xf32>
    %62 = vector.multi_reduction <add>, %61, %cst_20 [0] : vector<16x64xf32> to vector<64xf32>
    %63 = vector.shape_cast %62 : vector<64xf32> to vector<1x64xf32>
    %cst_21 = arith.constant 1.600000e+01 : f32
    %64 = vector.broadcast %cst_21 : f32 to vector<1x64xf32>
    %65 = arith.divf %63, %64 : vector<1x64xf32>
    %66 = vector.broadcast %65 : vector<1x64xf32> to vector<16x64xf32>
    %67 = arith.subf %61, %66 : vector<16x64xf32>
    %68 = arith.mulf %67, %67 : vector<16x64xf32>
    %cst_22 = arith.constant dense<0.000000e+00> : vector<64xf32>
    %69 = vector.multi_reduction <add>, %68, %cst_22 [0] : vector<16x64xf32> to vector<64xf32>
    %70 = vector.shape_cast %69 : vector<64xf32> to vector<1x64xf32>
    %cst_23 = arith.constant 1.600000e+01 : f32
    %71 = vector.broadcast %cst_23 : f32 to vector<1x64xf32>
    %72 = arith.divf %70, %71 : vector<1x64xf32>
    %cst_24 = arith.constant 9.99999974E-6 : f32
    %73 = vector.broadcast %cst_24 : f32 to vector<1x64xf32>
    %74 = arith.addf %72, %73 : vector<1x64xf32>
    %75 = math.rsqrt %74 : vector<1x64xf32>
    %76 = vector.broadcast %75 : vector<1x64xf32> to vector<16x64xf32>
    %77 = arith.mulf %67, %76 : vector<16x64xf32>
    %cst_25 = arith.constant 0.000000e+00 : f32
    %78 = vector.broadcast %cst_25 : f32 to vector<16x64xf32>
    %79 = arith.maximumf %77, %78 : vector<16x64xf32>
    %c0_26 = arith.constant 0 : index
    %c0_27 = arith.constant 0 : index
    %c0_28 = arith.constant 0 : index
    %80 = vector.load %arg4[%c0_26, %c0_27, %c0_28] : memref<1x16x64xf32, #tpu.memory_space<vmem>>, vector<1x16x64xf32>
    %81 = vector.shape_cast %80 : vector<1x16x64xf32> to vector<16x64xf32>
    %82 = vector.shape_cast %79 : vector<16x64xf32> to vector<1x16x64xf32>
    tpu.vector_store %arg4[%c0_26, %c0_27, %c0_28], %82 {strides = array<i32>} : memref<1x16x64xf32, #tpu.memory_space<vmem>>, vector<1x16x64xf32>,
    return
  }
  func.func @transform_0(%arg0: i32) -> (i32, i32, i32, i32) {
    %c0_i32 = arith.constant 0 : i32
    %c0_i32_0 = arith.constant 0 : i32
    %c0_i32_1 = arith.constant 0 : i32
    %c0_i32_2 = arith.constant 0 : i32
    return %arg0, %c0_i32, %c0_i32_0, %c0_i32_1 : i32, i32, i32, i32
  }
  func.func @transform_1(%arg0: i32) -> (i32, i32, i32) {
    %c0_i32 = arith.constant 0 : i32
    %c0_i32_0 = arith.constant 0 : i32
    %c0_i32_1 = arith.constant 0 : i32
    %c0_i32_2 = arith.constant 0 : i32
    return %c0_i32, %c0_i32_0, %c0_i32_1 : i32, i32, i32
  }
  func.func @transform_2(%arg0: i32) -> (i32, i32) {
    %c0_i32 = arith.constant 0 : i32
    %c0_i32_0 = arith.constant 0 : i32
    %c0_i32_1 = arith.constant 0 : i32
    return %c0_i32, %c0_i32_0 : i32, i32
  }
  func.func @transform_3(%arg0: i32) -> (i32, i32, i32) {
    %c0_i32 = arith.constant 0 : i32
    %c0_i32_0 = arith.constant 0 : i32
    %c0_i32_1 = arith.constant 0 : i32
    return %arg0, %c0_i32, %c0_i32_0 : i32, i32, i32
  }
}

module attributes {stable_mosaic.version = 11 : i64} {
  func.func @_conv_norm_act_kernel(%arg0: i32, %arg1: memref<1x2x9x64xf32, #tpu.memory_space<vmem>>, %arg2: memref<3x64x128xf32, #tpu.memory_space<vmem>>, %arg3: memref<1x128xf32, #tpu.memory_space<vmem>>, %arg4: memref<1x8x128xf32, #tpu.memory_space<vmem>>) attributes {dimension_semantics = [#tpu.dimension_semantics<parallel>], iteration_bounds = array<i64: 2>, scalar_prefetch = 0 : i64, scratch_operands = 0 : i64, tpu.core_type = #tpu.core_type<tc>, window_params = [{transform_indices = @transform_0, window_bounds = array<i64: 1, 2, 9, 64>}, {pipeline_mode = #tpu.pipeline_mode<synchronous>, transform_indices = @transform_1, window_bounds = array<i64: 3, 64, 128>}, {pipeline_mode = #tpu.pipeline_mode<synchronous>, transform_indices = @transform_2, window_bounds = array<i64: 1, 128>}, {transform_indices = @transform_3, window_bounds = array<i64: 1, 8, 128>}]} {
    %c0 = arith.constant 0 : index
    %c0_0 = arith.constant 0 : index
    %c0_1 = arith.constant 0 : index
    %c0_2 = arith.constant 0 : index
    %0 = vector.load %arg1[%c0, %c0_0, %c0_1, %c0_2] : memref<1x2x9x64xf32, #tpu.memory_space<vmem>>, vector<1x2x9x64xf32>
    %1 = vector.shape_cast %0 : vector<1x2x9x64xf32> to vector<2x9x64xf32>
    %cst = arith.constant 0.000000e+00 : f32
    %2 = vector.broadcast %cst : f32 to vector<8x128xf32>
    %c0_3 = arith.constant 0 : index
    %c0_4 = arith.constant 0 : index
    %3 = vector.load %arg3[%c0_3, %c0_4] : memref<1x128xf32, #tpu.memory_space<vmem>>, vector<1x128xf32>
    %4 = vector.broadcast %3 : vector<1x128xf32> to vector<8x128xf32>
    %5 = arith.addf %2, %4 : vector<8x128xf32>
    %6 = vector.extract_strided_slice %1 {offsets = [0, 0, 0], sizes = [1, 8, 64], strides = [1, 1, 1]} : vector<2x9x64xf32> to vector<1x8x64xf32>
    %7 = vector.shape_cast %6 : vector<1x8x64xf32> to vector<8x64xf32>
    %c0_5 = arith.constant 0 : index
    %c0_6 = arith.constant 0 : index
    %c0_7 = arith.constant 0 : index
    %8 = vector.load %arg2[%c0_5, %c0_6, %c0_7] : memref<3x64x128xf32, #tpu.memory_space<vmem>>, vector<1x64x128xf32>
    %9 = vector.shape_cast %8 : vector<1x64x128xf32> to vector<64x128xf32>
    %10 = arith.truncf %7 : vector<8x64xf32> to vector<8x64xbf16>
    %11 = arith.truncf %9 : vector<64x128xf32> to vector<64x128xbf16>
    %cst_8 = arith.constant dense<0.000000e+00> : vector<8x128xf32>
    %12 = tpu.matmul %10, %11, %cst_8 {dimension_numbers = #tpu.dot_dimension_numbers<[1], [0], [0], [1], [0, 0, 1, 1], [], []>} : vector<8x64xbf16>, vector<64x128xbf16>, vector<8x128xf32> -> vector<8x128xf32>
    %13 = arith.addf %5, %12 : vector<8x128xf32>
    %14 = vector.extract_strided_slice %1 {offsets = [1, 0, 0], sizes = [1, 8, 64], strides = [1, 1, 1]} : vector<2x9x64xf32> to vector<1x8x64xf32>
    %15 = vector.shape_cast %14 : vector<1x8x64xf32> to vector<8x64xf32>
    %c1 = arith.constant 1 : index
    %c0_9 = arith.constant 0 : index
    %c0_10 = arith.constant 0 : index
    %16 = vector.load %arg2[%c1, %c0_9, %c0_10] : memref<3x64x128xf32, #tpu.memory_space<vmem>>, vector<1x64x128xf32>
    %17 = vector.shape_cast %16 : vector<1x64x128xf32> to vector<64x128xf32>
    %18 = arith.truncf %15 : vector<8x64xf32> to vector<8x64xbf16>
    %19 = arith.truncf %17 : vector<64x128xf32> to vector<64x128xbf16>
    %cst_11 = arith.constant dense<0.000000e+00> : vector<8x128xf32>
    %20 = tpu.matmul %18, %19, %cst_11 {dimension_numbers = #tpu.dot_dimension_numbers<[1], [0], [0], [1], [0, 0, 1, 1], [], []>} : vector<8x64xbf16>, vector<64x128xbf16>, vector<8x128xf32> -> vector<8x128xf32>
    %21 = arith.addf %13, %20 : vector<8x128xf32>
    %22 = vector.extract_strided_slice %1 {offsets = [0, 1, 0], sizes = [1, 8, 64], strides = [1, 1, 1]} : vector<2x9x64xf32> to vector<1x8x64xf32>
    %23 = vector.shape_cast %22 : vector<1x8x64xf32> to vector<8x64xf32>
    %c2 = arith.constant 2 : index
    %c0_12 = arith.constant 0 : index
    %c0_13 = arith.constant 0 : index
    %24 = vector.load %arg2[%c2, %c0_12, %c0_13] : memref<3x64x128xf32, #tpu.memory_space<vmem>>, vector<1x64x128xf32>
    %25 = vector.shape_cast %24 : vector<1x64x128xf32> to vector<64x128xf32>
    %26 = arith.truncf %23 : vector<8x64xf32> to vector<8x64xbf16>
    %27 = arith.truncf %25 : vector<64x128xf32> to vector<64x128xbf16>
    %cst_14 = arith.constant dense<0.000000e+00> : vector<8x128xf32>
    %28 = tpu.matmul %26, %27, %cst_14 {dimension_numbers = #tpu.dot_dimension_numbers<[1], [0], [0], [1], [0, 0, 1, 1], [], []>} : vector<8x64xbf16>, vector<64x128xbf16>, vector<8x128xf32> -> vector<8x128xf32>
    %29 = arith.addf %21, %28 : vector<8x128xf32>
    %cst_15 = arith.constant dense<0.000000e+00> : vector<128xf32>
    %30 = vector.multi_reduction <add>, %29, %cst_15 [0] : vector<8x128xf32> to vector<128xf32>
    %31 = vector.shape_cast %30 : vector<128xf32> to vector<1x128xf32>
    %cst_16 = arith.constant 8.000000e+00 : f32
    %32 = vector.broadcast %cst_16 : f32 to vector<1x128xf32>
    %33 = arith.divf %31, %32 : vector<1x128xf32>
    %34 = vector.broadcast %33 : vector<1x128xf32> to vector<8x128xf32>
    %35 = arith.subf %29, %34 : vector<8x128xf32>
    %36 = arith.mulf %35, %35 : vector<8x128xf32>
    %cst_17 = arith.constant dense<0.000000e+00> : vector<128xf32>
    %37 = vector.multi_reduction <add>, %36, %cst_17 [0] : vector<8x128xf32> to vector<128xf32>
    %38 = vector.shape_cast %37 : vector<128xf32> to vector<1x128xf32>
    %cst_18 = arith.constant 8.000000e+00 : f32
    %39 = vector.broadcast %cst_18 : f32 to vector<1x128xf32>
    %40 = arith.divf %38, %39 : vector<1x128xf32>
    %cst_19 = arith.constant 9.99999974E-6 : f32
    %41 = vector.broadcast %cst_19 : f32 to vector<1x128xf32>
    %42 = arith.addf %40, %41 : vector<1x128xf32>
    %43 = math.rsqrt %42 : vector<1x128xf32>
    %44 = vector.broadcast %43 : vector<1x128xf32> to vector<8x128xf32>
    %45 = arith.mulf %35, %44 : vector<8x128xf32>
    %cst_20 = arith.constant 0.000000e+00 : f32
    %46 = vector.broadcast %cst_20 : f32 to vector<8x128xf32>
    %47 = arith.maximumf %45, %46 : vector<8x128xf32>
    %c0_21 = arith.constant 0 : index
    %c0_22 = arith.constant 0 : index
    %c0_23 = arith.constant 0 : index
    %48 = vector.load %arg4[%c0_21, %c0_22, %c0_23] : memref<1x8x128xf32, #tpu.memory_space<vmem>>, vector<1x8x128xf32>
    %49 = vector.shape_cast %48 : vector<1x8x128xf32> to vector<8x128xf32>
    %50 = vector.shape_cast %47 : vector<8x128xf32> to vector<1x8x128xf32>
    tpu.vector_store %arg4[%c0_21, %c0_22, %c0_23], %50 {strides = array<i32>} : memref<1x8x128xf32, #tpu.memory_space<vmem>>, vector<1x8x128xf32>,
    return
  }
  func.func @transform_0(%arg0: i32) -> (i32, i32, i32, i32) {
    %c0_i32 = arith.constant 0 : i32
    %c0_i32_0 = arith.constant 0 : i32
    %c0_i32_1 = arith.constant 0 : i32
    %c0_i32_2 = arith.constant 0 : i32
    return %arg0, %c0_i32, %c0_i32_0, %c0_i32_1 : i32, i32, i32, i32
  }
  func.func @transform_1(%arg0: i32) -> (i32, i32, i32) {
    %c0_i32 = arith.constant 0 : i32
    %c0_i32_0 = arith.constant 0 : i32
    %c0_i32_1 = arith.constant 0 : i32
    %c0_i32_2 = arith.constant 0 : i32
    return %c0_i32, %c0_i32_0, %c0_i32_1 : i32, i32, i32
  }
  func.func @transform_2(%arg0: i32) -> (i32, i32) {
    %c0_i32 = arith.constant 0 : i32
    %c0_i32_0 = arith.constant 0 : i32
    %c0_i32_1 = arith.constant 0 : i32
    return %c0_i32, %c0_i32_0 : i32, i32
  }
  func.func @transform_3(%arg0: i32) -> (i32, i32, i32) {
    %c0_i32 = arith.constant 0 : i32
    %c0_i32_0 = arith.constant 0 : i32
    %c0_i32_1 = arith.constant 0 : i32
    return %arg0, %c0_i32, %c0_i32_0 : i32, i32, i32
  }
}

module attributes {stable_mosaic.version = 11 : i64} {
  func.func @_conv_norm_act_kernel(%arg0: i32, %arg1: memref<1x2x5x128xf32, #tpu.memory_space<vmem>>, %arg2: memref<3x128x256xf32, #tpu.memory_space<vmem>>, %arg3: memref<1x256xf32, #tpu.memory_space<vmem>>, %arg4: memref<1x4x256xf32, #tpu.memory_space<vmem>>) attributes {dimension_semantics = [#tpu.dimension_semantics<parallel>], iteration_bounds = array<i64: 2>, scalar_prefetch = 0 : i64, scratch_operands = 0 : i64, tpu.core_type = #tpu.core_type<tc>, window_params = [{transform_indices = @transform_0, window_bounds = array<i64: 1, 2, 5, 128>}, {pipeline_mode = #tpu.pipeline_mode<synchronous>, transform_indices = @transform_1, window_bounds = array<i64: 3, 128, 256>}, {pipeline_mode = #tpu.pipeline_mode<synchronous>, transform_indices = @transform_2, window_bounds = array<i64: 1, 256>}, {transform_indices = @transform_3, window_bounds = array<i64: 1, 4, 256>}]} {
    %c0 = arith.constant 0 : index
    %c0_0 = arith.constant 0 : index
    %c0_1 = arith.constant 0 : index
    %c0_2 = arith.constant 0 : index
    %0 = vector.load %arg1[%c0, %c0_0, %c0_1, %c0_2] : memref<1x2x5x128xf32, #tpu.memory_space<vmem>>, vector<1x2x5x128xf32>
    %1 = vector.shape_cast %0 : vector<1x2x5x128xf32> to vector<2x5x128xf32>
    %cst = arith.constant 0.000000e+00 : f32
    %2 = vector.broadcast %cst : f32 to vector<4x256xf32>
    %c0_3 = arith.constant 0 : index
    %c0_4 = arith.constant 0 : index
    %3 = vector.load %arg3[%c0_3, %c0_4] : memref<1x256xf32, #tpu.memory_space<vmem>>, vector<1x256xf32>
    %4 = vector.broadcast %3 : vector<1x256xf32> to vector<4x256xf32>
    %5 = arith.addf %2, %4 : vector<4x256xf32>
    %6 = vector.extract_strided_slice %1 {offsets = [0, 0, 0], sizes = [1, 4, 128], strides = [1, 1, 1]} : vector<2x5x128xf32> to vector<1x4x128xf32>
    %7 = vector.shape_cast %6 : vector<1x4x128xf32> to vector<4x128xf32>
    %c0_5 = arith.constant 0 : index
    %c0_6 = arith.constant 0 : index
    %c0_7 = arith.constant 0 : index
    %8 = vector.load %arg2[%c0_5, %c0_6, %c0_7] : memref<3x128x256xf32, #tpu.memory_space<vmem>>, vector<1x128x256xf32>
    %9 = vector.shape_cast %8 : vector<1x128x256xf32> to vector<128x256xf32>
    %10 = arith.truncf %7 : vector<4x128xf32> to vector<4x128xbf16>
    %11 = arith.truncf %9 : vector<128x256xf32> to vector<128x256xbf16>
    %cst_8 = arith.constant dense<0.000000e+00> : vector<4x256xf32>
    %12 = tpu.matmul %10, %11, %cst_8 {dimension_numbers = #tpu.dot_dimension_numbers<[1], [0], [0], [1], [0, 0, 1, 1], [], []>} : vector<4x128xbf16>, vector<128x256xbf16>, vector<4x256xf32> -> vector<4x256xf32>
    %13 = arith.addf %5, %12 : vector<4x256xf32>
    %14 = vector.extract_strided_slice %1 {offsets = [1, 0, 0], sizes = [1, 4, 128], strides = [1, 1, 1]} : vector<2x5x128xf32> to vector<1x4x128xf32>
    %15 = vector.shape_cast %14 : vector<1x4x128xf32> to vector<4x128xf32>
    %c1 = arith.constant 1 : index
    %c0_9 = arith.constant 0 : index
    %c0_10 = arith.constant 0 : index
    %16 = vector.load %arg2[%c1, %c0_9, %c0_10] : memref<3x128x256xf32, #tpu.memory_space<vmem>>, vector<1x128x256xf32>
    %17 = vector.shape_cast %16 : vector<1x128x256xf32> to vector<128x256xf32>
    %18 = arith.truncf %15 : vector<4x128xf32> to vector<4x128xbf16>
    %19 = arith.truncf %17 : vector<128x256xf32> to vector<128x256xbf16>
    %cst_11 = arith.constant dense<0.000000e+00> : vector<4x256xf32>
    %20 = tpu.matmul %18, %19, %cst_11 {dimension_numbers = #tpu.dot_dimension_numbers<[1], [0], [0], [1], [0, 0, 1, 1], [], []>} : vector<4x128xbf16>, vector<128x256xbf16>, vector<4x256xf32> -> vector<4x256xf32>
    %21 = arith.addf %13, %20 : vector<4x256xf32>
    %22 = vector.extract_strided_slice %1 {offsets = [0, 1, 0], sizes = [1, 4, 128], strides = [1, 1, 1]} : vector<2x5x128xf32> to vector<1x4x128xf32>
    %23 = vector.shape_cast %22 : vector<1x4x128xf32> to vector<4x128xf32>
    %c2 = arith.constant 2 : index
    %c0_12 = arith.constant 0 : index
    %c0_13 = arith.constant 0 : index
    %24 = vector.load %arg2[%c2, %c0_12, %c0_13] : memref<3x128x256xf32, #tpu.memory_space<vmem>>, vector<1x128x256xf32>
    %25 = vector.shape_cast %24 : vector<1x128x256xf32> to vector<128x256xf32>
    %26 = arith.truncf %23 : vector<4x128xf32> to vector<4x128xbf16>
    %27 = arith.truncf %25 : vector<128x256xf32> to vector<128x256xbf16>
    %cst_14 = arith.constant dense<0.000000e+00> : vector<4x256xf32>
    %28 = tpu.matmul %26, %27, %cst_14 {dimension_numbers = #tpu.dot_dimension_numbers<[1], [0], [0], [1], [0, 0, 1, 1], [], []>} : vector<4x128xbf16>, vector<128x256xbf16>, vector<4x256xf32> -> vector<4x256xf32>
    %29 = arith.addf %21, %28 : vector<4x256xf32>
    %cst_15 = arith.constant dense<0.000000e+00> : vector<256xf32>
    %30 = vector.multi_reduction <add>, %29, %cst_15 [0] : vector<4x256xf32> to vector<256xf32>
    %31 = vector.shape_cast %30 : vector<256xf32> to vector<1x256xf32>
    %cst_16 = arith.constant 4.000000e+00 : f32
    %32 = vector.broadcast %cst_16 : f32 to vector<1x256xf32>
    %33 = arith.divf %31, %32 : vector<1x256xf32>
    %34 = vector.broadcast %33 : vector<1x256xf32> to vector<4x256xf32>
    %35 = arith.subf %29, %34 : vector<4x256xf32>
    %36 = arith.mulf %35, %35 : vector<4x256xf32>
    %cst_17 = arith.constant dense<0.000000e+00> : vector<256xf32>
    %37 = vector.multi_reduction <add>, %36, %cst_17 [0] : vector<4x256xf32> to vector<256xf32>
    %38 = vector.shape_cast %37 : vector<256xf32> to vector<1x256xf32>
    %cst_18 = arith.constant 4.000000e+00 : f32
    %39 = vector.broadcast %cst_18 : f32 to vector<1x256xf32>
    %40 = arith.divf %38, %39 : vector<1x256xf32>
    %cst_19 = arith.constant 9.99999974E-6 : f32
    %41 = vector.broadcast %cst_19 : f32 to vector<1x256xf32>
    %42 = arith.addf %40, %41 : vector<1x256xf32>
    %43 = math.rsqrt %42 : vector<1x256xf32>
    %44 = vector.broadcast %43 : vector<1x256xf32> to vector<4x256xf32>
    %45 = arith.mulf %35, %44 : vector<4x256xf32>
    %cst_20 = arith.constant 0.000000e+00 : f32
    %46 = vector.broadcast %cst_20 : f32 to vector<4x256xf32>
    %47 = arith.maximumf %45, %46 : vector<4x256xf32>
    %c0_21 = arith.constant 0 : index
    %c0_22 = arith.constant 0 : index
    %c0_23 = arith.constant 0 : index
    %48 = vector.load %arg4[%c0_21, %c0_22, %c0_23] : memref<1x4x256xf32, #tpu.memory_space<vmem>>, vector<1x4x256xf32>
    %49 = vector.shape_cast %48 : vector<1x4x256xf32> to vector<4x256xf32>
    %50 = vector.shape_cast %47 : vector<4x256xf32> to vector<1x4x256xf32>
    tpu.vector_store %arg4[%c0_21, %c0_22, %c0_23], %50 {strides = array<i32>} : memref<1x4x256xf32, #tpu.memory_space<vmem>>, vector<1x4x256xf32>,
    return
  }
  func.func @transform_0(%arg0: i32) -> (i32, i32, i32, i32) {
    %c0_i32 = arith.constant 0 : i32
    %c0_i32_0 = arith.constant 0 : i32
    %c0_i32_1 = arith.constant 0 : i32
    %c0_i32_2 = arith.constant 0 : i32
    return %arg0, %c0_i32, %c0_i32_0, %c0_i32_1 : i32, i32, i32, i32
  }
  func.func @transform_1(%arg0: i32) -> (i32, i32, i32) {
    %c0_i32 = arith.constant 0 : i32
    %c0_i32_0 = arith.constant 0 : i32
    %c0_i32_1 = arith.constant 0 : i32
    %c0_i32_2 = arith.constant 0 : i32
    return %c0_i32, %c0_i32_0, %c0_i32_1 : i32, i32, i32
  }
  func.func @transform_2(%arg0: i32) -> (i32, i32) {
    %c0_i32 = arith.constant 0 : i32
    %c0_i32_0 = arith.constant 0 : i32
    %c0_i32_1 = arith.constant 0 : i32
    return %c0_i32, %c0_i32_0 : i32, i32
  }
  func.func @transform_3(%arg0: i32) -> (i32, i32, i32) {
    %c0_i32 = arith.constant 0 : i32
    %c0_i32_0 = arith.constant 0 : i32
    %c0_i32_1 = arith.constant 0 : i32
    return %arg0, %c0_i32, %c0_i32_0 : i32, i32, i32
  }
}

module attributes {stable_mosaic.version = 11 : i64} {
  func.func @_conv_bn_relu_kernel(%arg0: i32, %arg1: memref<2x6x256xf32, #tpu.memory_space<vmem>>, %arg2: memref<3x256x256xf32, #tpu.memory_space<vmem>>, %arg3: memref<1x256xf32, #tpu.memory_space<vmem>>, %arg4: memref<1x256xf32, #tpu.memory_space<vmem>>, %arg5: memref<1x256xf32, #tpu.memory_space<vmem>>, %arg6: memref<2x4x256xf32, #tpu.memory_space<vmem>>, %arg7: memref<2x4x256xf32, #tpu.memory_space<vmem>>) attributes {dimension_semantics = [#tpu.dimension_semantics<arbitrary>], iteration_bounds = array<i64: 1>, scalar_prefetch = 0 : i64, scratch_operands = 1 : i64, tpu.core_type = #tpu.core_type<tc>, window_params = [{pipeline_mode = #tpu.pipeline_mode<synchronous>, transform_indices = @transform_0, window_bounds = array<i64: 2, 6, 256>}, {pipeline_mode = #tpu.pipeline_mode<synchronous>, transform_indices = @transform_1, window_bounds = array<i64: 3, 256, 256>}, {pipeline_mode = #tpu.pipeline_mode<synchronous>, transform_indices = @transform_2, window_bounds = array<i64: 1, 256>}, {pipeline_mode = #tpu.pipeline_mode<synchronous>, transform_indices = @transform_3, window_bounds = array<i64: 1, 256>}, {pipeline_mode = #tpu.pipeline_mode<synchronous>, transform_indices = @transform_4, window_bounds = array<i64: 1, 256>}, {pipeline_mode = #tpu.pipeline_mode<synchronous>, transform_indices = @transform_5, window_bounds = array<i64: 2, 4, 256>}]} {
    %c0 = arith.constant 0 : index
    %c0_0 = arith.constant 0 : index
    %c0_1 = arith.constant 0 : index
    %0 = vector.load %arg1[%c0, %c0_0, %c0_1] : memref<2x6x256xf32, #tpu.memory_space<vmem>>, vector<1x6x256xf32>
    %1 = vector.shape_cast %0 : vector<1x6x256xf32> to vector<6x256xf32>
    %cst = arith.constant 0.000000e+00 : f32
    %2 = vector.broadcast %cst : f32 to vector<4x256xf32>
    %c0_2 = arith.constant 0 : index
    %c0_3 = arith.constant 0 : index
    %3 = vector.load %arg3[%c0_2, %c0_3] : memref<1x256xf32, #tpu.memory_space<vmem>>, vector<1x256xf32>
    %4 = vector.broadcast %3 : vector<1x256xf32> to vector<4x256xf32>
    %5 = arith.addf %2, %4 : vector<4x256xf32>
    %6 = vector.extract_strided_slice %1 {offsets = [0, 0], sizes = [4, 256], strides = [1, 1]} : vector<6x256xf32> to vector<4x256xf32>
    %7 = arith.truncf %6 : vector<4x256xf32> to vector<4x256xbf16>
    %c0_4 = arith.constant 0 : index
    %c0_5 = arith.constant 0 : index
    %c0_6 = arith.constant 0 : index
    %8 = vector.load %arg2[%c0_4, %c0_5, %c0_6] : memref<3x256x256xf32, #tpu.memory_space<vmem>>, vector<1x256x256xf32>
    %9 = vector.shape_cast %8 : vector<1x256x256xf32> to vector<256x256xf32>
    %10 = arith.truncf %9 : vector<256x256xf32> to vector<256x256xbf16>
    %cst_7 = arith.constant dense<0.000000e+00> : vector<4x256xf32>
    %11 = tpu.matmul %7, %10, %cst_7 {dimension_numbers = #tpu.dot_dimension_numbers<[1], [0], [0], [1], [0, 0, 1, 1], [], []>} : vector<4x256xbf16>, vector<256x256xbf16>, vector<4x256xf32> -> vector<4x256xf32>
    %12 = arith.addf %5, %11 : vector<4x256xf32>
    %13 = vector.extract_strided_slice %1 {offsets = [1, 0], sizes = [4, 256], strides = [1, 1]} : vector<6x256xf32> to vector<4x256xf32>
    %14 = arith.truncf %13 : vector<4x256xf32> to vector<4x256xbf16>
    %c1 = arith.constant 1 : index
    %c0_8 = arith.constant 0 : index
    %c0_9 = arith.constant 0 : index
    %15 = vector.load %arg2[%c1, %c0_8, %c0_9] : memref<3x256x256xf32, #tpu.memory_space<vmem>>, vector<1x256x256xf32>
    %16 = vector.shape_cast %15 : vector<1x256x256xf32> to vector<256x256xf32>
    %17 = arith.truncf %16 : vector<256x256xf32> to vector<256x256xbf16>
    %cst_10 = arith.constant dense<0.000000e+00> : vector<4x256xf32>
    %18 = tpu.matmul %14, %17, %cst_10 {dimension_numbers = #tpu.dot_dimension_numbers<[1], [0], [0], [1], [0, 0, 1, 1], [], []>} : vector<4x256xbf16>, vector<256x256xbf16>, vector<4x256xf32> -> vector<4x256xf32>
    %19 = arith.addf %12, %18 : vector<4x256xf32>
    %20 = vector.extract_strided_slice %1 {offsets = [2, 0], sizes = [4, 256], strides = [1, 1]} : vector<6x256xf32> to vector<4x256xf32>
    %21 = arith.truncf %20 : vector<4x256xf32> to vector<4x256xbf16>
    %c2 = arith.constant 2 : index
    %c0_11 = arith.constant 0 : index
    %c0_12 = arith.constant 0 : index
    %22 = vector.load %arg2[%c2, %c0_11, %c0_12] : memref<3x256x256xf32, #tpu.memory_space<vmem>>, vector<1x256x256xf32>
    %23 = vector.shape_cast %22 : vector<1x256x256xf32> to vector<256x256xf32>
    %24 = arith.truncf %23 : vector<256x256xf32> to vector<256x256xbf16>
    %cst_13 = arith.constant dense<0.000000e+00> : vector<4x256xf32>
    %25 = tpu.matmul %21, %24, %cst_13 {dimension_numbers = #tpu.dot_dimension_numbers<[1], [0], [0], [1], [0, 0, 1, 1], [], []>} : vector<4x256xbf16>, vector<256x256xbf16>, vector<4x256xf32> -> vector<4x256xf32>
    %26 = arith.addf %19, %25 : vector<4x256xf32>
    %c0_14 = arith.constant 0 : index
    %c0_15 = arith.constant 0 : index
    %c0_16 = arith.constant 0 : index
    %27 = vector.load %arg7[%c0_14, %c0_15, %c0_16] : memref<2x4x256xf32, #tpu.memory_space<vmem>>, vector<1x4x256xf32>
    %28 = vector.shape_cast %27 : vector<1x4x256xf32> to vector<4x256xf32>
    %29 = vector.shape_cast %26 : vector<4x256xf32> to vector<1x4x256xf32>
    tpu.vector_store %arg7[%c0_14, %c0_15, %c0_16], %29 {strides = array<i32>} : memref<2x4x256xf32, #tpu.memory_space<vmem>>, vector<1x4x256xf32>,
    %c1_17 = arith.constant 1 : index
    %c0_18 = arith.constant 0 : index
    %c0_19 = arith.constant 0 : index
    %30 = vector.load %arg1[%c1_17, %c0_18, %c0_19] : memref<2x6x256xf32, #tpu.memory_space<vmem>>, vector<1x6x256xf32>
    %31 = vector.shape_cast %30 : vector<1x6x256xf32> to vector<6x256xf32>
    %cst_20 = arith.constant 0.000000e+00 : f32
    %32 = vector.broadcast %cst_20 : f32 to vector<4x256xf32>
    %c0_21 = arith.constant 0 : index
    %c0_22 = arith.constant 0 : index
    %33 = vector.load %arg3[%c0_21, %c0_22] : memref<1x256xf32, #tpu.memory_space<vmem>>, vector<1x256xf32>
    %34 = vector.broadcast %33 : vector<1x256xf32> to vector<4x256xf32>
    %35 = arith.addf %32, %34 : vector<4x256xf32>
    %36 = vector.extract_strided_slice %31 {offsets = [0, 0], sizes = [4, 256], strides = [1, 1]} : vector<6x256xf32> to vector<4x256xf32>
    %37 = arith.truncf %36 : vector<4x256xf32> to vector<4x256xbf16>
    %c0_23 = arith.constant 0 : index
    %c0_24 = arith.constant 0 : index
    %c0_25 = arith.constant 0 : index
    %38 = vector.load %arg2[%c0_23, %c0_24, %c0_25] : memref<3x256x256xf32, #tpu.memory_space<vmem>>, vector<1x256x256xf32>
    %39 = vector.shape_cast %38 : vector<1x256x256xf32> to vector<256x256xf32>
    %40 = arith.truncf %39 : vector<256x256xf32> to vector<256x256xbf16>
    %cst_26 = arith.constant dense<0.000000e+00> : vector<4x256xf32>
    %41 = tpu.matmul %37, %40, %cst_26 {dimension_numbers = #tpu.dot_dimension_numbers<[1], [0], [0], [1], [0, 0, 1, 1], [], []>} : vector<4x256xbf16>, vector<256x256xbf16>, vector<4x256xf32> -> vector<4x256xf32>
    %42 = arith.addf %35, %41 : vector<4x256xf32>
    %43 = vector.extract_strided_slice %31 {offsets = [1, 0], sizes = [4, 256], strides = [1, 1]} : vector<6x256xf32> to vector<4x256xf32>
    %44 = arith.truncf %43 : vector<4x256xf32> to vector<4x256xbf16>
    %c1_27 = arith.constant 1 : index
    %c0_28 = arith.constant 0 : index
    %c0_29 = arith.constant 0 : index
    %45 = vector.load %arg2[%c1_27, %c0_28, %c0_29] : memref<3x256x256xf32, #tpu.memory_space<vmem>>, vector<1x256x256xf32>
    %46 = vector.shape_cast %45 : vector<1x256x256xf32> to vector<256x256xf32>
    %47 = arith.truncf %46 : vector<256x256xf32> to vector<256x256xbf16>
    %cst_30 = arith.constant dense<0.000000e+00> : vector<4x256xf32>
    %48 = tpu.matmul %44, %47, %cst_30 {dimension_numbers = #tpu.dot_dimension_numbers<[1], [0], [0], [1], [0, 0, 1, 1], [], []>} : vector<4x256xbf16>, vector<256x256xbf16>, vector<4x256xf32> -> vector<4x256xf32>
    %49 = arith.addf %42, %48 : vector<4x256xf32>
    %50 = vector.extract_strided_slice %31 {offsets = [2, 0], sizes = [4, 256], strides = [1, 1]} : vector<6x256xf32> to vector<4x256xf32>
    %51 = arith.truncf %50 : vector<4x256xf32> to vector<4x256xbf16>
    %c2_31 = arith.constant 2 : index
    %c0_32 = arith.constant 0 : index
    %c0_33 = arith.constant 0 : index
    %52 = vector.load %arg2[%c2_31, %c0_32, %c0_33] : memref<3x256x256xf32, #tpu.memory_space<vmem>>, vector<1x256x256xf32>
    %53 = vector.shape_cast %52 : vector<1x256x256xf32> to vector<256x256xf32>
    %54 = arith.truncf %53 : vector<256x256xf32> to vector<256x256xbf16>
    %cst_34 = arith.constant dense<0.000000e+00> : vector<4x256xf32>
    %55 = tpu.matmul %51, %54, %cst_34 {dimension_numbers = #tpu.dot_dimension_numbers<[1], [0], [0], [1], [0, 0, 1, 1], [], []>} : vector<4x256xbf16>, vector<256x256xbf16>, vector<4x256xf32> -> vector<4x256xf32>
    %56 = arith.addf %49, %55 : vector<4x256xf32>
    %c1_35 = arith.constant 1 : index
    %c0_36 = arith.constant 0 : index
    %c0_37 = arith.constant 0 : index
    %57 = vector.load %arg7[%c1_35, %c0_36, %c0_37] : memref<2x4x256xf32, #tpu.memory_space<vmem>>, vector<1x4x256xf32>
    %58 = vector.shape_cast %57 : vector<1x4x256xf32> to vector<4x256xf32>
    %59 = vector.shape_cast %56 : vector<4x256xf32> to vector<1x4x256xf32>
    tpu.vector_store %arg7[%c1_35, %c0_36, %c0_37], %59 {strides = array<i32>} : memref<2x4x256xf32, #tpu.memory_space<vmem>>, vector<1x4x256xf32>,
    %cst_38 = arith.constant 0.000000e+00 : f32
    %60 = vector.broadcast %cst_38 : f32 to vector<1x256xf32>
    %c0_39 = arith.constant 0 : index
    %c0_40 = arith.constant 0 : index
    %c0_41 = arith.constant 0 : index
    %61 = vector.load %arg7[%c0_39, %c0_40, %c0_41] : memref<2x4x256xf32, #tpu.memory_space<vmem>>, vector<1x4x256xf32>
    %62 = vector.shape_cast %61 : vector<1x4x256xf32> to vector<4x256xf32>
    %cst_42 = arith.constant dense<0.000000e+00> : vector<256xf32>
    %63 = vector.multi_reduction <add>, %62, %cst_42 [0] : vector<4x256xf32> to vector<256xf32>
    %64 = vector.shape_cast %63 : vector<256xf32> to vector<1x256xf32>
    %65 = arith.addf %60, %64 : vector<1x256xf32>
    %c1_43 = arith.constant 1 : index
    %c0_44 = arith.constant 0 : index
    %c0_45 = arith.constant 0 : index
    %66 = vector.load %arg7[%c1_43, %c0_44, %c0_45] : memref<2x4x256xf32, #tpu.memory_space<vmem>>, vector<1x4x256xf32>
    %67 = vector.shape_cast %66 : vector<1x4x256xf32> to vector<4x256xf32>
    %cst_46 = arith.constant dense<0.000000e+00> : vector<256xf32>
    %68 = vector.multi_reduction <add>, %67, %cst_46 [0] : vector<4x256xf32> to vector<256xf32>
    %69 = vector.shape_cast %68 : vector<256xf32> to vector<1x256xf32>
    %70 = arith.addf %65, %69 : vector<1x256xf32>
    %cst_47 = arith.constant 8.000000e+00 : f32
    %71 = vector.broadcast %cst_47 : f32 to vector<1x256xf32>
    %72 = arith.divf %70, %71 : vector<1x256xf32>
    %cst_48 = arith.constant 0.000000e+00 : f32
    %73 = vector.broadcast %cst_48 : f32 to vector<1x256xf32>
    %c0_49 = arith.constant 0 : index
    %c0_50 = arith.constant 0 : index
    %c0_51 = arith.constant 0 : index
    %74 = vector.load %arg7[%c0_49, %c0_50, %c0_51] : memref<2x4x256xf32, #tpu.memory_space<vmem>>, vector<1x4x256xf32>
    %75 = vector.shape_cast %74 : vector<1x4x256xf32> to vector<4x256xf32>
    %76 = vector.broadcast %72 : vector<1x256xf32> to vector<4x256xf32>
    %77 = arith.subf %75, %76 : vector<4x256xf32>
    %78 = arith.mulf %77, %77 : vector<4x256xf32>
    %cst_52 = arith.constant dense<0.000000e+00> : vector<256xf32>
    %79 = vector.multi_reduction <add>, %78, %cst_52 [0] : vector<4x256xf32> to vector<256xf32>
    %80 = vector.shape_cast %79 : vector<256xf32> to vector<1x256xf32>
    %81 = arith.addf %73, %80 : vector<1x256xf32>
    %c1_53 = arith.constant 1 : index
    %c0_54 = arith.constant 0 : index
    %c0_55 = arith.constant 0 : index
    %82 = vector.load %arg7[%c1_53, %c0_54, %c0_55] : memref<2x4x256xf32, #tpu.memory_space<vmem>>, vector<1x4x256xf32>
    %83 = vector.shape_cast %82 : vector<1x4x256xf32> to vector<4x256xf32>
    %84 = vector.broadcast %72 : vector<1x256xf32> to vector<4x256xf32>
    %85 = arith.subf %83, %84 : vector<4x256xf32>
    %86 = arith.mulf %85, %85 : vector<4x256xf32>
    %cst_56 = arith.constant dense<0.000000e+00> : vector<256xf32>
    %87 = vector.multi_reduction <add>, %86, %cst_56 [0] : vector<4x256xf32> to vector<256xf32>
    %88 = vector.shape_cast %87 : vector<256xf32> to vector<1x256xf32>
    %89 = arith.addf %81, %88 : vector<1x256xf32>
    %cst_57 = arith.constant 8.000000e+00 : f32
    %90 = vector.broadcast %cst_57 : f32 to vector<1x256xf32>
    %91 = arith.divf %89, %90 : vector<1x256xf32>
    %cst_58 = arith.constant 9.99999974E-6 : f32
    %92 = vector.broadcast %cst_58 : f32 to vector<1x256xf32>
    %93 = arith.addf %91, %92 : vector<1x256xf32>
    %94 = math.rsqrt %93 : vector<1x256xf32>
    %c0_59 = arith.constant 0 : index
    %c0_60 = arith.constant 0 : index
    %95 = vector.load %arg4[%c0_59, %c0_60] : memref<1x256xf32, #tpu.memory_space<vmem>>, vector<1x256xf32>
    %96 = arith.mulf %94, %95 : vector<1x256xf32>
    %c0_61 = arith.constant 0 : index
    %c0_62 = arith.constant 0 : index
    %97 = vector.load %arg5[%c0_61, %c0_62] : memref<1x256xf32, #tpu.memory_space<vmem>>, vector<1x256xf32>
    %98 = arith.mulf %72, %96 : vector<1x256xf32>
    %99 = arith.subf %97, %98 : vector<1x256xf32>
    %c0_63 = arith.constant 0 : index
    %c0_64 = arith.constant 0 : index
    %c0_65 = arith.constant 0 : index
    %100 = vector.load %arg7[%c0_63, %c0_64, %c0_65] : memref<2x4x256xf32, #tpu.memory_space<vmem>>, vector<1x4x256xf32>
    %101 = vector.shape_cast %100 : vector<1x4x256xf32> to vector<4x256xf32>
    %102 = vector.broadcast %96 : vector<1x256xf32> to vector<4x256xf32>
    %103 = arith.mulf %101, %102 : vector<4x256xf32>
    %104 = vector.broadcast %99 : vector<1x256xf32> to vector<4x256xf32>
    %105 = arith.addf %103, %104 : vector<4x256xf32>
    %cst_66 = arith.constant 0.000000e+00 : f32
    %106 = vector.broadcast %cst_66 : f32 to vector<4x256xf32>
    %107 = arith.maximumf %105, %106 : vector<4x256xf32>
    %c0_67 = arith.constant 0 : index
    %c0_68 = arith.constant 0 : index
    %c0_69 = arith.constant 0 : index
    %108 = vector.load %arg6[%c0_67, %c0_68, %c0_69] : memref<2x4x256xf32, #tpu.memory_space<vmem>>, vector<1x4x256xf32>
    %109 = vector.shape_cast %108 : vector<1x4x256xf32> to vector<4x256xf32>
    %110 = vector.shape_cast %107 : vector<4x256xf32> to vector<1x4x256xf32>
    tpu.vector_store %arg6[%c0_67, %c0_68, %c0_69], %110 {strides = array<i32>} : memref<2x4x256xf32, #tpu.memory_space<vmem>>, vector<1x4x256xf32>,
    %c1_70 = arith.constant 1 : index
    %c0_71 = arith.constant 0 : index
    %c0_72 = arith.constant 0 : index
    %111 = vector.load %arg7[%c1_70, %c0_71, %c0_72] : memref<2x4x256xf32, #tpu.memory_space<vmem>>, vector<1x4x256xf32>
    %112 = vector.shape_cast %111 : vector<1x4x256xf32> to vector<4x256xf32>
    %113 = vector.broadcast %96 : vector<1x256xf32> to vector<4x256xf32>
    %114 = arith.mulf %112, %113 : vector<4x256xf32>
    %115 = vector.broadcast %99 : vector<1x256xf32> to vector<4x256xf32>
    %116 = arith.addf %114, %115 : vector<4x256xf32>
    %cst_73 = arith.constant 0.000000e+00 : f32
    %117 = vector.broadcast %cst_73 : f32 to vector<4x256xf32>
    %118 = arith.maximumf %116, %117 : vector<4x256xf32>
    %c1_74 = arith.constant 1 : index
    %c0_75 = arith.constant 0 : index
    %c0_76 = arith.constant 0 : index
    %119 = vector.load %arg6[%c1_74, %c0_75, %c0_76] : memref<2x4x256xf32, #tpu.memory_space<vmem>>, vector<1x4x256xf32>
    %120 = vector.shape_cast %119 : vector<1x4x256xf32> to vector<4x256xf32>
    %121 = vector.shape_cast %118 : vector<4x256xf32> to vector<1x4x256xf32>
    tpu.vector_store %arg6[%c1_74, %c0_75, %c0_76], %121 {strides = array<i32>} : memref<2x4x256xf32, #tpu.memory_space<vmem>>, vector<1x4x256xf32>,
    return
  }
  func.func @transform_0(%arg0: i32) -> (i32, i32, i32) {
    %c0_i32 = arith.constant 0 : i32
    %c0_i32_0 = arith.constant 0 : i32
    %c0_i32_1 = arith.constant 0 : i32
    %c0_i32_2 = arith.constant 0 : i32
    return %c0_i32, %c0_i32_0, %c0_i32_1 : i32, i32, i32
  }
  func.func @transform_1(%arg0: i32) -> (i32, i32, i32) {
    %c0_i32 = arith.constant 0 : i32
    %c0_i32_0 = arith.constant 0 : i32
    %c0_i32_1 = arith.constant 0 : i32
    %c0_i32_2 = arith.constant 0 : i32
    return %c0_i32, %c0_i32_0, %c0_i32_1 : i32, i32, i32
  }
  func.func @transform_2(%arg0: i32) -> (i32, i32) {
    %c0_i32 = arith.constant 0 : i32
    %c0_i32_0 = arith.constant 0 : i32
    %c0_i32_1 = arith.constant 0 : i32
    return %c0_i32, %c0_i32_0 : i32, i32
  }
  func.func @transform_3(%arg0: i32) -> (i32, i32) {
    %c0_i32 = arith.constant 0 : i32
    %c0_i32_0 = arith.constant 0 : i32
    %c0_i32_1 = arith.constant 0 : i32
    return %c0_i32, %c0_i32_0 : i32, i32
  }
  func.func @transform_4(%arg0: i32) -> (i32, i32) {
    %c0_i32 = arith.constant 0 : i32
    %c0_i32_0 = arith.constant 0 : i32
    %c0_i32_1 = arith.constant 0 : i32
    return %c0_i32, %c0_i32_0 : i32, i32
  }
  func.func @transform_5(%arg0: i32) -> (i32, i32, i32) {
    %c0_i32 = arith.constant 0 : i32
    %c0_i32_0 = arith.constant 0 : i32
    %c0_i32_1 = arith.constant 0 : i32
    %c0_i32_2 = arith.constant 0 : i32
    return %c0_i32, %c0_i32_0, %c0_i32_1 : i32, i32, i32
  }
}

module attributes {stable_mosaic.version = 11 : i64} {
  func.func @_convT_in_relu_kernel(%arg0: i32, %arg1: memref<1x5x256xf32, #tpu.memory_space<vmem>>, %arg2: memref<3x256x128xf32, #tpu.memory_space<vmem>>, %arg3: memref<1x128xf32, #tpu.memory_space<vmem>>, %arg4: memref<1x2x4x128xf32, #tpu.memory_space<vmem>>) attributes {dimension_semantics = [#tpu.dimension_semantics<parallel>], iteration_bounds = array<i64: 2>, scalar_prefetch = 0 : i64, scratch_operands = 0 : i64, tpu.core_type = #tpu.core_type<tc>, window_params = [{transform_indices = @transform_0, window_bounds = array<i64: 1, 5, 256>}, {pipeline_mode = #tpu.pipeline_mode<synchronous>, transform_indices = @transform_1, window_bounds = array<i64: 3, 256, 128>}, {pipeline_mode = #tpu.pipeline_mode<synchronous>, transform_indices = @transform_2, window_bounds = array<i64: 1, 128>}, {transform_indices = @transform_3, window_bounds = array<i64: 1, 2, 4, 128>}]} {
    %c0 = arith.constant 0 : index
    %c0_0 = arith.constant 0 : index
    %c0_1 = arith.constant 0 : index
    %0 = vector.load %arg1[%c0, %c0_0, %c0_1] : memref<1x5x256xf32, #tpu.memory_space<vmem>>, vector<1x5x256xf32>
    %1 = vector.shape_cast %0 : vector<1x5x256xf32> to vector<5x256xf32>
    %2 = vector.extract_strided_slice %1 {offsets = [0, 0], sizes = [4, 256], strides = [1, 1]} : vector<5x256xf32> to vector<4x256xf32>
    %3 = vector.extract_strided_slice %1 {offsets = [1, 0], sizes = [4, 256], strides = [1, 1]} : vector<5x256xf32> to vector<4x256xf32>
    %c0_2 = arith.constant 0 : index
    %c0_3 = arith.constant 0 : index
    %4 = vector.load %arg3[%c0_2, %c0_3] : memref<1x128xf32, #tpu.memory_space<vmem>>, vector<1x128xf32>
    %c1 = arith.constant 1 : index
    %c0_4 = arith.constant 0 : index
    %c0_5 = arith.constant 0 : index
    %5 = vector.load %arg2[%c1, %c0_4, %c0_5] : memref<3x256x128xf32, #tpu.memory_space<vmem>>, vector<1x256x128xf32>
    %6 = vector.shape_cast %5 : vector<1x256x128xf32> to vector<256x128xf32>
    %7 = arith.truncf %2 : vector<4x256xf32> to vector<4x256xbf16>
    %8 = arith.truncf %6 : vector<256x128xf32> to vector<256x128xbf16>
    %cst = arith.constant dense<0.000000e+00> : vector<4x128xf32>
    %9 = tpu.matmul %7, %8, %cst {dimension_numbers = #tpu.dot_dimension_numbers<[1], [0], [0], [1], [0, 0, 1, 1], [], []>} : vector<4x256xbf16>, vector<256x128xbf16>, vector<4x128xf32> -> vector<4x128xf32>
    %10 = vector.broadcast %4 : vector<1x128xf32> to vector<4x128xf32>
    %11 = arith.addf %9, %10 : vector<4x128xf32>
    %c2 = arith.constant 2 : index
    %c0_6 = arith.constant 0 : index
    %c0_7 = arith.constant 0 : index
    %12 = vector.load %arg2[%c2, %c0_6, %c0_7] : memref<3x256x128xf32, #tpu.memory_space<vmem>>, vector<1x256x128xf32>
    %13 = vector.shape_cast %12 : vector<1x256x128xf32> to vector<256x128xf32>
    %14 = arith.truncf %2 : vector<4x256xf32> to vector<4x256xbf16>
    %15 = arith.truncf %13 : vector<256x128xf32> to vector<256x128xbf16>
    %cst_8 = arith.constant dense<0.000000e+00> : vector<4x128xf32>
    %16 = tpu.matmul %14, %15, %cst_8 {dimension_numbers = #tpu.dot_dimension_numbers<[1], [0], [0], [1], [0, 0, 1, 1], [], []>} : vector<4x256xbf16>, vector<256x128xbf16>, vector<4x128xf32> -> vector<4x128xf32>
    %c0_9 = arith.constant 0 : index
    %c0_10 = arith.constant 0 : index
    %c0_11 = arith.constant 0 : index
    %17 = vector.load %arg2[%c0_9, %c0_10, %c0_11] : memref<3x256x128xf32, #tpu.memory_space<vmem>>, vector<1x256x128xf32>
    %18 = vector.shape_cast %17 : vector<1x256x128xf32> to vector<256x128xf32>
    %19 = arith.truncf %3 : vector<4x256xf32> to vector<4x256xbf16>
    %20 = arith.truncf %18 : vector<256x128xf32> to vector<256x128xbf16>
    %cst_12 = arith.constant dense<0.000000e+00> : vector<4x128xf32>
    %21 = tpu.matmul %19, %20, %cst_12 {dimension_numbers = #tpu.dot_dimension_numbers<[1], [0], [0], [1], [0, 0, 1, 1], [], []>} : vector<4x256xbf16>, vector<256x128xbf16>, vector<4x128xf32> -> vector<4x128xf32>
    %22 = arith.addf %16, %21 : vector<4x128xf32>
    %23 = vector.broadcast %4 : vector<1x128xf32> to vector<4x128xf32>
    %24 = arith.addf %22, %23 : vector<4x128xf32>
    %cst_13 = arith.constant dense<0.000000e+00> : vector<128xf32>
    %25 = vector.multi_reduction <add>, %11, %cst_13 [0] : vector<4x128xf32> to vector<128xf32>
    %26 = vector.shape_cast %25 : vector<128xf32> to vector<1x128xf32>
    %cst_14 = arith.constant dense<0.000000e+00> : vector<128xf32>
    %27 = vector.multi_reduction <add>, %24, %cst_14 [0] : vector<4x128xf32> to vector<128xf32>
    %28 = vector.shape_cast %27 : vector<128xf32> to vector<1x128xf32>
    %29 = arith.addf %26, %28 : vector<1x128xf32>
    %cst_15 = arith.constant 8.000000e+00 : f32
    %30 = vector.broadcast %cst_15 : f32 to vector<1x128xf32>
    %31 = arith.divf %29, %30 : vector<1x128xf32>
    %32 = vector.broadcast %31 : vector<1x128xf32> to vector<4x128xf32>
    %33 = arith.subf %11, %32 : vector<4x128xf32>
    %34 = vector.broadcast %31 : vector<1x128xf32> to vector<4x128xf32>
    %35 = arith.subf %24, %34 : vector<4x128xf32>
    %36 = arith.mulf %33, %33 : vector<4x128xf32>
    %cst_16 = arith.constant dense<0.000000e+00> : vector<128xf32>
    %37 = vector.multi_reduction <add>, %36, %cst_16 [0] : vector<4x128xf32> to vector<128xf32>
    %38 = vector.shape_cast %37 : vector<128xf32> to vector<1x128xf32>
    %39 = arith.mulf %35, %35 : vector<4x128xf32>
    %cst_17 = arith.constant dense<0.000000e+00> : vector<128xf32>
    %40 = vector.multi_reduction <add>, %39, %cst_17 [0] : vector<4x128xf32> to vector<128xf32>
    %41 = vector.shape_cast %40 : vector<128xf32> to vector<1x128xf32>
    %42 = arith.addf %38, %41 : vector<1x128xf32>
    %cst_18 = arith.constant 8.000000e+00 : f32
    %43 = vector.broadcast %cst_18 : f32 to vector<1x128xf32>
    %44 = arith.divf %42, %43 : vector<1x128xf32>
    %cst_19 = arith.constant 9.99999974E-6 : f32
    %45 = vector.broadcast %cst_19 : f32 to vector<1x128xf32>
    %46 = arith.addf %44, %45 : vector<1x128xf32>
    %47 = math.rsqrt %46 : vector<1x128xf32>
    %48 = vector.broadcast %47 : vector<1x128xf32> to vector<4x128xf32>
    %49 = arith.mulf %33, %48 : vector<4x128xf32>
    %cst_20 = arith.constant 0.000000e+00 : f32
    %50 = vector.broadcast %cst_20 : f32 to vector<4x128xf32>
    %51 = arith.maximumf %49, %50 : vector<4x128xf32>
    %c0_21 = arith.constant 0 : index
    %c0_22 = arith.constant 0 : index
    %c0_23 = arith.constant 0 : index
    %c0_24 = arith.constant 0 : index
    %52 = vector.load %arg4[%c0_21, %c0_22, %c0_23, %c0_24] : memref<1x2x4x128xf32, #tpu.memory_space<vmem>>, vector<1x1x4x128xf32>
    %53 = vector.shape_cast %52 : vector<1x1x4x128xf32> to vector<4x128xf32>
    %54 = vector.shape_cast %51 : vector<4x128xf32> to vector<1x1x4x128xf32>
    tpu.vector_store %arg4[%c0_21, %c0_22, %c0_23, %c0_24], %54 {strides = array<i32>} : memref<1x2x4x128xf32, #tpu.memory_space<vmem>>, vector<1x1x4x128xf32>,
    %55 = vector.broadcast %47 : vector<1x128xf32> to vector<4x128xf32>
    %56 = arith.mulf %35, %55 : vector<4x128xf32>
    %cst_25 = arith.constant 0.000000e+00 : f32
    %57 = vector.broadcast %cst_25 : f32 to vector<4x128xf32>
    %58 = arith.maximumf %56, %57 : vector<4x128xf32>
    %c0_26 = arith.constant 0 : index
    %c1_27 = arith.constant 1 : index
    %c0_28 = arith.constant 0 : index
    %c0_29 = arith.constant 0 : index
    %59 = vector.load %arg4[%c0_26, %c1_27, %c0_28, %c0_29] : memref<1x2x4x128xf32, #tpu.memory_space<vmem>>, vector<1x1x4x128xf32>
    %60 = vector.shape_cast %59 : vector<1x1x4x128xf32> to vector<4x128xf32>
    %61 = vector.shape_cast %58 : vector<4x128xf32> to vector<1x1x4x128xf32>
    tpu.vector_store %arg4[%c0_26, %c1_27, %c0_28, %c0_29], %61 {strides = array<i32>} : memref<1x2x4x128xf32, #tpu.memory_space<vmem>>, vector<1x1x4x128xf32>,
    return
  }
  func.func @transform_0(%arg0: i32) -> (i32, i32, i32) {
    %c0_i32 = arith.constant 0 : i32
    %c0_i32_0 = arith.constant 0 : i32
    %c0_i32_1 = arith.constant 0 : i32
    return %arg0, %c0_i32, %c0_i32_0 : i32, i32, i32
  }
  func.func @transform_1(%arg0: i32) -> (i32, i32, i32) {
    %c0_i32 = arith.constant 0 : i32
    %c0_i32_0 = arith.constant 0 : i32
    %c0_i32_1 = arith.constant 0 : i32
    %c0_i32_2 = arith.constant 0 : i32
    return %c0_i32, %c0_i32_0, %c0_i32_1 : i32, i32, i32
  }
  func.func @transform_2(%arg0: i32) -> (i32, i32) {
    %c0_i32 = arith.constant 0 : i32
    %c0_i32_0 = arith.constant 0 : i32
    %c0_i32_1 = arith.constant 0 : i32
    return %c0_i32, %c0_i32_0 : i32, i32
  }
  func.func @transform_3(%arg0: i32) -> (i32, i32, i32, i32) {
    %c0_i32 = arith.constant 0 : i32
    %c0_i32_0 = arith.constant 0 : i32
    %c0_i32_1 = arith.constant 0 : i32
    %c0_i32_2 = arith.constant 0 : i32
    return %arg0, %c0_i32, %c0_i32_0, %c0_i32_1 : i32, i32, i32, i32
  }
}

module attributes {stable_mosaic.version = 11 : i64} {
  func.func @_conv_bn_relu_kernel(%arg0: i32, %arg1: memref<2x6x256xf32, #tpu.memory_space<vmem>>, %arg2: memref<3x256x256xf32, #tpu.memory_space<vmem>>, %arg3: memref<1x256xf32, #tpu.memory_space<vmem>>, %arg4: memref<1x256xf32, #tpu.memory_space<vmem>>, %arg5: memref<1x256xf32, #tpu.memory_space<vmem>>, %arg6: memref<2x4x256xf32, #tpu.memory_space<vmem>>, %arg7: memref<2x4x256xf32, #tpu.memory_space<vmem>>, %arg8: memref<2x4x256xf32, #tpu.memory_space<vmem>>) attributes {dimension_semantics = [#tpu.dimension_semantics<arbitrary>], iteration_bounds = array<i64: 1>, scalar_prefetch = 0 : i64, scratch_operands = 1 : i64, tpu.core_type = #tpu.core_type<tc>, window_params = [{pipeline_mode = #tpu.pipeline_mode<synchronous>, transform_indices = @transform_0, window_bounds = array<i64: 2, 6, 256>}, {pipeline_mode = #tpu.pipeline_mode<synchronous>, transform_indices = @transform_1, window_bounds = array<i64: 3, 256, 256>}, {pipeline_mode = #tpu.pipeline_mode<synchronous>, transform_indices = @transform_2, window_bounds = array<i64: 1, 256>}, {pipeline_mode = #tpu.pipeline_mode<synchronous>, transform_indices = @transform_3, window_bounds = array<i64: 1, 256>}, {pipeline_mode = #tpu.pipeline_mode<synchronous>, transform_indices = @transform_4, window_bounds = array<i64: 1, 256>}, {pipeline_mode = #tpu.pipeline_mode<synchronous>, transform_indices = @transform_5, window_bounds = array<i64: 2, 4, 256>}, {pipeline_mode = #tpu.pipeline_mode<synchronous>, transform_indices = @transform_6, window_bounds = array<i64: 2, 4, 256>}]} {
    %c0 = arith.constant 0 : index
    %c0_0 = arith.constant 0 : index
    %c0_1 = arith.constant 0 : index
    %0 = vector.load %arg1[%c0, %c0_0, %c0_1] : memref<2x6x256xf32, #tpu.memory_space<vmem>>, vector<1x6x256xf32>
    %1 = vector.shape_cast %0 : vector<1x6x256xf32> to vector<6x256xf32>
    %cst = arith.constant 0.000000e+00 : f32
    %2 = vector.broadcast %cst : f32 to vector<4x256xf32>
    %c0_2 = arith.constant 0 : index
    %c0_3 = arith.constant 0 : index
    %3 = vector.load %arg3[%c0_2, %c0_3] : memref<1x256xf32, #tpu.memory_space<vmem>>, vector<1x256xf32>
    %4 = vector.broadcast %3 : vector<1x256xf32> to vector<4x256xf32>
    %5 = arith.addf %2, %4 : vector<4x256xf32>
    %6 = vector.extract_strided_slice %1 {offsets = [0, 0], sizes = [4, 256], strides = [1, 1]} : vector<6x256xf32> to vector<4x256xf32>
    %7 = arith.truncf %6 : vector<4x256xf32> to vector<4x256xbf16>
    %c0_4 = arith.constant 0 : index
    %c0_5 = arith.constant 0 : index
    %c0_6 = arith.constant 0 : index
    %8 = vector.load %arg2[%c0_4, %c0_5, %c0_6] : memref<3x256x256xf32, #tpu.memory_space<vmem>>, vector<1x256x256xf32>
    %9 = vector.shape_cast %8 : vector<1x256x256xf32> to vector<256x256xf32>
    %10 = arith.truncf %9 : vector<256x256xf32> to vector<256x256xbf16>
    %cst_7 = arith.constant dense<0.000000e+00> : vector<4x256xf32>
    %11 = tpu.matmul %7, %10, %cst_7 {dimension_numbers = #tpu.dot_dimension_numbers<[1], [0], [0], [1], [0, 0, 1, 1], [], []>} : vector<4x256xbf16>, vector<256x256xbf16>, vector<4x256xf32> -> vector<4x256xf32>
    %12 = arith.addf %5, %11 : vector<4x256xf32>
    %13 = vector.extract_strided_slice %1 {offsets = [1, 0], sizes = [4, 256], strides = [1, 1]} : vector<6x256xf32> to vector<4x256xf32>
    %14 = arith.truncf %13 : vector<4x256xf32> to vector<4x256xbf16>
    %c1 = arith.constant 1 : index
    %c0_8 = arith.constant 0 : index
    %c0_9 = arith.constant 0 : index
    %15 = vector.load %arg2[%c1, %c0_8, %c0_9] : memref<3x256x256xf32, #tpu.memory_space<vmem>>, vector<1x256x256xf32>
    %16 = vector.shape_cast %15 : vector<1x256x256xf32> to vector<256x256xf32>
    %17 = arith.truncf %16 : vector<256x256xf32> to vector<256x256xbf16>
    %cst_10 = arith.constant dense<0.000000e+00> : vector<4x256xf32>
    %18 = tpu.matmul %14, %17, %cst_10 {dimension_numbers = #tpu.dot_dimension_numbers<[1], [0], [0], [1], [0, 0, 1, 1], [], []>} : vector<4x256xbf16>, vector<256x256xbf16>, vector<4x256xf32> -> vector<4x256xf32>
    %19 = arith.addf %12, %18 : vector<4x256xf32>
    %20 = vector.extract_strided_slice %1 {offsets = [2, 0], sizes = [4, 256], strides = [1, 1]} : vector<6x256xf32> to vector<4x256xf32>
    %21 = arith.truncf %20 : vector<4x256xf32> to vector<4x256xbf16>
    %c2 = arith.constant 2 : index
    %c0_11 = arith.constant 0 : index
    %c0_12 = arith.constant 0 : index
    %22 = vector.load %arg2[%c2, %c0_11, %c0_12] : memref<3x256x256xf32, #tpu.memory_space<vmem>>, vector<1x256x256xf32>
    %23 = vector.shape_cast %22 : vector<1x256x256xf32> to vector<256x256xf32>
    %24 = arith.truncf %23 : vector<256x256xf32> to vector<256x256xbf16>
    %cst_13 = arith.constant dense<0.000000e+00> : vector<4x256xf32>
    %25 = tpu.matmul %21, %24, %cst_13 {dimension_numbers = #tpu.dot_dimension_numbers<[1], [0], [0], [1], [0, 0, 1, 1], [], []>} : vector<4x256xbf16>, vector<256x256xbf16>, vector<4x256xf32> -> vector<4x256xf32>
    %26 = arith.addf %19, %25 : vector<4x256xf32>
    %c0_14 = arith.constant 0 : index
    %c0_15 = arith.constant 0 : index
    %c0_16 = arith.constant 0 : index
    %27 = vector.load %arg8[%c0_14, %c0_15, %c0_16] : memref<2x4x256xf32, #tpu.memory_space<vmem>>, vector<1x4x256xf32>
    %28 = vector.shape_cast %27 : vector<1x4x256xf32> to vector<4x256xf32>
    %29 = vector.shape_cast %26 : vector<4x256xf32> to vector<1x4x256xf32>
    tpu.vector_store %arg8[%c0_14, %c0_15, %c0_16], %29 {strides = array<i32>} : memref<2x4x256xf32, #tpu.memory_space<vmem>>, vector<1x4x256xf32>,
    %c1_17 = arith.constant 1 : index
    %c0_18 = arith.constant 0 : index
    %c0_19 = arith.constant 0 : index
    %30 = vector.load %arg1[%c1_17, %c0_18, %c0_19] : memref<2x6x256xf32, #tpu.memory_space<vmem>>, vector<1x6x256xf32>
    %31 = vector.shape_cast %30 : vector<1x6x256xf32> to vector<6x256xf32>
    %cst_20 = arith.constant 0.000000e+00 : f32
    %32 = vector.broadcast %cst_20 : f32 to vector<4x256xf32>
    %c0_21 = arith.constant 0 : index
    %c0_22 = arith.constant 0 : index
    %33 = vector.load %arg3[%c0_21, %c0_22] : memref<1x256xf32, #tpu.memory_space<vmem>>, vector<1x256xf32>
    %34 = vector.broadcast %33 : vector<1x256xf32> to vector<4x256xf32>
    %35 = arith.addf %32, %34 : vector<4x256xf32>
    %36 = vector.extract_strided_slice %31 {offsets = [0, 0], sizes = [4, 256], strides = [1, 1]} : vector<6x256xf32> to vector<4x256xf32>
    %37 = arith.truncf %36 : vector<4x256xf32> to vector<4x256xbf16>
    %c0_23 = arith.constant 0 : index
    %c0_24 = arith.constant 0 : index
    %c0_25 = arith.constant 0 : index
    %38 = vector.load %arg2[%c0_23, %c0_24, %c0_25] : memref<3x256x256xf32, #tpu.memory_space<vmem>>, vector<1x256x256xf32>
    %39 = vector.shape_cast %38 : vector<1x256x256xf32> to vector<256x256xf32>
    %40 = arith.truncf %39 : vector<256x256xf32> to vector<256x256xbf16>
    %cst_26 = arith.constant dense<0.000000e+00> : vector<4x256xf32>
    %41 = tpu.matmul %37, %40, %cst_26 {dimension_numbers = #tpu.dot_dimension_numbers<[1], [0], [0], [1], [0, 0, 1, 1], [], []>} : vector<4x256xbf16>, vector<256x256xbf16>, vector<4x256xf32> -> vector<4x256xf32>
    %42 = arith.addf %35, %41 : vector<4x256xf32>
    %43 = vector.extract_strided_slice %31 {offsets = [1, 0], sizes = [4, 256], strides = [1, 1]} : vector<6x256xf32> to vector<4x256xf32>
    %44 = arith.truncf %43 : vector<4x256xf32> to vector<4x256xbf16>
    %c1_27 = arith.constant 1 : index
    %c0_28 = arith.constant 0 : index
    %c0_29 = arith.constant 0 : index
    %45 = vector.load %arg2[%c1_27, %c0_28, %c0_29] : memref<3x256x256xf32, #tpu.memory_space<vmem>>, vector<1x256x256xf32>
    %46 = vector.shape_cast %45 : vector<1x256x256xf32> to vector<256x256xf32>
    %47 = arith.truncf %46 : vector<256x256xf32> to vector<256x256xbf16>
    %cst_30 = arith.constant dense<0.000000e+00> : vector<4x256xf32>
    %48 = tpu.matmul %44, %47, %cst_30 {dimension_numbers = #tpu.dot_dimension_numbers<[1], [0], [0], [1], [0, 0, 1, 1], [], []>} : vector<4x256xbf16>, vector<256x256xbf16>, vector<4x256xf32> -> vector<4x256xf32>
    %49 = arith.addf %42, %48 : vector<4x256xf32>
    %50 = vector.extract_strided_slice %31 {offsets = [2, 0], sizes = [4, 256], strides = [1, 1]} : vector<6x256xf32> to vector<4x256xf32>
    %51 = arith.truncf %50 : vector<4x256xf32> to vector<4x256xbf16>
    %c2_31 = arith.constant 2 : index
    %c0_32 = arith.constant 0 : index
    %c0_33 = arith.constant 0 : index
    %52 = vector.load %arg2[%c2_31, %c0_32, %c0_33] : memref<3x256x256xf32, #tpu.memory_space<vmem>>, vector<1x256x256xf32>
    %53 = vector.shape_cast %52 : vector<1x256x256xf32> to vector<256x256xf32>
    %54 = arith.truncf %53 : vector<256x256xf32> to vector<256x256xbf16>
    %cst_34 = arith.constant dense<0.000000e+00> : vector<4x256xf32>
    %55 = tpu.matmul %51, %54, %cst_34 {dimension_numbers = #tpu.dot_dimension_numbers<[1], [0], [0], [1], [0, 0, 1, 1], [], []>} : vector<4x256xbf16>, vector<256x256xbf16>, vector<4x256xf32> -> vector<4x256xf32>
    %56 = arith.addf %49, %55 : vector<4x256xf32>
    %c1_35 = arith.constant 1 : index
    %c0_36 = arith.constant 0 : index
    %c0_37 = arith.constant 0 : index
    %57 = vector.load %arg8[%c1_35, %c0_36, %c0_37] : memref<2x4x256xf32, #tpu.memory_space<vmem>>, vector<1x4x256xf32>
    %58 = vector.shape_cast %57 : vector<1x4x256xf32> to vector<4x256xf32>
    %59 = vector.shape_cast %56 : vector<4x256xf32> to vector<1x4x256xf32>
    tpu.vector_store %arg8[%c1_35, %c0_36, %c0_37], %59 {strides = array<i32>} : memref<2x4x256xf32, #tpu.memory_space<vmem>>, vector<1x4x256xf32>,
    %cst_38 = arith.constant 0.000000e+00 : f32
    %60 = vector.broadcast %cst_38 : f32 to vector<1x256xf32>
    %c0_39 = arith.constant 0 : index
    %c0_40 = arith.constant 0 : index
    %c0_41 = arith.constant 0 : index
    %61 = vector.load %arg8[%c0_39, %c0_40, %c0_41] : memref<2x4x256xf32, #tpu.memory_space<vmem>>, vector<1x4x256xf32>
    %62 = vector.shape_cast %61 : vector<1x4x256xf32> to vector<4x256xf32>
    %cst_42 = arith.constant dense<0.000000e+00> : vector<256xf32>
    %63 = vector.multi_reduction <add>, %62, %cst_42 [0] : vector<4x256xf32> to vector<256xf32>
    %64 = vector.shape_cast %63 : vector<256xf32> to vector<1x256xf32>
    %65 = arith.addf %60, %64 : vector<1x256xf32>
    %c1_43 = arith.constant 1 : index
    %c0_44 = arith.constant 0 : index
    %c0_45 = arith.constant 0 : index
    %66 = vector.load %arg8[%c1_43, %c0_44, %c0_45] : memref<2x4x256xf32, #tpu.memory_space<vmem>>, vector<1x4x256xf32>
    %67 = vector.shape_cast %66 : vector<1x4x256xf32> to vector<4x256xf32>
    %cst_46 = arith.constant dense<0.000000e+00> : vector<256xf32>
    %68 = vector.multi_reduction <add>, %67, %cst_46 [0] : vector<4x256xf32> to vector<256xf32>
    %69 = vector.shape_cast %68 : vector<256xf32> to vector<1x256xf32>
    %70 = arith.addf %65, %69 : vector<1x256xf32>
    %cst_47 = arith.constant 8.000000e+00 : f32
    %71 = vector.broadcast %cst_47 : f32 to vector<1x256xf32>
    %72 = arith.divf %70, %71 : vector<1x256xf32>
    %cst_48 = arith.constant 0.000000e+00 : f32
    %73 = vector.broadcast %cst_48 : f32 to vector<1x256xf32>
    %c0_49 = arith.constant 0 : index
    %c0_50 = arith.constant 0 : index
    %c0_51 = arith.constant 0 : index
    %74 = vector.load %arg8[%c0_49, %c0_50, %c0_51] : memref<2x4x256xf32, #tpu.memory_space<vmem>>, vector<1x4x256xf32>
    %75 = vector.shape_cast %74 : vector<1x4x256xf32> to vector<4x256xf32>
    %76 = vector.broadcast %72 : vector<1x256xf32> to vector<4x256xf32>
    %77 = arith.subf %75, %76 : vector<4x256xf32>
    %78 = arith.mulf %77, %77 : vector<4x256xf32>
    %cst_52 = arith.constant dense<0.000000e+00> : vector<256xf32>
    %79 = vector.multi_reduction <add>, %78, %cst_52 [0] : vector<4x256xf32> to vector<256xf32>
    %80 = vector.shape_cast %79 : vector<256xf32> to vector<1x256xf32>
    %81 = arith.addf %73, %80 : vector<1x256xf32>
    %c1_53 = arith.constant 1 : index
    %c0_54 = arith.constant 0 : index
    %c0_55 = arith.constant 0 : index
    %82 = vector.load %arg8[%c1_53, %c0_54, %c0_55] : memref<2x4x256xf32, #tpu.memory_space<vmem>>, vector<1x4x256xf32>
    %83 = vector.shape_cast %82 : vector<1x4x256xf32> to vector<4x256xf32>
    %84 = vector.broadcast %72 : vector<1x256xf32> to vector<4x256xf32>
    %85 = arith.subf %83, %84 : vector<4x256xf32>
    %86 = arith.mulf %85, %85 : vector<4x256xf32>
    %cst_56 = arith.constant dense<0.000000e+00> : vector<256xf32>
    %87 = vector.multi_reduction <add>, %86, %cst_56 [0] : vector<4x256xf32> to vector<256xf32>
    %88 = vector.shape_cast %87 : vector<256xf32> to vector<1x256xf32>
    %89 = arith.addf %81, %88 : vector<1x256xf32>
    %cst_57 = arith.constant 8.000000e+00 : f32
    %90 = vector.broadcast %cst_57 : f32 to vector<1x256xf32>
    %91 = arith.divf %89, %90 : vector<1x256xf32>
    %cst_58 = arith.constant 9.99999974E-6 : f32
    %92 = vector.broadcast %cst_58 : f32 to vector<1x256xf32>
    %93 = arith.addf %91, %92 : vector<1x256xf32>
    %94 = math.rsqrt %93 : vector<1x256xf32>
    %c0_59 = arith.constant 0 : index
    %c0_60 = arith.constant 0 : index
    %95 = vector.load %arg4[%c0_59, %c0_60] : memref<1x256xf32, #tpu.memory_space<vmem>>, vector<1x256xf32>
    %96 = arith.mulf %94, %95 : vector<1x256xf32>
    %c0_61 = arith.constant 0 : index
    %c0_62 = arith.constant 0 : index
    %97 = vector.load %arg5[%c0_61, %c0_62] : memref<1x256xf32, #tpu.memory_space<vmem>>, vector<1x256xf32>
    %98 = arith.mulf %72, %96 : vector<1x256xf32>
    %99 = arith.subf %97, %98 : vector<1x256xf32>
    %c0_63 = arith.constant 0 : index
    %c0_64 = arith.constant 0 : index
    %c0_65 = arith.constant 0 : index
    %100 = vector.load %arg8[%c0_63, %c0_64, %c0_65] : memref<2x4x256xf32, #tpu.memory_space<vmem>>, vector<1x4x256xf32>
    %101 = vector.shape_cast %100 : vector<1x4x256xf32> to vector<4x256xf32>
    %102 = vector.broadcast %96 : vector<1x256xf32> to vector<4x256xf32>
    %103 = arith.mulf %101, %102 : vector<4x256xf32>
    %104 = vector.broadcast %99 : vector<1x256xf32> to vector<4x256xf32>
    %105 = arith.addf %103, %104 : vector<4x256xf32>
    %c0_66 = arith.constant 0 : index
    %c0_67 = arith.constant 0 : index
    %c0_68 = arith.constant 0 : index
    %106 = vector.load %arg6[%c0_66, %c0_67, %c0_68] : memref<2x4x256xf32, #tpu.memory_space<vmem>>, vector<1x4x256xf32>
    %107 = vector.shape_cast %106 : vector<1x4x256xf32> to vector<4x256xf32>
    %108 = arith.addf %105, %107 : vector<4x256xf32>
    %cst_69 = arith.constant 0.000000e+00 : f32
    %109 = vector.broadcast %cst_69 : f32 to vector<4x256xf32>
    %110 = arith.maximumf %108, %109 : vector<4x256xf32>
    %c0_70 = arith.constant 0 : index
    %c0_71 = arith.constant 0 : index
    %c0_72 = arith.constant 0 : index
    %111 = vector.load %arg7[%c0_70, %c0_71, %c0_72] : memref<2x4x256xf32, #tpu.memory_space<vmem>>, vector<1x4x256xf32>
    %112 = vector.shape_cast %111 : vector<1x4x256xf32> to vector<4x256xf32>
    %113 = vector.shape_cast %110 : vector<4x256xf32> to vector<1x4x256xf32>
    tpu.vector_store %arg7[%c0_70, %c0_71, %c0_72], %113 {strides = array<i32>} : memref<2x4x256xf32, #tpu.memory_space<vmem>>, vector<1x4x256xf32>,
    %c1_73 = arith.constant 1 : index
    %c0_74 = arith.constant 0 : index
    %c0_75 = arith.constant 0 : index
    %114 = vector.load %arg8[%c1_73, %c0_74, %c0_75] : memref<2x4x256xf32, #tpu.memory_space<vmem>>, vector<1x4x256xf32>
    %115 = vector.shape_cast %114 : vector<1x4x256xf32> to vector<4x256xf32>
    %116 = vector.broadcast %96 : vector<1x256xf32> to vector<4x256xf32>
    %117 = arith.mulf %115, %116 : vector<4x256xf32>
    %118 = vector.broadcast %99 : vector<1x256xf32> to vector<4x256xf32>
    %119 = arith.addf %117, %118 : vector<4x256xf32>
    %c1_76 = arith.constant 1 : index
    %c0_77 = arith.constant 0 : index
    %c0_78 = arith.constant 0 : index
    %120 = vector.load %arg6[%c1_76, %c0_77, %c0_78] : memref<2x4x256xf32, #tpu.memory_space<vmem>>, vector<1x4x256xf32>
    %121 = vector.shape_cast %120 : vector<1x4x256xf32> to vector<4x256xf32>
    %122 = arith.addf %119, %121 : vector<4x256xf32>
    %cst_79 = arith.constant 0.000000e+00 : f32
    %123 = vector.broadcast %cst_79 : f32 to vector<4x256xf32>
    %124 = arith.maximumf %122, %123 : vector<4x256xf32>
    %c1_80 = arith.constant 1 : index
    %c0_81 = arith.constant 0 : index
    %c0_82 = arith.constant 0 : index
    %125 = vector.load %arg7[%c1_80, %c0_81, %c0_82] : memref<2x4x256xf32, #tpu.memory_space<vmem>>, vector<1x4x256xf32>
    %126 = vector.shape_cast %125 : vector<1x4x256xf32> to vector<4x256xf32>
    %127 = vector.shape_cast %124 : vector<4x256xf32> to vector<1x4x256xf32>
    tpu.vector_store %arg7[%c1_80, %c0_81, %c0_82], %127 {strides = array<i32>} : memref<2x4x256xf32, #tpu.memory_space<vmem>>, vector<1x4x256xf32>,
    return
  }
  func.func @transform_0(%arg0: i32) -> (i32, i32, i32) {
    %c0_i32 = arith.constant 0 : i32
    %c0_i32_0 = arith.constant 0 : i32
    %c0_i32_1 = arith.constant 0 : i32
    %c0_i32_2 = arith.constant 0 : i32
    return %c0_i32, %c0_i32_0, %c0_i32_1 : i32, i32, i32
  }
  func.func @transform_1(%arg0: i32) -> (i32, i32, i32) {
    %c0_i32 = arith.constant 0 : i32
    %c0_i32_0 = arith.constant 0 : i32
    %c0_i32_1 = arith.constant 0 : i32
    %c0_i32_2 = arith.constant 0 : i32
    return %c0_i32, %c0_i32_0, %c0_i32_1 : i32, i32, i32
  }
  func.func @transform_2(%arg0: i32) -> (i32, i32) {
    %c0_i32 = arith.constant 0 : i32
    %c0_i32_0 = arith.constant 0 : i32
    %c0_i32_1 = arith.constant 0 : i32
    return %c0_i32, %c0_i32_0 : i32, i32
  }
  func.func @transform_3(%arg0: i32) -> (i32, i32) {
    %c0_i32 = arith.constant 0 : i32
    %c0_i32_0 = arith.constant 0 : i32
    %c0_i32_1 = arith.constant 0 : i32
    return %c0_i32, %c0_i32_0 : i32, i32
  }
  func.func @transform_4(%arg0: i32) -> (i32, i32) {
    %c0_i32 = arith.constant 0 : i32
    %c0_i32_0 = arith.constant 0 : i32
    %c0_i32_1 = arith.constant 0 : i32
    return %c0_i32, %c0_i32_0 : i32, i32
  }
  func.func @transform_5(%arg0: i32) -> (i32, i32, i32) {
    %c0_i32 = arith.constant 0 : i32
    %c0_i32_0 = arith.constant 0 : i32
    %c0_i32_1 = arith.constant 0 : i32
    %c0_i32_2 = arith.constant 0 : i32
    return %c0_i32, %c0_i32_0, %c0_i32_1 : i32, i32, i32
  }
  func.func @transform_6(%arg0: i32) -> (i32, i32, i32) {
    %c0_i32 = arith.constant 0 : i32
    %c0_i32_0 = arith.constant 0 : i32
    %c0_i32_1 = arith.constant 0 : i32
    %c0_i32_2 = arith.constant 0 : i32
    return %c0_i32, %c0_i32_0, %c0_i32_1 : i32, i32, i32
  }
}

module attributes {stable_mosaic.version = 11 : i64} {
  func.func @_convT_in_relu_kernel(%arg0: i32, %arg1: memref<1x9x128xf32, #tpu.memory_space<vmem>>, %arg2: memref<3x128x64xf32, #tpu.memory_space<vmem>>, %arg3: memref<1x64xf32, #tpu.memory_space<vmem>>, %arg4: memref<1x2x8x64xf32, #tpu.memory_space<vmem>>) attributes {dimension_semantics = [#tpu.dimension_semantics<parallel>], iteration_bounds = array<i64: 2>, scalar_prefetch = 0 : i64, scratch_operands = 0 : i64, tpu.core_type = #tpu.core_type<tc>, window_params = [{transform_indices = @transform_0, window_bounds = array<i64: 1, 9, 128>}, {pipeline_mode = #tpu.pipeline_mode<synchronous>, transform_indices = @transform_1, window_bounds = array<i64: 3, 128, 64>}, {pipeline_mode = #tpu.pipeline_mode<synchronous>, transform_indices = @transform_2, window_bounds = array<i64: 1, 64>}, {transform_indices = @transform_3, window_bounds = array<i64: 1, 2, 8, 64>}]} {
    %c0 = arith.constant 0 : index
    %c0_0 = arith.constant 0 : index
    %c0_1 = arith.constant 0 : index
    %0 = vector.load %arg1[%c0, %c0_0, %c0_1] : memref<1x9x128xf32, #tpu.memory_space<vmem>>, vector<1x9x128xf32>
    %1 = vector.shape_cast %0 : vector<1x9x128xf32> to vector<9x128xf32>
    %2 = vector.extract_strided_slice %1 {offsets = [0, 0], sizes = [8, 128], strides = [1, 1]} : vector<9x128xf32> to vector<8x128xf32>
    %3 = vector.extract_strided_slice %1 {offsets = [1, 0], sizes = [8, 128], strides = [1, 1]} : vector<9x128xf32> to vector<8x128xf32>
    %c0_2 = arith.constant 0 : index
    %c0_3 = arith.constant 0 : index
    %4 = vector.load %arg3[%c0_2, %c0_3] : memref<1x64xf32, #tpu.memory_space<vmem>>, vector<1x64xf32>
    %c1 = arith.constant 1 : index
    %c0_4 = arith.constant 0 : index
    %c0_5 = arith.constant 0 : index
    %5 = vector.load %arg2[%c1, %c0_4, %c0_5] : memref<3x128x64xf32, #tpu.memory_space<vmem>>, vector<1x128x64xf32>
    %6 = vector.shape_cast %5 : vector<1x128x64xf32> to vector<128x64xf32>
    %7 = arith.truncf %2 : vector<8x128xf32> to vector<8x128xbf16>
    %8 = arith.truncf %6 : vector<128x64xf32> to vector<128x64xbf16>
    %cst = arith.constant dense<0.000000e+00> : vector<8x64xf32>
    %9 = tpu.matmul %7, %8, %cst {dimension_numbers = #tpu.dot_dimension_numbers<[1], [0], [0], [1], [0, 0, 1, 1], [], []>} : vector<8x128xbf16>, vector<128x64xbf16>, vector<8x64xf32> -> vector<8x64xf32>
    %10 = vector.broadcast %4 : vector<1x64xf32> to vector<8x64xf32>
    %11 = arith.addf %9, %10 : vector<8x64xf32>
    %c2 = arith.constant 2 : index
    %c0_6 = arith.constant 0 : index
    %c0_7 = arith.constant 0 : index
    %12 = vector.load %arg2[%c2, %c0_6, %c0_7] : memref<3x128x64xf32, #tpu.memory_space<vmem>>, vector<1x128x64xf32>
    %13 = vector.shape_cast %12 : vector<1x128x64xf32> to vector<128x64xf32>
    %14 = arith.truncf %2 : vector<8x128xf32> to vector<8x128xbf16>
    %15 = arith.truncf %13 : vector<128x64xf32> to vector<128x64xbf16>
    %cst_8 = arith.constant dense<0.000000e+00> : vector<8x64xf32>
    %16 = tpu.matmul %14, %15, %cst_8 {dimension_numbers = #tpu.dot_dimension_numbers<[1], [0], [0], [1], [0, 0, 1, 1], [], []>} : vector<8x128xbf16>, vector<128x64xbf16>, vector<8x64xf32> -> vector<8x64xf32>
    %c0_9 = arith.constant 0 : index
    %c0_10 = arith.constant 0 : index
    %c0_11 = arith.constant 0 : index
    %17 = vector.load %arg2[%c0_9, %c0_10, %c0_11] : memref<3x128x64xf32, #tpu.memory_space<vmem>>, vector<1x128x64xf32>
    %18 = vector.shape_cast %17 : vector<1x128x64xf32> to vector<128x64xf32>
    %19 = arith.truncf %3 : vector<8x128xf32> to vector<8x128xbf16>
    %20 = arith.truncf %18 : vector<128x64xf32> to vector<128x64xbf16>
    %cst_12 = arith.constant dense<0.000000e+00> : vector<8x64xf32>
    %21 = tpu.matmul %19, %20, %cst_12 {dimension_numbers = #tpu.dot_dimension_numbers<[1], [0], [0], [1], [0, 0, 1, 1], [], []>} : vector<8x128xbf16>, vector<128x64xbf16>, vector<8x64xf32> -> vector<8x64xf32>
    %22 = arith.addf %16, %21 : vector<8x64xf32>
    %23 = vector.broadcast %4 : vector<1x64xf32> to vector<8x64xf32>
    %24 = arith.addf %22, %23 : vector<8x64xf32>
    %cst_13 = arith.constant dense<0.000000e+00> : vector<64xf32>
    %25 = vector.multi_reduction <add>, %11, %cst_13 [0] : vector<8x64xf32> to vector<64xf32>
    %26 = vector.shape_cast %25 : vector<64xf32> to vector<1x64xf32>
    %cst_14 = arith.constant dense<0.000000e+00> : vector<64xf32>
    %27 = vector.multi_reduction <add>, %24, %cst_14 [0] : vector<8x64xf32> to vector<64xf32>
    %28 = vector.shape_cast %27 : vector<64xf32> to vector<1x64xf32>
    %29 = arith.addf %26, %28 : vector<1x64xf32>
    %cst_15 = arith.constant 1.600000e+01 : f32
    %30 = vector.broadcast %cst_15 : f32 to vector<1x64xf32>
    %31 = arith.divf %29, %30 : vector<1x64xf32>
    %32 = vector.broadcast %31 : vector<1x64xf32> to vector<8x64xf32>
    %33 = arith.subf %11, %32 : vector<8x64xf32>
    %34 = vector.broadcast %31 : vector<1x64xf32> to vector<8x64xf32>
    %35 = arith.subf %24, %34 : vector<8x64xf32>
    %36 = arith.mulf %33, %33 : vector<8x64xf32>
    %cst_16 = arith.constant dense<0.000000e+00> : vector<64xf32>
    %37 = vector.multi_reduction <add>, %36, %cst_16 [0] : vector<8x64xf32> to vector<64xf32>
    %38 = vector.shape_cast %37 : vector<64xf32> to vector<1x64xf32>
    %39 = arith.mulf %35, %35 : vector<8x64xf32>
    %cst_17 = arith.constant dense<0.000000e+00> : vector<64xf32>
    %40 = vector.multi_reduction <add>, %39, %cst_17 [0] : vector<8x64xf32> to vector<64xf32>
    %41 = vector.shape_cast %40 : vector<64xf32> to vector<1x64xf32>
    %42 = arith.addf %38, %41 : vector<1x64xf32>
    %cst_18 = arith.constant 1.600000e+01 : f32
    %43 = vector.broadcast %cst_18 : f32 to vector<1x64xf32>
    %44 = arith.divf %42, %43 : vector<1x64xf32>
    %cst_19 = arith.constant 9.99999974E-6 : f32
    %45 = vector.broadcast %cst_19 : f32 to vector<1x64xf32>
    %46 = arith.addf %44, %45 : vector<1x64xf32>
    %47 = math.rsqrt %46 : vector<1x64xf32>
    %48 = vector.broadcast %47 : vector<1x64xf32> to vector<8x64xf32>
    %49 = arith.mulf %33, %48 : vector<8x64xf32>
    %cst_20 = arith.constant 0.000000e+00 : f32
    %50 = vector.broadcast %cst_20 : f32 to vector<8x64xf32>
    %51 = arith.maximumf %49, %50 : vector<8x64xf32>
    %c0_21 = arith.constant 0 : index
    %c0_22 = arith.constant 0 : index
    %c0_23 = arith.constant 0 : index
    %c0_24 = arith.constant 0 : index
    %52 = vector.load %arg4[%c0_21, %c0_22, %c0_23, %c0_24] : memref<1x2x8x64xf32, #tpu.memory_space<vmem>>, vector<1x1x8x64xf32>
    %53 = vector.shape_cast %52 : vector<1x1x8x64xf32> to vector<8x64xf32>
    %54 = vector.shape_cast %51 : vector<8x64xf32> to vector<1x1x8x64xf32>
    tpu.vector_store %arg4[%c0_21, %c0_22, %c0_23, %c0_24], %54 {strides = array<i32>} : memref<1x2x8x64xf32, #tpu.memory_space<vmem>>, vector<1x1x8x64xf32>,
    %55 = vector.broadcast %47 : vector<1x64xf32> to vector<8x64xf32>
    %56 = arith.mulf %35, %55 : vector<8x64xf32>
    %cst_25 = arith.constant 0.000000e+00 : f32
    %57 = vector.broadcast %cst_25 : f32 to vector<8x64xf32>
    %58 = arith.maximumf %56, %57 : vector<8x64xf32>
    %c0_26 = arith.constant 0 : index
    %c1_27 = arith.constant 1 : index
    %c0_28 = arith.constant 0 : index
    %c0_29 = arith.constant 0 : index
    %59 = vector.load %arg4[%c0_26, %c1_27, %c0_28, %c0_29] : memref<1x2x8x64xf32, #tpu.memory_space<vmem>>, vector<1x1x8x64xf32>
    %60 = vector.shape_cast %59 : vector<1x1x8x64xf32> to vector<8x64xf32>
    %61 = vector.shape_cast %58 : vector<8x64xf32> to vector<1x1x8x64xf32>
    tpu.vector_store %arg4[%c0_26, %c1_27, %c0_28, %c0_29], %61 {strides = array<i32>} : memref<1x2x8x64xf32, #tpu.memory_space<vmem>>, vector<1x1x8x64xf32>,
    return
  }
  func.func @transform_0(%arg0: i32) -> (i32, i32, i32) {
    %c0_i32 = arith.constant 0 : i32
    %c0_i32_0 = arith.constant 0 : i32
    %c0_i32_1 = arith.constant 0 : i32
    return %arg0, %c0_i32, %c0_i32_0 : i32, i32, i32
  }
  func.func @transform_1(%arg0: i32) -> (i32, i32, i32) {
    %c0_i32 = arith.constant 0 : i32
    %c0_i32_0 = arith.constant 0 : i32
    %c0_i32_1 = arith.constant 0 : i32
    %c0_i32_2 = arith.constant 0 : i32
    return %c0_i32, %c0_i32_0, %c0_i32_1 : i32, i32, i32
  }
  func.func @transform_2(%arg0: i32) -> (i32, i32) {
    %c0_i32 = arith.constant 0 : i32
    %c0_i32_0 = arith.constant 0 : i32
    %c0_i32_1 = arith.constant 0 : i32
    return %c0_i32, %c0_i32_0 : i32, i32
  }
  func.func @transform_3(%arg0: i32) -> (i32, i32, i32, i32) {
    %c0_i32 = arith.constant 0 : i32
    %c0_i32_0 = arith.constant 0 : i32
    %c0_i32_1 = arith.constant 0 : i32
    %c0_i32_2 = arith.constant 0 : i32
    return %arg0, %c0_i32, %c0_i32_0, %c0_i32_1 : i32, i32, i32, i32
  }
}

module attributes {stable_mosaic.version = 11 : i64} {
  func.func @_conv_norm_act_kernel(%arg0: i32, %arg1: memref<1x1x22x64xf32, #tpu.memory_space<vmem>>, %arg2: memref<7x64x128xf32, #tpu.memory_space<vmem>>, %arg3: memref<1x128xf32, #tpu.memory_space<vmem>>, %arg4: memref<1x16x128xf32, #tpu.memory_space<vmem>>) attributes {dimension_semantics = [#tpu.dimension_semantics<parallel>], iteration_bounds = array<i64: 2>, scalar_prefetch = 0 : i64, scratch_operands = 0 : i64, tpu.core_type = #tpu.core_type<tc>, window_params = [{transform_indices = @transform_0, window_bounds = array<i64: 1, 1, 22, 64>}, {pipeline_mode = #tpu.pipeline_mode<synchronous>, transform_indices = @transform_1, window_bounds = array<i64: 7, 64, 128>}, {pipeline_mode = #tpu.pipeline_mode<synchronous>, transform_indices = @transform_2, window_bounds = array<i64: 1, 128>}, {transform_indices = @transform_3, window_bounds = array<i64: 1, 16, 128>}]} {
    %c0 = arith.constant 0 : index
    %c0_0 = arith.constant 0 : index
    %c0_1 = arith.constant 0 : index
    %c0_2 = arith.constant 0 : index
    %0 = vector.load %arg1[%c0, %c0_0, %c0_1, %c0_2] : memref<1x1x22x64xf32, #tpu.memory_space<vmem>>, vector<1x1x22x64xf32>
    %1 = vector.shape_cast %0 : vector<1x1x22x64xf32> to vector<1x22x64xf32>
    %cst = arith.constant 0.000000e+00 : f32
    %2 = vector.broadcast %cst : f32 to vector<16x128xf32>
    %c0_3 = arith.constant 0 : index
    %c0_4 = arith.constant 0 : index
    %3 = vector.load %arg3[%c0_3, %c0_4] : memref<1x128xf32, #tpu.memory_space<vmem>>, vector<1x128xf32>
    %4 = vector.broadcast %3 : vector<1x128xf32> to vector<16x128xf32>
    %5 = arith.addf %2, %4 : vector<16x128xf32>
    %6 = vector.extract_strided_slice %1 {offsets = [0, 0, 0], sizes = [1, 16, 64], strides = [1, 1, 1]} : vector<1x22x64xf32> to vector<1x16x64xf32>
    %7 = vector.shape_cast %6 : vector<1x16x64xf32> to vector<16x64xf32>
    %c0_5 = arith.constant 0 : index
    %c0_6 = arith.constant 0 : index
    %c0_7 = arith.constant 0 : index
    %8 = vector.load %arg2[%c0_5, %c0_6, %c0_7] : memref<7x64x128xf32, #tpu.memory_space<vmem>>, vector<1x64x128xf32>
    %9 = vector.shape_cast %8 : vector<1x64x128xf32> to vector<64x128xf32>
    %10 = arith.truncf %7 : vector<16x64xf32> to vector<16x64xbf16>
    %11 = arith.truncf %9 : vector<64x128xf32> to vector<64x128xbf16>
    %cst_8 = arith.constant dense<0.000000e+00> : vector<16x128xf32>
    %12 = tpu.matmul %10, %11, %cst_8 {dimension_numbers = #tpu.dot_dimension_numbers<[1], [0], [0], [1], [0, 0, 1, 1], [], []>} : vector<16x64xbf16>, vector<64x128xbf16>, vector<16x128xf32> -> vector<16x128xf32>
    %13 = arith.addf %5, %12 : vector<16x128xf32>
    %14 = vector.extract_strided_slice %1 {offsets = [0, 1, 0], sizes = [1, 16, 64], strides = [1, 1, 1]} : vector<1x22x64xf32> to vector<1x16x64xf32>
    %15 = vector.shape_cast %14 : vector<1x16x64xf32> to vector<16x64xf32>
    %c1 = arith.constant 1 : index
    %c0_9 = arith.constant 0 : index
    %c0_10 = arith.constant 0 : index
    %16 = vector.load %arg2[%c1, %c0_9, %c0_10] : memref<7x64x128xf32, #tpu.memory_space<vmem>>, vector<1x64x128xf32>
    %17 = vector.shape_cast %16 : vector<1x64x128xf32> to vector<64x128xf32>
    %18 = arith.truncf %15 : vector<16x64xf32> to vector<16x64xbf16>
    %19 = arith.truncf %17 : vector<64x128xf32> to vector<64x128xbf16>
    %cst_11 = arith.constant dense<0.000000e+00> : vector<16x128xf32>
    %20 = tpu.matmul %18, %19, %cst_11 {dimension_numbers = #tpu.dot_dimension_numbers<[1], [0], [0], [1], [0, 0, 1, 1], [], []>} : vector<16x64xbf16>, vector<64x128xbf16>, vector<16x128xf32> -> vector<16x128xf32>
    %21 = arith.addf %13, %20 : vector<16x128xf32>
    %22 = vector.extract_strided_slice %1 {offsets = [0, 2, 0], sizes = [1, 16, 64], strides = [1, 1, 1]} : vector<1x22x64xf32> to vector<1x16x64xf32>
    %23 = vector.shape_cast %22 : vector<1x16x64xf32> to vector<16x64xf32>
    %c2 = arith.constant 2 : index
    %c0_12 = arith.constant 0 : index
    %c0_13 = arith.constant 0 : index
    %24 = vector.load %arg2[%c2, %c0_12, %c0_13] : memref<7x64x128xf32, #tpu.memory_space<vmem>>, vector<1x64x128xf32>
    %25 = vector.shape_cast %24 : vector<1x64x128xf32> to vector<64x128xf32>
    %26 = arith.truncf %23 : vector<16x64xf32> to vector<16x64xbf16>
    %27 = arith.truncf %25 : vector<64x128xf32> to vector<64x128xbf16>
    %cst_14 = arith.constant dense<0.000000e+00> : vector<16x128xf32>
    %28 = tpu.matmul %26, %27, %cst_14 {dimension_numbers = #tpu.dot_dimension_numbers<[1], [0], [0], [1], [0, 0, 1, 1], [], []>} : vector<16x64xbf16>, vector<64x128xbf16>, vector<16x128xf32> -> vector<16x128xf32>
    %29 = arith.addf %21, %28 : vector<16x128xf32>
    %30 = vector.extract_strided_slice %1 {offsets = [0, 3, 0], sizes = [1, 16, 64], strides = [1, 1, 1]} : vector<1x22x64xf32> to vector<1x16x64xf32>
    %31 = vector.shape_cast %30 : vector<1x16x64xf32> to vector<16x64xf32>
    %c3 = arith.constant 3 : index
    %c0_15 = arith.constant 0 : index
    %c0_16 = arith.constant 0 : index
    %32 = vector.load %arg2[%c3, %c0_15, %c0_16] : memref<7x64x128xf32, #tpu.memory_space<vmem>>, vector<1x64x128xf32>
    %33 = vector.shape_cast %32 : vector<1x64x128xf32> to vector<64x128xf32>
    %34 = arith.truncf %31 : vector<16x64xf32> to vector<16x64xbf16>
    %35 = arith.truncf %33 : vector<64x128xf32> to vector<64x128xbf16>
    %cst_17 = arith.constant dense<0.000000e+00> : vector<16x128xf32>
    %36 = tpu.matmul %34, %35, %cst_17 {dimension_numbers = #tpu.dot_dimension_numbers<[1], [0], [0], [1], [0, 0, 1, 1], [], []>} : vector<16x64xbf16>, vector<64x128xbf16>, vector<16x128xf32> -> vector<16x128xf32>
    %37 = arith.addf %29, %36 : vector<16x128xf32>
    %38 = vector.extract_strided_slice %1 {offsets = [0, 4, 0], sizes = [1, 16, 64], strides = [1, 1, 1]} : vector<1x22x64xf32> to vector<1x16x64xf32>
    %39 = vector.shape_cast %38 : vector<1x16x64xf32> to vector<16x64xf32>
    %c4 = arith.constant 4 : index
    %c0_18 = arith.constant 0 : index
    %c0_19 = arith.constant 0 : index
    %40 = vector.load %arg2[%c4, %c0_18, %c0_19] : memref<7x64x128xf32, #tpu.memory_space<vmem>>, vector<1x64x128xf32>
    %41 = vector.shape_cast %40 : vector<1x64x128xf32> to vector<64x128xf32>
    %42 = arith.truncf %39 : vector<16x64xf32> to vector<16x64xbf16>
    %43 = arith.truncf %41 : vector<64x128xf32> to vector<64x128xbf16>
    %cst_20 = arith.constant dense<0.000000e+00> : vector<16x128xf32>
    %44 = tpu.matmul %42, %43, %cst_20 {dimension_numbers = #tpu.dot_dimension_numbers<[1], [0], [0], [1], [0, 0, 1, 1], [], []>} : vector<16x64xbf16>, vector<64x128xbf16>, vector<16x128xf32> -> vector<16x128xf32>
    %45 = arith.addf %37, %44 : vector<16x128xf32>
    %46 = vector.extract_strided_slice %1 {offsets = [0, 5, 0], sizes = [1, 16, 64], strides = [1, 1, 1]} : vector<1x22x64xf32> to vector<1x16x64xf32>
    %47 = vector.shape_cast %46 : vector<1x16x64xf32> to vector<16x64xf32>
    %c5 = arith.constant 5 : index
    %c0_21 = arith.constant 0 : index
    %c0_22 = arith.constant 0 : index
    %48 = vector.load %arg2[%c5, %c0_21, %c0_22] : memref<7x64x128xf32, #tpu.memory_space<vmem>>, vector<1x64x128xf32>
    %49 = vector.shape_cast %48 : vector<1x64x128xf32> to vector<64x128xf32>
    %50 = arith.truncf %47 : vector<16x64xf32> to vector<16x64xbf16>
    %51 = arith.truncf %49 : vector<64x128xf32> to vector<64x128xbf16>
    %cst_23 = arith.constant dense<0.000000e+00> : vector<16x128xf32>
    %52 = tpu.matmul %50, %51, %cst_23 {dimension_numbers = #tpu.dot_dimension_numbers<[1], [0], [0], [1], [0, 0, 1, 1], [], []>} : vector<16x64xbf16>, vector<64x128xbf16>, vector<16x128xf32> -> vector<16x128xf32>
    %53 = arith.addf %45, %52 : vector<16x128xf32>
    %54 = vector.extract_strided_slice %1 {offsets = [0, 6, 0], sizes = [1, 16, 64], strides = [1, 1, 1]} : vector<1x22x64xf32> to vector<1x16x64xf32>
    %55 = vector.shape_cast %54 : vector<1x16x64xf32> to vector<16x64xf32>
    %c6 = arith.constant 6 : index
    %c0_24 = arith.constant 0 : index
    %c0_25 = arith.constant 0 : index
    %56 = vector.load %arg2[%c6, %c0_24, %c0_25] : memref<7x64x128xf32, #tpu.memory_space<vmem>>, vector<1x64x128xf32>
    %57 = vector.shape_cast %56 : vector<1x64x128xf32> to vector<64x128xf32>
    %58 = arith.truncf %55 : vector<16x64xf32> to vector<16x64xbf16>
    %59 = arith.truncf %57 : vector<64x128xf32> to vector<64x128xbf16>
    %cst_26 = arith.constant dense<0.000000e+00> : vector<16x128xf32>
    %60 = tpu.matmul %58, %59, %cst_26 {dimension_numbers = #tpu.dot_dimension_numbers<[1], [0], [0], [1], [0, 0, 1, 1], [], []>} : vector<16x64xbf16>, vector<64x128xbf16>, vector<16x128xf32> -> vector<16x128xf32>
    %61 = arith.addf %53, %60 : vector<16x128xf32>
    %62 = math.tanh %61 : vector<16x128xf32>
    %c0_27 = arith.constant 0 : index
    %c0_28 = arith.constant 0 : index
    %c0_29 = arith.constant 0 : index
    %63 = vector.load %arg4[%c0_27, %c0_28, %c0_29] : memref<1x16x128xf32, #tpu.memory_space<vmem>>, vector<1x16x128xf32>
    %64 = vector.shape_cast %63 : vector<1x16x128xf32> to vector<16x128xf32>
    %65 = vector.shape_cast %62 : vector<16x128xf32> to vector<1x16x128xf32>
    tpu.vector_store %arg4[%c0_27, %c0_28, %c0_29], %65 {strides = array<i32>} : memref<1x16x128xf32, #tpu.memory_space<vmem>>, vector<1x16x128xf32>,
    return
  }
  func.func @transform_0(%arg0: i32) -> (i32, i32, i32, i32) {
    %c0_i32 = arith.constant 0 : i32
    %c0_i32_0 = arith.constant 0 : i32
    %c0_i32_1 = arith.constant 0 : i32
    %c0_i32_2 = arith.constant 0 : i32
    return %arg0, %c0_i32, %c0_i32_0, %c0_i32_1 : i32, i32, i32, i32
  }
  func.func @transform_1(%arg0: i32) -> (i32, i32, i32) {
    %c0_i32 = arith.constant 0 : i32
    %c0_i32_0 = arith.constant 0 : i32
    %c0_i32_1 = arith.constant 0 : i32
    %c0_i32_2 = arith.constant 0 : i32
    return %c0_i32, %c0_i32_0, %c0_i32_1 : i32, i32, i32
  }
  func.func @transform_2(%arg0: i32) -> (i32, i32) {
    %c0_i32 = arith.constant 0 : i32
    %c0_i32_0 = arith.constant 0 : i32
    %c0_i32_1 = arith.constant 0 : i32
    return %c0_i32, %c0_i32_0 : i32, i32
  }
  func.func @transform_3(%arg0: i32) -> (i32, i32, i32) {
    %c0_i32 = arith.constant 0 : i32
    %c0_i32_0 = arith.constant 0 : i32
    %c0_i32_1 = arith.constant 0 : i32
    return %arg0, %c0_i32, %c0_i32_0 : i32, i32, i32
  }
}

</mosaic_0001>

<bundles_post_ra>
// kernel: generator_forward.25
= control target key start
LH: loop header
LB: loop body
LE: loop exit
PB: predicated region body
PF: predicated region fallthrough
CT: control target
= control target key end

     0   :  { %s561_s12 = smov 0   ;;  %s678_s0 = inlined_call_operand.vmem [shape: f32[2,2,9,64], index: 0, kind: input, shape index: {}]   ;;  %s679_s1 = inlined_call_operand.vmem [shape: f32[3,64,128], index: 1, kind: input, shape index: {}]   ;;  %s680_s2 = inlined_call_operand.vmem [shape: f32[1,128], index: 2, kind: input, shape index: {}]   ;;  %s681_s3 = inlined_call_operand.vmem [shape: f32[2,8,128], index: 3, kind: output, shape index: {}]  }
   0x1 LB: > { %s437_s13 = sadd.s32 4294967295, %s537_s12   ;;  %p441_p0 = scmp.ge.s32.totalorder %s537_s12, 1  ;;  %s537_s12 = sphi %s561_s12, %s13_s12  }
   0x2   : > { %p137_p1 = scmp.lt.s32.totalorder %s537_s12, 3 }
   0x4   : > { %p138_p2 = pnand %p441_p0, %p137_p1 }
   0x5   : > { %p160_p3 = scmp.lt.s32.totalorder (!%p138_p2), %s437_s13, 1 }
   0x6   : > { %141 = sbr.rel (%p138_p2) target bundleno = 293 (0x125), region = 32 }
   0xb   : > { %v187_v0 = vld [vmem:[%s679_s1 + $0x30] sm:$0xff]  ;;  %v188_v1 = vld [vmem:[%s679_s1 + $0x38] sm:$0xff]  ;;  %v539_v3 = vmov 0.0   ;;  %v185_v6 = vld [vmem:[%s679_s1 + $0x20] sm:$0xff]  ;;  %vm540_vm0 = vmmov 0   ;;  %s683_s13 = smov (!%p160_p3, %s437_s13), 1 }
   0xc   : > { %v453_v2 = vld [vmem:[%s679_s1 + $0x70] sm:$0xff]  ;;  %483 = vmatprep.subr.bf16.mxu0 %v539_v3  ;;  %v193_v4 = vpack.c.bf16 %v188_v1, %v187_v0  ;;  %495 = vmatprep.subr.bf16.mxu1 %v539_v3  ;;  %v454_v5 = vld [vmem:[%s679_s1 + $0x78] sm:$0xff]  ;;  %v186_v7 = vld [vmem:[%s679_s1 + $0x28] sm:$0xff]  ;;  %s467_s11 = sshll.u32 %s683_s13, 5  ;;  %vm194_vm1 = vcmask 523264   ;;  %s444_s18 = sshll.u32 %s683_s13, 3 }
   0xd   : > { %v252_v8 = vpack.c.bf16 %v454_v5, %v453_v2  ;;  %v451_v9 = vld [vmem:[%s679_s1 + $0x60] sm:$0xff]  ;;  %v452_v10 = vld [vmem:[%s679_s1 + $0x68] sm:$0xff]  ;;  %491 = vmatprep.mubr.msk.bf16.mxu0 %vm540_vm0, %v539_v3  ;;  %503 = vmatprep.mubr.msk.bf16.mxu1 %vm540_vm0, %v539_v3  ;;  %v192_v11 = vpack.c.bf16 %v186_v7, %v185_v6  ;;  %v183_v13 = vld [vmem:[%s679_s1 + $0x10] sm:$0xff]  ;;  %s164_s20 = scalar_lea.vmem %s678_s0, %s467_s11  ;;  %s168_s21 = scalar_lea.vmem %s681_s3, %s444_s18 }
   0xe   : > { %484 = vmatpush3.bf16.msra.mxu0 %v193_v4  ;;  %v251_v12 = vpack.c.bf16 %v452_v10, %v451_v9  ;;  %v184_v14 = vld [vmem:[%s679_s1 + $0x18] sm:$0xff]  ;;  %v449_v15 = vld [vmem:[%s679_s1 + $0x50] sm:$0xff]  ;;  %v181_v19 = vld [vmem:[%s679_s1] sm:$0xff] }
   0xf   : > { %485 = vmatprep.subr.bf16.mxu0 %v539_v3  ;;  %496 = vmatpush3.bf16.msra.mxu1 %v252_v8  ;;  %v450_v16 = vld [vmem:[%s679_s1 + $0x58] sm:$0xff]  ;;  %v191_v17 = vpack.c.bf16 %v184_v14, %v183_v13  ;;  %v182_v20 = vld [vmem:[%s679_s1 + $0x8] sm:$0xff]  ;;  %v447_v21 = vld [vmem:[%s679_s1 + $0x40] sm:$0xff] }
  0x10   : > { %497 = vmatprep.subr.bf16.mxu1 %v539_v3  ;;  %v250_v18 = vpack.c.bf16 %v450_v16, %v449_v15  ;;  %v448_v22 = vld [vmem:[%s679_s1 + $0x48] sm:$0xff]  ;;  %v190_v23 = vpack.c.bf16 %v182_v20, %v181_v19  ;;  %v170_v24 = vld [vmem:[%s164_s20] sm:$0xff]  ;;  %v462_v26 = vld [vmem:[%s679_s1 + $0xb0] sm:$0xff] }
  0x11   : > { %v249_v25 = vpack.c.bf16 %v448_v22, %v447_v21  ;;  %v463_v27 = vld [vmem:[%s679_s1 + $0xb8] sm:$0xff]  ;;  %v172_v28 = vld [vmem:[%s164_s20 + $0x10] sm:$0xff]  ;;  %v189_v29 = vpack.c.bf16 %v170_v24, %v170_v24  ;;  %v171_v30 = vld [vmem:[%s164_s20 + $0x8] sm:$0x1] }
  0x12   : > { %486 = vmatpush3.bf16.msra.mxu0 %v192_v11  ;;  %v310_v31 = vpack.c.bf16 %v463_v27, %v462_v26  ;;  %v248_v32 = vpack.c.bf16 %v172_v28, %v172_v28  ;;  %v460_v33 = vld [vmem:[%s679_s1 + $0xa0] sm:$0xff]  ;;  %v461_v34 = vld [vmem:[%s679_s1 + $0xa8] sm:$0xff]  ;;  %v306_v35 = vpack.c.bf16 %v171_v30, %v170_v24  ;;  %v458_v37 = vld [vmem:[%s679_s1 + $0x90] sm:$0xff] }
  0x13   : > { %487 = vmatprep.subr.bf16.mxu0 %v539_v3  ;;  %498 = vmatpush3.bf16.msra.mxu1 %v251_v12  ;;  %v309_v36 = vpack.c.bf16 %v461_v34, %v460_v33  ;;  %v459_v38 = vld [vmem:[%s679_s1 + $0x98] sm:$0xff]  ;;  %v456_v41 = vld [vmem:[%s679_s1 + $0x80] sm:$0xff]  ;;  %v457_v42 = vld [vmem:[%s679_s1 + $0x88] sm:$0xff] }
  0x14   : > { %499 = vmatprep.subr.bf16.mxu1 %v539_v3  ;;  %v314_v39 = vshll.u32 %v306_v35, 16  ;;  %v308_v40 = vpack.c.bf16 %v459_v38, %v458_v37  ;;  %v312_v43 = vshrl.u32 %v306_v35, 16  ;;  %v307_v45 = vpack.c.bf16 %v457_v42, %v456_v41  ;;  %v445_v55 = vld [vmem:[%s680_s2] ss:$0 sm:$0xff] }
  0x16   : > { %488 = vmatpush3.bf16.msra.mxu0 %v191_v17  ;;  %v316_v44 = vrot.slane %v314_v39, 1 }
  0x17   : > { %489 = vmatprep.subr.bf16.mxu0 %v539_v3  ;;  %500 = vmatpush3.bf16.msra.mxu1 %v250_v18 }
  0x18   : > { %501 = vmatprep.subr.bf16.mxu1 %v539_v3  ;;  %v317_v46 = vor.u32 %v316_v44, %v312_v43 }
  0x1a   : > { %490 = vmatpush3.bf16.msra.mxu0 %v190_v23 }
  0x1b   : > { %502 = vmatpush3.bf16.msra.mxu1 %v249_v25  ;;  %507 = vmatprep.subr.bf16.mxu0 %v539_v3 }
  0x1d   : > { %492 = vmatmul.mubr.msk.bf16.vlgmr.msra.gmra.mxu0 %vm194_vm1, %v189_v29 }
  0x1e   : > { %508 = vmatpush3.bf16.msra.mxu0 %v310_v31  ;;  %504 = vmatmul.mubr.msk.bf16.vlgmr.msra.gmra.mxu1 %vm194_vm1, %v248_v32 }
  0x1f   : > { %509 = vmatprep.subr.bf16.mxu0 %v539_v3  ;;  %515 = vmatprep.mubr.msk.bf16.mxu0 %vm540_vm0, %v539_v3 }
  0x22   : > { %510 = vmatpush3.bf16.msra.mxu0 %v309_v36 }
  0x23   : > { %511 = vmatprep.subr.bf16.mxu0 %v539_v3 }
  0x26   : > { %512 = vmatpush3.bf16.msra.mxu0 %v308_v40 }
  0x27   : > { %513 = vmatprep.subr.bf16.mxu0 %v539_v3 }
  0x2a   : > { %514 = vmatpush3.bf16.msra.mxu0 %v307_v45 }
  0x2d   : > { %516 = vmatmul.mubr.msk.bf16.vlgmr.msra.gmra.mxu0 %vm194_vm1, %v317_v46 }
  0xdd   : > { %v232_v47 = vpop.f32.mrf.mxu0 }
  0xde   : > { %v290_v48 = vpop.f32.mrf.mxu1  ;;  %v238_v56 = vadd.f32 %v445_v55, %v232_v47 }
  0xdf   : > { %v493_v49 = vpop.f32.mrf.mxu0 }
  0xe0   : > { %v505_v50 = vpop.f32.mrf.mxu1  ;;  %v296_v57 = vadd.f32 %v290_v48, %v238_v56 }
  0xe1   : > { %v235_v51 = vpop.f32.mrf.mxu0 }
  0xe2   : > { %v293_v52 = vpop.f32.mrf.mxu1 }
  0xe3   : > { %v494_v53 = vpop.f32.mrf.mxu0 }
  0xe4   : > { %v506_v54 = vpop.f32.mrf.mxu1 }
  0xed   : > { %v355_v58 = vpop.f32.mrf.mxu0 }
  0xee   : > { %v361_v59 = vadd.f32 %v355_v58, %v296_v57 }
  0xef   : > { %v517_v60 = vpop.f32.mrf.mxu0 }
  0xf0   : > { %v362_v61 = vrot.slane %v361_v59, 4 }
  0xf1   : > { %v358_v62 = vpop.f32.mrf.mxu0 }
  0xf2   : > { %v363_v63 = vadd.f32 %v362_v61, %v361_v59 }
  0xf3   : > { %v518_v0 = vpop.f32.mrf.mxu0 }
  0xf4   : > { %v364_v1 = vrot.slane %v363_v63, 2 }
  0xf6   : > { %v365_v2 = vadd.f32 %v364_v1, %v363_v63 }
  0xf8   : > { %v366_v3 = vrot.slane %v365_v2, 1 }
  0xfa   : > { %v367_v4 = vadd.f32 %v366_v3, %v365_v2 }
  0xfc   : > { %v369_v5 = vmul.f32 0.125, %v367_v4 }
  0xfe   : > { %v370_v6 = vsub.f32 %v361_v59, %v369_v5 }
 0x100   : > { %v371_v7 = vmul.f32 %v370_v6, %v370_v6 }
 0x102   : > { %v372_v8 = vrot.slane %v371_v7, 4 }
 0x104   : > { %v373_v9 = vadd.f32 %v372_v8, %v371_v7 }
 0x106   : > { %v374_v10 = vrot.slane %v373_v9, 2 }
 0x108   : > { %v375_v11 = vadd.f32 %v374_v10, %v373_v9 }
 0x10a   : > { %v376_v12 = vrot.slane %v375_v11, 1 }
 0x10c   : > { %v377_v13 = vadd.f32 %v376_v12, %v375_v11 }
 0x10e   : > { %v378_v14 = vmul.f32 0.125, %v377_v13 }
 0x110   : > { %v379_v15 = vadd.f32 1e-05, %v378_v14 }
 0x112   : > { %529 = vrsqrt.f32 %v379_v15 }
 0x11f   : > { %v530_v16 = vpop.eup %529 }
 0x120   : > { %v381_v17 = vmul.f32 %v530_v16, %v370_v6 }
 0x122   : > { %v382_v18 = vmax.f32 %v381_v17, 0.0 }
 0x124   : > { %383 = vst [vmem:[%s168_s21] sm:$0xff] %v382_v18 }
 0x125 PF: > { %s13_s12 = sadd.s32 1, %s537_s12  }
 0x126   : > { %p10_p4 = scmp.ge.s32.totalorder %s13_s12, 4  }
 0x128   :  { %12 = sbr.rel (!%p10_p4) target bundleno = 1 (0x1), region = 64 }

// kernel: generator_forward.24
= control target key start
LH: loop header
LB: loop body
LE: loop exit
PB: predicated region body
PF: predicated region fallthrough
CT: control target
= control target key end

     0   :  { %s509_s12 = smov 0   ;;  %s568_s0 = inlined_call_operand.vmem [shape: f32[2,1,22,1], index: 0, kind: input, shape index: {}]   ;;  %s569_s1 = inlined_call_operand.vmem [shape: f32[7,1,64], index: 1, kind: input, shape index: {}]   ;;  %s570_s2 = inlined_call_operand.vmem [shape: f32[1,64], index: 2, kind: input, shape index: {}]   ;;  %s571_s3 = inlined_call_operand.vmem [shape: f32[2,16,64], index: 3, kind: output, shape index: {}]  }
   0x1 LB: > { %s441_s13 = sadd.s32 4294967295, %s486_s12   ;;  %p445_p0 = scmp.ge.s32.totalorder %s486_s12, 1  ;;  %s486_s12 = sphi %s509_s12, %s13_s12  }
   0x2   : > { %p137_p1 = scmp.lt.s32.totalorder %s486_s12, 3 }
   0x4   : > { %p138_p2 = pnand %p445_p0, %p137_p1 }
   0x5   : > { %p161_p3 = scmp.lt.s32.totalorder (!%p138_p2), %s441_s13, 1 }
   0x6   : > { %141 = sbr.rel (%p138_p2) target bundleno = 220 (0xdc), region = 32 }
   0xb   : > { %v488_v0 = vmov 0   ;;  %s573_s13 = smov (!%p161_p3, %s441_s13), 1  ;;  %v452_v4 = vld [vmem:[%s569_s1 + $0x1] ss:$0 sm:$0xff]  ;;  %v454_v6 = vld [vmem:[%s569_s1 + $0x2] ss:$0 sm:$0xff] }
   0xc   : > { %476 = vset.pattern.permute.xlu0 %v488_v0  ;;  %477 = vset.pattern.permute.xlu1 %v488_v0  ;;  %s466_s14 = smul.u32 24, %s573_s13  ;;  %v456_v7 = vld [vmem:[%s569_s1 + $0x3] ss:$0 sm:$0xff]  ;;  %v458_v11 = vld [vmem:[%s569_s1 + $0x4] ss:$0 sm:$0xff]  ;;  %vm222_vm0 = vcmask 1046528  }
   0xd   : > { %v450_v16 = vld [vmem:[%s569_s1] ss:$0 sm:$0xff]  ;;  %vm246_vm1 = vcmask 1045504   ;;  %vm270_vm2 = vcmask 1044480   ;;  %vm294_vm3 = vcmask 1043456   ;;  %vm318_vm4 = vcmask 1042432  }
   0xe   : > { %s165_s17 = scalar_lea.vmem %s568_s0, %s466_s14  ;;  %v460_v22 = vld [vmem:[%s569_s1 + $0x5] ss:$0 sm:$0xff]  ;;  %v449_v23 = vld [vmem:[%s570_s2] ss:$0 sm:$0xff]  ;;  %v462_v40 = vld [vmem:[%s569_s1 + $0x6] ss:$0 sm:$0xff] }
   0xf   : > { %v171_v1 = vld [vmem:[%s165_s17] sm:$0xff]  ;;  %v173_v2 = vld [vmem:[%s165_s17 + $0x10] sm:$0x3f]  ;;  %v172_v3 = vld [vmem:[%s165_s17 + $0x8] sm:$0xff]  ;;  %vm342_vm5 = vcmask 1041408   ;;  %vm352_vm6 = vcmask 523264  }
  0x10   : > { %185 = vperm.xlu0 %476, %v171_v1   ;;  %207 = vperm.xlu1 %477, %v173_v2   ;;  %s465_s7 = sshll.u32 %s573_s13, 4 }
  0x11   : > { %s170_s10 = scalar_lea.vmem %s571_s3, %s465_s7 }
  0x14   : > { %190 = vperm.xlu0 %476, %v172_v3  }
  0x8b   : > { %v186_v5 = vpop.permute.xlu0 %185  ;;  %v208_v8 = vpop.permute.xlu1 %207 }
  0x8c   : > { %v216_v9 = vmul.f32 %v452_v4, %v186_v5  ;;  %v218_v10 = vmul.f32 %v452_v4, %v208_v8  ;;  %v240_v12 = vmul.f32 %v454_v6, %v186_v5  ;;  %v242_v13 = vmul.f32 %v454_v6, %v208_v8 }
  0x8d   : > { %v264_v14 = vmul.f32 %v456_v7, %v186_v5  ;;  %v266_v15 = vmul.f32 %v456_v7, %v208_v8  ;;  %v290_v17 = vmul.f32 %v458_v11, %v208_v8  ;;  %v288_v21 = vmul.f32 %v458_v11, %v186_v5 }
  0x8e   : > { %v223_v19 = vrot.slane %v216_v9, 1  ;;  %v226_v20 = vrot.slane %v218_v10, 1  ;;  %v199_v24 = vmul.f32 %v450_v16, %v186_v5  ;;  %v247_v28 = vrot.slane %v240_v12, 2 }
  0x8f   : > { %v191_v18 = vpop.permute.xlu0 %190  ;;  %v250_v29 = vrot.slane %v242_v13, 2  ;;  %v271_v30 = vrot.slane %v264_v14, 3  ;;  %v274_v31 = vrot.slane %v266_v15, 3  ;;  %v298_v32 = vrot.slane %v290_v17, 4 }
  0x90   : > { %v200_v25 = vmul.f32 %v450_v16, %v191_v18  ;;  %v217_v26 = vmul.f32 %v452_v4, %v191_v18  ;;  %v241_v27 = vmul.f32 %v454_v6, %v191_v18  ;;  %v312_v36 = vmul.f32 %v460_v22, %v186_v5 }
  0x91   : > { %v201_v37 = vadd.f32 %v449_v23, %v199_v24  ;;  %v265_v38 = vmul.f32 %v456_v7, %v191_v18  ;;  %v289_v39 = vmul.f32 %v458_v11, %v191_v18  ;;  %v314_v41 = vmul.f32 %v460_v22, %v208_v8 }
  0x92   : > { %v202_v33 = vadd.f32 %v449_v23, %v200_v25  ;;  %v224_v34 = vrot.slane %v217_v26, 1  ;;  %v248_v35 = vrot.slane %v241_v27, 2  ;;  %v313_v44 = vmul.f32 %v460_v22, %v191_v18 }
  0x93   : > { %v338_v45 = vmul.f32 %v462_v40, %v208_v8  ;;  %v272_v48 = vrot.slane %v265_v38, 3  ;;  %v296_v51 = vrot.slane %v289_v39, 4  ;;  %v337_v52 = vmul.f32 %v462_v40, %v191_v18 }
  0x94   : > { %v225_v42 = vsel %vm222_vm0, %v223_v19, %v224_v34  ;;  %v227_v43 = vsel %vm222_vm0, %v224_v34, %v226_v20  ;;  %v249_v49 = vsel %vm246_vm1, %v247_v28, %v248_v35  ;;  %v251_v50 = vsel %vm246_vm1, %v248_v35, %v250_v29 }
  0x95   : > { %v230_v46 = vadd.f32 %v225_v42, %v201_v37  ;;  %v231_v47 = vadd.f32 %v227_v43, %v202_v33  ;;  %v295_v53 = vrot.slane %v288_v21, 4  ;;  %v336_v54 = vmul.f32 %v462_v40, %v186_v5 }
  0x96   : > { %v322_v57 = vrot.slane %v314_v41, 5  ;;  %v273_v58 = vsel %vm270_vm2, %v271_v30, %v272_v48  ;;  %v275_v59 = vsel %vm270_vm2, %v272_v48, %v274_v31  ;;  %v320_v60 = vrot.slane %v313_v44, 5 }
  0x97   : > { %v254_v55 = vadd.f32 %v249_v49, %v230_v46  ;;  %v255_v56 = vadd.f32 %v251_v50, %v231_v47  ;;  %v319_v61 = vrot.slane %v312_v36, 5  ;;  %v346_v0 = vrot.slane %v338_v45, 6 }
  0x98   : > { %v297_v1 = vsel %vm294_vm3, %v295_v53, %v296_v51  ;;  %v299_v2 = vsel %vm294_vm3, %v296_v51, %v298_v32  ;;  %v344_v3 = vrot.slane %v337_v52, 6  ;;  %v343_v6 = vrot.slane %v336_v54, 6 }
  0x99   : > { %v278_v62 = vadd.f32 %v273_v58, %v254_v55  ;;  %v279_v63 = vadd.f32 %v275_v59, %v255_v56  ;;  %v321_v7 = vsel %vm318_vm4, %v319_v61, %v320_v60  ;;  %v323_v8 = vsel %vm318_vm4, %v320_v60, %v322_v57 }
  0x9a   : > { %v345_v11 = vsel %vm342_vm5, %v343_v6, %v344_v3  ;;  %v347_v12 = vsel %vm342_vm5, %v344_v3, %v346_v0 }
  0x9b   : > { %v302_v4 = vadd.f32 %v297_v1, %v278_v62  ;;  %v303_v5 = vadd.f32 %v299_v2, %v279_v63 }
  0x9d   : > { %v326_v9 = vadd.f32 %v321_v7, %v302_v4  ;;  %v327_v10 = vadd.f32 %v323_v8, %v303_v5 }
  0x9f   : > { %v350_v13 = vadd.f32 %v345_v11, %v326_v9  ;;  %v351_v14 = vadd.f32 %v347_v12, %v327_v10 }
  0xa1   : > { %v353_v15 = vsel %vm352_vm6, %v350_v13, 0.0  ;;  %v354_v16 = vsel %vm352_vm6, %v351_v14, 0.0 }
  0xa2   : > { %v355_v17 = vadd.f32 %v354_v16, %v353_v15 }
  0xa4   : > { %v356_v18 = vrot.slane %v355_v17, 4 }
  0xa6   : > { %v357_v19 = vadd.f32 %v356_v18, %v355_v17 }
  0xa8   : > { %v358_v20 = vrot.slane %v357_v19, 2 }
  0xaa   : > { %v359_v21 = vadd.f32 %v358_v20, %v357_v19 }
  0xac   : > { %v360_v22 = vrot.slane %v359_v21, 1 }
  0xae   : > { %v361_v23 = vadd.f32 %v360_v22, %v359_v21 }
  0xb0   : > { %v363_v24 = vmul.f32 0.0625, %v361_v23 }
  0xb2   : > { %v364_v25 = vsub.f32 %v350_v13, %v363_v24  ;;  %v365_v26 = vsub.f32 %v351_v14, %v363_v24 }
  0xb4   : > { %v366_v27 = vmul.f32 %v364_v25, %v364_v25  ;;  %v367_v28 = vmul.f32 %v365_v26, %v365_v26 }
  0xb6   : > { %v368_v29 = vsel %vm352_vm6, %v366_v27, 0.0  ;;  %v369_v30 = vsel %vm352_vm6, %v367_v28, 0.0 }
  0xb7   : > { %v370_v31 = vadd.f32 %v369_v30, %v368_v29 }
  0xb9   : > { %v371_v32 = vrot.slane %v370_v31, 4 }
  0xbb   : > { %v372_v33 = vadd.f32 %v371_v32, %v370_v31 }
  0xbd   : > { %v373_v34 = vrot.slane %v372_v33, 2 }
  0xbf   : > { %v374_v35 = vadd.f32 %v373_v34, %v372_v33 }
  0xc1   : > { %v375_v36 = vrot.slane %v374_v35, 1 }
  0xc3   : > { %v376_v37 = vadd.f32 %v375_v36, %v374_v35 }
  0xc5   : > { %v377_v38 = vmul.f32 0.0625, %v376_v37 }
  0xc7   : > { %v378_v39 = vadd.f32 1e-05, %v377_v38 }
  0xc9   : > { %478 = vrsqrt.f32 %v378_v39 }
  0xd6   : > { %v479_v40 = vpop.eup %478 }
  0xd7   : > { %v380_v41 = vmul.f32 %v479_v40, %v364_v25  ;;  %v381_v42 = vmul.f32 %v479_v40, %v365_v26 }
  0xd9   : > { %v382_v43 = vmax.f32 %v380_v41, 0.0  ;;  %v383_v44 = vmax.f32 %v381_v42, 0.0 }
  0xdb   : > { %384 = vst.msk [vmem:[%s170_s10] sm:$0xff] %vm352_vm6, %v382_v43  ;;  %385 = vst.msk [vmem:[%s170_s10 + $0x8] sm:$0xff] %vm352_vm6, %v383_v44 }
  0xdc PF: > { %s13_s12 = sadd.s32 1, %s486_s12  }
  0xdd   : > { %p10_p4 = scmp.ge.s32.totalorder %s13_s12, 4  }
  0xdf   :  { %12 = sbr.rel (!%p10_p4) target bundleno = 1 (0x1), region = 68 }

// kernel: generator_forward.26
= control target key start
LH: loop header
LB: loop body
LE: loop exit
PB: predicated region body
PF: predicated region fallthrough
CT: control target
= control target key end

     0   :  { %s698_s12 = smov 0   ;;  %s1032_s0 = inlined_call_operand.vmem [shape: f32[2,2,5,128], index: 0, kind: input, shape index: {}]   ;;  %s1033_s1 = inlined_call_operand.vmem [shape: f32[3,128,256], index: 1, kind: input, shape index: {}]   ;;  %s1034_s2 = inlined_call_operand.vmem [shape: f32[1,256], index: 2, kind: input, shape index: {}]   ;;  %s1035_s3 = inlined_call_operand.vmem [shape: f32[2,4,256], index: 3, kind: output, shape index: {}]  }
   0x1 LB: > { %s579_s13 = sadd.s32 4294967295, %s675_s12   ;;  %p583_p0 = scmp.ge.s32.totalorder %s675_s12, 1  ;;  %s675_s12 = sphi %s698_s12, %s13_s12  }
   0x2   : > { %p137_p1 = scmp.lt.s32.totalorder %s675_s12, 3 }
   0x4   : > { %p138_p2 = pnand %p583_p0, %p137_p1 }
   0x5   : > { %p836_p3 = scmp.lt.s32.totalorder (!%p138_p2), %s579_s13, 1 }
   0x6   : > { %141 = sbr.rel (%p138_p2) target bundleno = 332 (0x14c), region = 32 }
   0xb   : > { %v217_v0 = vld [vmem:[%s1033_s1 + $0xe8] sm:$0xff]  ;;  %v219_v1 = vld [vmem:[%s1033_s1 + $0xf8] sm:$0xff]  ;;  %v216_v2 = vld [vmem:[%s1033_s1 + $0xe0] sm:$0xff]  ;;  %v677_v7 = vmov 0   ;;  %s1038_s13 = smov (!%p836_p3, %s579_s13), 1  ;;  %vm473_vm0 = vcmask 1043456  }
   0xc   : > { %v236_v3 = vpack.c.bf16 %v219_v1, %v217_v0  ;;  %v218_v4 = vld [vmem:[%s1033_s1 + $0xf0] sm:$0xff]  ;;  %v617_v5 = vld [vmem:[%s1033_s1 + $0x1e8] sm:$0xff]  ;;  %v619_v6 = vld [vmem:[%s1033_s1 + $0x1f8] sm:$0xff]  ;;  %269 = vmatprep.mubr.bf16.mxu0 %v677_v7  ;;  %362 = vmatprep.mubr.bf16.mxu1 %v677_v7  ;;  %s654_s4 = sshll.u32 %s1038_s13, 4  ;;  %s655_s11 = sshll.u32 %s1038_s13, 3 }
   0xd   : > { %v235_v8 = vpack.c.bf16 %v218_v4, %v216_v2  ;;  %v329_v9 = vpack.c.bf16 %v619_v6, %v617_v5  ;;  %v616_v10 = vld [vmem:[%s1033_s1 + $0x1e0] sm:$0xff]  ;;  %v618_v11 = vld [vmem:[%s1033_s1 + $0x1f0] sm:$0xff]  ;;  %v213_v12 = vld [vmem:[%s1033_s1 + $0xc8] sm:$0xff]  ;;  %s165_s19 = scalar_lea.vmem %s1032_s0, %s654_s4  ;;  %s170_s16 = scalar_lea.vmem %s1035_s3, %s655_s11 }
   0xe   : > { %237 = vmatprep.subr.bf16.mxu0 %v236_v3  ;;  %v328_v13 = vpack.c.bf16 %v618_v11, %v616_v10  ;;  %v215_v14 = vld [vmem:[%s1033_s1 + $0xd8] sm:$0xff]  ;;  %v212_v15 = vld [vmem:[%s1033_s1 + $0xc0] sm:$0xff]  ;;  %v214_v16 = vld [vmem:[%s1033_s1 + $0xd0] sm:$0xff] }
   0xf   : > { %238 = vmatpush1.bf16.msra.mxu0 %v235_v8  ;;  %330 = vmatprep.subr.bf16.mxu1 %v329_v9  ;;  %v234_v17 = vpack.c.bf16 %v215_v14, %v213_v12  ;;  %v233_v18 = vpack.c.bf16 %v214_v16, %v212_v15  ;;  %v613_v19 = vld [vmem:[%s1033_s1 + $0x1c8] sm:$0xff]  ;;  %v615_v20 = vld [vmem:[%s1033_s1 + $0x1d8] sm:$0xff]  ;;  %v612_v21 = vld [vmem:[%s1033_s1 + $0x1c0] sm:$0xff] }
  0x10   : > { %331 = vmatpush1.bf16.msra.mxu1 %v328_v13  ;;  %v327_v22 = vpack.c.bf16 %v615_v20, %v613_v19  ;;  %v614_v23 = vld [vmem:[%s1033_s1 + $0x1d0] sm:$0xff]  ;;  %v209_v24 = vld [vmem:[%s1033_s1 + $0xa8] sm:$0xff]  ;;  %v211_v25 = vld [vmem:[%s1033_s1 + $0xb8] sm:$0xff] }
  0x11   : > { %239 = vmatprep.subr.bf16.mxu0 %v234_v17  ;;  %v326_v26 = vpack.c.bf16 %v614_v23, %v612_v21  ;;  %v232_v27 = vpack.c.bf16 %v211_v25, %v209_v24  ;;  %v208_v28 = vld [vmem:[%s1033_s1 + $0xa0] sm:$0xff]  ;;  %v210_v29 = vld [vmem:[%s1033_s1 + $0xb0] sm:$0xff]  ;;  %v609_v30 = vld [vmem:[%s1033_s1 + $0x1a8] sm:$0xff] }
  0x12   : > { %332 = vmatprep.subr.bf16.mxu1 %v327_v22  ;;  %v611_v31 = vld [vmem:[%s1033_s1 + $0x1b8] sm:$0xff]  ;;  %v608_v32 = vld [vmem:[%s1033_s1 + $0x1a0] sm:$0xff]  ;;  %v610_v33 = vld [vmem:[%s1033_s1 + $0x1b0] sm:$0xff]  ;;  %v231_v34 = vpack.c.bf16 %v210_v29, %v208_v28 }
  0x13   : > { %240 = vmatpush1.bf16.msra.mxu0 %v233_v18  ;;  %v325_v35 = vpack.c.bf16 %v611_v31, %v609_v30  ;;  %v205_v36 = vld [vmem:[%s1033_s1 + $0x88] sm:$0xff]  ;;  %v207_v37 = vld [vmem:[%s1033_s1 + $0x98] sm:$0xff]  ;;  %v204_v38 = vld [vmem:[%s1033_s1 + $0x80] sm:$0xff]  ;;  %v324_v39 = vpack.c.bf16 %v610_v33, %v608_v32 }
  0x14   : > { %333 = vmatpush1.bf16.msra.mxu1 %v326_v26  ;;  %241 = vmatprep.subr.bf16.mxu0 %v232_v27  ;;  %v230_v40 = vpack.c.bf16 %v207_v37, %v205_v36  ;;  %v206_v41 = vld [vmem:[%s1033_s1 + $0x90] sm:$0xff]  ;;  %v605_v42 = vld [vmem:[%s1033_s1 + $0x188] sm:$0xff]  ;;  %v607_v43 = vld [vmem:[%s1033_s1 + $0x198] sm:$0xff] }
  0x15   : > { %334 = vmatprep.subr.bf16.mxu1 %v325_v35  ;;  %v323_v44 = vpack.c.bf16 %v607_v43, %v605_v42  ;;  %v604_v45 = vld [vmem:[%s1033_s1 + $0x180] sm:$0xff]  ;;  %v606_v46 = vld [vmem:[%s1033_s1 + $0x190] sm:$0xff]  ;;  %v201_v47 = vld [vmem:[%s1033_s1 + $0x68] sm:$0xff]  ;;  %v229_v49 = vpack.c.bf16 %v206_v41, %v204_v38 }
  0x16   : > { %v203_v48 = vld [vmem:[%s1033_s1 + $0x78] sm:$0xff]  ;;  %v601_v50 = vld [vmem:[%s1033_s1 + $0x168] sm:$0xff]  ;;  %v322_v52 = vpack.c.bf16 %v606_v46, %v604_v45  ;;  %v200_v54 = vld [vmem:[%s1033_s1 + $0x60] sm:$0xff] }
  0x17   : > { %242 = vmatpush1.bf16.msra.mxu0 %v231_v34  ;;  %v603_v51 = vld [vmem:[%s1033_s1 + $0x178] sm:$0xff]  ;;  %v228_v53 = vpack.c.bf16 %v203_v48, %v201_v47  ;;  %v202_v55 = vld [vmem:[%s1033_s1 + $0x70] sm:$0xff]  ;;  %v600_v56 = vld [vmem:[%s1033_s1 + $0x160] sm:$0xff] }
  0x18   : > { %335 = vmatpush1.bf16.msra.mxu1 %v324_v39  ;;  %243 = vmatprep.subr.bf16.mxu0 %v230_v40  ;;  %v321_v57 = vpack.c.bf16 %v603_v51, %v601_v50  ;;  %v602_v58 = vld [vmem:[%s1033_s1 + $0x170] sm:$0xff]  ;;  %v197_v59 = vld [vmem:[%s1033_s1 + $0x48] sm:$0xff]  ;;  %v199_v60 = vld [vmem:[%s1033_s1 + $0x58] sm:$0xff]  ;;  %v227_v63 = vpack.c.bf16 %v202_v55, %v200_v54 }
  0x19   : > { %336 = vmatprep.subr.bf16.mxu1 %v323_v44  ;;  %v597_v61 = vld [vmem:[%s1033_s1 + $0x148] sm:$0xff]  ;;  %v599_v62 = vld [vmem:[%s1033_s1 + $0x158] sm:$0xff]  ;;  %v320_v0 = vpack.c.bf16 %v602_v58, %v600_v56  ;;  %v226_v1 = vpack.c.bf16 %v199_v60, %v197_v59  ;;  %v196_v2 = vld [vmem:[%s1033_s1 + $0x40] sm:$0xff] }
  0x1a   : > { %v198_v3 = vld [vmem:[%s1033_s1 + $0x50] sm:$0xff]  ;;  %v596_v4 = vld [vmem:[%s1033_s1 + $0x140] sm:$0xff]  ;;  %v319_v5 = vpack.c.bf16 %v599_v62, %v597_v61  ;;  %v193_v8 = vld [vmem:[%s1033_s1 + $0x28] sm:$0xff] }
  0x1b   : > { %244 = vmatpush1.bf16.msra.mxu0 %v229_v49  ;;  %v598_v6 = vld [vmem:[%s1033_s1 + $0x150] sm:$0xff]  ;;  %v195_v9 = vld [vmem:[%s1033_s1 + $0x38] sm:$0xff]  ;;  %v593_v10 = vld [vmem:[%s1033_s1 + $0x128] sm:$0xff]  ;;  %v225_v12 = vpack.c.bf16 %v198_v3, %v196_v2 }
  0x1c   : > { %337 = vmatpush1.bf16.msra.mxu1 %v322_v52  ;;  %245 = vmatprep.subr.bf16.mxu0 %v228_v53  ;;  %v595_v11 = vld [vmem:[%s1033_s1 + $0x138] sm:$0xff]  ;;  %v318_v13 = vpack.c.bf16 %v598_v6, %v596_v4  ;;  %v224_v14 = vpack.c.bf16 %v195_v9, %v193_v8  ;;  %v192_v15 = vld [vmem:[%s1033_s1 + $0x20] sm:$0xff]  ;;  %v194_v16 = vld [vmem:[%s1033_s1 + $0x30] sm:$0xff] }
  0x1d   : > { %338 = vmatprep.subr.bf16.mxu1 %v321_v57  ;;  %v592_v17 = vld [vmem:[%s1033_s1 + $0x120] sm:$0xff]  ;;  %v317_v18 = vpack.c.bf16 %v595_v11, %v593_v10  ;;  %v594_v19 = vld [vmem:[%s1033_s1 + $0x130] sm:$0xff]  ;;  %v189_v20 = vld [vmem:[%s1033_s1 + $0x8] sm:$0xff]  ;;  %v223_v24 = vpack.c.bf16 %v194_v16, %v192_v15 }
  0x1e   : > { %v191_v21 = vld [vmem:[%s1033_s1 + $0x18] sm:$0xff]  ;;  %v589_v22 = vld [vmem:[%s1033_s1 + $0x108] sm:$0xff]  ;;  %v316_v25 = vpack.c.bf16 %v594_v19, %v592_v17  ;;  %v188_v27 = vld [vmem:[%s1033_s1] sm:$0xff] }
  0x1f   : > { %246 = vmatpush1.bf16.msra.mxu0 %v227_v63  ;;  %v591_v23 = vld [vmem:[%s1033_s1 + $0x118] sm:$0xff]  ;;  %v222_v26 = vpack.c.bf16 %v191_v21, %v189_v20  ;;  %v190_v28 = vld [vmem:[%s1033_s1 + $0x10] sm:$0xff]  ;;  %v588_v29 = vld [vmem:[%s1033_s1 + $0x100] sm:$0xff] }
  0x20   : > { %339 = vmatpush1.bf16.msra.mxu1 %v320_v0  ;;  %247 = vmatprep.subr.bf16.mxu0 %v226_v1  ;;  %v315_v30 = vpack.c.bf16 %v591_v23, %v589_v22  ;;  %v590_v31 = vld [vmem:[%s1033_s1 + $0x110] sm:$0xff]  ;;  %v649_v32 = vld [vmem:[%s1033_s1 + $0x2e8] sm:$0xff]  ;;  %v651_v33 = vld [vmem:[%s1033_s1 + $0x2f8] sm:$0xff]  ;;  %v221_v34 = vpack.c.bf16 %v190_v28, %v188_v27 }
  0x21   : > { %340 = vmatprep.subr.bf16.mxu1 %v319_v5  ;;  %v172_v35 = vld [vmem:[%s165_s19] sm:$0x1f]  ;;  %v314_v36 = vpack.c.bf16 %v590_v31, %v588_v29  ;;  %v421_v37 = vpack.c.bf16 %v651_v33, %v649_v32  ;;  %v650_v39 = vld [vmem:[%s1033_s1 + $0x2f0] sm:$0xff]  ;;  %v173_v40 = vld [vmem:[%s165_s19 + $0x8] sm:$0x1f] }
  0x22   : > { %v648_v38 = vld [vmem:[%s1033_s1 + $0x2e0] sm:$0xff]  ;;  %v645_v41 = vld [vmem:[%s1033_s1 + $0x2c8] sm:$0xff]  ;;  %v647_v42 = vld [vmem:[%s1033_s1 + $0x2d8] sm:$0xff]  ;;  %v934_v43 = vpack.c.bf16 %v172_v35, %v172_v35  ;;  %v313_v45 = vpack.c.bf16 %v173_v40, %v173_v40 }
  0x23   : > { %248 = vmatpush1.bf16.msra.mxu0 %v225_v12  ;;  %v420_v44 = vpack.c.bf16 %v650_v39, %v648_v38  ;;  %v419_v46 = vpack.c.bf16 %v647_v42, %v645_v41  ;;  %v644_v47 = vld [vmem:[%s1033_s1 + $0x2c0] sm:$0xff]  ;;  %v646_v48 = vld [vmem:[%s1033_s1 + $0x2d0] sm:$0xff]  ;;  %v641_v49 = vld [vmem:[%s1033_s1 + $0x2a8] sm:$0xff] }
  0x24   : > { %341 = vmatpush1.bf16.msra.mxu1 %v318_v13  ;;  %249 = vmatprep.subr.bf16.mxu0 %v224_v14  ;;  %v643_v50 = vld [vmem:[%s1033_s1 + $0x2b8] sm:$0xff]  ;;  %v418_v51 = vpack.c.bf16 %v646_v48, %v644_v47  ;;  %v640_v53 = vld [vmem:[%s1033_s1 + $0x2a0] sm:$0xff]  ;;  %v642_v54 = vld [vmem:[%s1033_s1 + $0x2b0] sm:$0xff]  ;;  %v425_v17 = vshll.u32 %v934_v43, 16  ;;  %v423_v22 = vshrl.u32 %v934_v43, 16 }
  0x25   : > { %342 = vmatprep.subr.bf16.mxu1 %v317_v18  ;;  %v417_v52 = vpack.c.bf16 %v643_v50, %v641_v49  ;;  %v637_v55 = vld [vmem:[%s1033_s1 + $0x288] sm:$0xff]  ;;  %v639_v56 = vld [vmem:[%s1033_s1 + $0x298] sm:$0xff]  ;;  %v416_v57 = vpack.c.bf16 %v642_v54, %v640_v53  ;;  %v636_v59 = vld [vmem:[%s1033_s1 + $0x280] sm:$0xff] }
  0x26   : > { %v415_v58 = vpack.c.bf16 %v639_v56, %v637_v55  ;;  %v633_v60 = vld [vmem:[%s1033_s1 + $0x268] sm:$0xff]  ;;  %v635_v61 = vld [vmem:[%s1033_s1 + $0x278] sm:$0xff]  ;;  %v632_v0 = vld [vmem:[%s1033_s1 + $0x260] sm:$0xff]  ;;  %v427_v23 = vrot.slane %v425_v17, 1 }
  0x27   : > { %250 = vmatpush1.bf16.msra.mxu0 %v223_v24  ;;  %v413_v63 = vpack.c.bf16 %v635_v61, %v633_v60  ;;  %v634_v1 = vld [vmem:[%s1033_s1 + $0x270] sm:$0xff]  ;;  %v629_v2 = vld [vmem:[%s1033_s1 + $0x248] sm:$0xff]  ;;  %v631_v3 = vld [vmem:[%s1033_s1 + $0x258] sm:$0xff] }
  0x28   : > { %343 = vmatpush1.bf16.msra.mxu1 %v316_v25  ;;  %251 = vmatprep.subr.bf16.mxu0 %v222_v26  ;;  %v412_v4 = vpack.c.bf16 %v634_v1, %v632_v0  ;;  %v411_v5 = vpack.c.bf16 %v631_v3, %v629_v2  ;;  %v628_v6 = vld [vmem:[%s1033_s1 + $0x240] sm:$0xff]  ;;  %v630_v8 = vld [vmem:[%s1033_s1 + $0x250] sm:$0xff]  ;;  %v625_v9 = vld [vmem:[%s1033_s1 + $0x228] sm:$0xff]  ;;  %v428_v25 = vor.u32 %v427_v23, %v423_v22 }
  0x29   : > { %344 = vmatprep.subr.bf16.mxu1 %v315_v30  ;;  %v627_v10 = vld [vmem:[%s1033_s1 + $0x238] sm:$0xff]  ;;  %v410_v11 = vpack.c.bf16 %v630_v8, %v628_v6  ;;  %v624_v13 = vld [vmem:[%s1033_s1 + $0x220] sm:$0xff]  ;;  %v626_v14 = vld [vmem:[%s1033_s1 + $0x230] sm:$0xff] }
  0x2a   : > { %v409_v12 = vpack.c.bf16 %v627_v10, %v625_v9  ;;  %v621_v15 = vld [vmem:[%s1033_s1 + $0x208] sm:$0xff]  ;;  %v623_v16 = vld [vmem:[%s1033_s1 + $0x218] sm:$0xff]  ;;  %v408_v18 = vpack.c.bf16 %v626_v14, %v624_v13  ;;  %v620_v20 = vld [vmem:[%s1033_s1 + $0x200] sm:$0xff] }
  0x2b   : > { %252 = vmatpush1.bf16.msra.mxu0 %v221_v34  ;;  %v407_v19 = vpack.c.bf16 %v623_v16, %v621_v15  ;;  %v622_v21 = vld [vmem:[%s1033_s1 + $0x210] sm:$0xff]  ;;  %v176_v34 = vlaneseq }
  0x2c   : > { %345 = vmatpush1.bf16.msra.mxu1 %v314_v36  ;;  %430 = vmatprep.subr.bf16.mxu0 %v421_v37  ;;  %v406_v24 = vpack.c.bf16 %v622_v21, %v620_v20  ;;  %v174_v37 = vld [vmem:[%s1034_s2] sm:$0x3] }
  0x2d   : > { %v177_v35 = vshrl.u32 %v176_v34, 7 }
  0x2e   : > { %270 = vmatmul.mubr.bf16.vlgmr.msra.gmra.mxu0 %v934_v43 }
  0x2f   : > { %431 = vmatpush1.bf16.msra.mxu0 %v420_v44  ;;  %363 = vmatmul.mubr.bf16.vlgmr.msra.gmra.mxu1 %v313_v45  ;;  %v178_v36 = vsub.s32 0, %v177_v35  ;;  %v182_v38 = vsub.s32 1, %v177_v35 }
  0x30   : > { %432 = vmatprep.subr.bf16.mxu0 %v419_v46  ;;  %462 = vmatprep.mubr.bf16.mxu0 %v677_v7  ;;  %v638_v7 = vld [vmem:[%s1033_s1 + $0x290] sm:$0xff] }
  0x31   : > { %v414_v62 = vpack.c.bf16 %v638_v7, %v636_v59  ;;  %v179_v39 = vrot.slane %v174_v37, %v178_v36  ;;  %v183_v40 = vrot.slane %v174_v37, %v182_v38 }
  0x33   : > { %433 = vmatpush1.bf16.msra.mxu0 %v418_v51 }
  0x34   : > { %434 = vmatprep.subr.bf16.mxu0 %v417_v52 }
  0x37   : > { %435 = vmatpush1.bf16.msra.mxu0 %v416_v57 }
  0x38   : > { %436 = vmatprep.subr.bf16.mxu0 %v415_v58 }
  0x3b   : > { %437 = vmatpush1.bf16.msra.mxu0 %v414_v62 }
  0x3c   : > { %438 = vmatprep.subr.bf16.mxu0 %v413_v63 }
  0x3f   : > { %439 = vmatpush1.bf16.msra.mxu0 %v412_v4 }
  0x40   : > { %440 = vmatprep.subr.bf16.mxu0 %v411_v5 }
  0x43   : > { %441 = vmatpush1.bf16.msra.mxu0 %v410_v11 }
  0x44   : > { %442 = vmatprep.subr.bf16.mxu0 %v409_v12 }
  0x47   : > { %443 = vmatpush1.bf16.msra.mxu0 %v408_v18 }
  0x48   : > { %444 = vmatprep.subr.bf16.mxu0 %v407_v19 }
  0x4b   : > { %445 = vmatpush1.bf16.msra.mxu0 %v406_v24 }
  0x4e   : > { %463 = vmatmul.mubr.bf16.vlgmr.msra.gmra.mxu0 %v428_v25 }
  0xee   : > { %v271_v26 = vpop.f32.mrf.mxu0 }
  0xef   : > { %v364_v27 = vpop.f32.mrf.mxu1  ;;  %v278_v41 = vadd.f32 %v271_v26, %v179_v39 }
  0xf0   : > { %v273_v28 = vpop.f32.mrf.mxu0 }
  0xf1   : > { %v366_v29 = vpop.f32.mrf.mxu1  ;;  %v279_v42 = vadd.f32 %v273_v28, %v183_v40  ;;  %v371_v43 = vadd.f32 %v364_v27, %v278_v41 }
  0xf2   : > { %v275_v30 = vpop.f32.mrf.mxu0 }
  0xf3   : > { %v368_v31 = vpop.f32.mrf.mxu1  ;;  %v372_v45 = vadd.f32 %v366_v29, %v279_v42 }
  0xf4   : > { %v276_v32 = vpop.f32.mrf.mxu0 }
  0xf5   : > { %v369_v33 = vpop.f32.mrf.mxu1 }
 0x10e   : > { %v464_v44 = vpop.f32.mrf.mxu0 }
 0x10f   : > { %v471_v46 = vadd.f32 %v464_v44, %v371_v43 }
 0x110   : > { %v466_v47 = vpop.f32.mrf.mxu0 }
 0x111   : > { %v474_v48 = vsel %vm473_vm0, %v471_v46, 0.0  ;;  %v472_v49 = vadd.f32 %v466_v47, %v372_v45 }
 0x112   : > { %v475_v50 = vrot.slane %v474_v48, 4  ;;  %v468_v51 = vpop.f32.mrf.mxu0 }
 0x113   : > { %v481_v52 = vsel %vm473_vm0, %v472_v49, 0.0 }
 0x114   : > { %v476_v53 = vadd.f32 %v475_v50, %v474_v48  ;;  %v482_v54 = vrot.slane %v481_v52, 4  ;;  %v469_v55 = vpop.f32.mrf.mxu0 }
 0x116   : > { %v477_v56 = vrot.slane %v476_v53, 2  ;;  %v483_v57 = vadd.f32 %v482_v54, %v481_v52 }
 0x118   : > { %v478_v58 = vadd.f32 %v477_v56, %v476_v53  ;;  %v484_v59 = vrot.slane %v483_v57, 2 }
 0x11a   : > { %v479_v7 = vrot.slane %v478_v58, 1  ;;  %v485_v60 = vadd.f32 %v484_v59, %v483_v57 }
 0x11c   : > { %v480_v61 = vadd.f32 %v479_v7, %v478_v58  ;;  %v486_v62 = vrot.slane %v485_v60, 1 }
 0x11e   : > { %v489_v63 = vmul.f32 0.25, %v480_v61  ;;  %v487_v0 = vadd.f32 %v486_v62, %v485_v60 }
 0x120   : > { %v491_v1 = vsub.f32 %v471_v46, %v489_v63  ;;  %v490_v2 = vmul.f32 0.25, %v487_v0 }
 0x122   : > { %v493_v3 = vmul.f32 %v491_v1, %v491_v1  ;;  %v492_v4 = vsub.f32 %v472_v49, %v490_v2 }
 0x124   : > { %v495_v5 = vsel %vm473_vm0, %v493_v3, 0.0  ;;  %v494_v6 = vmul.f32 %v492_v4, %v492_v4 }
 0x125   : > { %v496_v8 = vrot.slane %v495_v5, 4 }
 0x126   : > { %v502_v9 = vsel %vm473_vm0, %v494_v6, 0.0 }
 0x127   : > { %v497_v10 = vadd.f32 %v496_v8, %v495_v5  ;;  %v503_v11 = vrot.slane %v502_v9, 4 }
 0x129   : > { %v498_v12 = vrot.slane %v497_v10, 2  ;;  %v504_v13 = vadd.f32 %v503_v11, %v502_v9 }
 0x12b   : > { %v499_v14 = vadd.f32 %v498_v12, %v497_v10  ;;  %v505_v15 = vrot.slane %v504_v13, 2 }
 0x12d   : > { %v500_v16 = vrot.slane %v499_v14, 1  ;;  %v506_v17 = vadd.f32 %v505_v15, %v504_v13 }
 0x12f   : > { %v501_v18 = vadd.f32 %v500_v16, %v499_v14  ;;  %v507_v19 = vrot.slane %v506_v17, 1 }
 0x131   : > { %v509_v20 = vmul.f32 0.25, %v501_v18  ;;  %v508_v21 = vadd.f32 %v507_v19, %v506_v17 }
 0x133   : > { %v511_v22 = vadd.f32 1e-05, %v509_v20  ;;  %v510_v23 = vmul.f32 0.25, %v508_v21 }
 0x135   : > { %665 = vrsqrt.f32 %v511_v22  ;;  %v512_v24 = vadd.f32 1e-05, %v510_v23 }
 0x137   : > { %667 = vrsqrt.f32 %v512_v24 }
 0x142   : > { %v666_v25 = vpop.eup %665 }
 0x143   : > { %v515_v26 = vmul.f32 %v666_v25, %v491_v1 }
 0x144   : > { %v668_v27 = vpop.eup %667 }
 0x145   : > { %v516_v28 = vmul.f32 %v668_v27, %v492_v4  ;;  %v517_v29 = vmax.f32 %v515_v26, 0.0 }
 0x147   : > { %v518_v30 = vmax.f32 %v516_v28, 0.0 }
 0x149   : > { %v521_v31 = vcombine.low %v517_v29, %v518_v30 }
 0x14b   : > { %523 = vst [vmem:[%s170_s16] sm:$0xff] %v521_v31 }
 0x14c PF: > { %s13_s12 = sadd.s32 1, %s675_s12  }
 0x14d   : > { %p10_p4 = scmp.ge.s32.totalorder %s13_s12, 4  }
 0x14f   :  { %12 = sbr.rel (!%p10_p4) target bundleno = 1 (0x1), region = 64 }

// kernel: generator_forward.45
= control target key start
LH: loop header
LB: loop body
LE: loop exit
PB: predicated region body
PF: predicated region fallthrough
CT: control target
= control target key end

     0   :  { %s751_s12 = smov 0   ;;  %s1083_s0 = inlined_call_operand.vmem [shape: f32[2,5,256], index: 0, kind: input, shape index: {}]   ;;  %s1084_s1 = inlined_call_operand.vmem [shape: f32[3,256,128], index: 1, kind: input, shape index: {}]   ;;  %s1085_s2 = inlined_call_operand.vmem [shape: f32[1,128], index: 2, kind: input, shape index: {}]   ;;  %s1086_s3 = inlined_call_operand.vmem [shape: f32[2,2,4,128], index: 3, kind: output, shape index: {}]  }
   0x1 LB: > { %s568_s13 = sadd.s32 4294967295, %s729_s12   ;;  %p572_p0 = scmp.ge.s32.totalorder %s729_s12, 1  ;;  %s729_s12 = sphi %s751_s12, %s13_s12  }
   0x2   : > { %p137_p1 = scmp.lt.s32.totalorder %s729_s12, 3 }
   0x4   : > { %p138_p2 = pnand %p572_p0, %p137_p1 }
   0x5   : > { %p161_p3 = scmp.lt.s32.totalorder (!%p138_p2), %s568_s13, 1 }
   0x6   : > { %141 = sbr.rel (%p138_p2) target bundleno = 338 (0x152), region = 32 }
   0xb   : > { %v607_v0 = vld [vmem:[%s1084_s1 + $0x1f0] sm:$0xff]  ;;  %v608_v1 = vld [vmem:[%s1084_s1 + $0x1f8] sm:$0xff]  ;;  %v605_v5 = vld [vmem:[%s1084_s1 + $0x1e0] sm:$0xff]  ;;  %s1088_s13 = smov (!%p161_p3, %s568_s13), 1  ;;  %vm466_vm0 = vcmask 1043456  }
   0xc   : > { %v591_v2 = vld [vmem:[%s1084_s1 + $0x170] sm:$0xff]  ;;  %v225_v3 = vpack.c.bf16 %v608_v1, %v607_v0  ;;  %v592_v4 = vld [vmem:[%s1084_s1 + $0x178] sm:$0xff]  ;;  %v606_v6 = vld [vmem:[%s1084_s1 + $0x1e8] sm:$0xff]  ;;  %s645_s17 = sshll.u32 %s1088_s13, 4  ;;  %s646_s15 = sshll.u32 %s1088_s13, 3 }
   0xd   : > { %v217_v7 = vpack.c.bf16 %v592_v4, %v591_v2  ;;  %v224_v8 = vpack.c.bf16 %v606_v6, %v605_v5  ;;  %v589_v9 = vld [vmem:[%s1084_s1 + $0x160] sm:$0xff]  ;;  %v590_v10 = vld [vmem:[%s1084_s1 + $0x168] sm:$0xff]  ;;  %v603_v11 = vld [vmem:[%s1084_s1 + $0x1d0] sm:$0xff]  ;;  %s822_s30 = scalar_lea.vmem %s1083_s0, %s645_s17  ;;  %s170_s18 = scalar_lea.vmem %s1086_s3, %s646_s15 }
   0xe   : > { %647 = vmatprep.subr.bf16.mxu0 %v225_v3  ;;  %v604_v12 = vld [vmem:[%s1084_s1 + $0x1d8] sm:$0xff]  ;;  %v216_v13 = vpack.c.bf16 %v590_v10, %v589_v9  ;;  %v587_v15 = vld [vmem:[%s1084_s1 + $0x150] sm:$0xff]  ;;  %v601_v17 = vld [vmem:[%s1084_s1 + $0x1c0] sm:$0xff] }
   0xf   : > { %648 = vmatpush3.bf16.msra.mxu0 %v217_v7  ;;  %v223_v14 = vpack.c.bf16 %v604_v12, %v603_v11  ;;  %v588_v16 = vld [vmem:[%s1084_s1 + $0x158] sm:$0xff]  ;;  %v602_v18 = vld [vmem:[%s1084_s1 + $0x1c8] sm:$0xff]  ;;  %v585_v20 = vld [vmem:[%s1084_s1 + $0x140] sm:$0xff] }
  0x10   : > { %649 = vmatprep.subr.bf16.mxu0 %v224_v8  ;;  %v215_v19 = vpack.c.bf16 %v588_v16, %v587_v15  ;;  %v586_v21 = vld [vmem:[%s1084_s1 + $0x148] sm:$0xff]  ;;  %v222_v22 = vpack.c.bf16 %v602_v18, %v601_v17  ;;  %v599_v23 = vld [vmem:[%s1084_s1 + $0x1b0] sm:$0xff]  ;;  %v352_v25 = vld [vmem:[%s1084_s1 + $0xf8] sm:$0xff] }
  0x11   : > { %v351_v24 = vld [vmem:[%s1084_s1 + $0xf0] sm:$0xff]  ;;  %v600_v26 = vld [vmem:[%s1084_s1 + $0x1b8] sm:$0xff]  ;;  %v214_v32 = vpack.c.bf16 %v586_v21, %v585_v20  ;;  %v349_v33 = vld [vmem:[%s1084_s1 + $0xe0] sm:$0xff] }
  0x12   : > { %v368_v27 = vpack.c.bf16 %v352_v25, %v351_v24  ;;  %v335_v28 = vld [vmem:[%s1084_s1 + $0x70] sm:$0xff]  ;;  %v336_v29 = vld [vmem:[%s1084_s1 + $0x78] sm:$0xff]  ;;  %v350_v34 = vld [vmem:[%s1084_s1 + $0xe8] sm:$0xff]  ;;  %v221_v36 = vpack.c.bf16 %v600_v26, %v599_v23 }
  0x13   : > { %650 = vmatpush3.bf16.msra.mxu0 %v216_v13  ;;  %v583_v30 = vld [vmem:[%s1084_s1 + $0x130] sm:$0xff]  ;;  %v360_v31 = vpack.c.bf16 %v336_v29, %v335_v28  ;;  %v173_v35 = vld [vmem:[%s822_s30 + $0x8] sm:$0x1f]  ;;  %v584_v37 = vld [vmem:[%s1084_s1 + $0x138] sm:$0xff]  ;;  %v367_v38 = vpack.c.bf16 %v350_v34, %v349_v33 }
  0x14   : > { %651 = vmatprep.subr.bf16.mxu0 %v223_v14  ;;  %669 = vmatprep.subr.bf16.mxu1 %v368_v27  ;;  %v846_v39 = vpack.c.bf16 %v173_v35, %v173_v35  ;;  %v333_v40 = vld [vmem:[%s1084_s1 + $0x60] sm:$0xff]  ;;  %v334_v41 = vld [vmem:[%s1084_s1 + $0x68] sm:$0xff]  ;;  %v347_v45 = vld [vmem:[%s1084_s1 + $0xd0] sm:$0xff]  ;;  %v213_v49 = vpack.c.bf16 %v584_v37, %v583_v30 }
  0x15   : > { %670 = vmatpush3.bf16.msra.mxu1 %v360_v31  ;;  %v597_v42 = vld [vmem:[%s1084_s1 + $0x1a0] sm:$0xff]  ;;  %v598_v43 = vld [vmem:[%s1084_s1 + $0x1a8] sm:$0xff]  ;;  %v359_v44 = vpack.c.bf16 %v334_v41, %v333_v40  ;;  %v348_v46 = vld [vmem:[%s1084_s1 + $0xd8] sm:$0xff] }
  0x16   : > { %671 = vmatprep.subr.bf16.mxu1 %v367_v38  ;;  %264 = vmatprep.mubr.bf16.mxu0 %v846_v39  ;;  %v377_v47 = vshrl.u32 %v846_v39, 16  ;;  %v379_v48 = vshll.u32 %v846_v39, 16  ;;  %v581_v50 = vld [vmem:[%s1084_s1 + $0x120] sm:$0xff]  ;;  %v366_v51 = vpack.c.bf16 %v348_v46, %v347_v45  ;;  %v331_v52 = vld [vmem:[%s1084_s1 + $0x50] sm:$0xff]  ;;  %v332_v53 = vld [vmem:[%s1084_s1 + $0x58] sm:$0xff]  ;;  %v220_v54 = vpack.c.bf16 %v598_v43, %v597_v42 }
  0x17   : > { %652 = vmatpush3.bf16.msra.mxu0 %v215_v19  ;;  %v582_v55 = vld [vmem:[%s1084_s1 + $0x128] sm:$0xff]  ;;  %v595_v56 = vld [vmem:[%s1084_s1 + $0x190] sm:$0xff]  ;;  %v596_v57 = vld [vmem:[%s1084_s1 + $0x198] sm:$0xff]  ;;  %v358_v58 = vpack.c.bf16 %v332_v53, %v331_v52 }
  0x18   : > { %653 = vmatprep.subr.bf16.mxu0 %v222_v22  ;;  %v381_v59 = vrot.slane %v379_v48, 1  ;;  %v345_v60 = vld [vmem:[%s1084_s1 + $0xc0] sm:$0xff]  ;;  %v346_v61 = vld [vmem:[%s1084_s1 + $0xc8] sm:$0xff]  ;;  %v212_v2 = vpack.c.bf16 %v582_v55, %v581_v50  ;;  %v579_v3 = vld [vmem:[%s1084_s1 + $0x110] sm:$0xff]  ;;  %v219_v5 = vpack.c.bf16 %v596_v57, %v595_v56 }
  0x19   : > { %672 = vmatpush3.bf16.msra.mxu1 %v359_v44  ;;  %v329_v62 = vld [vmem:[%s1084_s1 + $0x40] sm:$0xff]  ;;  %v365_v63 = vpack.c.bf16 %v346_v61, %v345_v60  ;;  %v330_v0 = vld [vmem:[%s1084_s1 + $0x48] sm:$0xff]  ;;  %v343_v4 = vld [vmem:[%s1084_s1 + $0xb0] sm:$0xff] }
  0x1a   : > { %673 = vmatprep.subr.bf16.mxu1 %v366_v51  ;;  %v382_v1 = vor.u32 %v381_v59, %v377_v47  ;;  %v580_v6 = vld [vmem:[%s1084_s1 + $0x118] sm:$0xff]  ;;  %v593_v7 = vld [vmem:[%s1084_s1 + $0x180] sm:$0xff]  ;;  %v357_v8 = vpack.c.bf16 %v330_v0, %v329_v62  ;;  %v594_v10 = vld [vmem:[%s1084_s1 + $0x188] sm:$0xff] }
  0x1b   : > { %654 = vmatpush3.bf16.msra.mxu0 %v214_v32  ;;  %v344_v9 = vld [vmem:[%s1084_s1 + $0xb8] sm:$0xff]  ;;  %v327_v12 = vld [vmem:[%s1084_s1 + $0x30] sm:$0xff]  ;;  %v341_v14 = vld [vmem:[%s1084_s1 + $0xa0] sm:$0xff]  ;;  %v211_v16 = vpack.c.bf16 %v580_v6, %v579_v3  ;;  %v218_v17 = vpack.c.bf16 %v594_v10, %v593_v7 }
  0x1c   : > { %655 = vmatprep.subr.bf16.mxu0 %v221_v36  ;;  %v364_v11 = vpack.c.bf16 %v344_v9, %v343_v4  ;;  %v328_v13 = vld [vmem:[%s1084_s1 + $0x38] sm:$0xff]  ;;  %417 = vmatprep.mubr.bf16.mxu1 %v382_v1  ;;  %v342_v15 = vld [vmem:[%s1084_s1 + $0xa8] sm:$0xff]  ;;  %v577_v18 = vld [vmem:[%s1084_s1 + $0x100] sm:$0xff] }
  0x1d   : > { %674 = vmatpush3.bf16.msra.mxu1 %v358_v58  ;;  %v578_v19 = vld [vmem:[%s1084_s1 + $0x108] sm:$0xff]  ;;  %v640_v20 = vld [vmem:[%s1084_s1 + $0x2f0] sm:$0xff]  ;;  %v356_v21 = vpack.c.bf16 %v328_v13, %v327_v12  ;;  %v641_v22 = vld [vmem:[%s1084_s1 + $0x2f8] sm:$0xff]  ;;  %v363_v23 = vpack.c.bf16 %v342_v15, %v341_v14 }
  0x1e   : > { %675 = vmatprep.subr.bf16.mxu1 %v365_v63  ;;  %v325_v24 = vld [vmem:[%s1084_s1 + $0x20] sm:$0xff]  ;;  %v326_v25 = vld [vmem:[%s1084_s1 + $0x28] sm:$0xff]  ;;  %v339_v27 = vld [vmem:[%s1084_s1 + $0x90] sm:$0xff]  ;;  %v210_v29 = vpack.c.bf16 %v578_v19, %v577_v18  ;;  %v320_v30 = vpack.c.bf16 %v641_v22, %v640_v20 }
  0x1f   : > { %656 = vmatpush3.bf16.msra.mxu0 %v213_v49  ;;  %v172_v26 = vld [vmem:[%s822_s30] sm:$0x1f]  ;;  %v340_v28 = vld [vmem:[%s1084_s1 + $0x98] sm:$0xff]  ;;  %v624_v31 = vld [vmem:[%s1084_s1 + $0x270] sm:$0xff]  ;;  %v355_v34 = vpack.c.bf16 %v326_v25, %v325_v24 }
  0x20   : > { %657 = vmatprep.subr.bf16.mxu0 %v220_v54  ;;  %v625_v32 = vld [vmem:[%s1084_s1 + $0x278] sm:$0xff]  ;;  %v638_v33 = vld [vmem:[%s1084_s1 + $0x2e0] sm:$0xff]  ;;  %v963_v35 = vpack.c.bf16 %v172_v26, %v172_v26  ;;  %v639_v36 = vld [vmem:[%s1084_s1 + $0x2e8] sm:$0xff]  ;;  %v362_v37 = vpack.c.bf16 %v340_v28, %v339_v27 }
  0x21   : > { %676 = vmatpush3.bf16.msra.mxu1 %v357_v8  ;;  %v323_v38 = vld [vmem:[%s1084_s1 + $0x10] sm:$0xff]  ;;  %v324_v40 = vld [vmem:[%s1084_s1 + $0x18] sm:$0xff]  ;;  %v337_v41 = vld [vmem:[%s1084_s1 + $0x80] sm:$0xff]  ;;  %v312_v43 = vpack.c.bf16 %v625_v32, %v624_v31  ;;  %v319_v45 = vpack.c.bf16 %v639_v36, %v638_v33 }
  0x22   : > { %677 = vmatprep.subr.bf16.mxu1 %v364_v11  ;;  %v338_v42 = vld [vmem:[%s1084_s1 + $0x88] sm:$0xff]  ;;  %v372_v44 = vshll.u32 %v963_v35, 16  ;;  %v622_v46 = vld [vmem:[%s1084_s1 + $0x260] sm:$0xff]  ;;  %v636_v48 = vld [vmem:[%s1084_s1 + $0x2d0] sm:$0xff]  ;;  %v354_v49 = vpack.c.bf16 %v324_v40, %v323_v38  ;;  %v370_v55 = vshrl.u32 %v963_v35, 16 }
  0x23   : > { %658 = vmatpush3.bf16.msra.mxu0 %v212_v2  ;;  %v623_v47 = vld [vmem:[%s1084_s1 + $0x268] sm:$0xff]  ;;  %v637_v50 = vld [vmem:[%s1084_s1 + $0x2d8] sm:$0xff]  ;;  %v361_v51 = vpack.c.bf16 %v338_v42, %v337_v41  ;;  %v321_v52 = vld [vmem:[%s1084_s1] sm:$0xff] }
  0x24   : > { %659 = vmatprep.subr.bf16.mxu0 %v219_v5  ;;  %v322_v53 = vld [vmem:[%s1084_s1 + $0x8] sm:$0xff]  ;;  %v311_v54 = vpack.c.bf16 %v623_v47, %v622_v46  ;;  %v374_v56 = vrot.slane %v372_v44, 1  ;;  %v318_v57 = vpack.c.bf16 %v637_v50, %v636_v48  ;;  %v620_v58 = vld [vmem:[%s1084_s1 + $0x250] sm:$0xff]  ;;  %v621_v59 = vld [vmem:[%s1084_s1 + $0x258] sm:$0xff] }
  0x25   : > { %678 = vmatpush3.bf16.msra.mxu1 %v356_v21  ;;  %v353_v60 = vpack.c.bf16 %v322_v53, %v321_v52  ;;  %v634_v61 = vld [vmem:[%s1084_s1 + $0x2c0] sm:$0xff]  ;;  %v310_v62 = vpack.c.bf16 %v621_v59, %v620_v58  ;;  %v619_v2 = vld [vmem:[%s1084_s1 + $0x248] sm:$0xff]  ;;  %v632_v3 = vld [vmem:[%s1084_s1 + $0x2b0] sm:$0xff] }
  0x26   : > { %679 = vmatprep.subr.bf16.mxu1 %v363_v23  ;;  %v375_v63 = vor.u32 %v374_v56, %v370_v55  ;;  %v618_v1 = vld [vmem:[%s1084_s1 + $0x240] sm:$0xff]  ;;  %v633_v4 = vld [vmem:[%s1084_s1 + $0x2b8] sm:$0xff]  ;;  %v616_v7 = vld [vmem:[%s1084_s1 + $0x230] sm:$0xff] }
  0x27   : > { %660 = vmatpush3.bf16.msra.mxu0 %v211_v16  ;;  %v309_v5 = vpack.c.bf16 %v619_v2, %v618_v1  ;;  %v316_v6 = vpack.c.bf16 %v633_v4, %v632_v3  ;;  %v617_v8 = vld [vmem:[%s1084_s1 + $0x238] sm:$0xff]  ;;  %v630_v9 = vld [vmem:[%s1084_s1 + $0x2a0] sm:$0xff]  ;;  %v631_v10 = vld [vmem:[%s1084_s1 + $0x2a8] sm:$0xff] }
  0x28   : > { %661 = vmatprep.subr.bf16.mxu0 %v218_v17  ;;  %v308_v11 = vpack.c.bf16 %v617_v8, %v616_v7  ;;  %v315_v12 = vpack.c.bf16 %v631_v10, %v630_v9  ;;  %v614_v13 = vld [vmem:[%s1084_s1 + $0x220] sm:$0xff]  ;;  %v615_v14 = vld [vmem:[%s1084_s1 + $0x228] sm:$0xff]  ;;  %v628_v15 = vld [vmem:[%s1084_s1 + $0x290] sm:$0xff] }
  0x29   : > { %680 = vmatpush3.bf16.msra.mxu1 %v355_v34  ;;  %v629_v16 = vld [vmem:[%s1084_s1 + $0x298] sm:$0xff]  ;;  %v307_v17 = vpack.c.bf16 %v615_v14, %v614_v13  ;;  %v612_v19 = vld [vmem:[%s1084_s1 + $0x210] sm:$0xff]  ;;  %v626_v21 = vld [vmem:[%s1084_s1 + $0x280] sm:$0xff] }
  0x2a   : > { %681 = vmatprep.subr.bf16.mxu1 %v362_v37  ;;  %v314_v18 = vpack.c.bf16 %v629_v16, %v628_v15  ;;  %v613_v20 = vld [vmem:[%s1084_s1 + $0x218] sm:$0xff]  ;;  %v627_v22 = vld [vmem:[%s1084_s1 + $0x288] sm:$0xff]  ;;  %v610_v25 = vld [vmem:[%s1084_s1 + $0x200] sm:$0xff] }
  0x2b   : > { %662 = vmatpush3.bf16.msra.mxu0 %v210_v29  ;;  %v306_v23 = vpack.c.bf16 %v613_v20, %v612_v19  ;;  %v313_v24 = vpack.c.bf16 %v627_v22, %v626_v21  ;;  %v611_v26 = vld [vmem:[%s1084_s1 + $0x208] sm:$0xff]  ;;  %v609_v38 = vld [vmem:[%s1085_s2] ss:$0 sm:$0xff] }
  0x2c   : > { %691 = vmatprep.subr.bf16.mxu0 %v320_v30  ;;  %v305_v27 = vpack.c.bf16 %v611_v26, %v610_v25 }
  0x2d   : > { %682 = vmatpush3.bf16.msra.mxu1 %v354_v49 }
  0x2e   : > { %265 = vmatmul.mubr.bf16.vlgmr.msra.gmra.mxu0 %v963_v35  ;;  %683 = vmatprep.subr.bf16.mxu1 %v361_v51 }
  0x2f   : > { %692 = vmatpush3.bf16.msra.mxu0 %v312_v43  ;;  %457 = vmatprep.mubr.bf16.mxu0 %v846_v39  ;;  %v635_v39 = vld [vmem:[%s1084_s1 + $0x2c8] sm:$0xff] }
  0x30   : > { %693 = vmatprep.subr.bf16.mxu0 %v319_v45  ;;  %v317_v0 = vpack.c.bf16 %v635_v39, %v634_v61 }
  0x31   : > { %684 = vmatpush3.bf16.msra.mxu1 %v353_v60 }
  0x33   : > { %694 = vmatpush3.bf16.msra.mxu0 %v311_v54 }
  0x34   : > { %695 = vmatprep.subr.bf16.mxu0 %v318_v57  ;;  %418 = vmatmul.mubr.bf16.vlgmr.msra.gmra.mxu1 %v375_v63 }
  0x37   : > { %696 = vmatpush3.bf16.msra.mxu0 %v310_v62 }
  0x38   : > { %697 = vmatprep.subr.bf16.mxu0 %v317_v0 }
  0x3b   : > { %698 = vmatpush3.bf16.msra.mxu0 %v309_v5 }
  0x3c   : > { %699 = vmatprep.subr.bf16.mxu0 %v316_v6 }
  0x3f   : > { %700 = vmatpush3.bf16.msra.mxu0 %v308_v11 }
  0x40   : > { %701 = vmatprep.subr.bf16.mxu0 %v315_v12 }
  0x43   : > { %702 = vmatpush3.bf16.msra.mxu0 %v307_v17 }
  0x44   : > { %703 = vmatprep.subr.bf16.mxu0 %v314_v18 }
  0x47   : > { %704 = vmatpush3.bf16.msra.mxu0 %v306_v23 }
  0x48   : > { %705 = vmatprep.subr.bf16.mxu0 %v313_v24 }
  0x4b   : > { %706 = vmatpush3.bf16.msra.mxu0 %v305_v27 }
  0x4e   : > { %458 = vmatmul.mubr.bf16.vlgmr.msra.gmra.mxu0 %v963_v35 }
  0xee   : > { %v663_v28 = vpop.f32.mrf.mxu0 }
  0xf0   : > { %v664_v29 = vpop.f32.mrf.mxu0 }
  0xf1   : > { %v665_v37 = vadd.f32 %v664_v29, %v663_v28 }
  0xf2   : > { %v666_v30 = vpop.f32.mrf.mxu0 }
  0xf3   : > { %v267_v40 = vadd.f32 %v665_v37, %v609_v38 }
  0xf4   : > { %v667_v31 = vpop.f32.mrf.mxu0  ;;  %v685_v32 = vpop.f32.mrf.mxu1 }
  0xf5   : > { %v467_v41 = vsel %vm466_vm0, %v267_v40, 0.0 }
  0xf6   : > { %v686_v33 = vpop.f32.mrf.mxu1  ;;  %v468_v42 = vrot.slane %v467_v41, 4 }
  0xf7   : > { %v687_v44 = vadd.f32 %v686_v33, %v685_v32 }
  0xf8   : > { %v688_v34 = vpop.f32.mrf.mxu1  ;;  %v469_v46 = vadd.f32 %v468_v42, %v467_v41 }
  0xfa   : > { %v689_v36 = vpop.f32.mrf.mxu1  ;;  %v470_v51 = vrot.slane %v469_v46, 2 }
  0xfc   : > { %v471_v54 = vadd.f32 %v470_v51, %v469_v46 }
  0xfe   : > { %v472_v57 = vrot.slane %v471_v54, 1 }
 0x100   : > { %v473_v60 = vadd.f32 %v472_v57, %v471_v54 }
 0x10e   : > { %v707_v43 = vpop.f32.mrf.mxu0 }
 0x110   : > { %v708_v35 = vpop.f32.mrf.mxu0 }
 0x111   : > { %v709_v45 = vadd.f32 %v708_v35, %v707_v43 }
 0x112   : > { %v710_v47 = vpop.f32.mrf.mxu0 }
 0x113   : > { %v460_v48 = vadd.f32 %v709_v45, %v687_v44 }
 0x114   : > { %v711_v49 = vpop.f32.mrf.mxu0 }
 0x115   : > { %v465_v50 = vadd.f32 %v609_v38, %v460_v48 }
 0x117   : > { %v474_v52 = vsel %vm466_vm0, %v465_v50, 0.0 }
 0x118   : > { %v475_v53 = vrot.slane %v474_v52, 4 }
 0x11a   : > { %v476_v55 = vadd.f32 %v475_v53, %v474_v52 }
 0x11c   : > { %v477_v56 = vrot.slane %v476_v55, 2 }
 0x11e   : > { %v478_v58 = vadd.f32 %v477_v56, %v476_v55 }
 0x120   : > { %v479_v59 = vrot.slane %v478_v58, 1 }
 0x122   : > { %v480_v61 = vadd.f32 %v479_v59, %v478_v58 }
 0x124   : > { %v481_v39 = vadd.f32 %v480_v61, %v473_v60 }
 0x126   : > { %v483_v62 = vmul.f32 0.125, %v481_v39 }
 0x128   : > { %v484_v63 = vsub.f32 %v267_v40, %v483_v62  ;;  %v485_v0 = vsub.f32 %v465_v50, %v483_v62 }
 0x12a   : > { %v486_v1 = vmul.f32 %v484_v63, %v484_v63  ;;  %v494_v2 = vmul.f32 %v485_v0, %v485_v0 }
 0x12c   : > { %v487_v3 = vsel %vm466_vm0, %v486_v1, 0.0  ;;  %v495_v4 = vsel %vm466_vm0, %v494_v2, 0.0 }
 0x12d   : > { %v488_v5 = vrot.slane %v487_v3, 4  ;;  %v496_v6 = vrot.slane %v495_v4, 4 }
 0x12f   : > { %v489_v7 = vadd.f32 %v488_v5, %v487_v3  ;;  %v497_v8 = vadd.f32 %v496_v6, %v495_v4 }
 0x131   : > { %v490_v9 = vrot.slane %v489_v7, 2  ;;  %v498_v10 = vrot.slane %v497_v8, 2 }
 0x133   : > { %v491_v11 = vadd.f32 %v490_v9, %v489_v7  ;;  %v499_v12 = vadd.f32 %v498_v10, %v497_v8 }
 0x135   : > { %v492_v13 = vrot.slane %v491_v11, 1  ;;  %v500_v14 = vrot.slane %v499_v12, 1 }
 0x137   : > { %v493_v15 = vadd.f32 %v492_v13, %v491_v11  ;;  %v501_v16 = vadd.f32 %v500_v14, %v499_v12 }
 0x139   : > { %v502_v17 = vadd.f32 %v501_v16, %v493_v15 }
 0x13b   : > { %v503_v18 = vmul.f32 0.125, %v502_v17 }
 0x13d   : > { %v504_v19 = vadd.f32 1e-05, %v503_v18 }
 0x13f   : > { %721 = vrsqrt.f32 %v504_v19 }
 0x14c   : > { %v722_v20 = vpop.eup %721 }
 0x14d   : > { %v506_v21 = vmul.f32 %v722_v20, %v484_v63  ;;  %v509_v22 = vmul.f32 %v722_v20, %v485_v0 }
 0x14f   : > { %v507_v23 = vmax.f32 %v506_v21, 0.0  ;;  %v510_v24 = vmax.f32 %v509_v22, 0.0 }
 0x151   : > { %508 = vst [vmem:[%s170_s18] sm:$0xf] %v507_v23  ;;  %642 = vst [vmem:[%s170_s18 + $0x4] sm:$0xf] %v510_v24 }
 0x152 PF: > { %s13_s12 = sadd.s32 1, %s729_s12  }
 0x153   : > { %p10_p4 = scmp.ge.s32.totalorder %s13_s12, 4  }
 0x155   :  { %12 = sbr.rel (!%p10_p4) target bundleno = 1 (0x1), region = 65 }

// kernel: generator_forward.27
= control target key start
LH: loop header
LB: loop body
LE: loop exit
PB: predicated region body
PF: predicated region fallthrough
CT: control target
= control target key end

     0   :  { %vm952_vm0 = vcmask 1043456   ;;  %s2529_s1 = inlined_call_operand.vmem [shape: f32[3,256,256], index: 1, kind: input, shape index: {}]   ;;  %s2530_s0 = inlined_call_operand.vmem [shape: f32[2,6,256], index: 0, kind: input, shape index: {}]   ;;  %s2531_s2 = inlined_call_operand.vmem [shape: f32[1,256], index: 2, kind: input, shape index: {}]   ;;  %s2532_s3 = inlined_call_operand.vmem [shape: f32[1,256], index: 3, kind: input, shape index: {}]   ;;  %s2533_s4 = inlined_call_operand.vmem [shape: f32[1,256], index: 4, kind: input, shape index: {}]   ;;  %s2534_s5 = inlined_call_operand.vmem [shape: f32[2,4,256], index: 5, kind: output, shape index: {}]  }
   0x1   :  { %v67_v0 = vld [vmem:[%s2529_s1 + $0xe8] sm:$0xff]  ;;  %v69_v1 = vld [vmem:[%s2529_s1 + $0xf8] sm:$0xff]  ;;  %v66_v5 = vld [vmem:[%s2529_s1 + $0xe0] sm:$0xff] }
   0x2   :  { %v1146_v2 = vld [vmem:[%s2529_s1 + $0x2e8] sm:$0xff]  ;;  %v1423_v3 = vpack.c.bf16 %v69_v1, %v67_v0  ;;  %v1148_v4 = vld [vmem:[%s2529_s1 + $0x2f8] sm:$0xff]  ;;  %v68_v6 = vld [vmem:[%s2529_s1 + $0xf0] sm:$0xff] }
   0x3   :  { %v257_v7 = vpack.c.bf16 %v1148_v4, %v1146_v2  ;;  %v1434_v8 = vpack.c.bf16 %v68_v6, %v66_v5  ;;  %v1145_v9 = vld [vmem:[%s2529_s1 + $0x2e0] sm:$0xff]  ;;  %v1147_v10 = vld [vmem:[%s2529_s1 + $0x2f0] sm:$0xff]  ;;  %v63_v11 = vld [vmem:[%s2529_s1 + $0xc8] sm:$0xff] }
   0x4   :  { %134 = vmatprep.subr.bf16.mxu0 %v1423_v3  ;;  %v256_v12 = vpack.c.bf16 %v1147_v10, %v1145_v9  ;;  %v65_v13 = vld [vmem:[%s2529_s1 + $0xd8] sm:$0xff]  ;;  %v1142_v14 = vld [vmem:[%s2529_s1 + $0x2c8] sm:$0xff]  ;;  %v62_v18 = vld [vmem:[%s2529_s1 + $0xc0] sm:$0xff] }
   0x5   :  { %v1144_v15 = vld [vmem:[%s2529_s1 + $0x2d8] sm:$0xff]  ;;  %290 = vmatprep.subr.bf16.mxu1 %v257_v7  ;;  %135 = vmatpush1.bf16.msra.mxu0 %v1434_v8  ;;  %v1456_v16 = vpack.c.bf16 %v65_v13, %v63_v11  ;;  %v64_v19 = vld [vmem:[%s2529_s1 + $0xd0] sm:$0xff]  ;;  %v1141_v20 = vld [vmem:[%s2529_s1 + $0x2c0] sm:$0xff] }
   0x6   :  { %v255_v17 = vpack.c.bf16 %v1144_v15, %v1142_v14  ;;  %291 = vmatpush1.bf16.msra.mxu1 %v256_v12  ;;  %v1467_v21 = vpack.c.bf16 %v64_v19, %v62_v18  ;;  %v1143_v22 = vld [vmem:[%s2529_s1 + $0x2d0] sm:$0xff]  ;;  %v59_v23 = vld [vmem:[%s2529_s1 + $0xa8] sm:$0xff]  ;;  %v61_v24 = vld [vmem:[%s2529_s1 + $0xb8] sm:$0xff] }
   0x7   :  { %136 = vmatprep.subr.bf16.mxu0 %v1456_v16  ;;  %v254_v25 = vpack.c.bf16 %v1143_v22, %v1141_v20  ;;  %v1479_v26 = vpack.c.bf16 %v61_v24, %v59_v23  ;;  %v1138_v27 = vld [vmem:[%s2529_s1 + $0x2a8] sm:$0xff]  ;;  %v1140_v28 = vld [vmem:[%s2529_s1 + $0x2b8] sm:$0xff]  ;;  %v58_v29 = vld [vmem:[%s2529_s1 + $0xa0] sm:$0xff] }
   0x8   :  { %292 = vmatprep.subr.bf16.mxu1 %v255_v17  ;;  %v253_v30 = vpack.c.bf16 %v1140_v28, %v1138_v27  ;;  %v60_v31 = vld [vmem:[%s2529_s1 + $0xb0] sm:$0xff]  ;;  %v1137_v32 = vld [vmem:[%s2529_s1 + $0x2a0] sm:$0xff]  ;;  %v55_v35 = vld [vmem:[%s2529_s1 + $0x88] sm:$0xff] }
   0x9   :  { %v1139_v33 = vld [vmem:[%s2529_s1 + $0x2b0] sm:$0xff]  ;;  %137 = vmatpush1.bf16.msra.mxu0 %v1467_v21  ;;  %v1500_v34 = vpack.c.bf16 %v60_v31, %v58_v29  ;;  %v57_v36 = vld [vmem:[%s2529_s1 + $0x98] sm:$0xff]  ;;  %v1134_v37 = vld [vmem:[%s2529_s1 + $0x288] sm:$0xff] }
   0xa   :  { %293 = vmatpush1.bf16.msra.mxu1 %v254_v25  ;;  %138 = vmatprep.subr.bf16.mxu0 %v1479_v26  ;;  %v252_v38 = vpack.c.bf16 %v1139_v33, %v1137_v32  ;;  %v1512_v39 = vpack.c.bf16 %v57_v36, %v55_v35  ;;  %v1136_v40 = vld [vmem:[%s2529_s1 + $0x298] sm:$0xff]  ;;  %v54_v41 = vld [vmem:[%s2529_s1 + $0x80] sm:$0xff]  ;;  %v56_v42 = vld [vmem:[%s2529_s1 + $0x90] sm:$0xff] }
   0xb   :  { %294 = vmatprep.subr.bf16.mxu1 %v253_v30  ;;  %v251_v43 = vpack.c.bf16 %v1136_v40, %v1134_v37  ;;  %v1133_v44 = vld [vmem:[%s2529_s1 + $0x280] sm:$0xff]  ;;  %v1135_v45 = vld [vmem:[%s2529_s1 + $0x290] sm:$0xff]  ;;  %v51_v46 = vld [vmem:[%s2529_s1 + $0x68] sm:$0xff]  ;;  %v1542_v50 = vpack.c.bf16 %v56_v42, %v54_v41 }
   0xc   :  { %v53_v47 = vld [vmem:[%s2529_s1 + $0x78] sm:$0xff]  ;;  %v1130_v48 = vld [vmem:[%s2529_s1 + $0x268] sm:$0xff]  ;;  %v250_v51 = vpack.c.bf16 %v1135_v45, %v1133_v44  ;;  %v50_v53 = vld [vmem:[%s2529_s1 + $0x60] sm:$0xff] }
   0xd   :  { %v1132_v49 = vld [vmem:[%s2529_s1 + $0x278] sm:$0xff]  ;;  %139 = vmatpush1.bf16.msra.mxu0 %v1500_v34  ;;  %v1545_v52 = vpack.c.bf16 %v53_v47, %v51_v46  ;;  %v52_v54 = vld [vmem:[%s2529_s1 + $0x70] sm:$0xff]  ;;  %v1129_v55 = vld [vmem:[%s2529_s1 + $0x260] sm:$0xff] }
   0xe   :  { %295 = vmatpush1.bf16.msra.mxu1 %v252_v38  ;;  %140 = vmatprep.subr.bf16.mxu0 %v1512_v39  ;;  %v249_v56 = vpack.c.bf16 %v1132_v49, %v1130_v48  ;;  %v1131_v57 = vld [vmem:[%s2529_s1 + $0x270] sm:$0xff]  ;;  %v47_v58 = vld [vmem:[%s2529_s1 + $0x48] sm:$0xff]  ;;  %v49_v59 = vld [vmem:[%s2529_s1 + $0x58] sm:$0xff]  ;;  %v1572_v62 = vpack.c.bf16 %v52_v54, %v50_v53 }
   0xf   :  { %296 = vmatprep.subr.bf16.mxu1 %v251_v43  ;;  %v1126_v60 = vld [vmem:[%s2529_s1 + $0x248] sm:$0xff]  ;;  %v1128_v61 = vld [vmem:[%s2529_s1 + $0x258] sm:$0xff]  ;;  %v248_v63 = vpack.c.bf16 %v1131_v57, %v1129_v55  ;;  %v1575_v0 = vpack.c.bf16 %v49_v59, %v47_v58  ;;  %v46_v1 = vld [vmem:[%s2529_s1 + $0x40] sm:$0xff] }
  0x10   :  { %v48_v2 = vld [vmem:[%s2529_s1 + $0x50] sm:$0xff]  ;;  %v1125_v4 = vld [vmem:[%s2529_s1 + $0x240] sm:$0xff]  ;;  %v247_v5 = vpack.c.bf16 %v1128_v61, %v1126_v60  ;;  %v43_v7 = vld [vmem:[%s2529_s1 + $0x28] sm:$0xff] }
  0x11   :  { %141 = vmatpush1.bf16.msra.mxu0 %v1542_v50  ;;  %v1127_v6 = vld [vmem:[%s2529_s1 + $0x250] sm:$0xff]  ;;  %v45_v9 = vld [vmem:[%s2529_s1 + $0x38] sm:$0xff]  ;;  %v1122_v10 = vld [vmem:[%s2529_s1 + $0x228] sm:$0xff]  ;;  %v1602_v12 = vpack.c.bf16 %v48_v2, %v46_v1 }
  0x12   :  { %297 = vmatpush1.bf16.msra.mxu1 %v250_v51  ;;  %142 = vmatprep.subr.bf16.mxu0 %v1545_v52  ;;  %v1124_v11 = vld [vmem:[%s2529_s1 + $0x238] sm:$0xff]  ;;  %v246_v13 = vpack.c.bf16 %v1127_v6, %v1125_v4  ;;  %v1605_v14 = vpack.c.bf16 %v45_v9, %v43_v7  ;;  %v42_v15 = vld [vmem:[%s2529_s1 + $0x20] sm:$0xff]  ;;  %v44_v17 = vld [vmem:[%s2529_s1 + $0x30] sm:$0xff] }
  0x13   :  { %298 = vmatprep.subr.bf16.mxu1 %v249_v56  ;;  %v1121_v18 = vld [vmem:[%s2529_s1 + $0x220] sm:$0xff]  ;;  %v245_v19 = vpack.c.bf16 %v1124_v11, %v1122_v10  ;;  %v1123_v20 = vld [vmem:[%s2529_s1 + $0x230] sm:$0xff]  ;;  %v39_v22 = vld [vmem:[%s2529_s1 + $0x8] sm:$0xff]  ;;  %v1632_v27 = vpack.c.bf16 %v44_v17, %v42_v15 }
  0x14   :  { %v41_v23 = vld [vmem:[%s2529_s1 + $0x18] sm:$0xff]  ;;  %v1118_v24 = vld [vmem:[%s2529_s1 + $0x208] sm:$0xff]  ;;  %v244_v28 = vpack.c.bf16 %v1123_v20, %v1121_v18  ;;  %v38_v30 = vld [vmem:[%s2529_s1] sm:$0xff] }
  0x15   :  { %143 = vmatpush1.bf16.msra.mxu0 %v1572_v62  ;;  %v1120_v25 = vld [vmem:[%s2529_s1 + $0x218] sm:$0xff]  ;;  %v1635_v29 = vpack.c.bf16 %v41_v23, %v39_v22  ;;  %v40_v31 = vld [vmem:[%s2529_s1 + $0x10] sm:$0xff]  ;;  %v1117_v32 = vld [vmem:[%s2529_s1 + $0x200] sm:$0xff] }
  0x16   :  { %299 = vmatpush1.bf16.msra.mxu1 %v248_v63  ;;  %144 = vmatprep.subr.bf16.mxu0 %v1575_v0  ;;  %v243_v33 = vpack.c.bf16 %v1120_v25, %v1118_v24  ;;  %v1119_v35 = vld [vmem:[%s2529_s1 + $0x210] sm:$0xff]  ;;  %v99_v36 = vld [vmem:[%s2529_s1 + $0x1e8] sm:$0xff]  ;;  %v101_v37 = vld [vmem:[%s2529_s1 + $0x1f8] sm:$0xff]  ;;  %v1662_v41 = vpack.c.bf16 %v40_v31, %v38_v30 }
  0x17   :  { %300 = vmatprep.subr.bf16.mxu1 %v247_v5  ;;  %v1178_v38 = vld [vmem:[%s2529_s1 + $0x3e8] sm:$0xff]  ;;  %v1180_v40 = vld [vmem:[%s2529_s1 + $0x3f8] sm:$0xff]  ;;  %v242_v42 = vpack.c.bf16 %v1119_v35, %v1117_v32  ;;  %v1665_v43 = vpack.c.bf16 %v101_v37, %v99_v36  ;;  %v98_v44 = vld [vmem:[%s2529_s1 + $0x1e0] sm:$0xff] }
  0x18   :  { %v100_v45 = vld [vmem:[%s2529_s1 + $0x1f0] sm:$0xff]  ;;  %v1177_v46 = vld [vmem:[%s2529_s1 + $0x3e0] sm:$0xff]  ;;  %v273_v47 = vpack.c.bf16 %v1180_v40, %v1178_v38  ;;  %v95_v49 = vld [vmem:[%s2529_s1 + $0x1c8] sm:$0xff] }
  0x19   :  { %145 = vmatpush1.bf16.msra.mxu0 %v1602_v12  ;;  %v1179_v48 = vld [vmem:[%s2529_s1 + $0x3f0] sm:$0xff]  ;;  %v97_v51 = vld [vmem:[%s2529_s1 + $0x1d8] sm:$0xff]  ;;  %v1174_v53 = vld [vmem:[%s2529_s1 + $0x3c8] sm:$0xff]  ;;  %v1692_v55 = vpack.c.bf16 %v100_v45, %v98_v44 }
  0x1a   :  { %301 = vmatpush1.bf16.msra.mxu1 %v246_v13  ;;  %146 = vmatprep.subr.bf16.mxu0 %v1605_v14  ;;  %v1176_v54 = vld [vmem:[%s2529_s1 + $0x3d8] sm:$0xff]  ;;  %v272_v56 = vpack.c.bf16 %v1179_v48, %v1177_v46  ;;  %v1695_v57 = vpack.c.bf16 %v97_v51, %v95_v49  ;;  %v94_v58 = vld [vmem:[%s2529_s1 + $0x1c0] sm:$0xff]  ;;  %v96_v59 = vld [vmem:[%s2529_s1 + $0x1d0] sm:$0xff] }
  0x1b   :  { %302 = vmatprep.subr.bf16.mxu1 %v245_v19  ;;  %v1173_v60 = vld [vmem:[%s2529_s1 + $0x3c0] sm:$0xff]  ;;  %v271_v61 = vpack.c.bf16 %v1176_v54, %v1174_v53  ;;  %v1175_v63 = vld [vmem:[%s2529_s1 + $0x3d0] sm:$0xff]  ;;  %v91_v1 = vld [vmem:[%s2529_s1 + $0x1a8] sm:$0xff]  ;;  %v1722_v6 = vpack.c.bf16 %v96_v59, %v94_v58 }
  0x1c   :  { %v93_v2 = vld [vmem:[%s2529_s1 + $0x1b8] sm:$0xff]  ;;  %v1170_v4 = vld [vmem:[%s2529_s1 + $0x3a8] sm:$0xff]  ;;  %v270_v7 = vpack.c.bf16 %v1175_v63, %v1173_v60  ;;  %v90_v10 = vld [vmem:[%s2529_s1 + $0x1a0] sm:$0xff] }
  0x1d   :  { %147 = vmatpush1.bf16.msra.mxu0 %v1632_v27  ;;  %v1172_v5 = vld [vmem:[%s2529_s1 + $0x3b8] sm:$0xff]  ;;  %v1725_v9 = vpack.c.bf16 %v93_v2, %v91_v1  ;;  %v92_v11 = vld [vmem:[%s2529_s1 + $0x1b0] sm:$0xff]  ;;  %v1169_v13 = vld [vmem:[%s2529_s1 + $0x3a0] sm:$0xff] }
  0x1e   :  { %303 = vmatpush1.bf16.msra.mxu1 %v244_v28  ;;  %148 = vmatprep.subr.bf16.mxu0 %v1635_v29  ;;  %v269_v15 = vpack.c.bf16 %v1172_v5, %v1170_v4  ;;  %v1171_v17 = vld [vmem:[%s2529_s1 + $0x3b0] sm:$0xff]  ;;  %v87_v18 = vld [vmem:[%s2529_s1 + $0x188] sm:$0xff]  ;;  %v89_v19 = vld [vmem:[%s2529_s1 + $0x198] sm:$0xff]  ;;  %v1752_v23 = vpack.c.bf16 %v92_v11, %v90_v10 }
  0x1f   :  { %304 = vmatprep.subr.bf16.mxu1 %v243_v33  ;;  %v1166_v20 = vld [vmem:[%s2529_s1 + $0x388] sm:$0xff]  ;;  %v1168_v22 = vld [vmem:[%s2529_s1 + $0x398] sm:$0xff]  ;;  %v86_v24 = vld [vmem:[%s2529_s1 + $0x180] sm:$0xff]  ;;  %v268_v25 = vpack.c.bf16 %v1171_v17, %v1169_v13  ;;  %v1758_v28 = vpack.c.bf16 %v89_v19, %v87_v18 }
  0x20   :  { %v88_v30 = vld [vmem:[%s2529_s1 + $0x190] sm:$0xff]  ;;  %v1165_v31 = vld [vmem:[%s2529_s1 + $0x380] sm:$0xff]  ;;  %v267_v33 = vpack.c.bf16 %v1168_v22, %v1166_v20  ;;  %v83_v35 = vld [vmem:[%s2529_s1 + $0x168] sm:$0xff] }
  0x21   :  { %149 = vmatpush1.bf16.msra.mxu0 %v1662_v41  ;;  %v1167_v32 = vld [vmem:[%s2529_s1 + $0x390] sm:$0xff]  ;;  %v85_v36 = vld [vmem:[%s2529_s1 + $0x178] sm:$0xff]  ;;  %v21_v37 = vld [vmem:[%s2530_s0 + $0x8] sm:$0x3f]  ;;  %v1787_v44 = vpack.c.bf16 %v88_v30, %v86_v24 }
  0x22   :  { %305 = vmatpush1.bf16.msra.mxu1 %v242_v42  ;;  %150 = vmatprep.subr.bf16.mxu0 %v1665_v43  ;;  %v1162_v38 = vld [vmem:[%s2529_s1 + $0x368] sm:$0xff]  ;;  %v1164_v40 = vld [vmem:[%s2529_s1 + $0x378] sm:$0xff]  ;;  %v1784_v42 = vpack.c.bf16 %v21_v37, %v21_v37  ;;  %v266_v45 = vpack.c.bf16 %v1167_v32, %v1165_v31  ;;  %v1790_v46 = vpack.c.bf16 %v85_v36, %v83_v35  ;;  %v84_v48 = vld [vmem:[%s2529_s1 + $0x170] sm:$0xff] }
  0x23   :  { %306 = vmatprep.subr.bf16.mxu1 %v273_v47  ;;  %v82_v47 = vld [vmem:[%s2529_s1 + $0x160] sm:$0xff]  ;;  %v265_v54 = vpack.c.bf16 %v1164_v40, %v1162_v38  ;;  %v79_v58 = vld [vmem:[%s2529_s1 + $0x148] sm:$0xff]  ;;  %v81_v59 = vld [vmem:[%s2529_s1 + $0x158] sm:$0xff] }
  0x24   :  { %v1161_v49 = vld [vmem:[%s2529_s1 + $0x360] sm:$0xff]  ;;  %v282_v51 = vshrl.u32 %v1784_v42, 16  ;;  %v284_v53 = vshll.u32 %v1784_v42, 16  ;;  %166 = vmatprep.mubr.bf16.mxu0 %v1784_v42  ;;  %v1158_v60 = vld [vmem:[%s2529_s1 + $0x348] sm:$0xff]  ;;  %v1820_v1 = vpack.c.bf16 %v84_v48, %v82_v47  ;;  %v1826_v5 = vpack.c.bf16 %v81_v59, %v79_v58  ;;  %v1159_v17 = vld [vmem:[%s2529_s1 + $0x350] sm:$0xff] }
  0x25   :  { %151 = vmatpush2.bf16.msra.mxu0 %v1692_v55  ;;  %v78_v2 = vld [vmem:[%s2529_s1 + $0x140] sm:$0xff]  ;;  %v75_v18 = vld [vmem:[%s2529_s1 + $0x128] sm:$0xff]  ;;  %v77_v19 = vld [vmem:[%s2529_s1 + $0x138] sm:$0xff] }
  0x26   :  { %307 = vmatpush2.bf16.msra.mxu1 %v272_v56  ;;  %152 = vmatprep.subr.bf16.mxu0 %v1695_v57  ;;  %v1163_v56 = vld [vmem:[%s2529_s1 + $0x370] sm:$0xff]  ;;  %v286_v63 = vrot.slane %v284_v53, 1  ;;  %v1157_v10 = vld [vmem:[%s2529_s1 + $0x340] sm:$0xff]  ;;  %v1154_v20 = vld [vmem:[%s2529_s1 + $0x328] sm:$0xff]  ;;  %v1858_v31 = vpack.c.bf16 %v77_v19, %v75_v18 }
  0x27   :  { %308 = vmatprep.subr.bf16.mxu1 %v271_v61  ;;  %v1160_v61 = vld [vmem:[%s2529_s1 + $0x358] sm:$0xff]  ;;  %v264_v4 = vpack.c.bf16 %v1163_v56, %v1161_v49  ;;  %v20_v13 = vld [vmem:[%s2530_s0] sm:$0x3f]  ;;  %v262_v30 = vpack.c.bf16 %v1159_v17, %v1157_v10  ;;  %v1155_v37 = vld [vmem:[%s2529_s1 + $0x330] sm:$0xff] }
  0x28   :  { %v287_v11 = vor.u32 %v286_v63, %v282_v51  ;;  %v1156_v22 = vld [vmem:[%s2529_s1 + $0x338] sm:$0xff]  ;;  %v74_v32 = vld [vmem:[%s2529_s1 + $0x120] sm:$0xff]  ;;  %v71_v38 = vld [vmem:[%s2529_s1 + $0x108] sm:$0xff] }
  0x29   :  { %153 = vmatpush2.bf16.msra.mxu0 %v1722_v6  ;;  %v1153_v35 = vld [vmem:[%s2529_s1 + $0x320] sm:$0xff]  ;;  %v261_v36 = vpack.c.bf16 %v1156_v22, %v1154_v20  ;;  %v73_v40 = vld [vmem:[%s2529_s1 + $0x118] sm:$0xff]  ;;  %v72_v56 = vld [vmem:[%s2529_s1 + $0x110] sm:$0xff] }
  0x2a   :  { %309 = vmatpush2.bf16.msra.mxu1 %v270_v7  ;;  %154 = vmatprep.subr.bf16.mxu0 %v1725_v9  ;;  %v80_v7 = vld [vmem:[%s2529_s1 + $0x150] sm:$0xff]  ;;  %v1152_v47 = vld [vmem:[%s2529_s1 + $0x318] sm:$0xff]  ;;  %v260_v51 = vpack.c.bf16 %v1155_v37, %v1153_v35  ;;  %v1889_v53 = vpack.c.bf16 %v73_v40, %v71_v38  ;;  %v1149_v58 = vld [vmem:[%s2529_s1 + $0x300] sm:$0xff]  ;;  %v433_v37 = vrot.slane %v1784_v42, 1 }
  0x2b   :  { %310 = vmatprep.subr.bf16.mxu1 %v269_v15  ;;  %v263_v15 = vpack.c.bf16 %v1160_v61, %v1158_v60  ;;  %322 = vmatprep.mubr.bf16.mxu1 %v287_v11  ;;  %v1853_v24 = vpack.c.bf16 %v80_v7, %v78_v2  ;;  %v1151_v60 = vld [vmem:[%s2529_s1 + $0x310] sm:$0xff]  ;;  %v1210_v61 = vld [vmem:[%s2529_s1 + $0x4e8] sm:$0xff]  ;;  %v1212_v63 = vld [vmem:[%s2529_s1 + $0x4f8] sm:$0xff] }
  0x2c   :  { %v258_v10 = vpack.c.bf16 %v1151_v60, %v1149_v58  ;;  %v1914_v11 = vpack.c.bf16 %v1212_v63, %v1210_v61  ;;  %v1206_v17 = vld [vmem:[%s2529_s1 + $0x4c8] sm:$0xff]  ;;  %v1208_v18 = vld [vmem:[%s2529_s1 + $0x4d8] sm:$0xff]  ;;  %v1203_v42 = vld [vmem:[%s2529_s1 + $0x4b0] sm:$0xff] }
  0x2d   :  { %155 = vmatpush2.bf16.msra.mxu0 %v1752_v23  ;;  %v1246_v22 = vld [vmem:[%s2530_s0 + $0x18] sm:$0x3f]  ;;  %v1202_v35 = vld [vmem:[%s2529_s1 + $0x4a8] sm:$0xff]  ;;  %v1195_v60 = vld [vmem:[%s2529_s1 + $0x470] sm:$0xff] }
  0x2e   :  { %311 = vmatpush2.bf16.msra.mxu1 %v268_v25  ;;  %156 = vmatprep.subr.bf16.mxu0 %v1758_v28  ;;  %v1855_v25 = vpack.c.bf16 %v20_v13, %v20_v13  ;;  %v1209_v13 = vld [vmem:[%s2529_s1 + $0x4e0] sm:$0xff]  ;;  %v1952_v38 = vpack.c.bf16 %v1246_v22, %v1246_v22  ;;  %v1190_v61 = vld [vmem:[%s2529_s1 + $0x448] sm:$0xff] }
  0x2f   :  { %312 = vmatprep.subr.bf16.mxu1 %v267_v33  ;;  %v76_v33 = vld [vmem:[%s2529_s1 + $0x130] sm:$0xff] }
  0x30   :  { %v1885_v48 = vpack.c.bf16 %v76_v33, %v74_v32  ;;  %v277_v49 = vshll.u32 %v1855_v25, 16  ;;  %v1205_v32 = vld [vmem:[%s2529_s1 + $0x4c0] sm:$0xff]  ;;  %v1207_v33 = vld [vmem:[%s2529_s1 + $0x4d0] sm:$0xff] }
  0x31   :  { %157 = vmatpush2.bf16.msra.mxu0 %v1787_v44  ;;  %v1955_v40 = vpack.c.bf16 %v1207_v33, %v1205_v32  ;;  %v1183_v32 = vld [vmem:[%s2529_s1 + $0x410] sm:$0xff]  ;;  %v1242_v33 = vld [vmem:[%s2529_s1 + $0x5e8] sm:$0xff] }
  0x32   :  { %313 = vmatpush2.bf16.msra.mxu1 %v266_v45  ;;  %158 = vmatprep.subr.bf16.mxu0 %v1790_v46  ;;  %v1150_v45 = vld [vmem:[%s2529_s1 + $0x308] sm:$0xff]  ;;  %v279_v7 = vrot.slane %v277_v49, 1 }
  0x33   :  { %314 = vmatprep.subr.bf16.mxu1 %v265_v54  ;;  %v70_v54 = vld [vmem:[%s2529_s1 + $0x100] sm:$0xff]  ;;  %v259_v59 = vpack.c.bf16 %v1152_v47, %v1150_v45  ;;  %v1198_v47 = vld [vmem:[%s2529_s1 + $0x488] sm:$0xff] }
  0x34   :  { %v1910_v2 = vpack.c.bf16 %v72_v56, %v70_v54  ;;  %v1201_v45 = vld [vmem:[%s2529_s1 + $0x4a0] sm:$0xff]  ;;  %v1199_v54 = vld [vmem:[%s2529_s1 + $0x490] sm:$0xff]  ;;  %v1194_v56 = vld [vmem:[%s2529_s1 + $0x468] sm:$0xff] }
  0x35   :  { %159 = vmatpush2.bf16.msra.mxu0 %v1820_v1  ;;  %v1976_v49 = vpack.c.bf16 %v1203_v42, %v1201_v45  ;;  %v1238_v45 = vld [vmem:[%s2529_s1 + $0x5c8] sm:$0xff] }
  0x36   :  { %315 = vmatpush2.bf16.msra.mxu1 %v264_v4  ;;  %160 = vmatprep.subr.bf16.mxu0 %v1826_v5  ;;  %v275_v4 = vshrl.u32 %v1855_v25, 16 }
  0x37   :  { %316 = vmatprep.subr.bf16.mxu1 %v263_v15  ;;  %v1211_v15 = vld [vmem:[%s2529_s1 + $0x4f0] sm:$0xff] }
  0x38   :  { %v280_v19 = vor.u32 %v279_v7, %v275_v4  ;;  %v1929_v20 = vpack.c.bf16 %v1211_v15, %v1209_v13  ;;  %v1191_v7 = vld [vmem:[%s2529_s1 + $0x450] sm:$0xff] }
  0x39   :  { %161 = vmatpush2.bf16.msra.mxu0 %v1853_v24 }
  0x3a   :  { %317 = vmatpush2.bf16.msra.mxu1 %v262_v30  ;;  %162 = vmatprep.subr.bf16.mxu0 %v1858_v31  ;;  %v1935_v30 = vpack.c.bf16 %v1208_v18, %v1206_v17  ;;  %v1187_v17 = vld [vmem:[%s2529_s1 + $0x430] sm:$0xff]  ;;  %v1182_v18 = vld [vmem:[%s2529_s1 + $0x408] sm:$0xff] }
  0x3b   :  { %318 = vmatprep.subr.bf16.mxu1 %v261_v36  ;;  %v1204_v36 = vld [vmem:[%s2529_s1 + $0x4b8] sm:$0xff] }
  0x3d   :  { %163 = vmatpush2.bf16.msra.mxu0 %v1885_v48 }
  0x3e   :  { %319 = vmatpush2.bf16.msra.mxu1 %v260_v51  ;;  %164 = vmatprep.subr.bf16.mxu0 %v1889_v53  ;;  %v1197_v51 = vld [vmem:[%s2529_s1 + $0x480] sm:$0xff] }
  0x3f   :  { %320 = vmatprep.subr.bf16.mxu1 %v259_v59  ;;  %v1996_v58 = vpack.c.bf16 %v1199_v54, %v1197_v51  ;;  %v1234_v51 = vld [vmem:[%s2529_s1 + $0x5a8] sm:$0xff] }
  0x41   :  { %165 = vmatpush2.bf16.msra.mxu0 %v1910_v2 }
  0x42   :  { %321 = vmatpush2.bf16.msra.mxu1 %v258_v10  ;;  %436 = vmatprep.subr.bf16.mxu0 %v1914_v11  ;;  %v1186_v10 = vld [vmem:[%s2529_s1 + $0x428] sm:$0xff] }
  0x43   :  { %599 = vmatprep.subr.bf16.mxu1 %v1423_v3  ;;  %v1959_v3 = vpack.c.bf16 %v1204_v36, %v1202_v35 }
  0x44   :  { %167 = vmatmul.mubr.bf16.vlgmr.msra.gmra.mxu0 %v1855_v25 }
  0x45   :  { %323 = vmatmul.mubr.bf16.vlgmr.msra.gmra.mxu1 %v280_v19  ;;  %437 = vmatpush1.bf16.msra.mxu0 %v1929_v20 }
  0x46   :  { %600 = vmatpush1.bf16.msra.mxu1 %v1434_v8  ;;  %438 = vmatprep.subr.bf16.mxu0 %v1935_v30  ;;  %v1200_v8 = vld [vmem:[%s2529_s1 + $0x498] sm:$0xff] }
  0x47   :  { %601 = vmatprep.subr.bf16.mxu1 %v1456_v16  ;;  %468 = vmatprep.mubr.bf16.mxu0 %v433_v37  ;;  %v1980_v16 = vpack.c.bf16 %v1200_v8, %v1198_v47  ;;  %v1243_v37 = vld [vmem:[%s2529_s1 + $0x5f0] sm:$0xff] }
  0x48   :  { %631 = vmatprep.mubr.bf16.mxu1 %v1952_v38  ;;  %v1239_v8 = vld [vmem:[%s2529_s1 + $0x5d0] sm:$0xff] }
  0x49   :  { %439 = vmatpush1.bf16.msra.mxu0 %v1955_v40 }
  0x4a   :  { %602 = vmatpush1.bf16.msra.mxu1 %v1467_v21  ;;  %440 = vmatprep.subr.bf16.mxu0 %v1959_v3  ;;  %v1196_v21 = vld [vmem:[%s2529_s1 + $0x478] sm:$0xff] }
  0x4b   :  { %603 = vmatprep.subr.bf16.mxu1 %v1479_v26  ;;  %v2000_v59 = vpack.c.bf16 %v1196_v21, %v1194_v56  ;;  %v1193_v26 = vld [vmem:[%s2529_s1 + $0x460] sm:$0xff]  ;;  %v1235_v21 = vld [vmem:[%s2529_s1 + $0x5b0] sm:$0xff] }
  0x4c   :  { %v2016_v63 = vpack.c.bf16 %v1195_v60, %v1193_v26  ;;  %v1230_v26 = vld [vmem:[%s2529_s1 + $0x588] sm:$0xff] }
  0x4d   :  { %441 = vmatpush1.bf16.msra.mxu0 %v1976_v49 }
  0x4e   :  { %604 = vmatpush1.bf16.msra.mxu1 %v1500_v34  ;;  %442 = vmatprep.subr.bf16.mxu0 %v1980_v16  ;;  %v1192_v34 = vld [vmem:[%s2529_s1 + $0x458] sm:$0xff] }
  0x4f   :  { %605 = vmatprep.subr.bf16.mxu1 %v1512_v39  ;;  %v2020_v4 = vpack.c.bf16 %v1192_v34, %v1190_v61  ;;  %v1189_v39 = vld [vmem:[%s2529_s1 + $0x440] sm:$0xff]  ;;  %v1231_v34 = vld [vmem:[%s2529_s1 + $0x590] sm:$0xff] }
  0x50   :  { %v2036_v13 = vpack.c.bf16 %v1191_v7, %v1189_v39  ;;  %v1226_v39 = vld [vmem:[%s2529_s1 + $0x568] sm:$0xff] }
  0x51   :  { %443 = vmatpush1.bf16.msra.mxu0 %v1996_v58 }
  0x52   :  { %606 = vmatpush1.bf16.msra.mxu1 %v1542_v50  ;;  %444 = vmatprep.subr.bf16.mxu0 %v2000_v59  ;;  %v1188_v50 = vld [vmem:[%s2529_s1 + $0x438] sm:$0xff] }
  0x53   :  { %607 = vmatprep.subr.bf16.mxu1 %v1545_v52  ;;  %v2040_v15 = vpack.c.bf16 %v1188_v50, %v1186_v10  ;;  %v1185_v52 = vld [vmem:[%s2529_s1 + $0x420] sm:$0xff]  ;;  %v1227_v50 = vld [vmem:[%s2529_s1 + $0x570] sm:$0xff] }
  0x54   :  { %v2056_v19 = vpack.c.bf16 %v1187_v17, %v1185_v52  ;;  %v1222_v52 = vld [vmem:[%s2529_s1 + $0x548] sm:$0xff] }
  0x55   :  { %445 = vmatpush1.bf16.msra.mxu0 %v2016_v63 }
  0x56   :  { %608 = vmatpush1.bf16.msra.mxu1 %v1572_v62  ;;  %446 = vmatprep.subr.bf16.mxu0 %v2020_v4  ;;  %v1184_v62 = vld [vmem:[%s2529_s1 + $0x418] sm:$0xff] }
  0x57   :  { %609 = vmatprep.subr.bf16.mxu1 %v1575_v0  ;;  %v2060_v22 = vpack.c.bf16 %v1184_v62, %v1182_v18  ;;  %v1181_v0 = vld [vmem:[%s2529_s1 + $0x400] sm:$0xff]  ;;  %v1223_v62 = vld [vmem:[%s2529_s1 + $0x550] sm:$0xff] }
  0x58   :  { %v2076_v35 = vpack.c.bf16 %v1183_v32, %v1181_v0  ;;  %v1218_v0 = vld [vmem:[%s2529_s1 + $0x528] sm:$0xff] }
  0x59   :  { %447 = vmatpush1.bf16.msra.mxu0 %v2036_v13 }
  0x5a   :  { %610 = vmatpush1.bf16.msra.mxu1 %v1602_v12  ;;  %448 = vmatprep.subr.bf16.mxu0 %v2040_v15  ;;  %v1244_v12 = vld [vmem:[%s2529_s1 + $0x5f8] sm:$0xff] }
  0x5b   :  { %611 = vmatprep.subr.bf16.mxu1 %v1605_v14  ;;  %v2080_v36 = vpack.c.bf16 %v1244_v12, %v1242_v33  ;;  %v1241_v14 = vld [vmem:[%s2529_s1 + $0x5e0] sm:$0xff]  ;;  %v1219_v12 = vld [vmem:[%s2529_s1 + $0x530] sm:$0xff] }
  0x5c   :  { %v2096_v42 = vpack.c.bf16 %v1243_v37, %v1241_v14  ;;  %v1214_v14 = vld [vmem:[%s2529_s1 + $0x508] sm:$0xff] }
  0x5d   :  { %449 = vmatpush1.bf16.msra.mxu0 %v2056_v19 }
  0x5e   :  { %612 = vmatpush1.bf16.msra.mxu1 %v1632_v27  ;;  %450 = vmatprep.subr.bf16.mxu0 %v2060_v22  ;;  %v1240_v27 = vld [vmem:[%s2529_s1 + $0x5d8] sm:$0xff] }
  0x5f   :  { %613 = vmatprep.subr.bf16.mxu1 %v1635_v29  ;;  %v2100_v47 = vpack.c.bf16 %v1240_v27, %v1238_v45  ;;  %v1237_v29 = vld [vmem:[%s2529_s1 + $0x5c0] sm:$0xff]  ;;  %v1215_v27 = vld [vmem:[%s2529_s1 + $0x510] sm:$0xff] }
  0x60   :  { %v2116_v54 = vpack.c.bf16 %v1239_v8, %v1237_v29  ;;  %v1276_v29 = vld [vmem:[%s2529_s1 + $0x2e8] sm:$0xff]  ;;  %v748_v8 = vshll.u32 %v1952_v38, 16 }
  0x61   :  { %451 = vmatpush1.bf16.msra.mxu0 %v2076_v35 }
  0x62   :  { %614 = vmatpush1.bf16.msra.mxu1 %v1662_v41  ;;  %452 = vmatprep.subr.bf16.mxu0 %v2080_v36  ;;  %v1236_v41 = vld [vmem:[%s2529_s1 + $0x5b8] sm:$0xff] }
  0x63   :  { %615 = vmatprep.subr.bf16.mxu1 %v1665_v43  ;;  %v2120_v56 = vpack.c.bf16 %v1236_v41, %v1234_v51  ;;  %v1233_v43 = vld [vmem:[%s2529_s1 + $0x5a0] sm:$0xff] }
  0x64   :  { %v2136_v60 = vpack.c.bf16 %v1235_v21, %v1233_v43  ;;  %v1275_v43 = vld [vmem:[%s2529_s1 + $0x2e0] sm:$0xff]  ;;  %v1277_v21 = vld [vmem:[%s2529_s1 + $0x2f0] sm:$0xff] }
  0x65   :  { %453 = vmatpush2.bf16.msra.mxu0 %v2096_v42 }
  0x66   :  { %616 = vmatpush2.bf16.msra.mxu1 %v1692_v55  ;;  %454 = vmatprep.subr.bf16.mxu0 %v2100_v47  ;;  %v1232_v55 = vld [vmem:[%s2529_s1 + $0x598] sm:$0xff] }
  0x67   :  { %617 = vmatprep.subr.bf16.mxu1 %v1695_v57  ;;  %v2140_v61 = vpack.c.bf16 %v1232_v55, %v1230_v26  ;;  %v1229_v57 = vld [vmem:[%s2529_s1 + $0x580] sm:$0xff]  ;;  %v1274_v26 = vld [vmem:[%s2529_s1 + $0x2d8] sm:$0xff]  ;;  %v746_v55 = vshrl.u32 %v1952_v38, 16 }
  0x68   :  { %v2156_v7 = vpack.c.bf16 %v1231_v34, %v1229_v57  ;;  %v750_v57 = vrot.slane %v748_v8, 1  ;;  %v432_v34 = vrot.slane %v1855_v25, 1  ;;  %v1268_v25 = vld [vmem:[%s2529_s1 + $0x2a8] sm:$0xff] }
  0x69   :  { %455 = vmatpush2.bf16.msra.mxu0 %v2116_v54 }
  0x6a   :  { %618 = vmatpush2.bf16.msra.mxu1 %v1722_v6  ;;  %456 = vmatprep.subr.bf16.mxu0 %v2120_v56  ;;  %v1228_v6 = vld [vmem:[%s2529_s1 + $0x578] sm:$0xff] }
  0x6b   :  { %619 = vmatprep.subr.bf16.mxu1 %v1725_v9  ;;  %v2160_v10 = vpack.c.bf16 %v1228_v6, %v1226_v39  ;;  %v1225_v9 = vld [vmem:[%s2529_s1 + $0x560] sm:$0xff]  ;;  %v720_v6 = vpack.c.bf16 %v1277_v21, %v1275_v43 }
  0x6c   :  { %v2176_v17 = vpack.c.bf16 %v1227_v50, %v1225_v9  ;;  %v1271_v9 = vld [vmem:[%s2529_s1 + $0x2c0] sm:$0xff]  ;;  %v1273_v50 = vld [vmem:[%s2529_s1 + $0x2d0] sm:$0xff] }
  0x6d   :  { %457 = vmatpush2.bf16.msra.mxu0 %v2136_v60 }
  0x6e   :  { %620 = vmatpush2.bf16.msra.mxu1 %v1752_v23  ;;  %458 = vmatprep.subr.bf16.mxu0 %v2140_v61  ;;  %v1224_v23 = vld [vmem:[%s2529_s1 + $0x558] sm:$0xff] }
  0x6f   :  { %621 = vmatprep.subr.bf16.mxu1 %v1758_v28  ;;  %v2180_v18 = vpack.c.bf16 %v1224_v23, %v1222_v52  ;;  %v1221_v28 = vld [vmem:[%s2529_s1 + $0x540] sm:$0xff]  ;;  %v751_v52 = vor.u32 %v750_v57, %v746_v55  ;;  %v896_v23 = vrot.slane %v1952_v38, 1  ;;  %v1264_v38 = vld [vmem:[%s2529_s1 + $0x288] sm:$0xff] }
  0x70   :  { %v2196_v32 = vpack.c.bf16 %v1223_v62, %v1221_v28  ;;  %v718_v28 = vpack.c.bf16 %v1273_v50, %v1271_v9  ;;  %v1267_v62 = vld [vmem:[%s2529_s1 + $0x2a0] sm:$0xff] }
  0x71   :  { %459 = vmatpush2.bf16.msra.mxu0 %v2156_v7  ;;  %v1307_v50 = vld [vmem:[%s2529_s1 + $0x3e0] sm:$0xff] }
  0x72   :  { %622 = vmatpush2.bf16.msra.mxu1 %v1787_v44  ;;  %460 = vmatprep.subr.bf16.mxu0 %v2160_v10  ;;  %v1220_v44 = vld [vmem:[%s2529_s1 + $0x538] sm:$0xff] }
  0x73   :  { %623 = vmatprep.subr.bf16.mxu1 %v1790_v46  ;;  %v2200_v33 = vpack.c.bf16 %v1220_v44, %v1218_v0  ;;  %v1217_v46 = vld [vmem:[%s2529_s1 + $0x520] sm:$0xff]  ;;  %v1269_v0 = vld [vmem:[%s2529_s1 + $0x2b0] sm:$0xff] }
  0x74   :  { %v2216_v37 = vpack.c.bf16 %v1219_v12, %v1217_v46  ;;  %v716_v44 = vpack.c.bf16 %v1269_v0, %v1267_v62  ;;  %v1265_v12 = vld [vmem:[%s2529_s1 + $0x290] sm:$0xff]  ;;  %v1299_v0 = vld [vmem:[%s2529_s1 + $0x3a0] sm:$0xff] }
  0x75   :  { %461 = vmatpush2.bf16.msra.mxu0 %v2176_v17 }
  0x76   :  { %624 = vmatpush2.bf16.msra.mxu1 %v1820_v1  ;;  %462 = vmatprep.subr.bf16.mxu0 %v2180_v18  ;;  %v1216_v1 = vld [vmem:[%s2529_s1 + $0x518] sm:$0xff] }
  0x77   :  { %625 = vmatprep.subr.bf16.mxu1 %v1826_v5  ;;  %v2220_v45 = vpack.c.bf16 %v1216_v1, %v1214_v14  ;;  %v1213_v5 = vld [vmem:[%s2529_s1 + $0x500] sm:$0xff]  ;;  %v1260_v14 = vld [vmem:[%s2529_s1 + $0x268] sm:$0xff] }
  0x78   :  { %v2237_v51 = vpack.c.bf16 %v1215_v27, %v1213_v5  ;;  %v1259_v27 = vld [vmem:[%s2529_s1 + $0x260] sm:$0xff] }
  0x79   :  { %463 = vmatpush2.bf16.msra.mxu0 %v2196_v32 }
  0x7a   :  { %626 = vmatpush2.bf16.msra.mxu1 %v1853_v24  ;;  %464 = vmatprep.subr.bf16.mxu0 %v2200_v33  ;;  %v1278_v24 = vld [vmem:[%s2529_s1 + $0x2f8] sm:$0xff] }
  0x7b   :  { %627 = vmatprep.subr.bf16.mxu1 %v1858_v31  ;;  %v1245_v31 = vld [vmem:[%s2530_s0 + $0x10] sm:$0x3f]  ;;  %v721_v41 = vpack.c.bf16 %v1278_v24, %v1276_v29  ;;  %v1256_v29 = vld [vmem:[%s2529_s1 + $0x248] sm:$0xff] }
  0x7c   :  { %v2260_v39 = vpack.c.bf16 %v1245_v31, %v1245_v31  ;;  %v1255_v31 = vld [vmem:[%s2529_s1 + $0x240] sm:$0xff] }
  0x7d   :  { %465 = vmatpush2.bf16.msra.mxu0 %v2216_v37 }
  0x7e   :  { %628 = vmatpush2.bf16.msra.mxu1 %v1885_v48  ;;  %466 = vmatprep.subr.bf16.mxu0 %v2220_v45  ;;  %v1272_v48 = vld [vmem:[%s2529_s1 + $0x2c8] sm:$0xff] }
  0x7f   :  { %629 = vmatprep.subr.bf16.mxu1 %v1889_v53  ;;  %v719_v53 = vpack.c.bf16 %v1274_v26, %v1272_v48  ;;  %v1251_v48 = vld [vmem:[%s2529_s1 + $0x220] sm:$0xff]  ;;  %v1248_v26 = vld [vmem:[%s2529_s1 + $0x208] sm:$0xff] }
  0x81   :  { %467 = vmatpush2.bf16.msra.mxu0 %v2237_v51 }
  0x82   :  { %630 = vmatpush2.bf16.msra.mxu1 %v1910_v2  ;;  %754 = vmatprep.subr.bf16.mxu0 %v721_v41  ;;  %v1270_v2 = vld [vmem:[%s2529_s1 + $0x2b8] sm:$0xff]  ;;  %v1252_v41 = vld [vmem:[%s2529_s1 + $0x228] sm:$0xff] }
  0x83   :  { %899 = vmatprep.subr.bf16.mxu1 %v1914_v11  ;;  %v717_v11 = vpack.c.bf16 %v1270_v2, %v1268_v25  ;;  %v1304_v25 = vld [vmem:[%s2529_s1 + $0x3c8] sm:$0xff] }
  0x84   :  { %469 = vmatmul.mubr.bf16.vlgmr.msra.gmra.mxu0 %v432_v34  ;;  %v1247_v34 = vld [vmem:[%s2529_s1 + $0x200] sm:$0xff] }
  0x85   :  { %632 = vmatmul.mubr.bf16.vlgmr.msra.gmra.mxu1 %v2260_v39  ;;  %755 = vmatpush1.bf16.msra.mxu0 %v720_v6  ;;  %v1308_v6 = vld [vmem:[%s2529_s1 + $0x3e8] sm:$0xff] }
  0x86   :  { %900 = vmatpush1.bf16.msra.mxu1 %v1929_v20  ;;  %756 = vmatprep.subr.bf16.mxu0 %v719_v53  ;;  %v1266_v20 = vld [vmem:[%s2529_s1 + $0x298] sm:$0xff] }
  0x87   :  { %901 = vmatprep.subr.bf16.mxu1 %v1935_v30  ;;  %786 = vmatprep.mubr.bf16.mxu0 %v751_v52  ;;  %v715_v46 = vpack.c.bf16 %v1266_v20, %v1264_v38  ;;  %v1263_v30 = vld [vmem:[%s2529_s1 + $0x280] sm:$0xff]  ;;  %v1296_v38 = vld [vmem:[%s2529_s1 + $0x388] sm:$0xff] }
  0x88   :  { %931 = vmatprep.mubr.bf16.mxu1 %v896_v23  ;;  %v714_v1 = vpack.c.bf16 %v1265_v12, %v1263_v30  ;;  %v1303_v23 = vld [vmem:[%s2529_s1 + $0x3c0] sm:$0xff]  ;;  %v1292_v30 = vld [vmem:[%s2529_s1 + $0x368] sm:$0xff] }
  0x89   :  { %757 = vmatpush1.bf16.msra.mxu0 %v718_v28  ;;  %v1300_v28 = vld [vmem:[%s2529_s1 + $0x3a8] sm:$0xff] }
  0x8a   :  { %902 = vmatpush1.bf16.msra.mxu1 %v1955_v40  ;;  %758 = vmatprep.subr.bf16.mxu0 %v717_v11  ;;  %v1262_v40 = vld [vmem:[%s2529_s1 + $0x278] sm:$0xff] }
  0x8b   :  { %903 = vmatprep.subr.bf16.mxu1 %v1959_v3  ;;  %v713_v5 = vpack.c.bf16 %v1262_v40, %v1260_v14  ;;  %v1261_v3 = vld [vmem:[%s2529_s1 + $0x270] sm:$0xff]  ;;  %v1291_v40 = vld [vmem:[%s2529_s1 + $0x360] sm:$0xff] }
  0x8c   :  { %v712_v24 = vpack.c.bf16 %v1261_v3, %v1259_v27  ;;  %v1287_v3 = vld [vmem:[%s2529_s1 + $0x340] sm:$0xff] }
  0x8d   :  { %759 = vmatpush1.bf16.msra.mxu0 %v716_v44 }
  0x8e   :  { %904 = vmatpush1.bf16.msra.mxu1 %v1976_v49  ;;  %760 = vmatprep.subr.bf16.mxu0 %v715_v46  ;;  %v1258_v49 = vld [vmem:[%s2529_s1 + $0x258] sm:$0xff]  ;;  %v1295_v46 = vld [vmem:[%s2529_s1 + $0x380] sm:$0xff] }
  0x8f   :  { %905 = vmatprep.subr.bf16.mxu1 %v1980_v16  ;;  %v711_v8 = vpack.c.bf16 %v1258_v49, %v1256_v29  ;;  %v1257_v16 = vld [vmem:[%s2529_s1 + $0x250] sm:$0xff]  ;;  %v1284_v29 = vld [vmem:[%s2529_s1 + $0x328] sm:$0xff] }
  0x90   :  { %v710_v43 = vpack.c.bf16 %v1257_v16, %v1255_v31  ;;  %v1280_v31 = vld [vmem:[%s2529_s1 + $0x308] sm:$0xff]  ;;  %v741_v16 = vshll.u32 %v2260_v39, 16 }
  0x91   :  { %761 = vmatpush1.bf16.msra.mxu0 %v714_v1  ;;  %v1288_v1 = vld [vmem:[%s2529_s1 + $0x348] sm:$0xff] }
  0x92   :  { %906 = vmatpush1.bf16.msra.mxu1 %v1996_v58  ;;  %762 = vmatprep.subr.bf16.mxu0 %v713_v5  ;;  %v1254_v58 = vld [vmem:[%s2529_s1 + $0x238] sm:$0xff] }
  0x93   :  { %907 = vmatprep.subr.bf16.mxu1 %v2000_v59  ;;  %v709_v21 = vpack.c.bf16 %v1254_v58, %v1252_v41  ;;  %v1253_v59 = vld [vmem:[%s2529_s1 + $0x230] sm:$0xff] }
  0x94   :  { %v708_v55 = vpack.c.bf16 %v1253_v59, %v1251_v48  ;;  %v743_v48 = vrot.slane %v741_v16, 1 }
  0x95   :  { %763 = vmatpush1.bf16.msra.mxu0 %v712_v24 }
  0x96   :  { %908 = vmatpush1.bf16.msra.mxu1 %v2016_v63  ;;  %764 = vmatprep.subr.bf16.mxu0 %v711_v8  ;;  %v1250_v63 = vld [vmem:[%s2529_s1 + $0x218] sm:$0xff]  ;;  %v1283_v8 = vld [vmem:[%s2529_s1 + $0x320] sm:$0xff] }
  0x97   :  { %909 = vmatprep.subr.bf16.mxu1 %v2020_v4  ;;  %v707_v57 = vpack.c.bf16 %v1250_v63, %v1248_v26  ;;  %v1249_v4 = vld [vmem:[%s2529_s1 + $0x210] sm:$0xff]  ;;  %v895_v26 = vrot.slane %v2260_v39, 1  ;;  %v24_v63 = vlaneseq }
  0x98   :  { %v706_v53 = vpack.c.bf16 %v1249_v4, %v1247_v34 }
  0x99   :  { %765 = vmatpush1.bf16.msra.mxu0 %v710_v43  ;;  %v1281_v43 = vld [vmem:[%s2529_s1 + $0x310] sm:$0xff] }
  0x9a   :  { %910 = vmatpush1.bf16.msra.mxu1 %v2036_v13  ;;  %766 = vmatprep.subr.bf16.mxu0 %v709_v21  ;;  %v1310_v13 = vld [vmem:[%s2529_s1 + $0x3f8] sm:$0xff]  ;;  %v739_v21 = vshrl.u32 %v2260_v39, 16 }
  0x9b   :  { %911 = vmatprep.subr.bf16.mxu1 %v2040_v15  ;;  %v737_v9 = vpack.c.bf16 %v1310_v13, %v1308_v6  ;;  %v1309_v15 = vld [vmem:[%s2529_s1 + $0x3f0] sm:$0xff] }
  0x9c   :  { %v736_v2 = vpack.c.bf16 %v1309_v15, %v1307_v50 }
  0x9d   :  { %767 = vmatpush1.bf16.msra.mxu0 %v708_v55 }
  0x9e   :  { %912 = vmatpush1.bf16.msra.mxu1 %v2056_v19  ;;  %768 = vmatprep.subr.bf16.mxu0 %v707_v57  ;;  %v1306_v19 = vld [vmem:[%s2529_s1 + $0x3d8] sm:$0xff] }
  0x9f   :  { %913 = vmatprep.subr.bf16.mxu1 %v2060_v22  ;;  %v735_v52 = vpack.c.bf16 %v1306_v19, %v1304_v25  ;;  %v1305_v22 = vld [vmem:[%s2529_s1 + $0x3d0] sm:$0xff] }
  0xa0   :  { %v734_v11 = vpack.c.bf16 %v1305_v22, %v1303_v23 }
  0xa1   :  { %769 = vmatpush1.bf16.msra.mxu0 %v706_v53 }
  0xa2   :  { %914 = vmatpush1.bf16.msra.mxu1 %v2076_v35  ;;  %770 = vmatprep.subr.bf16.mxu0 %v737_v9  ;;  %v1302_v35 = vld [vmem:[%s2529_s1 + $0x3b8] sm:$0xff] }
  0xa3   :  { %915 = vmatprep.subr.bf16.mxu1 %v2080_v36  ;;  %v733_v62 = vpack.c.bf16 %v1302_v35, %v1300_v28  ;;  %v1301_v36 = vld [vmem:[%s2529_s1 + $0x3b0] sm:$0xff] }
  0xa4   :  { %v732_v20 = vpack.c.bf16 %v1301_v36, %v1299_v0 }
  0xa5   :  { %771 = vmatpush2.bf16.msra.mxu0 %v736_v2 }
  0xa6   :  { %916 = vmatpush2.bf16.msra.mxu1 %v2096_v42  ;;  %772 = vmatprep.subr.bf16.mxu0 %v735_v52  ;;  %v1298_v42 = vld [vmem:[%s2529_s1 + $0x398] sm:$0xff] }
  0xa7   :  { %917 = vmatprep.subr.bf16.mxu1 %v2100_v47  ;;  %v731_v44 = vpack.c.bf16 %v1298_v42, %v1296_v38  ;;  %v1297_v47 = vld [vmem:[%s2529_s1 + $0x390] sm:$0xff] }
  0xa8   :  { %v730_v12 = vpack.c.bf16 %v1297_v47, %v1295_v46 }
  0xa9   :  { %773 = vmatpush2.bf16.msra.mxu0 %v734_v11 }
  0xaa   :  { %918 = vmatpush2.bf16.msra.mxu1 %v2116_v54  ;;  %774 = vmatprep.subr.bf16.mxu0 %v733_v62  ;;  %v1294_v54 = vld [vmem:[%s2529_s1 + $0x378] sm:$0xff] }
  0xab   :  { %919 = vmatprep.subr.bf16.mxu1 %v2120_v56  ;;  %v729_v14 = vpack.c.bf16 %v1294_v54, %v1292_v30  ;;  %v1293_v56 = vld [vmem:[%s2529_s1 + $0x370] sm:$0xff] }
  0xac   :  { %v728_v5 = vpack.c.bf16 %v1293_v56, %v1291_v40 }
  0xad   :  { %775 = vmatpush2.bf16.msra.mxu0 %v732_v20  ;;  %v487_v20 = vld [vmem:[%s2531_s2] sm:$0x3] }
  0xae   :  { %920 = vmatpush2.bf16.msra.mxu1 %v2136_v60  ;;  %776 = vmatprep.subr.bf16.mxu0 %v731_v44  ;;  %v1290_v60 = vld [vmem:[%s2529_s1 + $0x358] sm:$0xff] }
  0xaf   :  { %921 = vmatprep.subr.bf16.mxu1 %v2140_v61  ;;  %v727_v27 = vpack.c.bf16 %v1290_v60, %v1288_v1  ;;  %v1289_v61 = vld [vmem:[%s2529_s1 + $0x350] sm:$0xff] }
  0xb0   :  { %v726_v49 = vpack.c.bf16 %v1289_v61, %v1287_v3 }
  0xb1   :  { %777 = vmatpush2.bf16.msra.mxu0 %v730_v12 }
  0xb2   :  { %922 = vmatpush2.bf16.msra.mxu1 %v2156_v7  ;;  %778 = vmatprep.subr.bf16.mxu0 %v729_v14  ;;  %v1286_v7 = vld [vmem:[%s2529_s1 + $0x338] sm:$0xff] }
  0xb3   :  { %923 = vmatprep.subr.bf16.mxu1 %v2160_v10  ;;  %v725_v24 = vpack.c.bf16 %v1286_v7, %v1284_v29  ;;  %v1285_v10 = vld [vmem:[%s2529_s1 + $0x330] sm:$0xff] }
  0xb4   :  { %v724_v41 = vpack.c.bf16 %v1285_v10, %v1283_v8 }
  0xb5   :  { %779 = vmatpush2.bf16.msra.mxu0 %v728_v5 }
  0xb6   :  { %924 = vmatpush2.bf16.msra.mxu1 %v2176_v17  ;;  %780 = vmatprep.subr.bf16.mxu0 %v727_v27  ;;  %v1282_v17 = vld [vmem:[%s2529_s1 + $0x318] sm:$0xff] }
  0xb7   :  { %925 = vmatprep.subr.bf16.mxu1 %v2180_v18  ;;  %v723_v58 = vpack.c.bf16 %v1282_v17, %v1280_v31  ;;  %v1279_v18 = vld [vmem:[%s2529_s1 + $0x300] sm:$0xff] }
  0xb8   :  { %v722_v59 = vpack.c.bf16 %v1281_v43, %v1279_v18 }
  0xb9   :  { %781 = vmatpush2.bf16.msra.mxu0 %v726_v49 }
  0xba   :  { %926 = vmatpush2.bf16.msra.mxu1 %v2196_v32  ;;  %782 = vmatprep.subr.bf16.mxu0 %v725_v24  ;;  %v744_v32 = vor.u32 %v743_v48, %v739_v21 }
  0xbb   :  { %927 = vmatprep.subr.bf16.mxu1 %v2200_v33  ;;  %v2474_v33 = vshrl.u32 %v24_v63, 7 }
  0xbd   :  { %783 = vmatpush2.bf16.msra.mxu0 %v724_v41  ;;  %v2477_v55 = vsub.s32 0, %v2474_v33 }
  0xbe   :  { %928 = vmatpush2.bf16.msra.mxu1 %v2216_v37  ;;  %784 = vmatprep.subr.bf16.mxu0 %v723_v58  ;;  %v22_v37 = vld [vmem:[%s2531_s2] sm:$0x3] }
  0xbf   :  { %929 = vmatprep.subr.bf16.mxu1 %v2220_v45  ;;  %v2483_v45 = vsub.s32 1, %v2474_v33  ;;  %v27_v57 = vrot.slane %v22_v37, %v2477_v55  ;;  %v492_v46 = vrot.slane %v487_v20, %v2477_v55 }
  0xc1   :  { %785 = vmatpush2.bf16.msra.mxu0 %v722_v59  ;;  %v31_v39 = vrot.slane %v22_v37, %v2483_v45  ;;  %v496_v54 = vrot.slane %v487_v20, %v2483_v45 }
  0xc2   :  { %930 = vmatpush2.bf16.msra.mxu1 %v2237_v51 }
  0xc4   :  { %787 = vmatmul.mubr.bf16.vlgmr.msra.gmra.mxu0 %v744_v32 }
  0xc5   :  { %932 = vmatmul.mubr.bf16.vlgmr.msra.gmra.mxu1 %v895_v26 }
 0x104   :  { %v168_v51 = vpop.f32.mrf.mxu0 }
 0x105   :  { %v175_v34 = vadd.f32 %v168_v51, %v27_v57  ;;  %v324_v4 = vpop.f32.mrf.mxu1 }
 0x106   :  { %v170_v6 = vpop.f32.mrf.mxu0 }
 0x107   :  { %v331_v13 = vadd.f32 %v324_v4, %v175_v34  ;;  %v176_v53 = vadd.f32 %v170_v6, %v31_v39  ;;  %v326_v9 = vpop.f32.mrf.mxu1 }
 0x108   :  { %v172_v50 = vpop.f32.mrf.mxu0 }
 0x109   :  { %v332_v15 = vadd.f32 %v326_v9, %v176_v53  ;;  %v328_v25 = vpop.f32.mrf.mxu1 }
 0x10a   :  { %v173_v19 = vpop.f32.mrf.mxu0 }
 0x10b   :  { %v329_v2 = vpop.f32.mrf.mxu1 }
 0x144   :  { %v470_v52 = vpop.f32.mrf.mxu0 }
 0x145   :  { %v477_v23 = vadd.f32 %v470_v52, %v331_v13  ;;  %v633_v22 = vpop.f32.mrf.mxu1 }
 0x146   :  { %v472_v28 = vpop.f32.mrf.mxu0  ;;  %v640_v12 = vadd.f32 %v633_v22, %v492_v46 }
 0x147   :  { %v478_v35 = vadd.f32 %v472_v28, %v332_v15  ;;  %v635_v11 = vpop.f32.mrf.mxu1 }
 0x148   :  { %v474_v62 = vpop.f32.mrf.mxu0  ;;  %v641_v1 = vadd.f32 %v635_v11, %v496_v54 }
 0x149   :  { %v2487_v0 = vcombine.low %v477_v23, %v478_v35  ;;  %v637_v36 = vpop.f32.mrf.mxu1  ;;  %v1376_v44 = vcombine.low %v478_v35, %v478_v35 }
 0x14a   :  { %v475_v38 = vpop.f32.mrf.mxu0 }
 0x14b   :  { %v638_v42 = vpop.f32.mrf.mxu1  ;;  %v953_v47 = vsel %vm952_vm0, %v2487_v0, 0.0  ;;  %v960_v30 = vsel %vm952_vm0, %v1376_v44, 0.0 }
 0x14c   :  { %v954_v14 = vrot.slane %v953_v47, 4  ;;  %v961_v40 = vrot.slane %v960_v30, 4 }
 0x14e   :  { %v955_v29 = vadd.f32 %v954_v14, %v953_v47  ;;  %v962_v7 = vadd.f32 %v961_v40, %v960_v30 }
 0x150   :  { %v956_v58 = vrot.slane %v955_v29, 2  ;;  %v963_v18 = vrot.slane %v962_v7, 2 }
 0x152   :  { %v957_v32 = vadd.f32 %v956_v58, %v955_v29  ;;  %v964_v26 = vadd.f32 %v963_v18, %v962_v7 }
 0x154   :  { %v958_v51 = vrot.slane %v957_v32, 1  ;;  %v965_v34 = vrot.slane %v964_v26, 1 }
 0x156   :  { %v959_v9 = vadd.f32 %v958_v51, %v957_v32  ;;  %v966_v50 = vadd.f32 %v965_v34, %v964_v26 }
 0x184   :  { %v788_v56 = vpop.f32.mrf.mxu0 }
 0x185   :  { %v795_v60 = vadd.f32 %v788_v56, %v640_v12  ;;  %v933_v5 = vpop.f32.mrf.mxu1 }
 0x186   :  { %v790_v27 = vpop.f32.mrf.mxu0 }
 0x187   :  { %v796_v3 = vadd.f32 %v790_v27, %v641_v1  ;;  %v935_v61 = vpop.f32.mrf.mxu1  ;;  %v940_v24 = vadd.f32 %v933_v5, %v795_v60 }
 0x188   :  { %v792_v49 = vpop.f32.mrf.mxu0 }
 0x189   :  { %v941_v8 = vadd.f32 %v935_v61, %v796_v3  ;;  %v937_v10 = vpop.f32.mrf.mxu1 }
 0x18a   :  { %v793_v31 = vpop.f32.mrf.mxu0 }
 0x18b   :  { %v2497_v17 = vcombine.low %v940_v24, %v941_v8  ;;  %v1377_v16 = vcombine.low %v941_v8, %v941_v8  ;;  %v938_v41 = vpop.f32.mrf.mxu1 }
 0x18d   :  { %v973_v43 = vsel %vm952_vm0, %v2497_v17, 0.0  ;;  %v980_v21 = vsel %vm952_vm0, %v1377_v16, 0.0 }
 0x18e   :  { %v974_v48 = vrot.slane %v973_v43, 4  ;;  %v981_v59 = vrot.slane %v980_v21, 4 }
 0x190   :  { %v975_v63 = vadd.f32 %v974_v48, %v973_v43  ;;  %v982_v37 = vadd.f32 %v981_v59, %v980_v21 }
 0x192   :  { %v976_v57 = vrot.slane %v975_v63, 2  ;;  %v983_v39 = vrot.slane %v982_v37, 2 }
 0x194   :  { %v977_v4 = vadd.f32 %v976_v57, %v975_v63  ;;  %v984_v6 = vadd.f32 %v983_v39, %v982_v37  ;;  %v1044_v63 = vld [vmem:[%s2532_s3] sm:$0x3]  ;;  %v1383_v37 = vmov 1966171168  }
 0x195   :  { %v1065_v57 = vunpack.c.l.s4 %v1383_v37  ;;  %v1049_v39 = vrot.slane %v1044_v63, %v2477_v55  ;;  %v1053_v51 = vrot.slane %v1044_v63, %v2483_v45 }
 0x196   :  { %v978_v13 = vrot.slane %v977_v4, 1  ;;  %v985_v53 = vrot.slane %v984_v6, 1 }
 0x198   :  { %v979_v15 = vadd.f32 %v978_v13, %v977_v4  ;;  %v986_v25 = vadd.f32 %v985_v53, %v984_v6  ;;  %v1066_v4 = vunpack.c.0.s8 %v1065_v57 }
 0x19a   :  { %v987_v19 = vadd.f32 %v979_v15, %v959_v9  ;;  %v988_v2 = vadd.f32 %v986_v25, %v966_v50  ;;  %v1069_v9 = vsub.s32 %v1066_v4, %v2474_v33 }
 0x19c   :  { %v990_v52 = vmul.f32 0.125, %v987_v19  ;;  %v991_v23 = vmul.f32 0.125, %v988_v2 }
 0x19e   :  { %v994_v22 = vcombine.low %v990_v52, %v991_v23 }
 0x1a0   :  { %v996_v28 = vsub.f32 %v2487_v0, %v994_v22  ;;  %v1017_v35 = vsub.f32 %v2497_v17, %v994_v22 }
 0x1a2   :  { %v997_v11 = vmul.f32 %v996_v28, %v996_v28  ;;  %v1018_v62 = vmul.f32 %v1017_v35, %v1017_v35 }
 0x1a4   :  { %v999_v36 = vcombine.high %v997_v11, %v997_v11  ;;  %v1001_v38 = vsel %vm952_vm0, %v997_v11, 0.0  ;;  %v1020_v42 = vcombine.high %v1018_v62, %v1018_v62  ;;  %v1022_v20 = vsel %vm952_vm0, %v1018_v62, 0.0  ;;  %v1058_v11 = vld [vmem:[%s2533_s4] sm:$0x3] }
 0x1a5   :  { %v1002_v44 = vrot.slane %v1001_v38, 4  ;;  %v1023_v46 = vrot.slane %v1022_v20, 4 }
 0x1a6   :  { %v1008_v47 = vsel %vm952_vm0, %v999_v36, 0.0  ;;  %v1029_v30 = vsel %vm952_vm0, %v1020_v42, 0.0 }
 0x1a7   :  { %v1003_v54 = vadd.f32 %v1002_v44, %v1001_v38  ;;  %v1009_v12 = vrot.slane %v1008_v47, 4  ;;  %v1024_v14 = vadd.f32 %v1023_v46, %v1022_v20  ;;  %v1030_v40 = vrot.slane %v1029_v30, 4 }
 0x1a9   :  { %v1004_v56 = vrot.slane %v1003_v54, 2  ;;  %v1010_v1 = vadd.f32 %v1009_v12, %v1008_v47  ;;  %v1025_v60 = vrot.slane %v1024_v14, 2  ;;  %v1031_v5 = vadd.f32 %v1030_v40, %v1029_v30 }
 0x1ab   :  { %v1005_v27 = vadd.f32 %v1004_v56, %v1003_v54  ;;  %v1011_v3 = vrot.slane %v1010_v1, 2  ;;  %v1026_v61 = vadd.f32 %v1025_v60, %v1024_v14  ;;  %v1032_v29 = vrot.slane %v1031_v5, 2 }
 0x1ad   :  { %v1006_v7 = vrot.slane %v1005_v27, 1  ;;  %v1012_v49 = vadd.f32 %v1011_v3, %v1010_v1  ;;  %v1027_v24 = vrot.slane %v1026_v61, 1  ;;  %v1033_v8 = vadd.f32 %v1032_v29, %v1031_v5 }
 0x1af   :  { %v1007_v10 = vadd.f32 %v1006_v7, %v1005_v27  ;;  %v1013_v31 = vrot.slane %v1012_v49, 1  ;;  %v1028_v16 = vadd.f32 %v1027_v24, %v1026_v61  ;;  %v1034_v41 = vrot.slane %v1033_v8, 1 }
 0x1b1   :  { %v1014_v58 = vadd.f32 %v1013_v31, %v1012_v49  ;;  %v1035_v18 = vadd.f32 %v1034_v41, %v1033_v8  ;;  %v1036_v43 = vadd.f32 %v1028_v16, %v1007_v10 }
 0x1b3   :  { %v1037_v21 = vadd.f32 %v1035_v18, %v1014_v58  ;;  %v1038_v48 = vmul.f32 0.125, %v1036_v43 }
 0x1b5   :  { %v1039_v59 = vmul.f32 0.125, %v1037_v21  ;;  %v1040_v32 = vadd.f32 1e-05, %v1038_v48 }
 0x1b7   :  { %v1041_v26 = vadd.f32 1e-05, %v1039_v59  ;;  %1379 = vrsqrt.f32 %v1040_v32 }
 0x1b9   :  { %1381 = vrsqrt.f32 %v1041_v26 }
 0x1c4   :  { %v1380_v34 = vpop.eup %1379 }
 0x1c5   :  { %v1056_v6 = vmul.f32 %v1380_v34, %v1049_v39 }
 0x1c6   :  { %v1382_v13 = vpop.eup %1381 }
 0x1c7   :  { %v1057_v53 = vmul.f32 %v1382_v13, %v1053_v51  ;;  %v1059_v50 = vmul.f32 %v1056_v6, %v990_v52  ;;  %v1083_v25 = vrot.slane %v1056_v6, %v2477_v55 }
 0x1c9   :  { %v1060_v15 = vmul.f32 %v1057_v53, %v991_v23  ;;  %v1087_v19 = vrot.slane %v1057_v53, %v2477_v55 }
 0x1cb   :  { %v1063_v2 = vcombine.low %v1059_v50, %v1060_v15  ;;  %v1090_v22 = vcombine.low %v1083_v25, %v1087_v19 }
 0x1cd   :  { %v1070_v28 = vrot.slane %v1063_v2, %v1069_v9  ;;  %v1108_v35 = vmul.f32 %v1090_v22, %v2497_v17  ;;  %v1092_v52 = vmul.f32 %v1090_v22, %v2487_v0 }
 0x1cf   :  { %v1077_v62 = vrot.slane %v1070_v28, %v1069_v9 }
 0x1d1   :  { %v1079_v36 = vsub.f32 %v1058_v11, %v1077_v62 }
 0x1d3   :  { %v1097_v38 = vrot.slane %v1079_v36, %v2477_v55  ;;  %v1101_v33 = vrot.slane %v1079_v36, %v2483_v45 }
 0x1d5   :  { %v1102_v23 = vcombine.low %v1097_v38, %v1101_v33 }
 0x1d7   :  { %v1104_v42 = vadd.f32 %v1102_v23, %v1092_v52  ;;  %v1109_v20 = vadd.f32 %v1108_v35, %v1102_v23 }
 0x1d9   :  { %v1105_v44 = vmax.f32 %v1104_v42, 0.0  ;;  %v1110_v46 = vmax.f32 %v1109_v20, 0.0 }
 0x1db   :  { %1106 = vst [vmem:[%s2534_s5] sm:$0xff] %v1105_v44  ;;  %1375 = vst [vmem:[%s2534_s5 + $0x8] sm:$0xff] %v1110_v46 }

// kernel: generator_forward.46
= control target key start
LH: loop header
LB: loop body
LE: loop exit
PB: predicated region body
PF: predicated region fallthrough
CT: control target
= control target key end

     0   :  { %s664_s12 = smov 0   ;;  %s875_s0 = inlined_call_operand.vmem [shape: f32[2,9,128], index: 0, kind: input, shape index: {}]   ;;  %s876_s1 = inlined_call_operand.vmem [shape: f32[3,128,64], index: 1, kind: input, shape index: {}]   ;;  %s877_s2 = inlined_call_operand.vmem [shape: f32[1,64], index: 2, kind: input, shape index: {}]   ;;  %s878_s3 = inlined_call_operand.vmem [shape: f32[2,2,8,64], index: 3, kind: output, shape index: {}]  }
   0x1 LB: > { %s488_s13 = sadd.s32 4294967295, %s640_s12   ;;  %p492_p0 = scmp.ge.s32.totalorder %s640_s12, 1  ;;  %s640_s12 = sphi %s664_s12, %s13_s12  }
   0x2   : > { %p137_p1 = scmp.lt.s32.totalorder %s640_s12, 3 }
   0x4   : > { %p138_p2 = pnand %p492_p0, %p137_p1 }
   0x5   : > { %p161_p3 = scmp.lt.s32.totalorder (!%p138_p2), %s488_s13, 1 }
   0x6   : > { %141 = sbr.rel (%p138_p2) target bundleno = 333 (0x14d), region = 32 }
   0xb   : > { %v511_v0 = vld [vmem:[%s876_s1 + $0xf0] sm:$0xff]  ;;  %v512_v1 = vld [vmem:[%s876_s1 + $0xf8] sm:$0xff]  ;;  %v509_v2 = vld [vmem:[%s876_s1 + $0xe0] sm:$0xff]  ;;  %v642_v3 = vmov 0.0   ;;  %vm643_vm0 = vmmov 0   ;;  %s880_s13 = smov (!%p161_p3, %s488_s13), 1 }
   0xc   : > { %562 = vmatprep.subr.bf16.mxu0 %v642_v3  ;;  %v200_v4 = vpack.c.bf16 %v512_v1, %v511_v0  ;;  %v510_v5 = vld [vmem:[%s876_s1 + $0xe8] sm:$0xff]  ;;  %582 = vmatprep.subr.bf16.mxu1 %v642_v3  ;;  %v507_v7 = vld [vmem:[%s876_s1 + $0xd0] sm:$0xff]  ;;  %v508_v8 = vld [vmem:[%s876_s1 + $0xd8] sm:$0xff]  ;;  %s533_s29 = sshll.u32 %s880_s13, 4  ;;  %vm386_vm1 = vcmask 523264  }
   0xd   : > { %578 = vmatprep.mubr.msk.bf16.mxu0 %vm643_vm0, %v642_v3  ;;  %598 = vmatprep.mubr.msk.bf16.mxu1 %vm643_vm0, %v642_v3  ;;  %v199_v6 = vpack.c.bf16 %v510_v5, %v509_v2  ;;  %v286_v9 = vld [vmem:[%s876_s1 + $0x70] sm:$0xff]  ;;  %v287_v10 = vld [vmem:[%s876_s1 + $0x78] sm:$0xff]  ;;  %v284_v12 = vld [vmem:[%s876_s1 + $0x60] sm:$0xff]  ;;  %v198_v14 = vpack.c.bf16 %v508_v8, %v507_v7  ;;  %s165_s9 = scalar_lea.vmem %s875_s0, %s533_s29  ;;  %s170_s20 = scalar_lea.vmem %s878_s3, %s533_s29 }
   0xe   : > { %563 = vmatpush3.bf16.msra.mxu0 %v200_v4  ;;  %v296_v11 = vpack.c.bf16 %v287_v10, %v286_v9  ;;  %v285_v13 = vld [vmem:[%s876_s1 + $0x68] sm:$0xff]  ;;  %v505_v15 = vld [vmem:[%s876_s1 + $0xc0] sm:$0xff]  ;;  %v282_v18 = vld [vmem:[%s876_s1 + $0x50] sm:$0xff] }
   0xf   : > { %564 = vmatprep.subr.bf16.mxu0 %v642_v3  ;;  %v506_v16 = vld [vmem:[%s876_s1 + $0xc8] sm:$0xff]  ;;  %v295_v17 = vpack.c.bf16 %v285_v13, %v284_v12  ;;  %v283_v19 = vld [vmem:[%s876_s1 + $0x58] sm:$0xff]  ;;  %v503_v21 = vld [vmem:[%s876_s1 + $0xb0] sm:$0xff] }
  0x10   : > { %583 = vmatpush3.bf16.msra.mxu1 %v296_v11  ;;  %v197_v20 = vpack.c.bf16 %v506_v16, %v505_v15  ;;  %v504_v22 = vld [vmem:[%s876_s1 + $0xb8] sm:$0xff]  ;;  %v294_v23 = vpack.c.bf16 %v283_v19, %v282_v18  ;;  %v280_v24 = vld [vmem:[%s876_s1 + $0x40] sm:$0xff]  ;;  %v281_v25 = vld [vmem:[%s876_s1 + $0x48] sm:$0xff] }
  0x11   : > { %584 = vmatprep.subr.bf16.mxu1 %v642_v3  ;;  %v196_v26 = vpack.c.bf16 %v504_v22, %v503_v21  ;;  %v501_v27 = vld [vmem:[%s876_s1 + $0xa0] sm:$0xff]  ;;  %v502_v28 = vld [vmem:[%s876_s1 + $0xa8] sm:$0xff]  ;;  %v293_v29 = vpack.c.bf16 %v281_v25, %v280_v24  ;;  %v278_v30 = vld [vmem:[%s876_s1 + $0x30] sm:$0xff] }
  0x12   : > { %565 = vmatpush3.bf16.msra.mxu0 %v199_v6  ;;  %v279_v31 = vld [vmem:[%s876_s1 + $0x38] sm:$0xff]  ;;  %v195_v32 = vpack.c.bf16 %v502_v28, %v501_v27  ;;  %v499_v33 = vld [vmem:[%s876_s1 + $0x90] sm:$0xff]  ;;  %v173_v35 = vld [vmem:[%s165_s9 + $0x8] sm:$0x1] }
  0x13   : > { %566 = vmatprep.subr.bf16.mxu0 %v642_v3  ;;  %v500_v34 = vld [vmem:[%s876_s1 + $0x98] sm:$0xff]  ;;  %v292_v36 = vpack.c.bf16 %v279_v31, %v278_v30  ;;  %v276_v37 = vld [vmem:[%s876_s1 + $0x20] sm:$0xff]  ;;  %v277_v38 = vld [vmem:[%s876_s1 + $0x28] sm:$0xff] }
  0x14   : > { %585 = vmatpush3.bf16.msra.mxu1 %v295_v17  ;;  %v172_v39 = vld [vmem:[%s165_s9] sm:$0xff]  ;;  %v194_v40 = vpack.c.bf16 %v500_v34, %v499_v33  ;;  %v498_v43 = vld [vmem:[%s876_s1 + $0x88] sm:$0xff]  ;;  %v291_v44 = vpack.c.bf16 %v277_v38, %v276_v37  ;;  %v274_v45 = vld [vmem:[%s876_s1 + $0x10] sm:$0xff] }
  0x15   : > { %586 = vmatprep.subr.bf16.mxu1 %v642_v3  ;;  %v288_v41 = vpack.c.bf16 %v173_v35, %v172_v39  ;;  %v497_v42 = vld [vmem:[%s876_s1 + $0x80] sm:$0xff]  ;;  %v275_v46 = vld [vmem:[%s876_s1 + $0x18] sm:$0xff]  ;;  %v528_v49 = vld [vmem:[%s876_s1 + $0x170] sm:$0xff]  ;;  %v192_v54 = vpack.c.bf16 %v172_v39, %v172_v39 }
  0x16   : > { %567 = vmatpush3.bf16.msra.mxu0 %v198_v14  ;;  %v193_v47 = vpack.c.bf16 %v498_v43, %v497_v42  ;;  %v529_v50 = vld [vmem:[%s876_s1 + $0x178] sm:$0xff]  ;;  %v290_v51 = vpack.c.bf16 %v275_v46, %v274_v45  ;;  %v272_v52 = vld [vmem:[%s876_s1] sm:$0xff]  ;;  %v273_v53 = vld [vmem:[%s876_s1 + $0x8] sm:$0xff] }
  0x17   : > { %568 = vmatprep.subr.bf16.mxu0 %v642_v3  ;;  %v300_v48 = vshll.u32 %v288_v41, 16  ;;  %v271_v55 = vpack.c.bf16 %v529_v50, %v528_v49  ;;  %v298_v56 = vshrl.u32 %v288_v41, 16  ;;  %v526_v58 = vld [vmem:[%s876_s1 + $0x160] sm:$0xff]  ;;  %v527_v59 = vld [vmem:[%s876_s1 + $0x168] sm:$0xff]  ;;  %v289_v60 = vpack.c.bf16 %v273_v53, %v272_v52  ;;  %v524_v63 = vld [vmem:[%s876_s1 + $0x150] sm:$0xff] }
  0x18   : > { %587 = vmatpush3.bf16.msra.mxu1 %v294_v23  ;;  %v270_v61 = vpack.c.bf16 %v527_v59, %v526_v58  ;;  %v525_v0 = vld [vmem:[%s876_s1 + $0x158] sm:$0xff]  ;;  %v522_v2 = vld [vmem:[%s876_s1 + $0x140] sm:$0xff]  ;;  %v523_v4 = vld [vmem:[%s876_s1 + $0x148] sm:$0xff] }
  0x19   : > { %588 = vmatprep.subr.bf16.mxu1 %v642_v3  ;;  %v302_v57 = vrot.slane %v300_v48, 1  ;;  %v269_v1 = vpack.c.bf16 %v525_v0, %v524_v63  ;;  %v268_v5 = vpack.c.bf16 %v523_v4, %v522_v2  ;;  %v520_v6 = vld [vmem:[%s876_s1 + $0x130] sm:$0xff]  ;;  %v521_v7 = vld [vmem:[%s876_s1 + $0x138] sm:$0xff]  ;;  %v518_v9 = vld [vmem:[%s876_s1 + $0x120] sm:$0xff] }
  0x1a   : > { %569 = vmatpush3.bf16.msra.mxu0 %v197_v20  ;;  %v267_v8 = vpack.c.bf16 %v521_v7, %v520_v6  ;;  %v519_v10 = vld [vmem:[%s876_s1 + $0x128] sm:$0xff]  ;;  %v516_v12 = vld [vmem:[%s876_s1 + $0x110] sm:$0xff]  ;;  %v517_v13 = vld [vmem:[%s876_s1 + $0x118] sm:$0xff] }
  0x1b   : > { %570 = vmatprep.subr.bf16.mxu0 %v642_v3  ;;  %v303_v62 = vor.u32 %v302_v57, %v298_v56  ;;  %v266_v11 = vpack.c.bf16 %v519_v10, %v518_v9  ;;  %v265_v14 = vpack.c.bf16 %v517_v13, %v516_v12  ;;  %v514_v15 = vld [vmem:[%s876_s1 + $0x100] sm:$0xff]  ;;  %v515_v16 = vld [vmem:[%s876_s1 + $0x108] sm:$0xff] }
  0x1c   : > { %589 = vmatpush3.bf16.msra.mxu1 %v293_v29  ;;  %v264_v17 = vpack.c.bf16 %v515_v16, %v514_v15 }
  0x1d   : > { %590 = vmatprep.subr.bf16.mxu1 %v642_v3 }
  0x1e   : > { %571 = vmatpush3.bf16.msra.mxu0 %v196_v26  ;;  %v513_v26 = vld [vmem:[%s877_s2] ss:$0 sm:$0xff] }
  0x1f   : > { %572 = vmatprep.subr.bf16.mxu0 %v642_v3 }
  0x20   : > { %591 = vmatpush3.bf16.msra.mxu1 %v292_v36 }
  0x21   : > { %592 = vmatprep.subr.bf16.mxu1 %v642_v3 }
  0x22   : > { %573 = vmatpush3.bf16.msra.mxu0 %v195_v32 }
  0x23   : > { %574 = vmatprep.subr.bf16.mxu0 %v642_v3 }
  0x24   : > { %593 = vmatpush3.bf16.msra.mxu1 %v291_v44 }
  0x25   : > { %594 = vmatprep.subr.bf16.mxu1 %v642_v3 }
  0x26   : > { %575 = vmatpush3.bf16.msra.mxu0 %v194_v40 }
  0x27   : > { %576 = vmatprep.subr.bf16.mxu0 %v642_v3 }
  0x28   : > { %595 = vmatpush3.bf16.msra.mxu1 %v290_v51 }
  0x29   : > { %596 = vmatprep.subr.bf16.mxu1 %v642_v3 }
  0x2a   : > { %577 = vmatpush3.bf16.msra.mxu0 %v193_v47 }
  0x2b   : > { %602 = vmatprep.subr.bf16.mxu0 %v642_v3 }
  0x2c   : > { %597 = vmatpush3.bf16.msra.mxu1 %v289_v60 }
  0x2d   : > { %579 = vmatmul.mubr.bf16.vlgmr.msra.gmra.mxu0 %v192_v54 }
  0x2e   : > { %603 = vmatpush3.bf16.msra.mxu0 %v271_v55  ;;  %618 = vmatprep.mubr.msk.bf16.mxu0 %vm643_vm0, %v642_v3 }
  0x2f   : > { %604 = vmatprep.subr.bf16.mxu0 %v642_v3  ;;  %599 = vmatmul.mubr.bf16.vlgmr.msra.gmra.mxu1 %v303_v62 }
  0x32   : > { %605 = vmatpush3.bf16.msra.mxu0 %v270_v61 }
  0x33   : > { %606 = vmatprep.subr.bf16.mxu0 %v642_v3 }
  0x36   : > { %607 = vmatpush3.bf16.msra.mxu0 %v269_v1 }
  0x37   : > { %608 = vmatprep.subr.bf16.mxu0 %v642_v3 }
  0x3a   : > { %609 = vmatpush3.bf16.msra.mxu0 %v268_v5 }
  0x3b   : > { %610 = vmatprep.subr.bf16.mxu0 %v642_v3 }
  0x3e   : > { %611 = vmatpush3.bf16.msra.mxu0 %v267_v8 }
  0x3f   : > { %612 = vmatprep.subr.bf16.mxu0 %v642_v3 }
  0x42   : > { %613 = vmatpush3.bf16.msra.mxu0 %v266_v11 }
  0x43   : > { %614 = vmatprep.subr.bf16.mxu0 %v642_v3 }
  0x46   : > { %615 = vmatpush3.bf16.msra.mxu0 %v265_v14 }
  0x47   : > { %616 = vmatprep.subr.bf16.mxu0 %v642_v3 }
  0x4a   : > { %617 = vmatpush3.bf16.msra.mxu0 %v264_v17 }
  0x4d   : > { %619 = vmatmul.mubr.bf16.vlgmr.msra.gmra.mxu0 %v192_v54 }
  0xed   : > { %v241_v18 = vpop.f32.mrf.mxu0 }
  0xee   : > { %v242_v27 = vadd.f32 %v513_v26, %v241_v18 }
  0xef   : > { %v580_v19 = vpop.f32.mrf.mxu0  ;;  %v339_v21 = vpop.f32.mrf.mxu1 }
  0xf0   : > { %v387_v28 = vsel %vm386_vm1, %v242_v27, 0.0 }
  0xf1   : > { %v244_v20 = vpop.f32.mrf.mxu0  ;;  %v600_v23 = vpop.f32.mrf.mxu1  ;;  %v388_v29 = vrot.slane %v387_v28, 4 }
  0xf3   : > { %v581_v22 = vpop.f32.mrf.mxu0  ;;  %v342_v24 = vpop.f32.mrf.mxu1  ;;  %v389_v3 = vadd.f32 %v388_v29, %v387_v28 }
  0xf5   : > { %v601_v25 = vpop.f32.mrf.mxu1  ;;  %v390_v34 = vrot.slane %v389_v3, 2 }
  0xf7   : > { %v391_v39 = vadd.f32 %v390_v34, %v389_v3 }
  0xf9   : > { %v392_v42 = vrot.slane %v391_v39, 1 }
  0xfb   : > { %v393_v45 = vadd.f32 %v392_v42, %v391_v39 }
 0x10d   : > { %v379_v30 = vpop.f32.mrf.mxu0 }
 0x10e   : > { %v380_v31 = vadd.f32 %v379_v30, %v339_v21 }
 0x10f   : > { %v620_v32 = vpop.f32.mrf.mxu0 }
 0x110   : > { %v385_v33 = vadd.f32 %v513_v26, %v380_v31 }
 0x111   : > { %v382_v35 = vpop.f32.mrf.mxu0 }
 0x112   : > { %v394_v36 = vsel %vm386_vm1, %v385_v33, 0.0 }
 0x113   : > { %v395_v37 = vrot.slane %v394_v36, 4  ;;  %v621_v38 = vpop.f32.mrf.mxu0 }
 0x115   : > { %v396_v40 = vadd.f32 %v395_v37, %v394_v36 }
 0x117   : > { %v397_v41 = vrot.slane %v396_v40, 2 }
 0x119   : > { %v398_v43 = vadd.f32 %v397_v41, %v396_v40 }
 0x11b   : > { %v399_v44 = vrot.slane %v398_v43, 1 }
 0x11d   : > { %v400_v46 = vadd.f32 %v399_v44, %v398_v43 }
 0x11f   : > { %v401_v47 = vadd.f32 %v400_v46, %v393_v45 }
 0x121   : > { %v403_v48 = vmul.f32 0.0625, %v401_v47 }
 0x123   : > { %v404_v49 = vsub.f32 %v242_v27, %v403_v48  ;;  %v405_v50 = vsub.f32 %v385_v33, %v403_v48 }
 0x125   : > { %v406_v51 = vmul.f32 %v404_v49, %v404_v49  ;;  %v414_v52 = vmul.f32 %v405_v50, %v405_v50 }
 0x127   : > { %v407_v53 = vsel %vm386_vm1, %v406_v51, 0.0  ;;  %v415_v54 = vsel %vm386_vm1, %v414_v52, 0.0 }
 0x128   : > { %v408_v55 = vrot.slane %v407_v53, 4  ;;  %v416_v56 = vrot.slane %v415_v54, 4 }
 0x12a   : > { %v409_v57 = vadd.f32 %v408_v55, %v407_v53  ;;  %v417_v58 = vadd.f32 %v416_v56, %v415_v54 }
 0x12c   : > { %v410_v59 = vrot.slane %v409_v57, 2  ;;  %v418_v60 = vrot.slane %v417_v58, 2 }
 0x12e   : > { %v411_v61 = vadd.f32 %v410_v59, %v409_v57  ;;  %v419_v62 = vadd.f32 %v418_v60, %v417_v58 }
 0x130   : > { %v412_v63 = vrot.slane %v411_v61, 1  ;;  %v420_v0 = vrot.slane %v419_v62, 1 }
 0x132   : > { %v413_v1 = vadd.f32 %v412_v63, %v411_v61  ;;  %v421_v2 = vadd.f32 %v420_v0, %v419_v62 }
 0x134   : > { %v422_v4 = vadd.f32 %v421_v2, %v413_v1 }
 0x136   : > { %v423_v5 = vmul.f32 0.0625, %v422_v4 }
 0x138   : > { %v424_v6 = vadd.f32 1e-05, %v423_v5 }
 0x13a   : > { %632 = vrsqrt.f32 %v424_v6 }
 0x147   : > { %v633_v7 = vpop.eup %632 }
 0x148   : > { %v426_v8 = vmul.f32 %v633_v7, %v404_v49  ;;  %v429_v9 = vmul.f32 %v633_v7, %v405_v50 }
 0x14a   : > { %v427_v10 = vmax.f32 %v426_v8, 0.0  ;;  %v430_v11 = vmax.f32 %v429_v9, 0.0 }
 0x14c   : > { %428 = vst.msk [vmem:[%s170_s20] sm:$0xff] %vm386_vm1, %v427_v10  ;;  %530 = vst.msk [vmem:[%s170_s20 + $0x8] sm:$0xff] %vm386_vm1, %v430_v11 }
 0x14d PF: > { %s13_s12 = sadd.s32 1, %s640_s12  }
 0x14e   : > { %p10_p4 = scmp.ge.s32.totalorder %s13_s12, 4  }
 0x150   :  { %12 = sbr.rel (!%p10_p4) target bundleno = 1 (0x1), region = 65 }

// kernel: generator_forward.28
= control target key start
LH: loop header
LB: loop body
LE: loop exit
PB: predicated region body
PF: predicated region fallthrough
CT: control target
= control target key end

     0   :  { %vm955_vm0 = vcmask 1043456   ;;  %s2549_s1 = inlined_call_operand.vmem [shape: f32[3,256,256], index: 1, kind: input, shape index: {}]   ;;  %s2550_s0 = inlined_call_operand.vmem [shape: f32[2,6,256], index: 0, kind: input, shape index: {}]   ;;  %s2551_s2 = inlined_call_operand.vmem [shape: f32[1,256], index: 2, kind: input, shape index: {}]   ;;  %s2552_s3 = inlined_call_operand.vmem [shape: f32[1,256], index: 3, kind: input, shape index: {}]   ;;  %s2553_s4 = inlined_call_operand.vmem [shape: f32[1,256], index: 4, kind: input, shape index: {}]   ;;  %s2554_s5 = inlined_call_operand.vmem [shape: f32[2,4,256], index: 5, kind: input, shape index: {}]   ;;  %s2555_s6 = inlined_call_operand.vmem [shape: f32[2,4,256], index: 6, kind: output, shape index: {}]  }
   0x1   :  { %v70_v0 = vld [vmem:[%s2549_s1 + $0xe8] sm:$0xff]  ;;  %v72_v1 = vld [vmem:[%s2549_s1 + $0xf8] sm:$0xff]  ;;  %v69_v5 = vld [vmem:[%s2549_s1 + $0xe0] sm:$0xff] }
   0x2   :  { %v1154_v2 = vld [vmem:[%s2549_s1 + $0x2e8] sm:$0xff]  ;;  %v1437_v3 = vpack.c.bf16 %v72_v1, %v70_v0  ;;  %v1156_v4 = vld [vmem:[%s2549_s1 + $0x2f8] sm:$0xff]  ;;  %v71_v6 = vld [vmem:[%s2549_s1 + $0xf0] sm:$0xff] }
   0x3   :  { %v260_v7 = vpack.c.bf16 %v1156_v4, %v1154_v2  ;;  %v1448_v8 = vpack.c.bf16 %v71_v6, %v69_v5  ;;  %v1153_v9 = vld [vmem:[%s2549_s1 + $0x2e0] sm:$0xff]  ;;  %v1155_v10 = vld [vmem:[%s2549_s1 + $0x2f0] sm:$0xff]  ;;  %v66_v11 = vld [vmem:[%s2549_s1 + $0xc8] sm:$0xff] }
   0x4   :  { %137 = vmatprep.subr.bf16.mxu0 %v1437_v3  ;;  %v259_v12 = vpack.c.bf16 %v1155_v10, %v1153_v9  ;;  %v68_v13 = vld [vmem:[%s2549_s1 + $0xd8] sm:$0xff]  ;;  %v1150_v14 = vld [vmem:[%s2549_s1 + $0x2c8] sm:$0xff]  ;;  %v65_v18 = vld [vmem:[%s2549_s1 + $0xc0] sm:$0xff] }
   0x5   :  { %v1152_v15 = vld [vmem:[%s2549_s1 + $0x2d8] sm:$0xff]  ;;  %293 = vmatprep.subr.bf16.mxu1 %v260_v7  ;;  %138 = vmatpush1.bf16.msra.mxu0 %v1448_v8  ;;  %v1470_v16 = vpack.c.bf16 %v68_v13, %v66_v11  ;;  %v67_v19 = vld [vmem:[%s2549_s1 + $0xd0] sm:$0xff]  ;;  %v1149_v20 = vld [vmem:[%s2549_s1 + $0x2c0] sm:$0xff] }
   0x6   :  { %v258_v17 = vpack.c.bf16 %v1152_v15, %v1150_v14  ;;  %294 = vmatpush1.bf16.msra.mxu1 %v259_v12  ;;  %v1481_v21 = vpack.c.bf16 %v67_v19, %v65_v18  ;;  %v1151_v22 = vld [vmem:[%s2549_s1 + $0x2d0] sm:$0xff]  ;;  %v62_v23 = vld [vmem:[%s2549_s1 + $0xa8] sm:$0xff]  ;;  %v64_v24 = vld [vmem:[%s2549_s1 + $0xb8] sm:$0xff] }
   0x7   :  { %139 = vmatprep.subr.bf16.mxu0 %v1470_v16  ;;  %v257_v25 = vpack.c.bf16 %v1151_v22, %v1149_v20  ;;  %v1493_v26 = vpack.c.bf16 %v64_v24, %v62_v23  ;;  %v1146_v27 = vld [vmem:[%s2549_s1 + $0x2a8] sm:$0xff]  ;;  %v1148_v28 = vld [vmem:[%s2549_s1 + $0x2b8] sm:$0xff]  ;;  %v61_v29 = vld [vmem:[%s2549_s1 + $0xa0] sm:$0xff] }
   0x8   :  { %295 = vmatprep.subr.bf16.mxu1 %v258_v17  ;;  %v256_v30 = vpack.c.bf16 %v1148_v28, %v1146_v27  ;;  %v63_v31 = vld [vmem:[%s2549_s1 + $0xb0] sm:$0xff]  ;;  %v1145_v32 = vld [vmem:[%s2549_s1 + $0x2a0] sm:$0xff]  ;;  %v58_v35 = vld [vmem:[%s2549_s1 + $0x88] sm:$0xff] }
   0x9   :  { %v1147_v33 = vld [vmem:[%s2549_s1 + $0x2b0] sm:$0xff]  ;;  %140 = vmatpush1.bf16.msra.mxu0 %v1481_v21  ;;  %v1514_v34 = vpack.c.bf16 %v63_v31, %v61_v29  ;;  %v60_v36 = vld [vmem:[%s2549_s1 + $0x98] sm:$0xff]  ;;  %v1142_v37 = vld [vmem:[%s2549_s1 + $0x288] sm:$0xff] }
   0xa   :  { %296 = vmatpush1.bf16.msra.mxu1 %v257_v25  ;;  %141 = vmatprep.subr.bf16.mxu0 %v1493_v26  ;;  %v255_v38 = vpack.c.bf16 %v1147_v33, %v1145_v32  ;;  %v1526_v39 = vpack.c.bf16 %v60_v36, %v58_v35  ;;  %v1144_v40 = vld [vmem:[%s2549_s1 + $0x298] sm:$0xff]  ;;  %v57_v41 = vld [vmem:[%s2549_s1 + $0x80] sm:$0xff]  ;;  %v59_v42 = vld [vmem:[%s2549_s1 + $0x90] sm:$0xff] }
   0xb   :  { %297 = vmatprep.subr.bf16.mxu1 %v256_v30  ;;  %v254_v43 = vpack.c.bf16 %v1144_v40, %v1142_v37  ;;  %v1141_v44 = vld [vmem:[%s2549_s1 + $0x280] sm:$0xff]  ;;  %v1143_v45 = vld [vmem:[%s2549_s1 + $0x290] sm:$0xff]  ;;  %v54_v46 = vld [vmem:[%s2549_s1 + $0x68] sm:$0xff]  ;;  %v1556_v50 = vpack.c.bf16 %v59_v42, %v57_v41 }
   0xc   :  { %v56_v47 = vld [vmem:[%s2549_s1 + $0x78] sm:$0xff]  ;;  %v1138_v48 = vld [vmem:[%s2549_s1 + $0x268] sm:$0xff]  ;;  %v253_v51 = vpack.c.bf16 %v1143_v45, %v1141_v44  ;;  %v53_v53 = vld [vmem:[%s2549_s1 + $0x60] sm:$0xff] }
   0xd   :  { %v1140_v49 = vld [vmem:[%s2549_s1 + $0x278] sm:$0xff]  ;;  %142 = vmatpush1.bf16.msra.mxu0 %v1514_v34  ;;  %v1559_v52 = vpack.c.bf16 %v56_v47, %v54_v46  ;;  %v55_v54 = vld [vmem:[%s2549_s1 + $0x70] sm:$0xff]  ;;  %v1137_v55 = vld [vmem:[%s2549_s1 + $0x260] sm:$0xff] }
   0xe   :  { %298 = vmatpush1.bf16.msra.mxu1 %v255_v38  ;;  %143 = vmatprep.subr.bf16.mxu0 %v1526_v39  ;;  %v252_v56 = vpack.c.bf16 %v1140_v49, %v1138_v48  ;;  %v1139_v57 = vld [vmem:[%s2549_s1 + $0x270] sm:$0xff]  ;;  %v50_v58 = vld [vmem:[%s2549_s1 + $0x48] sm:$0xff]  ;;  %v52_v59 = vld [vmem:[%s2549_s1 + $0x58] sm:$0xff]  ;;  %v1586_v62 = vpack.c.bf16 %v55_v54, %v53_v53 }
   0xf   :  { %299 = vmatprep.subr.bf16.mxu1 %v254_v43  ;;  %v1134_v60 = vld [vmem:[%s2549_s1 + $0x248] sm:$0xff]  ;;  %v1136_v61 = vld [vmem:[%s2549_s1 + $0x258] sm:$0xff]  ;;  %v251_v63 = vpack.c.bf16 %v1139_v57, %v1137_v55  ;;  %v1589_v0 = vpack.c.bf16 %v52_v59, %v50_v58  ;;  %v49_v1 = vld [vmem:[%s2549_s1 + $0x40] sm:$0xff] }
  0x10   :  { %v51_v2 = vld [vmem:[%s2549_s1 + $0x50] sm:$0xff]  ;;  %v1133_v4 = vld [vmem:[%s2549_s1 + $0x240] sm:$0xff]  ;;  %v250_v5 = vpack.c.bf16 %v1136_v61, %v1134_v60  ;;  %v46_v7 = vld [vmem:[%s2549_s1 + $0x28] sm:$0xff] }
  0x11   :  { %144 = vmatpush1.bf16.msra.mxu0 %v1556_v50  ;;  %v1135_v6 = vld [vmem:[%s2549_s1 + $0x250] sm:$0xff]  ;;  %v48_v9 = vld [vmem:[%s2549_s1 + $0x38] sm:$0xff]  ;;  %v1130_v10 = vld [vmem:[%s2549_s1 + $0x228] sm:$0xff]  ;;  %v1616_v12 = vpack.c.bf16 %v51_v2, %v49_v1 }
  0x12   :  { %300 = vmatpush1.bf16.msra.mxu1 %v253_v51  ;;  %145 = vmatprep.subr.bf16.mxu0 %v1559_v52  ;;  %v1132_v11 = vld [vmem:[%s2549_s1 + $0x238] sm:$0xff]  ;;  %v249_v13 = vpack.c.bf16 %v1135_v6, %v1133_v4  ;;  %v1619_v14 = vpack.c.bf16 %v48_v9, %v46_v7  ;;  %v45_v15 = vld [vmem:[%s2549_s1 + $0x20] sm:$0xff]  ;;  %v47_v17 = vld [vmem:[%s2549_s1 + $0x30] sm:$0xff] }
  0x13   :  { %301 = vmatprep.subr.bf16.mxu1 %v252_v56  ;;  %v1129_v18 = vld [vmem:[%s2549_s1 + $0x220] sm:$0xff]  ;;  %v248_v19 = vpack.c.bf16 %v1132_v11, %v1130_v10  ;;  %v1131_v20 = vld [vmem:[%s2549_s1 + $0x230] sm:$0xff]  ;;  %v42_v22 = vld [vmem:[%s2549_s1 + $0x8] sm:$0xff]  ;;  %v1646_v27 = vpack.c.bf16 %v47_v17, %v45_v15 }
  0x14   :  { %v44_v23 = vld [vmem:[%s2549_s1 + $0x18] sm:$0xff]  ;;  %v1126_v24 = vld [vmem:[%s2549_s1 + $0x208] sm:$0xff]  ;;  %v247_v28 = vpack.c.bf16 %v1131_v20, %v1129_v18  ;;  %v41_v30 = vld [vmem:[%s2549_s1] sm:$0xff] }
  0x15   :  { %146 = vmatpush1.bf16.msra.mxu0 %v1586_v62  ;;  %v1128_v25 = vld [vmem:[%s2549_s1 + $0x218] sm:$0xff]  ;;  %v1649_v29 = vpack.c.bf16 %v44_v23, %v42_v22  ;;  %v43_v31 = vld [vmem:[%s2549_s1 + $0x10] sm:$0xff]  ;;  %v1125_v32 = vld [vmem:[%s2549_s1 + $0x200] sm:$0xff] }
  0x16   :  { %302 = vmatpush1.bf16.msra.mxu1 %v251_v63  ;;  %147 = vmatprep.subr.bf16.mxu0 %v1589_v0  ;;  %v246_v33 = vpack.c.bf16 %v1128_v25, %v1126_v24  ;;  %v1127_v35 = vld [vmem:[%s2549_s1 + $0x210] sm:$0xff]  ;;  %v102_v36 = vld [vmem:[%s2549_s1 + $0x1e8] sm:$0xff]  ;;  %v104_v37 = vld [vmem:[%s2549_s1 + $0x1f8] sm:$0xff]  ;;  %v1676_v41 = vpack.c.bf16 %v43_v31, %v41_v30 }
  0x17   :  { %303 = vmatprep.subr.bf16.mxu1 %v250_v5  ;;  %v1186_v38 = vld [vmem:[%s2549_s1 + $0x3e8] sm:$0xff]  ;;  %v1188_v40 = vld [vmem:[%s2549_s1 + $0x3f8] sm:$0xff]  ;;  %v245_v42 = vpack.c.bf16 %v1127_v35, %v1125_v32  ;;  %v1679_v43 = vpack.c.bf16 %v104_v37, %v102_v36  ;;  %v101_v44 = vld [vmem:[%s2549_s1 + $0x1e0] sm:$0xff] }
  0x18   :  { %v103_v45 = vld [vmem:[%s2549_s1 + $0x1f0] sm:$0xff]  ;;  %v1185_v46 = vld [vmem:[%s2549_s1 + $0x3e0] sm:$0xff]  ;;  %v276_v47 = vpack.c.bf16 %v1188_v40, %v1186_v38  ;;  %v98_v49 = vld [vmem:[%s2549_s1 + $0x1c8] sm:$0xff] }
  0x19   :  { %148 = vmatpush1.bf16.msra.mxu0 %v1616_v12  ;;  %v1187_v48 = vld [vmem:[%s2549_s1 + $0x3f0] sm:$0xff]  ;;  %v100_v51 = vld [vmem:[%s2549_s1 + $0x1d8] sm:$0xff]  ;;  %v1182_v53 = vld [vmem:[%s2549_s1 + $0x3c8] sm:$0xff]  ;;  %v1706_v55 = vpack.c.bf16 %v103_v45, %v101_v44 }
  0x1a   :  { %304 = vmatpush1.bf16.msra.mxu1 %v249_v13  ;;  %149 = vmatprep.subr.bf16.mxu0 %v1619_v14  ;;  %v1184_v54 = vld [vmem:[%s2549_s1 + $0x3d8] sm:$0xff]  ;;  %v275_v56 = vpack.c.bf16 %v1187_v48, %v1185_v46  ;;  %v1709_v57 = vpack.c.bf16 %v100_v51, %v98_v49  ;;  %v97_v58 = vld [vmem:[%s2549_s1 + $0x1c0] sm:$0xff]  ;;  %v99_v59 = vld [vmem:[%s2549_s1 + $0x1d0] sm:$0xff] }
  0x1b   :  { %305 = vmatprep.subr.bf16.mxu1 %v248_v19  ;;  %v1181_v60 = vld [vmem:[%s2549_s1 + $0x3c0] sm:$0xff]  ;;  %v274_v61 = vpack.c.bf16 %v1184_v54, %v1182_v53  ;;  %v1183_v63 = vld [vmem:[%s2549_s1 + $0x3d0] sm:$0xff]  ;;  %v94_v1 = vld [vmem:[%s2549_s1 + $0x1a8] sm:$0xff]  ;;  %v1736_v6 = vpack.c.bf16 %v99_v59, %v97_v58 }
  0x1c   :  { %v96_v2 = vld [vmem:[%s2549_s1 + $0x1b8] sm:$0xff]  ;;  %v1178_v4 = vld [vmem:[%s2549_s1 + $0x3a8] sm:$0xff]  ;;  %v273_v7 = vpack.c.bf16 %v1183_v63, %v1181_v60  ;;  %v93_v10 = vld [vmem:[%s2549_s1 + $0x1a0] sm:$0xff] }
  0x1d   :  { %150 = vmatpush1.bf16.msra.mxu0 %v1646_v27  ;;  %v1180_v5 = vld [vmem:[%s2549_s1 + $0x3b8] sm:$0xff]  ;;  %v1739_v9 = vpack.c.bf16 %v96_v2, %v94_v1  ;;  %v95_v11 = vld [vmem:[%s2549_s1 + $0x1b0] sm:$0xff]  ;;  %v1177_v13 = vld [vmem:[%s2549_s1 + $0x3a0] sm:$0xff] }
  0x1e   :  { %306 = vmatpush1.bf16.msra.mxu1 %v247_v28  ;;  %151 = vmatprep.subr.bf16.mxu0 %v1649_v29  ;;  %v272_v15 = vpack.c.bf16 %v1180_v5, %v1178_v4  ;;  %v1179_v17 = vld [vmem:[%s2549_s1 + $0x3b0] sm:$0xff]  ;;  %v90_v18 = vld [vmem:[%s2549_s1 + $0x188] sm:$0xff]  ;;  %v92_v19 = vld [vmem:[%s2549_s1 + $0x198] sm:$0xff]  ;;  %v1766_v23 = vpack.c.bf16 %v95_v11, %v93_v10 }
  0x1f   :  { %307 = vmatprep.subr.bf16.mxu1 %v246_v33  ;;  %v1174_v20 = vld [vmem:[%s2549_s1 + $0x388] sm:$0xff]  ;;  %v1176_v22 = vld [vmem:[%s2549_s1 + $0x398] sm:$0xff]  ;;  %v89_v24 = vld [vmem:[%s2549_s1 + $0x180] sm:$0xff]  ;;  %v271_v25 = vpack.c.bf16 %v1179_v17, %v1177_v13  ;;  %v1772_v28 = vpack.c.bf16 %v92_v19, %v90_v18 }
  0x20   :  { %v91_v30 = vld [vmem:[%s2549_s1 + $0x190] sm:$0xff]  ;;  %v1173_v31 = vld [vmem:[%s2549_s1 + $0x380] sm:$0xff]  ;;  %v270_v33 = vpack.c.bf16 %v1176_v22, %v1174_v20  ;;  %v86_v35 = vld [vmem:[%s2549_s1 + $0x168] sm:$0xff] }
  0x21   :  { %152 = vmatpush1.bf16.msra.mxu0 %v1676_v41  ;;  %v1175_v32 = vld [vmem:[%s2549_s1 + $0x390] sm:$0xff]  ;;  %v88_v36 = vld [vmem:[%s2549_s1 + $0x178] sm:$0xff]  ;;  %v24_v37 = vld [vmem:[%s2550_s0 + $0x8] sm:$0x3f]  ;;  %v1801_v44 = vpack.c.bf16 %v91_v30, %v89_v24 }
  0x22   :  { %308 = vmatpush1.bf16.msra.mxu1 %v245_v42  ;;  %153 = vmatprep.subr.bf16.mxu0 %v1679_v43  ;;  %v1170_v38 = vld [vmem:[%s2549_s1 + $0x368] sm:$0xff]  ;;  %v1172_v40 = vld [vmem:[%s2549_s1 + $0x378] sm:$0xff]  ;;  %v1798_v42 = vpack.c.bf16 %v24_v37, %v24_v37  ;;  %v269_v45 = vpack.c.bf16 %v1175_v32, %v1173_v31  ;;  %v1804_v46 = vpack.c.bf16 %v88_v36, %v86_v35  ;;  %v87_v48 = vld [vmem:[%s2549_s1 + $0x170] sm:$0xff] }
  0x23   :  { %309 = vmatprep.subr.bf16.mxu1 %v276_v47  ;;  %v85_v47 = vld [vmem:[%s2549_s1 + $0x160] sm:$0xff]  ;;  %v268_v54 = vpack.c.bf16 %v1172_v40, %v1170_v38  ;;  %v82_v58 = vld [vmem:[%s2549_s1 + $0x148] sm:$0xff]  ;;  %v84_v59 = vld [vmem:[%s2549_s1 + $0x158] sm:$0xff] }
  0x24   :  { %v1169_v49 = vld [vmem:[%s2549_s1 + $0x360] sm:$0xff]  ;;  %v285_v51 = vshrl.u32 %v1798_v42, 16  ;;  %v287_v53 = vshll.u32 %v1798_v42, 16  ;;  %169 = vmatprep.mubr.bf16.mxu0 %v1798_v42  ;;  %v1166_v60 = vld [vmem:[%s2549_s1 + $0x348] sm:$0xff]  ;;  %v1834_v1 = vpack.c.bf16 %v87_v48, %v85_v47  ;;  %v1840_v5 = vpack.c.bf16 %v84_v59, %v82_v58  ;;  %v1167_v17 = vld [vmem:[%s2549_s1 + $0x350] sm:$0xff] }
  0x25   :  { %154 = vmatpush2.bf16.msra.mxu0 %v1706_v55  ;;  %v81_v2 = vld [vmem:[%s2549_s1 + $0x140] sm:$0xff]  ;;  %v78_v18 = vld [vmem:[%s2549_s1 + $0x128] sm:$0xff]  ;;  %v80_v19 = vld [vmem:[%s2549_s1 + $0x138] sm:$0xff] }
  0x26   :  { %310 = vmatpush2.bf16.msra.mxu1 %v275_v56  ;;  %155 = vmatprep.subr.bf16.mxu0 %v1709_v57  ;;  %v1171_v56 = vld [vmem:[%s2549_s1 + $0x370] sm:$0xff]  ;;  %v289_v63 = vrot.slane %v287_v53, 1  ;;  %v1165_v10 = vld [vmem:[%s2549_s1 + $0x340] sm:$0xff]  ;;  %v1162_v20 = vld [vmem:[%s2549_s1 + $0x328] sm:$0xff]  ;;  %v1872_v31 = vpack.c.bf16 %v80_v19, %v78_v18 }
  0x27   :  { %311 = vmatprep.subr.bf16.mxu1 %v274_v61  ;;  %v1168_v61 = vld [vmem:[%s2549_s1 + $0x358] sm:$0xff]  ;;  %v267_v4 = vpack.c.bf16 %v1171_v56, %v1169_v49  ;;  %v23_v13 = vld [vmem:[%s2550_s0] sm:$0x3f]  ;;  %v265_v30 = vpack.c.bf16 %v1167_v17, %v1165_v10  ;;  %v1163_v37 = vld [vmem:[%s2549_s1 + $0x330] sm:$0xff] }
  0x28   :  { %v290_v11 = vor.u32 %v289_v63, %v285_v51  ;;  %v1164_v22 = vld [vmem:[%s2549_s1 + $0x338] sm:$0xff]  ;;  %v77_v32 = vld [vmem:[%s2549_s1 + $0x120] sm:$0xff]  ;;  %v74_v38 = vld [vmem:[%s2549_s1 + $0x108] sm:$0xff] }
  0x29   :  { %156 = vmatpush2.bf16.msra.mxu0 %v1736_v6  ;;  %v1161_v35 = vld [vmem:[%s2549_s1 + $0x320] sm:$0xff]  ;;  %v264_v36 = vpack.c.bf16 %v1164_v22, %v1162_v20  ;;  %v76_v40 = vld [vmem:[%s2549_s1 + $0x118] sm:$0xff]  ;;  %v75_v56 = vld [vmem:[%s2549_s1 + $0x110] sm:$0xff] }
  0x2a   :  { %312 = vmatpush2.bf16.msra.mxu1 %v273_v7  ;;  %157 = vmatprep.subr.bf16.mxu0 %v1739_v9  ;;  %v83_v7 = vld [vmem:[%s2549_s1 + $0x150] sm:$0xff]  ;;  %v1160_v47 = vld [vmem:[%s2549_s1 + $0x318] sm:$0xff]  ;;  %v263_v51 = vpack.c.bf16 %v1163_v37, %v1161_v35  ;;  %v1903_v53 = vpack.c.bf16 %v76_v40, %v74_v38  ;;  %v1157_v58 = vld [vmem:[%s2549_s1 + $0x300] sm:$0xff]  ;;  %v436_v37 = vrot.slane %v1798_v42, 1 }
  0x2b   :  { %313 = vmatprep.subr.bf16.mxu1 %v272_v15  ;;  %v266_v15 = vpack.c.bf16 %v1168_v61, %v1166_v60  ;;  %325 = vmatprep.mubr.bf16.mxu1 %v290_v11  ;;  %v1867_v24 = vpack.c.bf16 %v83_v7, %v81_v2  ;;  %v1159_v60 = vld [vmem:[%s2549_s1 + $0x310] sm:$0xff]  ;;  %v1218_v61 = vld [vmem:[%s2549_s1 + $0x4e8] sm:$0xff]  ;;  %v1220_v63 = vld [vmem:[%s2549_s1 + $0x4f8] sm:$0xff] }
  0x2c   :  { %v261_v10 = vpack.c.bf16 %v1159_v60, %v1157_v58  ;;  %v1928_v11 = vpack.c.bf16 %v1220_v63, %v1218_v61  ;;  %v1214_v17 = vld [vmem:[%s2549_s1 + $0x4c8] sm:$0xff]  ;;  %v1216_v18 = vld [vmem:[%s2549_s1 + $0x4d8] sm:$0xff]  ;;  %v1211_v42 = vld [vmem:[%s2549_s1 + $0x4b0] sm:$0xff] }
  0x2d   :  { %158 = vmatpush2.bf16.msra.mxu0 %v1766_v23  ;;  %v1254_v22 = vld [vmem:[%s2550_s0 + $0x18] sm:$0x3f]  ;;  %v1210_v35 = vld [vmem:[%s2549_s1 + $0x4a8] sm:$0xff]  ;;  %v1203_v60 = vld [vmem:[%s2549_s1 + $0x470] sm:$0xff] }
  0x2e   :  { %314 = vmatpush2.bf16.msra.mxu1 %v271_v25  ;;  %159 = vmatprep.subr.bf16.mxu0 %v1772_v28  ;;  %v1869_v25 = vpack.c.bf16 %v23_v13, %v23_v13  ;;  %v1217_v13 = vld [vmem:[%s2549_s1 + $0x4e0] sm:$0xff]  ;;  %v1966_v38 = vpack.c.bf16 %v1254_v22, %v1254_v22  ;;  %v1198_v61 = vld [vmem:[%s2549_s1 + $0x448] sm:$0xff] }
  0x2f   :  { %315 = vmatprep.subr.bf16.mxu1 %v270_v33  ;;  %v79_v33 = vld [vmem:[%s2549_s1 + $0x130] sm:$0xff] }
  0x30   :  { %v1899_v48 = vpack.c.bf16 %v79_v33, %v77_v32  ;;  %v280_v49 = vshll.u32 %v1869_v25, 16  ;;  %v1213_v32 = vld [vmem:[%s2549_s1 + $0x4c0] sm:$0xff]  ;;  %v1215_v33 = vld [vmem:[%s2549_s1 + $0x4d0] sm:$0xff] }
  0x31   :  { %160 = vmatpush2.bf16.msra.mxu0 %v1801_v44  ;;  %v1969_v40 = vpack.c.bf16 %v1215_v33, %v1213_v32  ;;  %v1191_v32 = vld [vmem:[%s2549_s1 + $0x410] sm:$0xff]  ;;  %v1250_v33 = vld [vmem:[%s2549_s1 + $0x5e8] sm:$0xff] }
  0x32   :  { %316 = vmatpush2.bf16.msra.mxu1 %v269_v45  ;;  %161 = vmatprep.subr.bf16.mxu0 %v1804_v46  ;;  %v1158_v45 = vld [vmem:[%s2549_s1 + $0x308] sm:$0xff]  ;;  %v282_v7 = vrot.slane %v280_v49, 1 }
  0x33   :  { %317 = vmatprep.subr.bf16.mxu1 %v268_v54  ;;  %v73_v54 = vld [vmem:[%s2549_s1 + $0x100] sm:$0xff]  ;;  %v262_v59 = vpack.c.bf16 %v1160_v47, %v1158_v45  ;;  %v1206_v47 = vld [vmem:[%s2549_s1 + $0x488] sm:$0xff] }
  0x34   :  { %v1924_v2 = vpack.c.bf16 %v75_v56, %v73_v54  ;;  %v1209_v45 = vld [vmem:[%s2549_s1 + $0x4a0] sm:$0xff]  ;;  %v1207_v54 = vld [vmem:[%s2549_s1 + $0x490] sm:$0xff]  ;;  %v1202_v56 = vld [vmem:[%s2549_s1 + $0x468] sm:$0xff] }
  0x35   :  { %162 = vmatpush2.bf16.msra.mxu0 %v1834_v1  ;;  %v1990_v49 = vpack.c.bf16 %v1211_v42, %v1209_v45  ;;  %v1246_v45 = vld [vmem:[%s2549_s1 + $0x5c8] sm:$0xff] }
  0x36   :  { %318 = vmatpush2.bf16.msra.mxu1 %v267_v4  ;;  %163 = vmatprep.subr.bf16.mxu0 %v1840_v5  ;;  %v278_v4 = vshrl.u32 %v1869_v25, 16 }
  0x37   :  { %319 = vmatprep.subr.bf16.mxu1 %v266_v15  ;;  %v1219_v15 = vld [vmem:[%s2549_s1 + $0x4f0] sm:$0xff] }
  0x38   :  { %v283_v19 = vor.u32 %v282_v7, %v278_v4  ;;  %v1943_v20 = vpack.c.bf16 %v1219_v15, %v1217_v13  ;;  %v1199_v7 = vld [vmem:[%s2549_s1 + $0x450] sm:$0xff] }
  0x39   :  { %164 = vmatpush2.bf16.msra.mxu0 %v1867_v24 }
  0x3a   :  { %320 = vmatpush2.bf16.msra.mxu1 %v265_v30  ;;  %165 = vmatprep.subr.bf16.mxu0 %v1872_v31  ;;  %v1949_v30 = vpack.c.bf16 %v1216_v18, %v1214_v17  ;;  %v1195_v17 = vld [vmem:[%s2549_s1 + $0x430] sm:$0xff]  ;;  %v1190_v18 = vld [vmem:[%s2549_s1 + $0x408] sm:$0xff] }
  0x3b   :  { %321 = vmatprep.subr.bf16.mxu1 %v264_v36  ;;  %v1212_v36 = vld [vmem:[%s2549_s1 + $0x4b8] sm:$0xff] }
  0x3d   :  { %166 = vmatpush2.bf16.msra.mxu0 %v1899_v48 }
  0x3e   :  { %322 = vmatpush2.bf16.msra.mxu1 %v263_v51  ;;  %167 = vmatprep.subr.bf16.mxu0 %v1903_v53  ;;  %v1205_v51 = vld [vmem:[%s2549_s1 + $0x480] sm:$0xff] }
  0x3f   :  { %323 = vmatprep.subr.bf16.mxu1 %v262_v59  ;;  %v2010_v58 = vpack.c.bf16 %v1207_v54, %v1205_v51  ;;  %v1242_v51 = vld [vmem:[%s2549_s1 + $0x5a8] sm:$0xff] }
  0x41   :  { %168 = vmatpush2.bf16.msra.mxu0 %v1924_v2 }
  0x42   :  { %324 = vmatpush2.bf16.msra.mxu1 %v261_v10  ;;  %439 = vmatprep.subr.bf16.mxu0 %v1928_v11  ;;  %v1194_v10 = vld [vmem:[%s2549_s1 + $0x428] sm:$0xff] }
  0x43   :  { %602 = vmatprep.subr.bf16.mxu1 %v1437_v3  ;;  %v1973_v3 = vpack.c.bf16 %v1212_v36, %v1210_v35 }
  0x44   :  { %170 = vmatmul.mubr.bf16.vlgmr.msra.gmra.mxu0 %v1869_v25 }
  0x45   :  { %326 = vmatmul.mubr.bf16.vlgmr.msra.gmra.mxu1 %v283_v19  ;;  %440 = vmatpush1.bf16.msra.mxu0 %v1943_v20 }
  0x46   :  { %603 = vmatpush1.bf16.msra.mxu1 %v1448_v8  ;;  %441 = vmatprep.subr.bf16.mxu0 %v1949_v30  ;;  %v1208_v8 = vld [vmem:[%s2549_s1 + $0x498] sm:$0xff] }
  0x47   :  { %604 = vmatprep.subr.bf16.mxu1 %v1470_v16  ;;  %471 = vmatprep.mubr.bf16.mxu0 %v436_v37  ;;  %v1994_v16 = vpack.c.bf16 %v1208_v8, %v1206_v47  ;;  %v1251_v37 = vld [vmem:[%s2549_s1 + $0x5f0] sm:$0xff] }
  0x48   :  { %634 = vmatprep.mubr.bf16.mxu1 %v1966_v38  ;;  %v1247_v8 = vld [vmem:[%s2549_s1 + $0x5d0] sm:$0xff] }
  0x49   :  { %442 = vmatpush1.bf16.msra.mxu0 %v1969_v40 }
  0x4a   :  { %605 = vmatpush1.bf16.msra.mxu1 %v1481_v21  ;;  %443 = vmatprep.subr.bf16.mxu0 %v1973_v3  ;;  %v1204_v21 = vld [vmem:[%s2549_s1 + $0x478] sm:$0xff] }
  0x4b   :  { %606 = vmatprep.subr.bf16.mxu1 %v1493_v26  ;;  %v2014_v59 = vpack.c.bf16 %v1204_v21, %v1202_v56  ;;  %v1201_v26 = vld [vmem:[%s2549_s1 + $0x460] sm:$0xff]  ;;  %v1243_v21 = vld [vmem:[%s2549_s1 + $0x5b0] sm:$0xff] }
  0x4c   :  { %v2030_v63 = vpack.c.bf16 %v1203_v60, %v1201_v26  ;;  %v1238_v26 = vld [vmem:[%s2549_s1 + $0x588] sm:$0xff] }
  0x4d   :  { %444 = vmatpush1.bf16.msra.mxu0 %v1990_v49 }
  0x4e   :  { %607 = vmatpush1.bf16.msra.mxu1 %v1514_v34  ;;  %445 = vmatprep.subr.bf16.mxu0 %v1994_v16  ;;  %v1200_v34 = vld [vmem:[%s2549_s1 + $0x458] sm:$0xff] }
  0x4f   :  { %608 = vmatprep.subr.bf16.mxu1 %v1526_v39  ;;  %v2034_v4 = vpack.c.bf16 %v1200_v34, %v1198_v61  ;;  %v1197_v39 = vld [vmem:[%s2549_s1 + $0x440] sm:$0xff]  ;;  %v1239_v34 = vld [vmem:[%s2549_s1 + $0x590] sm:$0xff] }
  0x50   :  { %v2050_v13 = vpack.c.bf16 %v1199_v7, %v1197_v39  ;;  %v1234_v39 = vld [vmem:[%s2549_s1 + $0x568] sm:$0xff] }
  0x51   :  { %446 = vmatpush1.bf16.msra.mxu0 %v2010_v58 }
  0x52   :  { %609 = vmatpush1.bf16.msra.mxu1 %v1556_v50  ;;  %447 = vmatprep.subr.bf16.mxu0 %v2014_v59  ;;  %v1196_v50 = vld [vmem:[%s2549_s1 + $0x438] sm:$0xff] }
  0x53   :  { %610 = vmatprep.subr.bf16.mxu1 %v1559_v52  ;;  %v2054_v15 = vpack.c.bf16 %v1196_v50, %v1194_v10  ;;  %v1193_v52 = vld [vmem:[%s2549_s1 + $0x420] sm:$0xff]  ;;  %v1235_v50 = vld [vmem:[%s2549_s1 + $0x570] sm:$0xff] }
  0x54   :  { %v2070_v19 = vpack.c.bf16 %v1195_v17, %v1193_v52  ;;  %v1230_v52 = vld [vmem:[%s2549_s1 + $0x548] sm:$0xff] }
  0x55   :  { %448 = vmatpush1.bf16.msra.mxu0 %v2030_v63 }
  0x56   :  { %611 = vmatpush1.bf16.msra.mxu1 %v1586_v62  ;;  %449 = vmatprep.subr.bf16.mxu0 %v2034_v4  ;;  %v1192_v62 = vld [vmem:[%s2549_s1 + $0x418] sm:$0xff] }
  0x57   :  { %612 = vmatprep.subr.bf16.mxu1 %v1589_v0  ;;  %v2074_v22 = vpack.c.bf16 %v1192_v62, %v1190_v18  ;;  %v1189_v0 = vld [vmem:[%s2549_s1 + $0x400] sm:$0xff]  ;;  %v1231_v62 = vld [vmem:[%s2549_s1 + $0x550] sm:$0xff] }
  0x58   :  { %v2090_v35 = vpack.c.bf16 %v1191_v32, %v1189_v0  ;;  %v1226_v0 = vld [vmem:[%s2549_s1 + $0x528] sm:$0xff] }
  0x59   :  { %450 = vmatpush1.bf16.msra.mxu0 %v2050_v13 }
  0x5a   :  { %613 = vmatpush1.bf16.msra.mxu1 %v1616_v12  ;;  %451 = vmatprep.subr.bf16.mxu0 %v2054_v15  ;;  %v1252_v12 = vld [vmem:[%s2549_s1 + $0x5f8] sm:$0xff] }
  0x5b   :  { %614 = vmatprep.subr.bf16.mxu1 %v1619_v14  ;;  %v2094_v36 = vpack.c.bf16 %v1252_v12, %v1250_v33  ;;  %v1249_v14 = vld [vmem:[%s2549_s1 + $0x5e0] sm:$0xff]  ;;  %v1227_v12 = vld [vmem:[%s2549_s1 + $0x530] sm:$0xff] }
  0x5c   :  { %v2110_v42 = vpack.c.bf16 %v1251_v37, %v1249_v14  ;;  %v1222_v14 = vld [vmem:[%s2549_s1 + $0x508] sm:$0xff] }
  0x5d   :  { %452 = vmatpush1.bf16.msra.mxu0 %v2070_v19 }
  0x5e   :  { %615 = vmatpush1.bf16.msra.mxu1 %v1646_v27  ;;  %453 = vmatprep.subr.bf16.mxu0 %v2074_v22  ;;  %v1248_v27 = vld [vmem:[%s2549_s1 + $0x5d8] sm:$0xff] }
  0x5f   :  { %616 = vmatprep.subr.bf16.mxu1 %v1649_v29  ;;  %v2114_v47 = vpack.c.bf16 %v1248_v27, %v1246_v45  ;;  %v1245_v29 = vld [vmem:[%s2549_s1 + $0x5c0] sm:$0xff]  ;;  %v1223_v27 = vld [vmem:[%s2549_s1 + $0x510] sm:$0xff] }
  0x60   :  { %v2130_v54 = vpack.c.bf16 %v1247_v8, %v1245_v29  ;;  %v1284_v29 = vld [vmem:[%s2549_s1 + $0x2e8] sm:$0xff]  ;;  %v751_v8 = vshll.u32 %v1966_v38, 16 }
  0x61   :  { %454 = vmatpush1.bf16.msra.mxu0 %v2090_v35 }
  0x62   :  { %617 = vmatpush1.bf16.msra.mxu1 %v1676_v41  ;;  %455 = vmatprep.subr.bf16.mxu0 %v2094_v36  ;;  %v1244_v41 = vld [vmem:[%s2549_s1 + $0x5b8] sm:$0xff] }
  0x63   :  { %618 = vmatprep.subr.bf16.mxu1 %v1679_v43  ;;  %v2134_v56 = vpack.c.bf16 %v1244_v41, %v1242_v51  ;;  %v1241_v43 = vld [vmem:[%s2549_s1 + $0x5a0] sm:$0xff] }
  0x64   :  { %v2150_v60 = vpack.c.bf16 %v1243_v21, %v1241_v43  ;;  %v1283_v43 = vld [vmem:[%s2549_s1 + $0x2e0] sm:$0xff]  ;;  %v1285_v21 = vld [vmem:[%s2549_s1 + $0x2f0] sm:$0xff] }
  0x65   :  { %456 = vmatpush2.bf16.msra.mxu0 %v2110_v42 }
  0x66   :  { %619 = vmatpush2.bf16.msra.mxu1 %v1706_v55  ;;  %457 = vmatprep.subr.bf16.mxu0 %v2114_v47  ;;  %v1240_v55 = vld [vmem:[%s2549_s1 + $0x598] sm:$0xff] }
  0x67   :  { %620 = vmatprep.subr.bf16.mxu1 %v1709_v57  ;;  %v2154_v61 = vpack.c.bf16 %v1240_v55, %v1238_v26  ;;  %v1237_v57 = vld [vmem:[%s2549_s1 + $0x580] sm:$0xff]  ;;  %v1282_v26 = vld [vmem:[%s2549_s1 + $0x2d8] sm:$0xff]  ;;  %v749_v55 = vshrl.u32 %v1966_v38, 16 }
  0x68   :  { %v2170_v7 = vpack.c.bf16 %v1239_v34, %v1237_v57  ;;  %v753_v57 = vrot.slane %v751_v8, 1  ;;  %v435_v34 = vrot.slane %v1869_v25, 1  ;;  %v1276_v25 = vld [vmem:[%s2549_s1 + $0x2a8] sm:$0xff] }
  0x69   :  { %458 = vmatpush2.bf16.msra.mxu0 %v2130_v54 }
  0x6a   :  { %621 = vmatpush2.bf16.msra.mxu1 %v1736_v6  ;;  %459 = vmatprep.subr.bf16.mxu0 %v2134_v56  ;;  %v1236_v6 = vld [vmem:[%s2549_s1 + $0x578] sm:$0xff] }
  0x6b   :  { %622 = vmatprep.subr.bf16.mxu1 %v1739_v9  ;;  %v2174_v10 = vpack.c.bf16 %v1236_v6, %v1234_v39  ;;  %v1233_v9 = vld [vmem:[%s2549_s1 + $0x560] sm:$0xff]  ;;  %v723_v6 = vpack.c.bf16 %v1285_v21, %v1283_v43 }
  0x6c   :  { %v2190_v17 = vpack.c.bf16 %v1235_v50, %v1233_v9  ;;  %v1279_v9 = vld [vmem:[%s2549_s1 + $0x2c0] sm:$0xff]  ;;  %v1281_v50 = vld [vmem:[%s2549_s1 + $0x2d0] sm:$0xff] }
  0x6d   :  { %460 = vmatpush2.bf16.msra.mxu0 %v2150_v60 }
  0x6e   :  { %623 = vmatpush2.bf16.msra.mxu1 %v1766_v23  ;;  %461 = vmatprep.subr.bf16.mxu0 %v2154_v61  ;;  %v1232_v23 = vld [vmem:[%s2549_s1 + $0x558] sm:$0xff] }
  0x6f   :  { %624 = vmatprep.subr.bf16.mxu1 %v1772_v28  ;;  %v2194_v18 = vpack.c.bf16 %v1232_v23, %v1230_v52  ;;  %v1229_v28 = vld [vmem:[%s2549_s1 + $0x540] sm:$0xff]  ;;  %v754_v52 = vor.u32 %v753_v57, %v749_v55  ;;  %v899_v23 = vrot.slane %v1966_v38, 1  ;;  %v1272_v38 = vld [vmem:[%s2549_s1 + $0x288] sm:$0xff] }
  0x70   :  { %v2210_v32 = vpack.c.bf16 %v1231_v62, %v1229_v28  ;;  %v721_v28 = vpack.c.bf16 %v1281_v50, %v1279_v9  ;;  %v1275_v62 = vld [vmem:[%s2549_s1 + $0x2a0] sm:$0xff] }
  0x71   :  { %462 = vmatpush2.bf16.msra.mxu0 %v2170_v7  ;;  %v1315_v50 = vld [vmem:[%s2549_s1 + $0x3e0] sm:$0xff] }
  0x72   :  { %625 = vmatpush2.bf16.msra.mxu1 %v1801_v44  ;;  %463 = vmatprep.subr.bf16.mxu0 %v2174_v10  ;;  %v1228_v44 = vld [vmem:[%s2549_s1 + $0x538] sm:$0xff] }
  0x73   :  { %626 = vmatprep.subr.bf16.mxu1 %v1804_v46  ;;  %v2214_v33 = vpack.c.bf16 %v1228_v44, %v1226_v0  ;;  %v1225_v46 = vld [vmem:[%s2549_s1 + $0x520] sm:$0xff]  ;;  %v1277_v0 = vld [vmem:[%s2549_s1 + $0x2b0] sm:$0xff] }
  0x74   :  { %v2230_v37 = vpack.c.bf16 %v1227_v12, %v1225_v46  ;;  %v719_v44 = vpack.c.bf16 %v1277_v0, %v1275_v62  ;;  %v1273_v12 = vld [vmem:[%s2549_s1 + $0x290] sm:$0xff]  ;;  %v1307_v0 = vld [vmem:[%s2549_s1 + $0x3a0] sm:$0xff] }
  0x75   :  { %464 = vmatpush2.bf16.msra.mxu0 %v2190_v17 }
  0x76   :  { %627 = vmatpush2.bf16.msra.mxu1 %v1834_v1  ;;  %465 = vmatprep.subr.bf16.mxu0 %v2194_v18  ;;  %v1224_v1 = vld [vmem:[%s2549_s1 + $0x518] sm:$0xff] }
  0x77   :  { %628 = vmatprep.subr.bf16.mxu1 %v1840_v5  ;;  %v2234_v45 = vpack.c.bf16 %v1224_v1, %v1222_v14  ;;  %v1221_v5 = vld [vmem:[%s2549_s1 + $0x500] sm:$0xff]  ;;  %v1268_v14 = vld [vmem:[%s2549_s1 + $0x268] sm:$0xff] }
  0x78   :  { %v2251_v51 = vpack.c.bf16 %v1223_v27, %v1221_v5  ;;  %v1267_v27 = vld [vmem:[%s2549_s1 + $0x260] sm:$0xff] }
  0x79   :  { %466 = vmatpush2.bf16.msra.mxu0 %v2210_v32 }
  0x7a   :  { %629 = vmatpush2.bf16.msra.mxu1 %v1867_v24  ;;  %467 = vmatprep.subr.bf16.mxu0 %v2214_v33  ;;  %v1286_v24 = vld [vmem:[%s2549_s1 + $0x2f8] sm:$0xff] }
  0x7b   :  { %630 = vmatprep.subr.bf16.mxu1 %v1872_v31  ;;  %v1253_v31 = vld [vmem:[%s2550_s0 + $0x10] sm:$0x3f]  ;;  %v724_v41 = vpack.c.bf16 %v1286_v24, %v1284_v29  ;;  %v1264_v29 = vld [vmem:[%s2549_s1 + $0x248] sm:$0xff] }
  0x7c   :  { %v2274_v39 = vpack.c.bf16 %v1253_v31, %v1253_v31  ;;  %v1263_v31 = vld [vmem:[%s2549_s1 + $0x240] sm:$0xff] }
  0x7d   :  { %468 = vmatpush2.bf16.msra.mxu0 %v2230_v37 }
  0x7e   :  { %631 = vmatpush2.bf16.msra.mxu1 %v1899_v48  ;;  %469 = vmatprep.subr.bf16.mxu0 %v2234_v45  ;;  %v1280_v48 = vld [vmem:[%s2549_s1 + $0x2c8] sm:$0xff] }
  0x7f   :  { %632 = vmatprep.subr.bf16.mxu1 %v1903_v53  ;;  %v722_v53 = vpack.c.bf16 %v1282_v26, %v1280_v48  ;;  %v1259_v48 = vld [vmem:[%s2549_s1 + $0x220] sm:$0xff]  ;;  %v1256_v26 = vld [vmem:[%s2549_s1 + $0x208] sm:$0xff] }
  0x81   :  { %470 = vmatpush2.bf16.msra.mxu0 %v2251_v51 }
  0x82   :  { %633 = vmatpush2.bf16.msra.mxu1 %v1924_v2  ;;  %757 = vmatprep.subr.bf16.mxu0 %v724_v41  ;;  %v1278_v2 = vld [vmem:[%s2549_s1 + $0x2b8] sm:$0xff]  ;;  %v1260_v41 = vld [vmem:[%s2549_s1 + $0x228] sm:$0xff] }
  0x83   :  { %902 = vmatprep.subr.bf16.mxu1 %v1928_v11  ;;  %v720_v11 = vpack.c.bf16 %v1278_v2, %v1276_v25  ;;  %v1312_v25 = vld [vmem:[%s2549_s1 + $0x3c8] sm:$0xff] }
  0x84   :  { %472 = vmatmul.mubr.bf16.vlgmr.msra.gmra.mxu0 %v435_v34  ;;  %v1255_v34 = vld [vmem:[%s2549_s1 + $0x200] sm:$0xff] }
  0x85   :  { %635 = vmatmul.mubr.bf16.vlgmr.msra.gmra.mxu1 %v2274_v39  ;;  %758 = vmatpush1.bf16.msra.mxu0 %v723_v6  ;;  %v1316_v6 = vld [vmem:[%s2549_s1 + $0x3e8] sm:$0xff] }
  0x86   :  { %903 = vmatpush1.bf16.msra.mxu1 %v1943_v20  ;;  %759 = vmatprep.subr.bf16.mxu0 %v722_v53  ;;  %v1274_v20 = vld [vmem:[%s2549_s1 + $0x298] sm:$0xff] }
  0x87   :  { %904 = vmatprep.subr.bf16.mxu1 %v1949_v30  ;;  %789 = vmatprep.mubr.bf16.mxu0 %v754_v52  ;;  %v718_v46 = vpack.c.bf16 %v1274_v20, %v1272_v38  ;;  %v1271_v30 = vld [vmem:[%s2549_s1 + $0x280] sm:$0xff]  ;;  %v1304_v38 = vld [vmem:[%s2549_s1 + $0x388] sm:$0xff] }
  0x88   :  { %934 = vmatprep.mubr.bf16.mxu1 %v899_v23  ;;  %v717_v1 = vpack.c.bf16 %v1273_v12, %v1271_v30  ;;  %v1311_v23 = vld [vmem:[%s2549_s1 + $0x3c0] sm:$0xff]  ;;  %v1300_v30 = vld [vmem:[%s2549_s1 + $0x368] sm:$0xff] }
  0x89   :  { %760 = vmatpush1.bf16.msra.mxu0 %v721_v28  ;;  %v1308_v28 = vld [vmem:[%s2549_s1 + $0x3a8] sm:$0xff] }
  0x8a   :  { %905 = vmatpush1.bf16.msra.mxu1 %v1969_v40  ;;  %761 = vmatprep.subr.bf16.mxu0 %v720_v11  ;;  %v1270_v40 = vld [vmem:[%s2549_s1 + $0x278] sm:$0xff] }
  0x8b   :  { %906 = vmatprep.subr.bf16.mxu1 %v1973_v3  ;;  %v716_v5 = vpack.c.bf16 %v1270_v40, %v1268_v14  ;;  %v1269_v3 = vld [vmem:[%s2549_s1 + $0x270] sm:$0xff]  ;;  %v1299_v40 = vld [vmem:[%s2549_s1 + $0x360] sm:$0xff] }
  0x8c   :  { %v715_v24 = vpack.c.bf16 %v1269_v3, %v1267_v27  ;;  %v1295_v3 = vld [vmem:[%s2549_s1 + $0x340] sm:$0xff] }
  0x8d   :  { %762 = vmatpush1.bf16.msra.mxu0 %v719_v44 }
  0x8e   :  { %907 = vmatpush1.bf16.msra.mxu1 %v1990_v49  ;;  %763 = vmatprep.subr.bf16.mxu0 %v718_v46  ;;  %v1266_v49 = vld [vmem:[%s2549_s1 + $0x258] sm:$0xff]  ;;  %v1303_v46 = vld [vmem:[%s2549_s1 + $0x380] sm:$0xff] }
  0x8f   :  { %908 = vmatprep.subr.bf16.mxu1 %v1994_v16  ;;  %v714_v8 = vpack.c.bf16 %v1266_v49, %v1264_v29  ;;  %v1265_v16 = vld [vmem:[%s2549_s1 + $0x250] sm:$0xff]  ;;  %v1292_v29 = vld [vmem:[%s2549_s1 + $0x328] sm:$0xff] }
  0x90   :  { %v713_v43 = vpack.c.bf16 %v1265_v16, %v1263_v31  ;;  %v1288_v31 = vld [vmem:[%s2549_s1 + $0x308] sm:$0xff]  ;;  %v744_v16 = vshll.u32 %v2274_v39, 16 }
  0x91   :  { %764 = vmatpush1.bf16.msra.mxu0 %v717_v1  ;;  %v1296_v1 = vld [vmem:[%s2549_s1 + $0x348] sm:$0xff] }
  0x92   :  { %909 = vmatpush1.bf16.msra.mxu1 %v2010_v58  ;;  %765 = vmatprep.subr.bf16.mxu0 %v716_v5  ;;  %v1262_v58 = vld [vmem:[%s2549_s1 + $0x238] sm:$0xff] }
  0x93   :  { %910 = vmatprep.subr.bf16.mxu1 %v2014_v59  ;;  %v712_v21 = vpack.c.bf16 %v1262_v58, %v1260_v41  ;;  %v1261_v59 = vld [vmem:[%s2549_s1 + $0x230] sm:$0xff] }
  0x94   :  { %v711_v55 = vpack.c.bf16 %v1261_v59, %v1259_v48  ;;  %v746_v48 = vrot.slane %v744_v16, 1 }
  0x95   :  { %766 = vmatpush1.bf16.msra.mxu0 %v715_v24 }
  0x96   :  { %911 = vmatpush1.bf16.msra.mxu1 %v2030_v63  ;;  %767 = vmatprep.subr.bf16.mxu0 %v714_v8  ;;  %v1258_v63 = vld [vmem:[%s2549_s1 + $0x218] sm:$0xff]  ;;  %v1291_v8 = vld [vmem:[%s2549_s1 + $0x320] sm:$0xff] }
  0x97   :  { %912 = vmatprep.subr.bf16.mxu1 %v2034_v4  ;;  %v710_v57 = vpack.c.bf16 %v1258_v63, %v1256_v26  ;;  %v1257_v4 = vld [vmem:[%s2549_s1 + $0x210] sm:$0xff]  ;;  %v898_v26 = vrot.slane %v2274_v39, 1  ;;  %v27_v63 = vlaneseq }
  0x98   :  { %v709_v53 = vpack.c.bf16 %v1257_v4, %v1255_v34 }
  0x99   :  { %768 = vmatpush1.bf16.msra.mxu0 %v713_v43  ;;  %v1289_v43 = vld [vmem:[%s2549_s1 + $0x310] sm:$0xff] }
  0x9a   :  { %913 = vmatpush1.bf16.msra.mxu1 %v2050_v13  ;;  %769 = vmatprep.subr.bf16.mxu0 %v712_v21  ;;  %v1318_v13 = vld [vmem:[%s2549_s1 + $0x3f8] sm:$0xff]  ;;  %v742_v21 = vshrl.u32 %v2274_v39, 16 }
  0x9b   :  { %914 = vmatprep.subr.bf16.mxu1 %v2054_v15  ;;  %v740_v9 = vpack.c.bf16 %v1318_v13, %v1316_v6  ;;  %v1317_v15 = vld [vmem:[%s2549_s1 + $0x3f0] sm:$0xff] }
  0x9c   :  { %v739_v2 = vpack.c.bf16 %v1317_v15, %v1315_v50 }
  0x9d   :  { %770 = vmatpush1.bf16.msra.mxu0 %v711_v55 }
  0x9e   :  { %915 = vmatpush1.bf16.msra.mxu1 %v2070_v19  ;;  %771 = vmatprep.subr.bf16.mxu0 %v710_v57  ;;  %v1314_v19 = vld [vmem:[%s2549_s1 + $0x3d8] sm:$0xff] }
  0x9f   :  { %916 = vmatprep.subr.bf16.mxu1 %v2074_v22  ;;  %v738_v52 = vpack.c.bf16 %v1314_v19, %v1312_v25  ;;  %v1313_v22 = vld [vmem:[%s2549_s1 + $0x3d0] sm:$0xff] }
  0xa0   :  { %v737_v11 = vpack.c.bf16 %v1313_v22, %v1311_v23 }
  0xa1   :  { %772 = vmatpush1.bf16.msra.mxu0 %v709_v53 }
  0xa2   :  { %917 = vmatpush1.bf16.msra.mxu1 %v2090_v35  ;;  %773 = vmatprep.subr.bf16.mxu0 %v740_v9  ;;  %v1310_v35 = vld [vmem:[%s2549_s1 + $0x3b8] sm:$0xff] }
  0xa3   :  { %918 = vmatprep.subr.bf16.mxu1 %v2094_v36  ;;  %v736_v62 = vpack.c.bf16 %v1310_v35, %v1308_v28  ;;  %v1309_v36 = vld [vmem:[%s2549_s1 + $0x3b0] sm:$0xff] }
  0xa4   :  { %v735_v20 = vpack.c.bf16 %v1309_v36, %v1307_v0 }
  0xa5   :  { %774 = vmatpush2.bf16.msra.mxu0 %v739_v2 }
  0xa6   :  { %919 = vmatpush2.bf16.msra.mxu1 %v2110_v42  ;;  %775 = vmatprep.subr.bf16.mxu0 %v738_v52  ;;  %v1306_v42 = vld [vmem:[%s2549_s1 + $0x398] sm:$0xff] }
  0xa7   :  { %920 = vmatprep.subr.bf16.mxu1 %v2114_v47  ;;  %v734_v44 = vpack.c.bf16 %v1306_v42, %v1304_v38  ;;  %v1305_v47 = vld [vmem:[%s2549_s1 + $0x390] sm:$0xff] }
  0xa8   :  { %v733_v12 = vpack.c.bf16 %v1305_v47, %v1303_v46 }
  0xa9   :  { %776 = vmatpush2.bf16.msra.mxu0 %v737_v11 }
  0xaa   :  { %921 = vmatpush2.bf16.msra.mxu1 %v2130_v54  ;;  %777 = vmatprep.subr.bf16.mxu0 %v736_v62  ;;  %v1302_v54 = vld [vmem:[%s2549_s1 + $0x378] sm:$0xff] }
  0xab   :  { %922 = vmatprep.subr.bf16.mxu1 %v2134_v56  ;;  %v732_v14 = vpack.c.bf16 %v1302_v54, %v1300_v30  ;;  %v1301_v56 = vld [vmem:[%s2549_s1 + $0x370] sm:$0xff] }
  0xac   :  { %v731_v5 = vpack.c.bf16 %v1301_v56, %v1299_v40 }
  0xad   :  { %778 = vmatpush2.bf16.msra.mxu0 %v735_v20  ;;  %v490_v20 = vld [vmem:[%s2551_s2] sm:$0x3] }
  0xae   :  { %923 = vmatpush2.bf16.msra.mxu1 %v2150_v60  ;;  %779 = vmatprep.subr.bf16.mxu0 %v734_v44  ;;  %v1298_v60 = vld [vmem:[%s2549_s1 + $0x358] sm:$0xff] }
  0xaf   :  { %924 = vmatprep.subr.bf16.mxu1 %v2154_v61  ;;  %v730_v27 = vpack.c.bf16 %v1298_v60, %v1296_v1  ;;  %v1297_v61 = vld [vmem:[%s2549_s1 + $0x350] sm:$0xff] }
  0xb0   :  { %v729_v49 = vpack.c.bf16 %v1297_v61, %v1295_v3 }
  0xb1   :  { %780 = vmatpush2.bf16.msra.mxu0 %v733_v12 }
  0xb2   :  { %925 = vmatpush2.bf16.msra.mxu1 %v2170_v7  ;;  %781 = vmatprep.subr.bf16.mxu0 %v732_v14  ;;  %v1294_v7 = vld [vmem:[%s2549_s1 + $0x338] sm:$0xff] }
  0xb3   :  { %926 = vmatprep.subr.bf16.mxu1 %v2174_v10  ;;  %v728_v24 = vpack.c.bf16 %v1294_v7, %v1292_v29  ;;  %v1293_v10 = vld [vmem:[%s2549_s1 + $0x330] sm:$0xff] }
  0xb4   :  { %v727_v41 = vpack.c.bf16 %v1293_v10, %v1291_v8 }
  0xb5   :  { %782 = vmatpush2.bf16.msra.mxu0 %v731_v5 }
  0xb6   :  { %927 = vmatpush2.bf16.msra.mxu1 %v2190_v17  ;;  %783 = vmatprep.subr.bf16.mxu0 %v730_v27  ;;  %v1290_v17 = vld [vmem:[%s2549_s1 + $0x318] sm:$0xff] }
  0xb7   :  { %928 = vmatprep.subr.bf16.mxu1 %v2194_v18  ;;  %v726_v58 = vpack.c.bf16 %v1290_v17, %v1288_v31  ;;  %v1287_v18 = vld [vmem:[%s2549_s1 + $0x300] sm:$0xff] }
  0xb8   :  { %v725_v59 = vpack.c.bf16 %v1289_v43, %v1287_v18 }
  0xb9   :  { %784 = vmatpush2.bf16.msra.mxu0 %v729_v49 }
  0xba   :  { %929 = vmatpush2.bf16.msra.mxu1 %v2210_v32  ;;  %785 = vmatprep.subr.bf16.mxu0 %v728_v24  ;;  %v747_v32 = vor.u32 %v746_v48, %v742_v21 }
  0xbb   :  { %930 = vmatprep.subr.bf16.mxu1 %v2214_v33  ;;  %v2488_v33 = vshrl.u32 %v27_v63, 7 }
  0xbd   :  { %786 = vmatpush2.bf16.msra.mxu0 %v727_v41  ;;  %v2491_v55 = vsub.s32 0, %v2488_v33 }
  0xbe   :  { %931 = vmatpush2.bf16.msra.mxu1 %v2230_v37  ;;  %787 = vmatprep.subr.bf16.mxu0 %v726_v58  ;;  %v25_v37 = vld [vmem:[%s2551_s2] sm:$0x3] }
  0xbf   :  { %932 = vmatprep.subr.bf16.mxu1 %v2234_v45  ;;  %v2497_v45 = vsub.s32 1, %v2488_v33  ;;  %v30_v57 = vrot.slane %v25_v37, %v2491_v55  ;;  %v495_v46 = vrot.slane %v490_v20, %v2491_v55 }
  0xc1   :  { %788 = vmatpush2.bf16.msra.mxu0 %v725_v59  ;;  %v34_v39 = vrot.slane %v25_v37, %v2497_v45  ;;  %v499_v54 = vrot.slane %v490_v20, %v2497_v45 }
  0xc2   :  { %933 = vmatpush2.bf16.msra.mxu1 %v2251_v51 }
  0xc4   :  { %790 = vmatmul.mubr.bf16.vlgmr.msra.gmra.mxu0 %v747_v32 }
  0xc5   :  { %935 = vmatmul.mubr.bf16.vlgmr.msra.gmra.mxu1 %v898_v26 }
 0x104   :  { %v171_v51 = vpop.f32.mrf.mxu0 }
 0x105   :  { %v178_v34 = vadd.f32 %v171_v51, %v30_v57  ;;  %v327_v4 = vpop.f32.mrf.mxu1 }
 0x106   :  { %v173_v6 = vpop.f32.mrf.mxu0 }
 0x107   :  { %v334_v13 = vadd.f32 %v327_v4, %v178_v34  ;;  %v179_v53 = vadd.f32 %v173_v6, %v34_v39  ;;  %v329_v9 = vpop.f32.mrf.mxu1 }
 0x108   :  { %v175_v50 = vpop.f32.mrf.mxu0 }
 0x109   :  { %v335_v15 = vadd.f32 %v329_v9, %v179_v53  ;;  %v331_v25 = vpop.f32.mrf.mxu1 }
 0x10a   :  { %v176_v19 = vpop.f32.mrf.mxu0 }
 0x10b   :  { %v332_v2 = vpop.f32.mrf.mxu1 }
 0x144   :  { %v473_v52 = vpop.f32.mrf.mxu0 }
 0x145   :  { %v480_v23 = vadd.f32 %v473_v52, %v334_v13  ;;  %v636_v22 = vpop.f32.mrf.mxu1 }
 0x146   :  { %v475_v28 = vpop.f32.mrf.mxu0  ;;  %v643_v12 = vadd.f32 %v636_v22, %v495_v46 }
 0x147   :  { %v481_v35 = vadd.f32 %v475_v28, %v335_v15  ;;  %v638_v11 = vpop.f32.mrf.mxu1 }
 0x148   :  { %v477_v62 = vpop.f32.mrf.mxu0  ;;  %v644_v1 = vadd.f32 %v638_v11, %v499_v54 }
 0x149   :  { %v2501_v0 = vcombine.low %v480_v23, %v481_v35  ;;  %v640_v36 = vpop.f32.mrf.mxu1  ;;  %v1385_v44 = vcombine.low %v481_v35, %v481_v35 }
 0x14a   :  { %v478_v38 = vpop.f32.mrf.mxu0 }
 0x14b   :  { %v641_v42 = vpop.f32.mrf.mxu1  ;;  %v956_v47 = vsel %vm955_vm0, %v2501_v0, 0.0  ;;  %v963_v30 = vsel %vm955_vm0, %v1385_v44, 0.0 }
 0x14c   :  { %v957_v14 = vrot.slane %v956_v47, 4  ;;  %v964_v40 = vrot.slane %v963_v30, 4 }
 0x14e   :  { %v958_v29 = vadd.f32 %v957_v14, %v956_v47  ;;  %v965_v7 = vadd.f32 %v964_v40, %v963_v30 }
 0x150   :  { %v959_v58 = vrot.slane %v958_v29, 2  ;;  %v966_v18 = vrot.slane %v965_v7, 2 }
 0x152   :  { %v960_v32 = vadd.f32 %v959_v58, %v958_v29  ;;  %v967_v26 = vadd.f32 %v966_v18, %v965_v7 }
 0x154   :  { %v961_v51 = vrot.slane %v960_v32, 1  ;;  %v968_v34 = vrot.slane %v967_v26, 1 }
 0x156   :  { %v962_v9 = vadd.f32 %v961_v51, %v960_v32  ;;  %v969_v50 = vadd.f32 %v968_v34, %v967_v26 }
 0x184   :  { %v791_v56 = vpop.f32.mrf.mxu0 }
 0x185   :  { %v798_v60 = vadd.f32 %v791_v56, %v643_v12  ;;  %v936_v5 = vpop.f32.mrf.mxu1 }
 0x186   :  { %v793_v27 = vpop.f32.mrf.mxu0 }
 0x187   :  { %v799_v3 = vadd.f32 %v793_v27, %v644_v1  ;;  %v938_v61 = vpop.f32.mrf.mxu1  ;;  %v943_v24 = vadd.f32 %v936_v5, %v798_v60 }
 0x188   :  { %v795_v49 = vpop.f32.mrf.mxu0 }
 0x189   :  { %v944_v8 = vadd.f32 %v938_v61, %v799_v3  ;;  %v940_v10 = vpop.f32.mrf.mxu1 }
 0x18a   :  { %v796_v31 = vpop.f32.mrf.mxu0 }
 0x18b   :  { %v2511_v17 = vcombine.low %v943_v24, %v944_v8  ;;  %v1386_v16 = vcombine.low %v944_v8, %v944_v8  ;;  %v941_v41 = vpop.f32.mrf.mxu1 }
 0x18d   :  { %v976_v43 = vsel %vm955_vm0, %v2511_v17, 0.0  ;;  %v983_v21 = vsel %vm955_vm0, %v1386_v16, 0.0 }
 0x18e   :  { %v977_v48 = vrot.slane %v976_v43, 4  ;;  %v984_v59 = vrot.slane %v983_v21, 4 }
 0x190   :  { %v978_v63 = vadd.f32 %v977_v48, %v976_v43  ;;  %v985_v37 = vadd.f32 %v984_v59, %v983_v21 }
 0x192   :  { %v979_v57 = vrot.slane %v978_v63, 2  ;;  %v986_v39 = vrot.slane %v985_v37, 2 }
 0x194   :  { %v980_v4 = vadd.f32 %v979_v57, %v978_v63  ;;  %v987_v6 = vadd.f32 %v986_v39, %v985_v37  ;;  %v1047_v63 = vld [vmem:[%s2552_s3] sm:$0x3]  ;;  %v1392_v37 = vmov 1966171168  }
 0x195   :  { %v1068_v57 = vunpack.c.l.s4 %v1392_v37  ;;  %v1052_v39 = vrot.slane %v1047_v63, %v2491_v55  ;;  %v1056_v51 = vrot.slane %v1047_v63, %v2497_v45 }
 0x196   :  { %v981_v13 = vrot.slane %v980_v4, 1  ;;  %v988_v53 = vrot.slane %v987_v6, 1 }
 0x198   :  { %v982_v15 = vadd.f32 %v981_v13, %v980_v4  ;;  %v989_v25 = vadd.f32 %v988_v53, %v987_v6  ;;  %v1069_v4 = vunpack.c.0.s8 %v1068_v57 }
 0x19a   :  { %v990_v19 = vadd.f32 %v982_v15, %v962_v9  ;;  %v991_v2 = vadd.f32 %v989_v25, %v969_v50  ;;  %v1072_v9 = vsub.s32 %v1069_v4, %v2488_v33 }
 0x19c   :  { %v993_v52 = vmul.f32 0.125, %v990_v19  ;;  %v994_v23 = vmul.f32 0.125, %v991_v2 }
 0x19e   :  { %v997_v22 = vcombine.low %v993_v52, %v994_v23 }
 0x1a0   :  { %v999_v28 = vsub.f32 %v2501_v0, %v997_v22  ;;  %v1020_v35 = vsub.f32 %v2511_v17, %v997_v22 }
 0x1a2   :  { %v1000_v11 = vmul.f32 %v999_v28, %v999_v28  ;;  %v1021_v62 = vmul.f32 %v1020_v35, %v1020_v35 }
 0x1a4   :  { %v1002_v36 = vcombine.high %v1000_v11, %v1000_v11  ;;  %v1004_v38 = vsel %vm955_vm0, %v1000_v11, 0.0  ;;  %v1023_v42 = vcombine.high %v1021_v62, %v1021_v62  ;;  %v1025_v20 = vsel %vm955_vm0, %v1021_v62, 0.0  ;;  %v1061_v11 = vld [vmem:[%s2553_s4] sm:$0x3] }
 0x1a5   :  { %v1005_v44 = vrot.slane %v1004_v38, 4  ;;  %v1026_v46 = vrot.slane %v1025_v20, 4 }
 0x1a6   :  { %v1011_v47 = vsel %vm955_vm0, %v1002_v36, 0.0  ;;  %v1032_v30 = vsel %vm955_vm0, %v1023_v42, 0.0  ;;  %v1108_v42 = vld [vmem:[%s2554_s5] sm:$0xff] }
 0x1a7   :  { %v1006_v54 = vadd.f32 %v1005_v44, %v1004_v38  ;;  %v1012_v12 = vrot.slane %v1011_v47, 4  ;;  %v1027_v14 = vadd.f32 %v1026_v46, %v1025_v20  ;;  %v1033_v40 = vrot.slane %v1032_v30, 4 }
 0x1a9   :  { %v1007_v56 = vrot.slane %v1006_v54, 2  ;;  %v1013_v1 = vadd.f32 %v1012_v12, %v1011_v47  ;;  %v1028_v60 = vrot.slane %v1027_v14, 2  ;;  %v1034_v5 = vadd.f32 %v1033_v40, %v1032_v30 }
 0x1ab   :  { %v1008_v27 = vadd.f32 %v1007_v56, %v1006_v54  ;;  %v1014_v3 = vrot.slane %v1013_v1, 2  ;;  %v1029_v61 = vadd.f32 %v1028_v60, %v1027_v14  ;;  %v1035_v29 = vrot.slane %v1034_v5, 2 }
 0x1ad   :  { %v1009_v7 = vrot.slane %v1008_v27, 1  ;;  %v1015_v49 = vadd.f32 %v1014_v3, %v1013_v1  ;;  %v1030_v24 = vrot.slane %v1029_v61, 1  ;;  %v1036_v8 = vadd.f32 %v1035_v29, %v1034_v5 }
 0x1af   :  { %v1010_v10 = vadd.f32 %v1009_v7, %v1008_v27  ;;  %v1016_v31 = vrot.slane %v1015_v49, 1  ;;  %v1031_v16 = vadd.f32 %v1030_v24, %v1029_v61  ;;  %v1037_v41 = vrot.slane %v1036_v8, 1 }
 0x1b1   :  { %v1017_v58 = vadd.f32 %v1016_v31, %v1015_v49  ;;  %v1038_v18 = vadd.f32 %v1037_v41, %v1036_v8  ;;  %v1039_v43 = vadd.f32 %v1031_v16, %v1010_v10 }
 0x1b3   :  { %v1040_v21 = vadd.f32 %v1038_v18, %v1017_v58  ;;  %v1041_v48 = vmul.f32 0.125, %v1039_v43 }
 0x1b5   :  { %v1042_v59 = vmul.f32 0.125, %v1040_v21  ;;  %v1043_v32 = vadd.f32 1e-05, %v1041_v48 }
 0x1b7   :  { %v1044_v26 = vadd.f32 1e-05, %v1042_v59  ;;  %1388 = vrsqrt.f32 %v1043_v32 }
 0x1b9   :  { %1390 = vrsqrt.f32 %v1044_v26 }
 0x1c4   :  { %v1389_v34 = vpop.eup %1388 }
 0x1c5   :  { %v1059_v6 = vmul.f32 %v1389_v34, %v1052_v39 }
 0x1c6   :  { %v1391_v13 = vpop.eup %1390 }
 0x1c7   :  { %v1060_v53 = vmul.f32 %v1391_v13, %v1056_v51  ;;  %v1062_v50 = vmul.f32 %v1059_v6, %v993_v52  ;;  %v1086_v25 = vrot.slane %v1059_v6, %v2491_v55 }
 0x1c9   :  { %v1063_v15 = vmul.f32 %v1060_v53, %v994_v23  ;;  %v1090_v19 = vrot.slane %v1060_v53, %v2491_v55 }
 0x1cb   :  { %v1066_v2 = vcombine.low %v1062_v50, %v1063_v15  ;;  %v1093_v22 = vcombine.low %v1086_v25, %v1090_v19 }
 0x1cd   :  { %v1073_v28 = vrot.slane %v1066_v2, %v1072_v9  ;;  %v1113_v35 = vmul.f32 %v1093_v22, %v2511_v17  ;;  %v1095_v52 = vmul.f32 %v1093_v22, %v2501_v0  ;;  %v1383_v17 = vld [vmem:[%s2554_s5 + $0x8] sm:$0xff] }
 0x1cf   :  { %v1080_v62 = vrot.slane %v1073_v28, %v1072_v9 }
 0x1d1   :  { %v1082_v36 = vsub.f32 %v1061_v11, %v1080_v62 }
 0x1d3   :  { %v1100_v38 = vrot.slane %v1082_v36, %v2491_v55  ;;  %v1104_v33 = vrot.slane %v1082_v36, %v2497_v45 }
 0x1d5   :  { %v1105_v23 = vcombine.low %v1100_v38, %v1104_v33 }
 0x1d7   :  { %v1107_v20 = vadd.f32 %v1105_v23, %v1095_v52  ;;  %v1114_v44 = vadd.f32 %v1113_v35, %v1105_v23 }
 0x1d9   :  { %v1109_v46 = vadd.f32 %v1108_v42, %v1107_v20  ;;  %v1117_v47 = vadd.f32 %v1383_v17, %v1114_v44 }
 0x1db   :  { %v1110_v30 = vmax.f32 %v1109_v46, 0.0  ;;  %v1118_v54 = vmax.f32 %v1117_v47, 0.0 }
 0x1dd   :  { %1111 = vst [vmem:[%s2555_s6] sm:$0xff] %v1110_v30  ;;  %1384 = vst [vmem:[%s2555_s6 + $0x8] sm:$0xff] %v1118_v54 }

// kernel: generator_forward.47
= control target key start
LH: loop header
LB: loop body
LE: loop exit
PB: predicated region body
PF: predicated region fallthrough
CT: control target
= control target key end

     0   :  { %s932_s12 = smov 0   ;;  %s1207_s0 = inlined_call_operand.vmem [shape: f32[2,1,22,64], index: 0, kind: input, shape index: {}]   ;;  %s1208_s1 = inlined_call_operand.vmem [shape: f32[7,64,128], index: 1, kind: input, shape index: {}]   ;;  %s1209_s2 = inlined_call_operand.vmem [shape: f32[1,128], index: 2, kind: input, shape index: {}]   ;;  %s1210_s3 = inlined_call_operand.vmem [shape: f32[2,16,128], index: 3, kind: output, shape index: {}]  }
   0x1 LB: > { %s701_s13 = sadd.s32 4294967295, %s908_s12   ;;  %p705_p0 = scmp.ge.s32.totalorder %s908_s12, 1  ;;  %s908_s12 = sphi %s932_s12, %s13_s12  }
   0x2   : > { %p137_p1 = scmp.lt.s32.totalorder %s908_s12, 3 }
   0x4   : > { %p138_p2 = pnand %p705_p0, %p137_p1 }
   0x5   : > { %p161_p3 = scmp.lt.s32.totalorder (!%p138_p2), %s701_s13, 1 }
   0x6   : > { %141 = sbr.rel (%p138_p2) target bundleno = 291 (0x123), region = 32 }
   0xb   : > { %v189_v0 = vld [vmem:[%s1208_s1 + $0x30] sm:$0xff]  ;;  %v190_v1 = vld [vmem:[%s1208_s1 + $0x38] sm:$0xff]  ;;  %v910_v3 = vmov 0.0   ;;  %v187_v6 = vld [vmem:[%s1208_s1 + $0x20] sm:$0xff]  ;;  %vm911_vm0 = vmmov 0   ;;  %s1212_s13 = smov (!%p161_p3, %s701_s13), 1 }
   0xc   : > { %v717_v2 = vld [vmem:[%s1208_s1 + $0x70] sm:$0xff]  ;;  %803 = vmatprep.subr.bf16.mxu0 %v910_v3  ;;  %v195_v4 = vpack.c.bf16 %v190_v1, %v189_v0  ;;  %815 = vmatprep.subr.bf16.mxu1 %v910_v3  ;;  %v718_v5 = vld [vmem:[%s1208_s1 + $0x78] sm:$0xff]  ;;  %v188_v7 = vld [vmem:[%s1208_s1 + $0x28] sm:$0xff]  ;;  %s887_s7 = smul.u32 24, %s1212_s13  ;;  %vm257_vm1 = vsmask.f32 7424 }
   0xd   : > { %v256_v8 = vpack.c.bf16 %v718_v5, %v717_v2  ;;  %v715_v9 = vld [vmem:[%s1208_s1 + $0x60] sm:$0xff]  ;;  %v716_v10 = vld [vmem:[%s1208_s1 + $0x68] sm:$0xff]  ;;  %811 = vmatprep.mubr.msk.bf16.mxu0 %vm911_vm0, %v910_v3  ;;  %823 = vmatprep.mubr.msk.bf16.mxu1 %vm911_vm0, %v910_v3  ;;  %v194_v11 = vpack.c.bf16 %v188_v7, %v187_v6  ;;  %v185_v13 = vld [vmem:[%s1208_s1 + $0x10] sm:$0xff]  ;;  %vm196_vm2 = vcmask 523264   ;;  %vm330_vm3 = vcmask 1046528   ;;  %s767_s5 = sshll.u32 %s1212_s13, 4 }
   0xe   : > { %804 = vmatpush3.bf16.msra.mxu0 %v195_v4  ;;  %v255_v12 = vpack.c.bf16 %v716_v10, %v715_v9  ;;  %v186_v14 = vld [vmem:[%s1208_s1 + $0x18] sm:$0xff]  ;;  %v713_v15 = vld [vmem:[%s1208_s1 + $0x50] sm:$0xff]  ;;  %s165_s16 = scalar_lea.vmem %s1207_s0, %s887_s7  ;;  %v183_v22 = vld [vmem:[%s1208_s1] sm:$0xff]  ;;  %vm393_vm4 = vsmask.f32 6400  ;;  %vm462_vm5 = vcmask 1045504   ;;  %s170_s8 = scalar_lea.vmem %s1210_s3, %s767_s5 }
   0xf   : > { %816 = vmatpush3.bf16.msra.mxu1 %v256_v8  ;;  %805 = vmatprep.subr.bf16.mxu0 %v910_v3  ;;  %v714_v16 = vld [vmem:[%s1208_s1 + $0x58] sm:$0xff]  ;;  %v193_v17 = vpack.c.bf16 %v186_v14, %v185_v13  ;;  %v172_v18 = vld [vmem:[%s165_s16] sm:$0xff]  ;;  %v173_v19 = vld [vmem:[%s165_s16 + $0x8] sm:$0xff]  ;;  %vm525_vm6 = vsmask.f32 5376  ;;  %vm592_vm7 = vcmask 1044480  }
  0x10   : > { %817 = vmatprep.subr.bf16.mxu1 %v910_v3  ;;  %v174_v20 = vld [vmem:[%s165_s16 + $0x10] sm:$0x3f]  ;;  %v254_v21 = vpack.c.bf16 %v714_v16, %v713_v15  ;;  %v184_v23 = vld [vmem:[%s1208_s1 + $0x8] sm:$0xff]  ;;  %v997_v24 = vpack.c.bf16 %v173_v19, %v172_v18  ;;  %v711_v26 = vld [vmem:[%s1208_s1 + $0x40] sm:$0xff] }
  0x11   : > { %v999_v25 = vpack.c.bf16 %v174_v20, %v174_v20  ;;  %v712_v27 = vld [vmem:[%s1208_s1 + $0x48] sm:$0xff]  ;;  %v192_v31 = vpack.c.bf16 %v184_v23, %v183_v22  ;;  %v726_v33 = vld [vmem:[%s1208_s1 + $0xb0] sm:$0xff]  ;;  %v727_v34 = vld [vmem:[%s1208_s1 + $0xb8] sm:$0xff] }
  0x12   : > { %806 = vmatpush3.bf16.msra.mxu0 %v194_v11  ;;  %v1009_v28 = vshrl.u32 %v997_v24, 16  ;;  %v1012_v29 = vshll.u32 %v997_v24, 16  ;;  %v253_v32 = vpack.c.bf16 %v712_v27, %v711_v26  ;;  %v735_v37 = vld [vmem:[%s1208_s1 + $0xf0] sm:$0xff]  ;;  %v736_v38 = vld [vmem:[%s1208_s1 + $0xf8] sm:$0xff]  ;;  %v327_v40 = vpack.c.bf16 %v727_v34, %v726_v33  ;;  %v724_v43 = vld [vmem:[%s1208_s1 + $0xa0] sm:$0xff] }
  0x13   : > { %818 = vmatpush3.bf16.msra.mxu1 %v255_v12  ;;  %807 = vmatprep.subr.bf16.mxu0 %v910_v3  ;;  %v1015_v30 = vshll.u32 %v999_v25, 16  ;;  %v392_v42 = vpack.c.bf16 %v736_v38, %v735_v37  ;;  %v725_v44 = vld [vmem:[%s1208_s1 + $0xa8] sm:$0xff]  ;;  %v733_v45 = vld [vmem:[%s1208_s1 + $0xe0] sm:$0xff]  ;;  %v722_v48 = vld [vmem:[%s1208_s1 + $0x90] sm:$0xff]  ;;  %v397_v53 = vshrl.u32 %v999_v25, 16  ;;  %v331_v1 = vrot.slane %v997_v24, 1 }
  0x14   : > { %819 = vmatprep.subr.bf16.mxu1 %v910_v3  ;;  %v262_v35 = vrot.slane %v1012_v29, 1  ;;  %v734_v46 = vld [vmem:[%s1208_s1 + $0xe8] sm:$0xff]  ;;  %v326_v47 = vpack.c.bf16 %v725_v44, %v724_v43  ;;  %v723_v50 = vld [vmem:[%s1208_s1 + $0x98] sm:$0xff]  ;;  %v731_v51 = vld [vmem:[%s1208_s1 + $0xd0] sm:$0xff]  ;;  %v394_v58 = vrot.slane %v1009_v28, 1  ;;  %v395_v59 = vrot.slane %v1012_v29, 2 }
  0x15   : > { %v267_v36 = vrot.slane %v1015_v30, 1  ;;  %v391_v49 = vpack.c.bf16 %v734_v46, %v733_v45  ;;  %v732_v52 = vld [vmem:[%s1208_s1 + $0xd8] sm:$0xff]  ;;  %v325_v54 = vpack.c.bf16 %v723_v50, %v722_v48  ;;  %v720_v56 = vld [vmem:[%s1208_s1 + $0x80] sm:$0xff]  ;;  %v721_v57 = vld [vmem:[%s1208_s1 + $0x88] sm:$0xff]  ;;  %v399_v60 = vrot.slane %v397_v53, 1 }
  0x16   : > { %808 = vmatpush3.bf16.msra.mxu0 %v193_v17  ;;  %v263_v39 = vor.u32 %v262_v35, %v1009_v28  ;;  %v390_v55 = vpack.c.bf16 %v732_v52, %v731_v51  ;;  %v400_v61 = vrot.slane %v1015_v30, 2  ;;  %v729_v62 = vld [vmem:[%s1208_s1 + $0xc0] sm:$0xff]  ;;  %v730_v63 = vld [vmem:[%s1208_s1 + $0xc8] sm:$0xff]  ;;  %v324_v0 = vpack.c.bf16 %v721_v57, %v720_v56  ;;  %v744_v5 = vld [vmem:[%s1208_s1 + $0x130] sm:$0xff] }
  0x17   : > { %820 = vmatpush3.bf16.msra.mxu1 %v254_v21  ;;  %809 = vmatprep.subr.bf16.mxu0 %v910_v3  ;;  %v332_v2 = vrot.slane %v999_v25, 1  ;;  %v389_v4 = vpack.c.bf16 %v730_v63, %v729_v62  ;;  %v745_v6 = vld [vmem:[%s1208_s1 + $0x138] sm:$0xff]  ;;  %v396_v7 = vor.u32 %v395_v59, %v394_v58  ;;  %v753_v9 = vld [vmem:[%s1208_s1 + $0x170] sm:$0xff]  ;;  %v742_v15 = vld [vmem:[%s1208_s1 + $0x120] sm:$0xff]  ;;  %v526_v34 = vrot.slane %v1009_v28, 2 }
  0x18   : > { %821 = vmatprep.subr.bf16.mxu1 %v910_v3  ;;  %v268_v41 = vsel %vm257_vm1, %v263_v39, %v267_v36  ;;  %v401_v8 = vor.u32 %v400_v61, %v399_v60  ;;  %v754_v10 = vld [vmem:[%s1208_s1 + $0x178] sm:$0xff]  ;;  %v461_v12 = vpack.c.bf16 %v745_v6, %v744_v5  ;;  %v743_v16 = vld [vmem:[%s1208_s1 + $0x128] sm:$0xff]  ;;  %v751_v17 = vld [vmem:[%s1208_s1 + $0x160] sm:$0xff]  ;;  %v527_v35 = vrot.slane %v1012_v29, 3 }
  0x19   : > { %v333_v11 = vsel %vm330_vm3, %v331_v1, %v332_v2  ;;  %v524_v14 = vpack.c.bf16 %v754_v10, %v753_v9  ;;  %v752_v18 = vld [vmem:[%s1208_s1 + $0x168] sm:$0xff]  ;;  %v460_v19 = vpack.c.bf16 %v743_v16, %v742_v15  ;;  %v740_v20 = vld [vmem:[%s1208_s1 + $0x110] sm:$0xff]  ;;  %v741_v22 = vld [vmem:[%s1208_s1 + $0x118] sm:$0xff]  ;;  %v529_v36 = vrot.slane %v397_v53, 2 }
  0x1a   : > { %810 = vmatpush3.bf16.msra.mxu0 %v192_v31  ;;  %v402_v13 = vsel %vm393_vm4, %v396_v7, %v401_v8  ;;  %v523_v21 = vpack.c.bf16 %v752_v18, %v751_v17  ;;  %v749_v23 = vld [vmem:[%s1208_s1 + $0x150] sm:$0xff]  ;;  %v750_v26 = vld [vmem:[%s1208_s1 + $0x158] sm:$0xff]  ;;  %v459_v27 = vpack.c.bf16 %v741_v22, %v740_v20  ;;  %v739_v33 = vld [vmem:[%s1208_s1 + $0x108] sm:$0xff]  ;;  %v530_v37 = vrot.slane %v1015_v30, 3 }
  0x1b   : > { %822 = vmatpush3.bf16.msra.mxu1 %v253_v32  ;;  %827 = vmatprep.subr.bf16.mxu0 %v910_v3  ;;  %v522_v31 = vpack.c.bf16 %v750_v26, %v749_v23  ;;  %v738_v32 = vld [vmem:[%s1208_s1 + $0x100] sm:$0xff]  ;;  %v748_v39 = vld [vmem:[%s1208_s1 + $0x148] sm:$0xff]  ;;  %v463_v28 = vrot.slane %v997_v24, 2  ;;  %v464_v29 = vrot.slane %v999_v25, 2  ;;  %v528_v43 = vor.u32 %v527_v35, %v526_v34  ;;  %v758_v51 = vld [vmem:[%s1208_s1 + $0x190] sm:$0xff] }
  0x1c   : > { %839 = vmatprep.subr.bf16.mxu1 %v910_v3  ;;  %v747_v38 = vld [vmem:[%s1208_s1 + $0x140] sm:$0xff]  ;;  %v531_v44 = vor.u32 %v530_v37, %v529_v36  ;;  %v759_v52 = vld [vmem:[%s1208_s1 + $0x198] sm:$0xff]  ;;  %v593_v57 = vrot.slane %v997_v24, 3  ;;  %v594_v58 = vrot.slane %v999_v25, 3 }
  0x1d   : > { %812 = vmatmul.mubr.msk.bf16.vlgmr.msra.gmra.mxu0 %vm196_vm2, %v997_v24  ;;  %v521_v30 = vpack.c.bf16 %v748_v39, %v747_v38  ;;  %v465_v45 = vsel %vm462_vm5, %v463_v28, %v464_v29  ;;  %v760_v48 = vld [vmem:[%s1208_s1 + $0x1a0] sm:$0xff]  ;;  %v589_v53 = vpack.c.bf16 %v759_v52, %v758_v51 }
  0x1e   : > { %828 = vmatpush3.bf16.msra.mxu0 %v327_v40  ;;  %824 = vmatmul.mubr.msk.bf16.vlgmr.msra.gmra.mxu1 %vm196_vm2, %v268_v41  ;;  %v458_v40 = vpack.c.bf16 %v739_v33, %v738_v32  ;;  %v762_v41 = vld [vmem:[%s1208_s1 + $0x1b0] sm:$0xff]  ;;  %v595_v59 = vsel %vm592_vm7, %v593_v57, %v594_v58  ;;  %v709_v10 = vld [vmem:[%s1209_s2] ss:$0 sm:$0xff] }
  0x1f   : > { %840 = vmatpush3.bf16.msra.mxu1 %v392_v42  ;;  %829 = vmatprep.subr.bf16.mxu0 %v910_v3  ;;  %v763_v42 = vld [vmem:[%s1208_s1 + $0x1b8] sm:$0xff] }
  0x20   : > { %841 = vmatprep.subr.bf16.mxu1 %v910_v3  ;;  %835 = vmatprep.mubr.msk.bf16.mxu0 %vm911_vm0, %v910_v3  ;;  %v591_v46 = vpack.c.bf16 %v763_v42, %v762_v41 }
  0x21   : > { %847 = vmatprep.mubr.msk.bf16.mxu1 %vm911_vm0, %v910_v3 }
  0x22   : > { %830 = vmatpush3.bf16.msra.mxu0 %v326_v47  ;;  %v532_v47 = vsel %vm525_vm6, %v528_v43, %v531_v44 }
  0x23   : > { %842 = vmatpush3.bf16.msra.mxu1 %v391_v49  ;;  %831 = vmatprep.subr.bf16.mxu0 %v910_v3  ;;  %v761_v49 = vld [vmem:[%s1208_s1 + $0x1a8] sm:$0xff] }
  0x24   : > { %843 = vmatprep.subr.bf16.mxu1 %v910_v3  ;;  %v590_v50 = vpack.c.bf16 %v761_v49, %v760_v48 }
  0x26   : > { %832 = vmatpush3.bf16.msra.mxu0 %v325_v54  ;;  %v756_v54 = vld [vmem:[%s1208_s1 + $0x180] sm:$0xff] }
  0x27   : > { %844 = vmatpush3.bf16.msra.mxu1 %v390_v55  ;;  %833 = vmatprep.subr.bf16.mxu0 %v910_v3  ;;  %v757_v55 = vld [vmem:[%s1208_s1 + $0x188] sm:$0xff] }
  0x28   : > { %845 = vmatprep.subr.bf16.mxu1 %v910_v3  ;;  %v588_v56 = vpack.c.bf16 %v757_v55, %v756_v54 }
  0x2a   : > { %834 = vmatpush3.bf16.msra.mxu0 %v324_v0 }
  0x2b   : > { %846 = vmatpush3.bf16.msra.mxu1 %v389_v4  ;;  %851 = vmatprep.subr.bf16.mxu0 %v910_v3 }
  0x2c   : > { %863 = vmatprep.subr.bf16.mxu1 %v910_v3 }
  0x2d   : > { %836 = vmatmul.mubr.msk.bf16.vlgmr.msra.gmra.mxu0 %vm196_vm2, %v333_v11 }
  0x2e   : > { %852 = vmatpush3.bf16.msra.mxu0 %v461_v12  ;;  %848 = vmatmul.mubr.msk.bf16.vlgmr.msra.gmra.mxu1 %vm196_vm2, %v402_v13 }
  0x2f   : > { %864 = vmatpush3.bf16.msra.mxu1 %v524_v14  ;;  %853 = vmatprep.subr.bf16.mxu0 %v910_v3 }
  0x30   : > { %865 = vmatprep.subr.bf16.mxu1 %v910_v3  ;;  %859 = vmatprep.mubr.msk.bf16.mxu0 %vm911_vm0, %v910_v3 }
  0x31   : > { %871 = vmatprep.mubr.msk.bf16.mxu1 %vm911_vm0, %v910_v3 }
  0x32   : > { %854 = vmatpush3.bf16.msra.mxu0 %v460_v19 }
  0x33   : > { %866 = vmatpush3.bf16.msra.mxu1 %v523_v21  ;;  %855 = vmatprep.subr.bf16.mxu0 %v910_v3 }
  0x34   : > { %867 = vmatprep.subr.bf16.mxu1 %v910_v3 }
  0x36   : > { %856 = vmatpush3.bf16.msra.mxu0 %v459_v27 }
  0x37   : > { %868 = vmatpush3.bf16.msra.mxu1 %v522_v31  ;;  %857 = vmatprep.subr.bf16.mxu0 %v910_v3 }
  0x38   : > { %869 = vmatprep.subr.bf16.mxu1 %v910_v3 }
  0x3a   : > { %858 = vmatpush3.bf16.msra.mxu0 %v458_v40 }
  0x3b   : > { %870 = vmatpush3.bf16.msra.mxu1 %v521_v30  ;;  %875 = vmatprep.subr.bf16.mxu0 %v910_v3 }
  0x3d   : > { %860 = vmatmul.mubr.msk.bf16.vlgmr.msra.gmra.mxu0 %vm196_vm2, %v465_v45 }
  0x3e   : > { %876 = vmatpush3.bf16.msra.mxu0 %v591_v46  ;;  %872 = vmatmul.mubr.msk.bf16.vlgmr.msra.gmra.mxu1 %vm196_vm2, %v532_v47 }
  0x3f   : > { %877 = vmatprep.subr.bf16.mxu0 %v910_v3  ;;  %883 = vmatprep.mubr.msk.bf16.mxu0 %vm911_vm0, %v910_v3 }
  0x42   : > { %878 = vmatpush3.bf16.msra.mxu0 %v590_v50 }
  0x43   : > { %879 = vmatprep.subr.bf16.mxu0 %v910_v3 }
  0x46   : > { %880 = vmatpush3.bf16.msra.mxu0 %v589_v53 }
  0x47   : > { %881 = vmatprep.subr.bf16.mxu0 %v910_v3 }
  0x4a   : > { %882 = vmatpush3.bf16.msra.mxu0 %v588_v56 }
  0x4d   : > { %884 = vmatmul.mubr.msk.bf16.vlgmr.msra.gmra.mxu0 %vm196_vm2, %v595_v59 }
  0xdd   : > { %v234_v60 = vpop.f32.mrf.mxu0 }
  0xde   : > { %v306_v61 = vpop.f32.mrf.mxu1  ;;  %v241_v11 = vadd.f32 %v709_v10, %v234_v60 }
  0xdf   : > { %v813_v62 = vpop.f32.mrf.mxu0 }
  0xe0   : > { %v825_v63 = vpop.f32.mrf.mxu1  ;;  %v313_v15 = vadd.f32 %v306_v61, %v241_v11 }
  0xe1   : > { %v237_v0 = vpop.f32.mrf.mxu0 }
  0xe2   : > { %v309_v1 = vpop.f32.mrf.mxu1  ;;  %v242_v16 = vadd.f32 %v709_v10, %v237_v0 }
  0xe3   : > { %v814_v2 = vpop.f32.mrf.mxu0 }
  0xe4   : > { %v826_v4 = vpop.f32.mrf.mxu1  ;;  %v314_v22 = vadd.f32 %v309_v1, %v242_v16 }
  0xed   : > { %v371_v5 = vpop.f32.mrf.mxu0 }
  0xee   : > { %v440_v6 = vpop.f32.mrf.mxu1  ;;  %v378_v19 = vadd.f32 %v371_v5, %v313_v15 }
  0xef   : > { %v837_v24 = vpop.f32.mrf.mxu0 }
  0xf0   : > { %v849_v7 = vpop.f32.mrf.mxu1  ;;  %v447_v26 = vadd.f32 %v440_v6, %v378_v19 }
  0xf1   : > { %v374_v25 = vpop.f32.mrf.mxu0 }
  0xf2   : > { %v443_v8 = vpop.f32.mrf.mxu1  ;;  %v379_v27 = vadd.f32 %v374_v25, %v314_v22 }
  0xf3   : > { %v838_v3 = vpop.f32.mrf.mxu0 }
  0xf4   : > { %v850_v9 = vpop.f32.mrf.mxu1  ;;  %v448_v32 = vadd.f32 %v443_v8, %v379_v27 }
  0xfd   : > { %v503_v12 = vpop.f32.mrf.mxu0 }
  0xfe   : > { %v570_v13 = vpop.f32.mrf.mxu1  ;;  %v510_v31 = vadd.f32 %v503_v12, %v447_v26 }
  0xff   : > { %v861_v14 = vpop.f32.mrf.mxu0 }
 0x100   : > { %v873_v17 = vpop.f32.mrf.mxu1  ;;  %v577_v33 = vadd.f32 %v570_v13, %v510_v31 }
 0x101   : > { %v506_v18 = vpop.f32.mrf.mxu0 }
 0x102   : > { %v573_v20 = vpop.f32.mrf.mxu1  ;;  %v511_v34 = vadd.f32 %v506_v18, %v448_v32 }
 0x103   : > { %v862_v21 = vpop.f32.mrf.mxu0 }
 0x104   : > { %v874_v23 = vpop.f32.mrf.mxu1  ;;  %v578_v38 = vadd.f32 %v573_v20, %v511_v34 }
 0x10d   : > { %v633_v35 = vpop.f32.mrf.mxu0 }
 0x10e   : > { %v640_v36 = vadd.f32 %v633_v35, %v577_v33 }
 0x10f   : > { %v885_v37 = vpop.f32.mrf.mxu0 }
 0x110   : > { %898 = vtanh.f32 %v640_v36 }
 0x111   : > { %v636_v39 = vpop.f32.mrf.mxu0 }
 0x112   : > { %v641_v40 = vadd.f32 %v636_v39, %v578_v38 }
 0x113   : > { %v886_v28 = vpop.f32.mrf.mxu0 }
 0x114   : > { %900 = vtanh.f32 %v641_v40 }
 0x11d   : > { %v899_v29 = vpop.eup %898 }
 0x11e   : > { %644 = vst [vmem:[%s170_s8] sm:$0xff] %v899_v29 }
 0x121   : > { %v901_v30 = vpop.eup %900 }
 0x122   : > { %645 = vst [vmem:[%s170_s8 + $0x8] sm:$0xff] %v901_v30 }
 0x123 PF: > { %s13_s12 = sadd.s32 1, %s908_s12  }
 0x124   : > { %p10_p4 = scmp.ge.s32.totalorder %s13_s12, 4  }
 0x126   :  { %12 = sbr.rel (!%p10_p4) target bundleno = 1 (0x1), region = 68 }

</bundles_post_ra>
